<compile_context>
chip_gen: v7x
topology: tpu7x:2x2x1
jax: 0.10.0
libtpu: 0.0.40
codegen_flags: <defaults>
</compile_context>

<pallas_src>
import functools

import numpy as np
import jax
import jax.numpy as jnp
from jax.experimental import pallas as pl
from jax.experimental.pallas import tpu as pltpu


# ----------------------------------------------------------------------------
# Anchor generation (plain numpy glue, mirrors generate_anchors semantics)
# ----------------------------------------------------------------------------
def generate_anchors(strides, anchor_sizes, aspect_ratios, alloc_size):
    all_anchors = []
    for stride, sizes in zip(strides, anchor_sizes):
        base = []
        for s in sizes:
            for r in aspect_ratios:
                w = s * np.sqrt(r)
                h = s / np.sqrt(r)
                base.append([-w / 2.0, -h / 2.0, w / 2.0, h / 2.0])
        base = np.asarray(base, np.float32)                      # (A, 4)
        Ha, Wa = alloc_size
        xs = (np.arange(Wa, dtype=np.float32) + 0.5) * stride
        ys = (np.arange(Ha, dtype=np.float32) + 0.5) * stride
        cx = np.broadcast_to(xs[None, :], (Ha, Wa))
        cy = np.broadcast_to(ys[:, None], (Ha, Wa))
        shifts = np.stack([cx, cy, cx, cy], axis=-1)             # (Ha, Wa, 4)
        anchors = shifts[:, :, None, :] + base[None, None, :, :]  # (Ha, Wa, A, 4)
        all_anchors.append(anchors.astype(np.float32))
    return all_anchors


def _round_up(v, m):
    return (v + m - 1) // m * m


def _num_row_blocks(total_rows):
    """1 grid step on single-TC chips (v5e/v6e); 2 parallel blocks on v7x."""
    try:
        kind = jax.devices()[0].device_kind.lower()
    except Exception:
        kind = ""
    n = 2 if ("v7" in kind or "7x" in kind) else 1
    if n > 1 and (total_rows % n != 0 or (total_rows // n) % 8 != 0):
        n = 1
    return n


# ----------------------------------------------------------------------------
# Fused Pallas kernel:
#   im2col 3x3 conv (+ReLU) -> fused 1x1 cls/box head -> decode / clip / filter
# One grid step == one block of B*H*W rows; everything stays in VMEM/registers.
# ----------------------------------------------------------------------------
def rpn_fused_kernel(p_ref, anc_ref, w3_ref, b3_ref, wh_ref, bh_ref, out_ref,
                     *, GA, img_h, img_w, min_area):
    # ---- 3x3 conv (padding=1) as ONE big-K bf16 matmul, f32 accumulation ----
    h = jnp.dot(p_ref[...], w3_ref[...], preferred_element_type=jnp.float32)
    h = jnp.maximum(h + b3_ref[...], 0.0).astype(jnp.bfloat16)

    # ---- fused box + objectness heads: one lane-dense (Cmid, 128) matmul ----
    # column layout: [dx | dy | dw | dh | cls | 0...], each group = GA lanes
    # (the decoder's stds/means are already folded into wh_ref / bh_ref).
    head = jnp.dot(h, wh_ref[...], preferred_element_type=jnp.float32)
    head = head + bh_ref[...]

    dxy = head[:, 0:2 * GA]            # [dx | dy]   (16-lane span)
    dwh = head[:, 2 * GA:4 * GA]       # [dw | dh]
    logit = head[:, 4 * GA:5 * GA]     # [cls]

    anc = anc_ref[...]
    c_xy = anc[:, 0:2 * GA]            # [acx | acy]
    a_wh = anc[:, 2 * GA:4 * GA]       # [aw  | ah ]

    # ---- decode on paired 16-lane spans ----
    pc = dxy * a_wh + c_xy
    half = 0.5 * jnp.exp(dwh) * a_wh

    # BBoxClipToImageSize with a per-lane bound: img_w in x lanes, img_h in y
    bound = jnp.concatenate(
        [jnp.full((1, GA), img_w, jnp.float32),
         jnp.full((1, GA), img_h, jnp.float32)], axis=1)
    c1 = jnp.clip(pc - half, 0.0, bound)       # [x1 | y1]
    c2 = jnp.clip(pc + half, 0.0, bound)       # [x2 | y2]

    # BBoxSizeFilter + sigmoid objectness
    wh = c2 - c1
    area = wh[:, 0:GA] * wh[:, GA:2 * GA]
    score = jnp.where(area >= min_area, jax.nn.sigmoid(logit), -1.0)

    # ---- single lane-dense 128-wide store: [x1|y1|x2|y2|score|0...] ----
    rows, outw = out_ref.shape
    pieces = [c1, c2, score]
    pad_w = outw - 5 * GA
    if pad_w > 0:
        pieces.append(jnp.zeros((rows, pad_w), jnp.float32))
    out_ref[...] = jnp.concatenate(pieces, axis=1)


def rpn_head_decode_pallas(patches, anc_rows, w3, b3, whead, bhead, *,
                           GA, img_h, img_w, min_area, n_row_blocks):
    R, K = patches.shape
    Cmid = w3.shape[1]
    OUTW = whead.shape[1]
    RB = R // n_row_blocks

    kern = functools.partial(
        rpn_fused_kernel, GA=GA, img_h=float(img_h), img_w=float(img_w),
        min_area=float(min_area))

    cost = pl.CostEstimate(
        flops=2 * R * (K * Cmid + Cmid * OUTW),
        transcendentals=R * 3 * GA,
        bytes_accessed=int(R * K * 2 + anc_rows.size * 4 + w3.size * 2 +
                           b3.size * 4 + whead.size * 2 + bhead.size * 4 +
                           R * OUTW * 4))

    out = pl.pallas_call(
        kern,
        out_shape=jax.ShapeDtypeStruct((R, OUTW), jnp.float32),
        grid_spec=pltpu.PrefetchScalarGridSpec(
            num_scalar_prefetch=0,
            grid=(n_row_blocks,),
            in_specs=[
                # im2col activation slab, one row-block per grid step
                pl.BlockSpec((RB, K), lambda i: (i, 0)),
                # anchors (center-form, GA-lane coordinate groups)
                pl.BlockSpec((RB, 4 * GA), lambda i: (i, 0)),
                # 3x3 conv weight as a single 2-D matrix / bias
                pl.BlockSpec((K, Cmid), lambda i: (0, 0)),
                pl.BlockSpec((1, Cmid), lambda i: (0, 0)),
                # fused lane-padded cls+box head weight / bias
                pl.BlockSpec((Cmid, OUTW), lambda i: (0, 0)),
                pl.BlockSpec((1, OUTW), lambda i: (0, 0)),
            ],
            out_specs=pl.BlockSpec((RB, OUTW), lambda i: (i, 0)),
        ),
        compiler_params=pltpu.CompilerParams(
            dimension_semantics=("parallel",),
            vmem_limit_bytes=48 * 1024 * 1024,
        ),
        cost_estimate=cost,
    )(patches, anc_rows, w3, b3, whead, bhead)
    return out


# ----------------------------------------------------------------------------
# RPN forward (inference path)
# ----------------------------------------------------------------------------
def rpn_forward_test(x_nchw, params, anchors_stage, stride, min_area,
                     topk_pre_nms, nms_thresh,
                     stds=(1.0, 1.0, 1.0, 1.0), means=(0.0, 0.0, 0.0, 0.0)):
    B, Cin, H, W = x_nchw.shape
    A = params["wc"].shape[1]
    Cmid = params["w3"].shape[-1]
    GA = _round_up(A, 8)                       # per-group lane padding
    OUTW = max(128, _round_up(5 * GA, 128))    # lane-dense head / output width
    HW = H * W
    N = HW * A
    R = B * HW

    # ---- glue: NCHW -> padded NHWC bf16 -> one (B*HW, 9*Cin) im2col slab ----
    # TODO(synk): at production FPN sizes switch to a kx-stacked
    # (B, H+2, W, 3*Cin) input + a row-tile grid axis to avoid the 9x im2col
    # HBM blow-up and v7x's 64 MiB VMEM ceiling.
    x = jnp.transpose(x_nchw, (0, 2, 3, 1)).astype(jnp.float32)
    xp = jnp.pad(x, ((0, 0), (1, 1), (1, 1), (0, 0))).astype(jnp.bfloat16)
    cols = [xp[:, ky:ky + H, kx:kx + W, :]
            for ky in range(3) for kx in range(3)]
    patches = jnp.concatenate(cols, axis=-1).reshape(R, 9 * Cin)

    # ---- 3x3 conv weight as ONE 2-D (9*Cin, Cmid) bf16 matrix ----
    w3 = params["w3"].reshape(9 * Cin, Cmid).astype(jnp.bfloat16)
    b3 = params["b3"].reshape(1, Cmid).astype(jnp.float32)

    # ---- fused, lane-padded box + objectness head ----
    # column layout [dx | dy | dw | dh | cls], each group padded to GA lanes,
    # whole thing padded to OUTW lanes.  Decoder stds/means folded in here.
    def pad_cols(m, width):
        return jnp.pad(m, ((0, 0), (0, width - m.shape[1])))

    wc, wb = params["wc"], params["wb"]
    bc, bb = params["bc"], params["bb"]
    groups_w = [wb[:, c::4] * stds[c] for c in range(4)] + [wc]
    groups_b = [bb[c::4] * stds[c] + means[c] for c in range(4)] + [bc]
    whead = jnp.concatenate([pad_cols(g, GA) for g in groups_w], axis=1)
    whead = pad_cols(whead, OUTW).astype(jnp.bfloat16)
    bhead = jnp.concatenate([jnp.pad(g, (0, GA - A)) for g in groups_b])
    bhead = jnp.pad(bhead, (0, OUTW - 5 * GA)).reshape(1, OUTW).astype(jnp.float32)

    # ---- anchors: center form [acx|acy|aw|ah] GA-lane groups, tiled over B ----
    anc = np.asarray(anchors_stage[:H, :W], np.float32).reshape(HW, A, 4)
    aw_ = anc[..., 2] - anc[..., 0]
    ah_ = anc[..., 3] - anc[..., 1]
    acx = anc[..., 0] + 0.5 * aw_
    acy = anc[..., 1] + 0.5 * ah_

    def grp(v):
        return np.pad(v, ((0, 0), (0, GA - A)))

    anc_slab = np.concatenate([grp(acx), grp(acy), grp(aw_), grp(ah_)], axis=1)
    anc_rows = jnp.asarray(np.tile(anc_slab, (B, 1)), jnp.float32)  # (R, 4*GA)

    # ---- fused Pallas kernel ----
    n_blocks = _num_row_blocks(R)
    out = rpn_head_decode_pallas(
        patches, anc_rows, w3, b3, whead, bhead,
        GA=GA, img_h=H * stride, img_w=W * stride, min_area=min_area,
        n_row_blocks=n_blocks)

    # ---- unpack lane-dense output slab ----
    out3 = out.reshape(B, HW, OUTW)
    x1 = out3[:, :, 0 * GA:0 * GA + A]
    y1 = out3[:, :, 1 * GA:1 * GA + A]
    x2 = out3[:, :, 2 * GA:2 * GA + A]
    y2 = out3[:, :, 3 * GA:3 * GA + A]
    proposals = jnp.stack([x1, y1, x2, y2], axis=-1).reshape(B, N, 4)
    scores = out3[:, :, 4 * GA:4 * GA + A].reshape(B, N)

    # ---- _select_proposals: per-level pre-NMS top-k (single level here) ----
    k = min(topk_pre_nms, N)
    top_scores, top_idx = jax.lax.top_k(scores, k)
    top_props = jnp.take_along_axis(proposals, top_idx[..., None], axis=1)

    # TODO(synk): torchvision.ops.batched_nms + post-NMS top-k produce ragged,
    # data-dependent shapes with no clean Pallas/TPU equivalent; the pre-NMS
    # top-k proposals/scores are returned instead.
    return {
        "proposals": top_props,
        "scores": top_scores,
        "all_proposals": proposals,
        "all_scores": scores,
        "anchor_sizes": None,
        "strides": (stride,),
    }


# ----------------------------------------------------------------------------
# Pure-JAX reference (same math / same bf16 casts, no Pallas) for sanity check.
# ----------------------------------------------------------------------------
def rpn_reference(x_nchw, params, anchors_stage, stride, min_area):
    B, Cin, H, W = x_nchw.shape
    A = params["wc"].shape[1]
    N = H * W * A
    x = jnp.transpose(x_nchw, (0, 2, 3, 1)).astype(jnp.float32)
    xp = jnp.pad(x, ((0, 0), (1, 1), (1, 1), (0, 0))).astype(jnp.bfloat16)
    cols = [xp[:, ky:ky + H, kx:kx + W, :] for ky in range(3) for kx in range(3)]
    patches = jnp.stack(cols, axis=3).reshape(B * H * W, 9 * Cin)
    w3 = params["w3"].reshape(9 * Cin, -1).astype(jnp.bfloat16)
    h = jnp.dot(patches, w3, preferred_element_type=jnp.float32) + params["b3"]
    h = jnp.maximum(h, 0.0).astype(jnp.bfloat16)
    cls = jnp.dot(h, params["wc"].astype(jnp.bfloat16),
                  preferred_element_type=jnp.float32) + params["bc"]
    box = jnp.dot(h, params["wb"].astype(jnp.bfloat16),
                  preferred_element_type=jnp.float32) + params["bb"]
    deltas = box.reshape(B, N, 4)
    anchors = jnp.asarray(anchors_stage[:H, :W].reshape(N, 4), jnp.float32)[None]
    aw = anchors[..., 2] - anchors[..., 0]
    ah = anchors[..., 3] - anchors[..., 1]
    acx = anchors[..., 0] + 0.5 * aw
    acy = anchors[..., 1] + 0.5 * ah
    pcx = deltas[..., 0] * aw + acx
    pcy = deltas[..., 1] * ah + acy
    pw = jnp.exp(deltas[..., 2]) * aw
    ph = jnp.exp(deltas[..., 3]) * ah
    x1 = jnp.clip(pcx - 0.5 * pw, 0.0, W * stride)
    y1 = jnp.clip(pcy - 0.5 * ph, 0.0, H * stride)
    x2 = jnp.clip(pcx + 0.5 * pw, 0.0, W * stride)
    y2 = jnp.clip(pcy + 0.5 * ph, 0.0, H * stride)
    proposals = jnp.stack([x1, y1, x2, y2], axis=-1)
    area = (x2 - x1) * (y2 - y1)
    scores = jnp.where(area >= min_area, jax.nn.sigmoid(cls.reshape(B, N)), -1.0)
    return proposals, scores


# ----------------------------------------------------------------------------
if __name__ == "__main__":
    # module config (single FPN stage)
    B, Cin, H, W = 2, 32, 16, 16
    anchor_sizes = ((32.0, 64.0),)
    aspect_ratios = (0.5, 1.0, 2.0)
    strides = (16,)
    alloc_size = (32, 32)
    proposal_min_area = 25.0
    topk_pre_nms_test = 300
    nms_thresh = 0.7
    A = len(anchor_sizes[0]) * len(aspect_ratios)    # 6 anchors per location
    Cmid = Cin                                       # StandardRPNHead keeps width

    anchors_per_stage = generate_anchors(strides, anchor_sizes, aspect_ratios,
                                         alloc_size)

    # deterministic synthetic parameters (shapes implied by StandardRPNHead)
    key = jax.random.PRNGKey(0)
    k_x, k1, k2, k3, k4, k5, k6 = jax.random.split(key, 7)
    params = {
        "w3": 0.05 * jax.random.normal(k1, (3, 3, Cin, Cmid), jnp.float32),
        "b3": 0.01 * jax.random.normal(k2, (Cmid,), jnp.float32),
        "wc": 0.05 * jax.random.normal(k3, (Cmid, A), jnp.float32),
        "bc": 0.01 * jax.random.normal(k4, (A,), jnp.float32),
        "wb": 0.05 * jax.random.normal(k5, (Cmid, 4 * A), jnp.float32),
        "bb": 0.01 * jax.random.normal(k6, (4 * A,), jnp.float32),
    }

    x = jax.random.normal(k_x, (B, Cin, H, W), jnp.float32)   # NCHW like PyTorch

    out = rpn_forward_test(x, params, anchors_per_stage[0], strides[0],
                           proposal_min_area, topk_pre_nms_test, nms_thresh)
    jax.block_until_ready(out["proposals"])
    jax.block_until_ready(out["scores"])

    # sanity check against pure-JAX reference (same bf16 inputs, f32 accum)
    ref_props, ref_scores = rpn_reference(x, params, anchors_per_stage[0],
                                          strides[0], proposal_min_area)
    assert out["proposals"].shape == (B, topk_pre_nms_test, 4)
    assert out["scores"].shape == (B, topk_pre_nms_test)
    assert bool(jnp.all(jnp.isfinite(out["proposals"])))

    props_k = np.asarray(out["all_proposals"])
    props_r = np.asarray(ref_props)
    np.testing.assert_allclose(props_k, props_r, rtol=5e-3, atol=5e-2)

    # scores: exclude boxes whose area sits numerically on the min-area
    # threshold (the filter decision there is not bitwise reproducible).
    area_r = (props_r[..., 2] - props_r[..., 0]) * (props_r[..., 3] - props_r[..., 1])
    safe = np.abs(area_r - proposal_min_area) > 1e-2
    np.testing.assert_allclose(np.asarray(out["all_scores"])[safe],
                               np.asarray(ref_scores)[safe],
                               rtol=5e-3, atol=1e-2)

    print("KERNEL_OK")
</pallas_src>

<mosaic_0001>
module attributes {stable_mosaic.version = 11 : i64} {
  func.func @rpn_fused_kernel(%arg0: i32, %arg1: memref<512x288xbf16, #tpu.memory_space<vmem>>, %arg2: memref<512x32xf32, #tpu.memory_space<vmem>>, %arg3: memref<288x32xbf16, #tpu.memory_space<vmem>>, %arg4: memref<1x32xf32, #tpu.memory_space<vmem>>, %arg5: memref<32x128xbf16, #tpu.memory_space<vmem>>, %arg6: memref<1x128xf32, #tpu.memory_space<vmem>>, %arg7: memref<512x128xf32, #tpu.memory_space<vmem>>) attributes {dimension_semantics = [#tpu.dimension_semantics<parallel>], iteration_bounds = array<i64: 1>, scalar_prefetch = 0 : i64, scratch_operands = 0 : i64, tpu.core_type = #tpu.core_type<tc>, window_params = [{transform_indices = @transform_0, window_bounds = array<i64: 512, 288>}, {transform_indices = @transform_1, window_bounds = array<i64: 512, 32>}, {pipeline_mode = #tpu.pipeline_mode<synchronous>, transform_indices = @transform_2, window_bounds = array<i64: 288, 32>}, {pipeline_mode = #tpu.pipeline_mode<synchronous>, transform_indices = @transform_3, window_bounds = array<i64: 1, 32>}, {pipeline_mode = #tpu.pipeline_mode<synchronous>, transform_indices = @transform_4, window_bounds = array<i64: 32, 128>}, {pipeline_mode = #tpu.pipeline_mode<synchronous>, transform_indices = @transform_5, window_bounds = array<i64: 1, 128>}, {transform_indices = @transform_6, window_bounds = array<i64: 512, 128>}]} {
    %c0 = arith.constant 0 : index
    %c0_0 = arith.constant 0 : index
    %0 = vector.load %arg1[%c0, %c0_0] : memref<512x288xbf16, #tpu.memory_space<vmem>>, vector<512x288xbf16>
    %c0_1 = arith.constant 0 : index
    %c0_2 = arith.constant 0 : index
    %1 = vector.load %arg3[%c0_1, %c0_2] : memref<288x32xbf16, #tpu.memory_space<vmem>>, vector<288x32xbf16>
    %cst = arith.constant dense<0.000000e+00> : vector<512x32xf32>
    %2 = tpu.matmul %0, %1, %cst {dimension_numbers = #tpu.dot_dimension_numbers<[1], [0], [0], [1], [0, 0, 1, 1], [], []>} : vector<512x288xbf16>, vector<288x32xbf16>, vector<512x32xf32> -> vector<512x32xf32>
    %c0_3 = arith.constant 0 : index
    %c0_4 = arith.constant 0 : index
    %3 = vector.load %arg4[%c0_3, %c0_4] : memref<1x32xf32, #tpu.memory_space<vmem>>, vector<1x32xf32>
    %4 = vector.broadcast %3 : vector<1x32xf32> to vector<512x32xf32>
    %5 = arith.addf %2, %4 : vector<512x32xf32>
    %cst_5 = arith.constant 0.000000e+00 : f32
    %6 = vector.broadcast %cst_5 : f32 to vector<512x32xf32>
    %7 = arith.maximumf %5, %6 : vector<512x32xf32>
    %8 = arith.truncf %7 : vector<512x32xf32> to vector<512x32xbf16>
    %c0_6 = arith.constant 0 : index
    %c0_7 = arith.constant 0 : index
    %9 = vector.load %arg5[%c0_6, %c0_7] : memref<32x128xbf16, #tpu.memory_space<vmem>>, vector<32x128xbf16>
    %cst_8 = arith.constant dense<0.000000e+00> : vector<512x128xf32>
    %10 = tpu.matmul %8, %9, %cst_8 {dimension_numbers = #tpu.dot_dimension_numbers<[1], [0], [0], [1], [0, 0, 1, 1], [], []>} : vector<512x32xbf16>, vector<32x128xbf16>, vector<512x128xf32> -> vector<512x128xf32>
    %c0_9 = arith.constant 0 : index
    %c0_10 = arith.constant 0 : index
    %11 = vector.load %arg6[%c0_9, %c0_10] : memref<1x128xf32, #tpu.memory_space<vmem>>, vector<1x128xf32>
    %12 = vector.broadcast %11 : vector<1x128xf32> to vector<512x128xf32>
    %13 = arith.addf %10, %12 : vector<512x128xf32>
    %14 = vector.extract_strided_slice %13 {offsets = [0, 0], sizes = [512, 16], strides = [1, 1]} : vector<512x128xf32> to vector<512x16xf32>
    %15 = vector.extract_strided_slice %13 {offsets = [0, 16], sizes = [512, 16], strides = [1, 1]} : vector<512x128xf32> to vector<512x16xf32>
    %16 = vector.extract_strided_slice %13 {offsets = [0, 32], sizes = [512, 8], strides = [1, 1]} : vector<512x128xf32> to vector<512x8xf32>
    %c0_11 = arith.constant 0 : index
    %c0_12 = arith.constant 0 : index
    %17 = vector.load %arg2[%c0_11, %c0_12] : memref<512x32xf32, #tpu.memory_space<vmem>>, vector<512x32xf32>
    %18 = vector.extract_strided_slice %17 {offsets = [0, 0], sizes = [512, 16], strides = [1, 1]} : vector<512x32xf32> to vector<512x16xf32>
    %19 = vector.extract_strided_slice %17 {offsets = [0, 16], sizes = [512, 16], strides = [1, 1]} : vector<512x32xf32> to vector<512x16xf32>
    %20 = arith.mulf %14, %19 : vector<512x16xf32>
    %21 = arith.addf %20, %18 : vector<512x16xf32>
    %22 = math.exp %15 : vector<512x16xf32>
    %cst_13 = arith.constant 5.000000e-01 : f32
    %23 = vector.broadcast %cst_13 : f32 to vector<512x16xf32>
    %24 = arith.mulf %23, %22 : vector<512x16xf32>
    %25 = arith.mulf %24, %19 : vector<512x16xf32>
    %cst_14 = arith.constant 2.560000e+02 : f32
    %26 = vector.broadcast %cst_14 : f32 to vector<1x8xf32>
    %cst_15 = arith.constant 2.560000e+02 : f32
    %27 = vector.broadcast %cst_15 : f32 to vector<1x8xf32>
    %28 = tpu.concatenate %26, %27 in 1 : vector<1x8xf32>, vector<1x8xf32> -> vector<1x16xf32>
    %29 = arith.subf %21, %25 : vector<512x16xf32>
    %cst_16 = arith.constant 0.000000e+00 : f32
    %30 = vector.broadcast %cst_16 : f32 to vector<512x16xf32>
    %31 = arith.maximumf %30, %29 : vector<512x16xf32>
    %32 = vector.broadcast %28 : vector<1x16xf32> to vector<512x16xf32>
    %33 = arith.minimumf %32, %31 : vector<512x16xf32>
    %34 = arith.addf %21, %25 : vector<512x16xf32>
    %cst_17 = arith.constant 0.000000e+00 : f32
    %35 = vector.broadcast %cst_17 : f32 to vector<512x16xf32>
    %36 = arith.maximumf %35, %34 : vector<512x16xf32>
    %37 = vector.broadcast %28 : vector<1x16xf32> to vector<512x16xf32>
    %38 = arith.minimumf %37, %36 : vector<512x16xf32>
    %39 = arith.subf %38, %33 : vector<512x16xf32>
    %40 = vector.extract_strided_slice %39 {offsets = [0, 0], sizes = [512, 8], strides = [1, 1]} : vector<512x16xf32> to vector<512x8xf32>
    %41 = vector.extract_strided_slice %39 {offsets = [0, 8], sizes = [512, 8], strides = [1, 1]} : vector<512x16xf32> to vector<512x8xf32>
    %42 = arith.mulf %40, %41 : vector<512x8xf32>
    %cst_18 = arith.constant 2.500000e+01 : f32
    %43 = vector.broadcast %cst_18 : f32 to vector<512x8xf32>
    %44 = arith.cmpf oge, %42, %43 : vector<512x8xf32>
    %45 = arith.negf %16 : vector<512x8xf32>
    %46 = math.exp %45 : vector<512x8xf32>
    %cst_19 = arith.constant 1.000000e+00 : f32
    %47 = vector.broadcast %cst_19 : f32 to vector<512x8xf32>
    %48 = arith.addf %47, %46 : vector<512x8xf32>
    %49 = arith.divf %47, %48 : vector<512x8xf32>
    %cst_20 = arith.constant -1.000000e+00 : f32
    %50 = vector.broadcast %cst_20 : f32 to vector<512x8xf32>
    %51 = arith.select %44, %49, %50 : vector<512x8xi1>, vector<512x8xf32>
    %cst_21 = arith.constant 0.000000e+00 : f32
    %52 = vector.broadcast %cst_21 : f32 to vector<512x88xf32>
    %53 = tpu.concatenate %33, %38, %51, %52 in 1 : vector<512x16xf32>, vector<512x16xf32>, vector<512x8xf32>, vector<512x88xf32> -> vector<512x128xf32>
    %c0_22 = arith.constant 0 : index
    %c0_23 = arith.constant 0 : index
    %54 = vector.load %arg7[%c0_22, %c0_23] : memref<512x128xf32, #tpu.memory_space<vmem>>, vector<512x128xf32>
    tpu.vector_store %arg7[%c0_22, %c0_23], %53 {strides = array<i32>} : memref<512x128xf32, #tpu.memory_space<vmem>>, vector<512x128xf32>,
    return
  }
  func.func @transform_0(%arg0: i32) -> (i32, i32) {
    %c0_i32 = arith.constant 0 : i32
    %c0_i32_0 = arith.constant 0 : i32
    return %arg0, %c0_i32 : i32, i32
  }
  func.func @transform_1(%arg0: i32) -> (i32, i32) {
    %c0_i32 = arith.constant 0 : i32
    %c0_i32_0 = arith.constant 0 : i32
    return %arg0, %c0_i32 : i32, i32
  }
  func.func @transform_2(%arg0: i32) -> (i32, i32) {
    %c0_i32 = arith.constant 0 : i32
    %c0_i32_0 = arith.constant 0 : i32
    %c0_i32_1 = arith.constant 0 : i32
    return %c0_i32, %c0_i32_0 : i32, i32
  }
  func.func @transform_3(%arg0: i32) -> (i32, i32) {
    %c0_i32 = arith.constant 0 : i32
    %c0_i32_0 = arith.constant 0 : i32
    %c0_i32_1 = arith.constant 0 : i32
    return %c0_i32, %c0_i32_0 : i32, i32
  }
  func.func @transform_4(%arg0: i32) -> (i32, i32) {
    %c0_i32 = arith.constant 0 : i32
    %c0_i32_0 = arith.constant 0 : i32
    %c0_i32_1 = arith.constant 0 : i32
    return %c0_i32, %c0_i32_0 : i32, i32
  }
  func.func @transform_5(%arg0: i32) -> (i32, i32) {
    %c0_i32 = arith.constant 0 : i32
    %c0_i32_0 = arith.constant 0 : i32
    %c0_i32_1 = arith.constant 0 : i32
    return %c0_i32, %c0_i32_0 : i32, i32
  }
  func.func @transform_6(%arg0: i32) -> (i32, i32) {
    %c0_i32 = arith.constant 0 : i32
    %c0_i32_0 = arith.constant 0 : i32
    return %arg0, %c0_i32 : i32, i32
  }
}

</mosaic_0001>

<bundles_post_ra>
// kernel: tpu_custom_call.1
= control target key start
LH: loop header
LB: loop body
LE: loop exit
PB: predicated region body
PF: predicated region fallthrough
CT: control target
= control target key end

     0   :  { %v6390_v1 = vmov 0   ;;  %vm784_vm0 = vcmask 261120   ;;  %s10444_s0 = inlined_call_operand.vmem [shape: bf16[512,288], index: 0, kind: input, shape index: {}]   ;;  %s10445_s1 = inlined_call_operand.vmem [shape: f32[512,32], index: 1, kind: input, shape index: {}]   ;;  %s10446_s2 = inlined_call_operand.vmem [shape: bf16[288,32], index: 2, kind: input, shape index: {}]   ;;  %s10447_s3 = inlined_call_operand.vmem [shape: f32[1,32], index: 3, kind: input, shape index: {}]   ;;  %s10448_s4 = inlined_call_operand.vmem [shape: bf16[32,128], index: 4, kind: input, shape index: {}]   ;;  %s10449_s5 = inlined_call_operand.vmem [shape: f32[1,128], index: 5, kind: input, shape index: {}]   ;;  %s10450_s6 = inlined_call_operand.hbm [shape: f32[512,128], index: 6, kind: output, shape index: {}]  }
   0x1   :  { %v5707_v0 = vld [vmem:[%s10446_s2] sm:$0xff]   ;;  %881 = vmatprep.subr.bf16.mxu0 %v6390_v1  ;;  %v5708_v2 = vld [vmem:[%s10446_s2 + $0x8] sm:$0xff]   ;;  %v5709_v3 = vld [vmem:[%s10446_s2 + $0x10] sm:$0xff]  }
   0x2   :  { %882 = vmatpush1.bf16.msra.mxu0 %v5707_v0  ;;  %v5710_v4 = vld [vmem:[%s10446_s2 + $0x18] sm:$0xff]   ;;  %v5711_v5 = vld [vmem:[%s10446_s2 + $0x20] sm:$0xff]   ;;  %v5724_v7 = vld [vmem:[%s10446_s2 + $0x88] sm:$0xff]  }
   0x3   :  { %883 = vmatprep.subr.bf16.mxu0 %v6390_v1  ;;  %v5722_v6 = vld [vmem:[%s10446_s2 + $0x80] sm:$0xff]   ;;  %v5712_v8 = vld [vmem:[%s10446_s2 + $0x28] sm:$0xff]   ;;  %v5713_v12 = vld [vmem:[%s10446_s2 + $0x30] sm:$0xff]  }
   0x4   :  { %5562 = vmatprep.subr.bf16.mxu1 %v5722_v6  ;;  %v5727_v9 = vld [vmem:[%s10444_s0 + $0x4] ss:$12 sps:$4 sm:$0xff]   ;;  %v5728_v10 = vld [vmem:[%s10444_s0 + $0x8] ss:$12 sps:$4 sm:$0xff]   ;;  %v5729_v11 = vld [vmem:[%s10444_s0 + $0x20] ss:$12 sps:$4 sm:$0xff]  }
   0x5   :  { %5563 = vmatpush3.bf16.msra.mxu1 %v5722_v6  ;;  %913 = vmatprep.mubr.bf16.mxu0 %v5727_v9  ;;  %v5736_v13 = vld [vmem:[%s10444_s0 + $0x38] ss:$12 sps:$4 sm:$0xff]   ;;  %v5737_v16 = vld [vmem:[%s10444_s0 + $0x50] ss:$12 sps:$4 sm:$0xff]   ;;  %v5744_v17 = vld [vmem:[%s10444_s0 + $0x68] ss:$12 sps:$4 sm:$0xff]  }
   0x6   :  { %884 = vmatpush1.bf16.msra.mxu0 %v5708_v2  ;;  %5564 = vmatprep.subr.bf16.mxu1 %v5724_v7  ;;  %v5714_v14 = vld [vmem:[%s10446_s2 + $0x38] sm:$0xff]   ;;  %v5715_v15 = vld [vmem:[%s10446_s2 + $0x40] sm:$0xff]   ;;  %v5716_v18 = vld [vmem:[%s10446_s2 + $0x48] sm:$0xff]  }
   0x7   :  { %885 = vmatprep.subr.bf16.mxu0 %v6390_v1  ;;  %5566 = vmatprep.mubr.msk.bf16.mxu1 %vm784_vm0, %v5728_v10  ;;  %v5717_v19 = vld [vmem:[%s10446_s2 + $0x50] sm:$0xff]   ;;  %v5745_v20 = vld [vmem:[%s10444_s0 + $0x80] ss:$12 sps:$4 sm:$0xff]   ;;  %v5752_v21 = vld [vmem:[%s10444_s0 + $0x98] ss:$12 sps:$4 sm:$0xff]  }
   0x8   :  { %v5718_v22 = vld [vmem:[%s10446_s2 + $0x58] sm:$0xff]   ;;  %v5719_v23 = vld [vmem:[%s10446_s2 + $0x60] sm:$0xff]   ;;  %v5760_v25 = vld [vmem:[%s10444_s0 + $0xc8] ss:$12 sps:$4 sm:$0xff]  }
   0x9   :  { %5565 = vmatpush3.bf16.msra.mxu1 %v5724_v7  ;;  %v5753_v24 = vld [vmem:[%s10444_s0 + $0xb0] ss:$12 sps:$4 sm:$0xff]   ;;  %v5720_v26 = vld [vmem:[%s10446_s2 + $0x68] sm:$0xff]   ;;  %v5778_v27 = vld [vmem:[%s10448_s4] sm:$0xff]  }
   0xa   :  { %886 = vmatpush1.bf16.msra.mxu0 %v5709_v3  ;;  %v5721_v28 = vld [vmem:[%s10446_s2 + $0x70] sm:$0xff]   ;;  %5630 = vmatprep.subr.bf16.mxu1 %v5778_v27  ;;  %v5761_v29 = vld [vmem:[%s10444_s0 + $0xe0] ss:$12 sps:$4 sm:$0xff]   ;;  %v5768_v30 = vld [vmem:[%s10444_s0 + $0xf8] ss:$12 sps:$4 sm:$0xff]  }
   0xb   :  { %887 = vmatprep.subr.bf16.mxu0 %v6390_v1  ;;  %v5723_v31 = vld [vmem:[%s10446_s2 + $0x78] sm:$0xff]   ;;  %v5725_v32 = vld [vmem:[%s10444_s0] ss:$12 sps:$4 sm:$0xff]   ;;  %v5776_v35 = vld [vmem:[%s10444_s0 + $0x128] ss:$12 sps:$4 sm:$0xff]  }
   0xc   :  { %5567 = vmatmul.mubr.msk.bf16.vlgmr.msra.gmra.mrb[0].mxu1 %vm784_vm0, %v5729_v11  ;;  %v5769_v33 = vld [vmem:[%s10444_s0 + $0x110] ss:$12 sps:$4 sm:$0xff]   ;;  %v5732_v36 = vld [vmem:[%s10444_s0 + $0x18] ss:$12 sps:$4 sm:$0xff]   ;;  %v5777_v37 = vld [vmem:[%s10444_s0 + $0x140] ss:$12 sps:$4 sm:$0xff]  }
   0xd   :  { %5570 = vmatprep.mubr.msk.bf16.mxu1 %vm784_vm0, %v5736_v13  ;;  %5631 = vmatpush3.bf16.msra.mxu1 %v5778_v27  ;;  %v5730_v34 = vld [vmem:[%s10444_s0 + $0x1c] ss:$12 sps:$4 sm:$0xff]   ;;  %v5733_v38 = vld [vmem:[%s10444_s0 + $0x34] ss:$12 sps:$4 sm:$0xff]   ;;  %v5785_v39 = vld [vmem:[%s10444_s0 + $0x158] ss:$12 sps:$4 sm:$0xff]  }
   0xe   :  { %888 = vmatpush1.bf16.msra.mxu0 %v5710_v4  ;;  %v5735_v40 = vld [vmem:[%s10444_s0 + $0x30] ss:$12 sps:$4 sm:$0xff]   ;;  %v5738_v42 = vld [vmem:[%s10444_s0 + $0x4c] ss:$12 sps:$4 sm:$0xff]   ;;  %v5795_v43 = vld [vmem:[%s10444_s0 + $0x188] ss:$12 sps:$4 sm:$0xff]  }
   0xf   :  { %889 = vmatprep.subr.bf16.mxu0 %v6390_v1  ;;  %v5786_v41 = vld [vmem:[%s10444_s0 + $0x170] ss:$12 sps:$4 sm:$0xff]  }
  0x12   :  { %890 = vmatpush1.bf16.msra.mxu0 %v5711_v5 }
  0x13   :  { %891 = vmatprep.subr.bf16.mxu0 %v6390_v1 }
  0x14   :  { %5571 = vmatmul.mubr.msk.bf16.gmra.mrb[4].mxu1 %vm784_vm0, %v5737_v16 }
  0x15   :  { %5574 = vmatprep.mubr.msk.bf16.mxu1 %vm784_vm0, %v5744_v17 }
  0x16   :  { %892 = vmatpush1.bf16.msra.mxu0 %v5712_v8 }
  0x17   :  { %893 = vmatprep.subr.bf16.mxu0 %v6390_v1 }
  0x1a   :  { %894 = vmatpush1.bf16.msra.mxu0 %v5713_v12 }
  0x1b   :  { %895 = vmatprep.subr.bf16.mxu0 %v6390_v1 }
  0x1c   :  { %5575 = vmatmul.mubr.msk.bf16.gmra.mrb[8].mxu1 %vm784_vm0, %v5745_v20 }
  0x1d   :  { %5578 = vmatprep.mubr.msk.bf16.mxu1 %vm784_vm0, %v5752_v21 }
  0x1e   :  { %896 = vmatpush1.bf16.msra.mxu0 %v5714_v14 }
  0x1f   :  { %897 = vmatprep.subr.bf16.mxu0 %v6390_v1 }
  0x22   :  { %898 = vmatpush1.bf16.msra.mxu0 %v5715_v15 }
  0x23   :  { %899 = vmatprep.subr.bf16.mxu0 %v6390_v1 }
  0x24   :  { %5579 = vmatmul.mubr.msk.bf16.gmra.mrb[12].mxu1 %vm784_vm0, %v5753_v24 }
  0x25   :  { %5582 = vmatprep.mubr.msk.bf16.mxu1 %vm784_vm0, %v5760_v25 }
  0x26   :  { %900 = vmatpush1.bf16.msra.mxu0 %v5716_v18 }
  0x27   :  { %901 = vmatprep.subr.bf16.mxu0 %v6390_v1 }
  0x2a   :  { %902 = vmatpush1.bf16.msra.mxu0 %v5717_v19 }
  0x2b   :  { %903 = vmatprep.subr.bf16.mxu0 %v6390_v1 }
  0x2c   :  { %5583 = vmatmul.mubr.msk.bf16.gmra.mrb[16].mxu1 %vm784_vm0, %v5761_v29 }
  0x2d   :  { %5586 = vmatprep.mubr.msk.bf16.mxu1 %vm784_vm0, %v5768_v30 }
  0x2e   :  { %904 = vmatpush1.bf16.msra.mxu0 %v5718_v22 }
  0x2f   :  { %905 = vmatprep.subr.bf16.mxu0 %v6390_v1 }
  0x32   :  { %906 = vmatpush1.bf16.msra.mxu0 %v5719_v23 }
  0x33   :  { %907 = vmatprep.subr.bf16.mxu0 %v6390_v1 }
  0x34   :  { %5587 = vmatmul.mubr.msk.bf16.gmra.mrb[20].mxu1 %vm784_vm0, %v5769_v33 }
  0x35   :  { %5590 = vmatprep.mubr.msk.bf16.mxu1 %vm784_vm0, %v5776_v35 }
  0x36   :  { %908 = vmatpush1.bf16.msra.mxu0 %v5720_v26 }
  0x37   :  { %909 = vmatprep.subr.bf16.mxu0 %v6390_v1 }
  0x3a   :  { %910 = vmatpush1.bf16.msra.mxu0 %v5721_v28 }
  0x3b   :  { %911 = vmatprep.subr.bf16.mxu0 %v6390_v1 }
  0x3c   :  { %5591 = vmatmul.mubr.msk.bf16.gmra.mrb[24].mxu1 %vm784_vm0, %v5777_v37 }
  0x3d   :  { %5594 = vmatprep.mubr.msk.bf16.mxu1 %vm784_vm0, %v5785_v39 }
  0x3e   :  { %912 = vmatpush1.bf16.msra.mxu0 %v5723_v31 }
  0x41   :  { %914 = vmatmul.mubr.bf16.vlgmr.msra.gmra.mrb[0].mxu0 %v5725_v32 }
  0x42   :  { %921 = vmatprep.mubr.bf16.mxu0 %v5730_v34 }
  0x44   :  { %5595 = vmatmul.mubr.msk.bf16.gmra.mrb[28].mxu1 %vm784_vm0, %v5786_v41 }
  0x49   :  { %922 = vmatmul.mubr.bf16.gmra.mrb[4].mxu0 %v5732_v36 }
  0x4a   :  { %929 = vmatprep.mubr.bf16.mxu0 %v5733_v38 }
  0x51   :  { %930 = vmatmul.mubr.bf16.gmra.mrb[8].mxu0 %v5735_v40 }
  0x52   :  { %11 = vsyncpa [#allocation3], 0  ;;  %937 = vmatprep.mubr.bf16.mxu0 %v5738_v42  ;;  %5598 = vmatprep.mubr.msk.bf16.mxu1 %vm784_vm0, %v5795_v43  ;;  %v5740_v44 = vld [vmem:[%s10444_s0 + $0x48] ss:$12 sps:$4 sm:$0xff]   ;;  %v5797_v45 = vld [vmem:[%s10444_s0 + $0x1a0] ss:$12 sps:$4 sm:$0xff]  }
  0x53   :  { %v5741_v46 = vld [vmem:[%s10444_s0 + $0x64] ss:$12 sps:$4 sm:$0xff]   ;;  %5599 = vmatmul.mubr.msk.bf16.gmra.mrb[32].mxu1 %vm784_vm0, %v5797_v45  ;;  %v5743_v48 = vld [vmem:[%s10444_s0 + $0x60] ss:$12 sps:$4 sm:$0xff]   ;;  %v5746_v50 = vld [vmem:[%s10444_s0 + $0x7c] ss:$12 sps:$4 sm:$0xff]  }
  0x54   :  { %v5803_v47 = vld [vmem:[%s10444_s0 + $0x1b8] ss:$12 sps:$4 sm:$0xff]   ;;  %v5805_v49 = vld [vmem:[%s10444_s0 + $0x1d0] ss:$12 sps:$4 sm:$0xff]   ;;  %v5809_v51 = vld [vmem:[%s10448_s4 + $0x8] sm:$0xff]   ;;  %s6391_s7 = smov 112  }
  0x55   :  { %5602 = vmatprep.mubr.msk.bf16.mxu1 %vm784_vm0, %v5803_v47  ;;  %v5812_v52 = vld [vmem:[%s10444_s0 + $0x1e8] ss:$12 sps:$4 sm:$0xff]   ;;  %5632 = vmatprep.subr.bf16.mxu1 %v5809_v51  ;;  %v5748_v53 = vld [vmem:[%s10444_s0 + $0x78] ss:$12 sps:$4 sm:$0xff]   ;;  %v5814_v55 = vld [vmem:[%s10444_s0 + $0x200] ss:$12 sps:$4 sm:$0xff]  }
  0x56   :  { %5633 = vmatpush3.bf16.msra.mxu1 %v5809_v51  ;;  %v5749_v54 = vld [vmem:[%s10444_s0 + $0x94] ss:$12 sps:$4 sm:$0xff]   ;;  %v5751_v56 = vld [vmem:[%s10444_s0 + $0x90] ss:$12 sps:$4 sm:$0xff]   ;;  %v5754_v57 = vld [vmem:[%s10444_s0 + $0xac] ss:$12 sps:$4 sm:$0xff]  }
  0x57   :  { %v5820_v58 = vld [vmem:[%s10444_s0 + $0x218] ss:$12 sps:$4 sm:$0xff]   ;;  %v5756_v59 = vld [vmem:[%s10444_s0 + $0xa8] ss:$12 sps:$4 sm:$0xff]   ;;  %v5822_v61 = vld [vmem:[%s10444_s0 + $0x230] ss:$12 sps:$4 sm:$0xff]  }
  0x58   :  { %v5757_v60 = vld [vmem:[%s10444_s0 + $0xc4] ss:$12 sps:$4 sm:$0xff]   ;;  %v5759_v62 = vld [vmem:[%s10444_s0 + $0xc0] ss:$12 sps:$4 sm:$0xff]   ;;  %v5762_v63 = vld [vmem:[%s10444_s0 + $0xdc] ss:$12 sps:$4 sm:$0xff]  }
  0x59   :  { %938 = vmatmul.mubr.bf16.gmra.mrb[12].mxu0 %v5740_v44  ;;  %v5826_v0 = vld [vmem:[%s10444_s0 + $0x248] ss:$12 sps:$4 sm:$0xff]   ;;  %v5827_v1 = vld [vmem:[%s10444_s0 + $0x260] ss:$12 sps:$4 sm:$0xff]   ;;  %v5764_v2 = vld [vmem:[%s10444_s0 + $0xd8] ss:$12 sps:$4 sm:$0xff]  }
  0x5a   :  { %945 = vmatprep.mubr.bf16.mxu0 %v5741_v46  ;;  %v5765_v3 = vld [vmem:[%s10444_s0 + $0xf4] ss:$12 sps:$4 sm:$0xff]   ;;  %v5831_v4 = vld [vmem:[%s10444_s0 + $0x278] ss:$12 sps:$4 sm:$0xff]   ;;  %v5832_v5 = vld [vmem:[%s10444_s0 + $0x290] ss:$12 sps:$4 sm:$0xff]  }
  0x5b   :  { %5603 = vmatmul.mubr.msk.bf16.gmra.mrb[36].mxu1 %vm784_vm0, %v5805_v49  ;;  %v5767_v6 = vld [vmem:[%s10444_s0 + $0xf0] ss:$12 sps:$4 sm:$0xff]   ;;  %v5770_v7 = vld [vmem:[%s10444_s0 + $0x10c] ss:$12 sps:$4 sm:$0xff]   ;;  %v5836_v8 = vld [vmem:[%s10444_s0 + $0x2a8] ss:$12 sps:$4 sm:$0xff]  }
  0x5c   :  { %5606 = vmatprep.mubr.msk.bf16.mxu1 %vm784_vm0, %v5812_v52  ;;  %v5837_v9 = vld [vmem:[%s10444_s0 + $0x2c0] ss:$12 sps:$4 sm:$0xff]   ;;  %v5772_v10 = vld [vmem:[%s10444_s0 + $0x108] ss:$12 sps:$4 sm:$0xff]   ;;  %v5773_v11 = vld [vmem:[%s10444_s0 + $0x124] ss:$12 sps:$4 sm:$0xff]  }
  0x5d   :  { %v5841_v12 = vld [vmem:[%s10444_s0 + $0x2d8] ss:$12 sps:$4 sm:$0xff]   ;;  %v5842_v13 = vld [vmem:[%s10444_s0 + $0x2f0] ss:$12 sps:$4 sm:$0xff]   ;;  %v5775_v14 = vld [vmem:[%s10444_s0 + $0x120] ss:$12 sps:$4 sm:$0xff]  }
  0x5e   :  { %v5779_v15 = vld [vmem:[%s10444_s0 + $0x13c] ss:$12 sps:$4 sm:$0xff]   ;;  %v5781_v16 = vld [vmem:[%s10444_s0 + $0x138] ss:$12 sps:$4 sm:$0xff]   ;;  %v5782_v17 = vld [vmem:[%s10444_s0 + $0x154] ss:$12 sps:$4 sm:$0xff]  }
  0x5f   :  { %v5784_v18 = vld [vmem:[%s10444_s0 + $0x150] ss:$12 sps:$4 sm:$0xff]   ;;  %v5787_v19 = vld [vmem:[%s10444_s0 + $0x16c] ss:$12 sps:$4 sm:$0xff]   ;;  %v5789_v20 = vld [vmem:[%s10444_s0 + $0x168] ss:$12 sps:$4 sm:$0xff]  }
  0x60   :  { %v5790_v21 = vld [vmem:[%s10444_s0 + $0x184] ss:$12 sps:$4 sm:$0xff]   ;;  %v5792_v22 = vld [vmem:[%s10444_s0 + $0x180] ss:$12 sps:$4 sm:$0xff]   ;;  %v5793_v23 = vld [vmem:[%s10444_s0 + $0x19c] ss:$12 sps:$4 sm:$0xff]  }
  0x61   :  { %946 = vmatmul.mubr.bf16.gmra.mrb[16].mxu0 %v5743_v48  ;;  %v5796_v24 = vld [vmem:[%s10444_s0 + $0x198] ss:$12 sps:$4 sm:$0xff]   ;;  %v5798_v25 = vld [vmem:[%s10444_s0 + $0x1b4] ss:$12 sps:$4 sm:$0xff]   ;;  %v5800_v26 = vld [vmem:[%s10444_s0 + $0x1b0] ss:$12 sps:$4 sm:$0xff]  }
  0x62   :  { %953 = vmatprep.mubr.bf16.mxu0 %v5746_v50  ;;  %v5801_v27 = vld [vmem:[%s10444_s0 + $0x1cc] ss:$12 sps:$4 sm:$0xff]   ;;  %v5804_v28 = vld [vmem:[%s10444_s0 + $0x1c8] ss:$12 sps:$4 sm:$0xff]   ;;  %v5806_v29 = vld [vmem:[%s10444_s0 + $0x1e4] ss:$12 sps:$4 sm:$0xff]  }
  0x63   :  { %5607 = vmatmul.mubr.msk.bf16.gmra.mrb[40].mxu1 %vm784_vm0, %v5814_v55  ;;  %v5808_v30 = vld [vmem:[%s10444_s0 + $0x1e0] ss:$12 sps:$4 sm:$0xff]   ;;  %v5810_v31 = vld [vmem:[%s10444_s0 + $0x1fc] ss:$12 sps:$4 sm:$0xff]   ;;  %v5813_v32 = vld [vmem:[%s10444_s0 + $0x1f8] ss:$12 sps:$4 sm:$0xff]  }
  0x64   :  { %5610 = vmatprep.mubr.msk.bf16.mxu1 %vm784_vm0, %v5820_v58  ;;  %v5815_v33 = vld [vmem:[%s10444_s0 + $0x214] ss:$12 sps:$4 sm:$0xff]   ;;  %v5817_v35 = vld [vmem:[%s10444_s0 + $0x210] ss:$12 sps:$4 sm:$0xff]   ;;  %v5818_v37 = vld [vmem:[%s10444_s0 + $0x22c] ss:$12 sps:$4 sm:$0xff]  }
  0x65   :  { %v5821_v41 = vld [vmem:[%s10444_s0 + $0x228] ss:$12 sps:$4 sm:$0xff]   ;;  %v5823_v43 = vld [vmem:[%s10444_s0 + $0x244] ss:$12 sps:$4 sm:$0xff]   ;;  %v5825_v47 = vld [vmem:[%s10444_s0 + $0x240] ss:$12 sps:$4 sm:$0xff]  }
  0x66   :  { %v5828_v49 = vld [vmem:[%s10444_s0 + $0x25c] ss:$12 sps:$4 sm:$0xff]   ;;  %v5833_v55 = vld [vmem:[%s10444_s0 + $0x274] ss:$12 sps:$4 sm:$0xff]   ;;  %s6392_s14 = smov 96   ;;  %s6394_s20 = smov 120  }
  0x67   :  { %v1965_v58 = vld [vmem:[%s10445_s1 + $0x10] sm:$0xff]  ;;  %s6395_s22 = smov 32  }
  0x68   :  { %2095 = vrot.lane.b32.xlu1 %v1965_v58, %s6391_s7  ;;  %v1974_v58 = vld [vmem:[%s10445_s1 + $0x58] sm:$0xff] }
  0x69   :  { %954 = vmatmul.mubr.bf16.gmra.mrb[20].mxu0 %v5748_v53  ;;  %v5830_v53 = vld [vmem:[%s10444_s0 + $0x258] ss:$12 sps:$4 sm:$0xff]  }
  0x6a   :  { %961 = vmatprep.mubr.bf16.mxu0 %v5749_v54 }
  0x6b   :  { %5611 = vmatmul.mubr.msk.bf16.gmra.mrb[44].mxu1 %vm784_vm0, %v5822_v61 }
  0x6c   :  { %5614 = vmatprep.mubr.msk.bf16.mxu1 %vm784_vm0, %v5826_v0 }
  0x71   :  { %962 = vmatmul.mubr.bf16.gmra.mrb[24].mxu0 %v5751_v56 }
  0x72   :  { %969 = vmatprep.mubr.bf16.mxu0 %v5754_v57 }
  0x73   :  { %5615 = vmatmul.mubr.msk.bf16.gmra.mrb[48].mxu1 %vm784_vm0, %v5827_v1  ;;  %v5838_v1 = vld [vmem:[%s10444_s0 + $0x28c] ss:$12 sps:$4 sm:$0xff]  }
  0x74   :  { %5618 = vmatprep.mubr.msk.bf16.mxu1 %vm784_vm0, %v5831_v4  ;;  %v6860_v4 = vld [vmem:[%s10447_s3] ss:$0 sm:$0xff] }
  0x79   :  { %970 = vmatmul.mubr.bf16.gmra.mrb[28].mxu0 %v5756_v59  ;;  %v1963_v59 = vld [vmem:[%s10445_s1] sm:$0xff] }
  0x7a   :  { %977 = vmatprep.mubr.bf16.mxu0 %v5757_v60  ;;  %2091 = vrot.lane.b32.xlu0 %v1963_v59, %s6391_s7  ;;  %v1966_v60 = vld [vmem:[%s10445_s1 + $0x18] sm:$0xff] }
  0x7b   :  { %5619 = vmatmul.mubr.msk.bf16.gmra.mrb[52].mxu1 %vm784_vm0, %v5832_v5  ;;  %2097 = vrot.lane.b32.xlu1 %v1966_v60, %s6391_s7 }
  0x7c   :  { %5622 = vmatprep.mubr.msk.bf16.mxu1 %vm784_vm0, %v5836_v8 }
  0x81   :  { %978 = vmatmul.mubr.bf16.gmra.mrb[32].mxu0 %v5759_v62  ;;  %v1964_v62 = vld [vmem:[%s10445_s1 + $0x8] sm:$0xff] }
  0x82   :  { %985 = vmatprep.mubr.bf16.mxu0 %v5762_v63  ;;  %v5835_v63 = vld [vmem:[%s10444_s0 + $0x270] ss:$12 sps:$4 sm:$0xff]   ;;  %2093 = vrot.lane.b32.xlu0 %v1964_v62, %s6391_s7 }
  0x83   :  { %5623 = vmatmul.mubr.msk.bf16.gmra.mrb[56].mxu1 %vm784_vm0, %v5837_v9  ;;  %v5840_v9 = vld [vmem:[%s10444_s0 + $0x288] ss:$12 sps:$4 sm:$0xff]  }
  0x84   :  { %5626 = vmatprep.mubr.msk.bf16.mxu1 %vm784_vm0, %v5841_v12 }
  0x89   :  { %986 = vmatmul.mubr.bf16.gmra.mrb[36].mxu0 %v5764_v2 }
  0x8a   :  { %993 = vmatprep.mubr.bf16.mxu0 %v5765_v3 }
  0x8b   :  { %5627 = vmatmul.mubr.msk.bf16.gmra.mrb[60].mxu1 %vm784_vm0, %v5842_v13  ;;  %v5843_v13 = vld [vmem:[%s10444_s0 + $0x2a4] ss:$12 sps:$4 sm:$0xff]  }
  0x91   :  { %994 = vmatmul.mubr.bf16.gmra.mrb[40].mxu0 %v5767_v6 }
  0x92   :  { %1001 = vmatprep.mubr.bf16.mxu0 %v5770_v7 }
  0x99   :  { %1002 = vmatmul.mubr.bf16.gmra.mrb[44].mxu0 %v5772_v10 }
  0x9a   :  { %1009 = vmatprep.mubr.bf16.mxu0 %v5773_v11  ;;  %v1967_v11 = vld [vmem:[%s10445_s1 + $0x20] sm:$0xff] }
  0x9b   :  { %2099 = vrot.lane.b32.xlu0 %v1967_v11, %s6391_s7 }
  0xa1   :  { %1010 = vmatmul.mubr.bf16.gmra.mrb[48].mxu0 %v5775_v14 }
  0xa2   :  { %1017 = vmatprep.mubr.bf16.mxu0 %v5779_v15 }
  0xa9   :  { %1018 = vmatmul.mubr.bf16.gmra.mrb[52].mxu0 %v5781_v16 }
  0xaa   :  { %1025 = vmatprep.mubr.bf16.mxu0 %v5782_v17 }
  0xb1   :  { %1026 = vmatmul.mubr.bf16.gmra.mrb[56].mxu0 %v5784_v18 }
  0xb2   :  { %1033 = vmatprep.mubr.bf16.mxu0 %v5787_v19  ;;  %v1968_v19 = vld [vmem:[%s10445_s1 + $0x28] sm:$0xff] }
  0xb3   :  { %2101 = vrot.lane.b32.xlu1 %v1968_v19, %s6391_s7  ;;  %v1977_v19 = vld [vmem:[%s10445_s1 + $0x70] sm:$0xff] }
  0xb9   :  { %1034 = vmatmul.mubr.bf16.gmra.mrb[60].mxu0 %v5789_v20  ;;  %v1969_v20 = vld [vmem:[%s10445_s1 + $0x30] sm:$0xff] }
  0xba   :  { %1041 = vmatprep.mubr.bf16.mxu0 %v5790_v21  ;;  %2103 = vrot.lane.b32.xlu0 %v1969_v20, %s6391_s7 }
  0xc1   :  { %1042 = vmatmul.mubr.bf16.gmra.mrb[64].mxu0 %v5792_v22  ;;  %v1970_v22 = vld [vmem:[%s10445_s1 + $0x38] sm:$0xff] }
  0xc2   :  { %1049 = vmatprep.mubr.bf16.mxu0 %v5793_v23  ;;  %2105 = vrot.lane.b32.xlu1 %v1970_v22, %s6391_s7 }
  0xc9   :  { %1050 = vmatmul.mubr.bf16.gmra.mrb[68].mxu0 %v5796_v24 }
  0xca   :  { %1057 = vmatprep.mubr.bf16.mxu0 %v5798_v25 }
  0xd1   :  { %1058 = vmatmul.mubr.bf16.gmra.mrb[72].mxu0 %v5800_v26 }
  0xd2   :  { %1065 = vmatprep.mubr.bf16.mxu0 %v5801_v27 }
  0xd9   :  { %1066 = vmatmul.mubr.bf16.gmra.mrb[76].mxu0 %v5804_v28 }
  0xda   :  { %1073 = vmatprep.mubr.bf16.mxu0 %v5806_v29 }
  0xdf   :  { %v6773_v34 = vpop.f32.mrb[0].mxu1 }
  0xe0   :  { %v1204_v36 = vpop.f32.mrb[1].mxu1 }
  0xe1   :  { %1074 = vmatmul.mubr.bf16.gmra.mrb[80].mxu0 %v5808_v30  ;;  %v6781_v38 = vpop.f32.mrb[2].mxu1  ;;  %v5845_v30 = vld [vmem:[%s10444_s0 + $0x2a0] ss:$12 sps:$4 sm:$0xff]  }
  0xe2   :  { %1081 = vmatprep.mubr.bf16.mxu0 %v5810_v31  ;;  %v6783_v39 = vpop.f32.mrb[3].mxu1 }
  0xe7   :  { %v6785_v40 = vpop.f32.mrb[4].mxu1 }
  0xe8   :  { %v6790_v42 = vpop.f32.mrb[5].mxu1 }
  0xe9   :  { %1082 = vmatmul.mubr.bf16.gmra.mrb[84].mxu0 %v5813_v32  ;;  %v6795_v44 = vpop.f32.mrb[6].mxu1  ;;  %v1971_v32 = vld [vmem:[%s10445_s1 + $0x40] sm:$0xff] }
  0xea   :  { %1089 = vmatprep.mubr.bf16.mxu0 %v5815_v33  ;;  %v6797_v45 = vpop.f32.mrb[7].mxu1  ;;  %2107 = vrot.lane.b32.xlu0 %v1971_v32, %s6391_s7 }
  0xef   :  { %v6799_v46 = vpop.f32.mrb[8].mxu1 }
  0xf0   :  { %v6804_v48 = vpop.f32.mrb[9].mxu1 }
  0xf1   :  { %1090 = vmatmul.mubr.bf16.gmra.mrb[88].mxu0 %v5817_v35  ;;  %v6809_v50 = vpop.f32.mrb[10].mxu1  ;;  %v5846_v35 = vld [vmem:[%s10444_s0 + $0x2bc] ss:$12 sps:$4 sm:$0xff]  }
  0xf2   :  { %1097 = vmatprep.mubr.bf16.mxu0 %v5818_v37  ;;  %v6811_v51 = vpop.f32.mrb[11].mxu1 }
  0xf7   :  { %v6813_v52 = vpop.f32.mrb[12].mxu1 }
  0xf8   :  { %v6818_v54 = vpop.f32.mrb[13].mxu1 }
  0xf9   :  { %1098 = vmatmul.mubr.bf16.gmra.mrb[92].mxu0 %v5821_v41  ;;  %v6823_v56 = vpop.f32.mrb[14].mxu1 }
  0xfa   :  { %1105 = vmatprep.mubr.bf16.mxu0 %v5823_v43  ;;  %v6825_v57 = vpop.f32.mrb[15].mxu1 }
  0xff   :  { %v6838_v61 = vpop.f32.mrb[16].mxu1 }
 0x100   :  { %v6847_v0 = vpop.f32.mrb[17].mxu1 }
 0x101   :  { %1106 = vmatmul.mubr.bf16.gmra.mrb[96].mxu0 %v5825_v47  ;;  %v6853_v2 = vpop.f32.mrb[18].mxu1  ;;  %v1972_v47 = vld [vmem:[%s10445_s1 + $0x48] sm:$0xff] }
 0x102   :  { %1113 = vmatprep.mubr.bf16.mxu0 %v5828_v49  ;;  %v6855_v3 = vpop.f32.mrb[19].mxu1  ;;  %2109 = vrot.lane.b32.xlu1 %v1972_v47, %s6391_s7 }
 0x106   :  { %2113 = vrot.lane.b32.xlu1 %v1974_v58, %s6391_s7  ;;  %v1982_v58 = vld [vmem:[%s10445_s1 + $0x98] sm:$0xff] }
 0x107   :  { %v6862_v6 = vpop.f32.mrb[20].mxu1 }
 0x108   :  { %v6868_v10 = vpop.f32.mrb[21].mxu1 }
 0x109   :  { %1114 = vmatmul.mubr.bf16.gmra.mrb[100].mxu0 %v5830_v53  ;;  %v6876_v14 = vpop.f32.mrb[22].mxu1 }
 0x10a   :  { %1121 = vmatprep.mubr.bf16.mxu0 %v5833_v55  ;;  %v6880_v18 = vpop.f32.mrb[23].mxu1 }
 0x10f   :  { %v6894_v26 = vpop.f32.mrb[24].mxu1 }
 0x110   :  { %v6901_v31 = vpop.f32.mrb[25].mxu1 }
 0x111   :  { %1122 = vmatmul.mubr.bf16.gmra.mrb[104].mxu0 %v5835_v63 }
 0x112   :  { %1129 = vmatprep.mubr.bf16.mxu0 %v5838_v1  ;;  %v5848_v1 = vld [vmem:[%s10444_s0 + $0x2b8] ss:$12 sps:$4 sm:$0xff]  }
 0x114   :  { %v915_v5 = vpop.f32.mrb[0].mxu0 }
 0x115   :  { %v916_v7 = vadd.f32 %v6860_v4, %v915_v5  ;;  %v917_v8 = vpop.f32.mrb[1].mxu0 }
 0x116   :  { %v918_v12 = vpop.f32.mrb[2].mxu0 }
 0x117   :  { %v919_v15 = vadd.f32 %v6860_v4, %v918_v12  ;;  %v1205_v16 = vadd.f32 %v1204_v36, %v916_v7  ;;  %v920_v17 = vpop.f32.mrb[3].mxu0  ;;  %v6909_v36 = vpop.f32.mrb[26].mxu1  ;;  %v1975_v7 = vld [vmem:[%s10445_s1 + $0x60] sm:$0xff] }
 0x118   :  { %v6915_v43 = vpop.f32.mrb[27].mxu1  ;;  %v1976_v17 = vld [vmem:[%s10445_s1 + $0x68] sm:$0xff] }
 0x119   :  { %v1208_v21 = vadd.f32 %v6783_v39, %v919_v15  ;;  %1130 = vmatmul.mubr.bf16.gmra.mrb[108].mxu0 %v5840_v9  ;;  %v1459_v23 = vmax.f32 %v1205_v16, 0.0  ;;  %v6929_v60 = vpop.f32.mrb[28].mxu1  ;;  %v5849_v9 = vld [vmem:[%s10444_s0 + $0x2d4] ss:$12 sps:$4 sm:$0xff]   ;;  %2117 = vrot.lane.b32.xlu1 %v1976_v17, %s6391_s7 }
 0x11a   :  { %1137 = vmatprep.mubr.bf16.mxu0 %v5843_v13  ;;  %v6936_v5 = vpop.f32.mrb[29].mxu1 }
 0x11b   :  { %v1460_v24 = vmax.f32 %v1208_v21, 0.0  ;;  %v6944_v11 = vpop.f32.mrb[30].mxu1 }
 0x11c   :  { %v923_v25 = vpop.f32.mrb[4].mxu0  ;;  %v6950_v16 = vpop.f32.mrb[31].mxu1 }
 0x11d   :  { %v1523_v27 = vpack.c.bf16 %v1460_v24, %v1459_v23  ;;  %v924_v28 = vadd.f32 %v6860_v4, %v923_v25  ;;  %v925_v29 = vpop.f32.mrb[5].mxu0 }
 0x11e   :  { %v926_v33 = vpop.f32.mrb[6].mxu0 }
 0x11f   :  { %v1213_v37 = vadd.f32 %v6773_v34, %v924_v28  ;;  %v927_v39 = vadd.f32 %v6860_v4, %v926_v33  ;;  %v928_v41 = vpop.f32.mrb[7].mxu0  ;;  %5634 = vmatprep.mubr.msk.bf16.mxu1 %vm784_vm0, %v1523_v27  ;;  %v1973_v34 = vld [vmem:[%s10445_s1 + $0x50] sm:$0xff]  ;;  %v5852_v33 = vld [vmem:[%s10444_s0 + $0x2ec] ss:$12 sps:$4 sm:$0xff]  }
 0x120   :  { %2111 = vrot.lane.b32.xlu0 %v1973_v34, %s6391_s7 }
 0x121   :  { %v1216_v49 = vadd.f32 %v6781_v38, %v927_v39  ;;  %1138 = vmatmul.mubr.bf16.gmra.mrb[112].mxu0 %v5845_v30  ;;  %v1461_v53 = vmax.f32 %v1213_v37, 0.0  ;;  %v1979_v30 = vld [vmem:[%s10445_s1 + $0x80] sm:$0xff] }
 0x122   :  { %1145 = vmatprep.mubr.bf16.mxu0 %v5846_v35 }
 0x123   :  { %v1462_v55 = vmax.f32 %v1216_v49, 0.0  ;;  %v1980_v49 = vld [vmem:[%s10445_s1 + $0x88] sm:$0xff] }
 0x124   :  { %v931_v59 = vpop.f32.mrb[8].mxu0  ;;  %2115 = vrot.lane.b32.xlu0 %v1975_v7, %s6391_s7 }
 0x125   :  { %v1524_v38 = vpack.c.bf16 %v1462_v55, %v1461_v53  ;;  %v932_v62 = vadd.f32 %v6860_v4, %v931_v59  ;;  %v933_v63 = vpop.f32.mrb[9].mxu0 }
 0x126   :  { %v934_v8 = vpop.f32.mrb[10].mxu0  ;;  %v6964_v24 = vpop.f32.mrb[32].mxu1 }
 0x127   :  { %v935_v12 = vadd.f32 %v6860_v4, %v934_v8  ;;  %v1221_v13 = vadd.f32 %v6790_v42, %v932_v62  ;;  %v936_v15 = vpop.f32.mrb[11].mxu0  ;;  %5635 = vmatmul.mubr.msk.bf16.vlgmr.msra.gmra.mrb[64].mxu1 %vm784_vm0, %v1524_v38  ;;  %v1978_v42 = vld [vmem:[%s10445_s1 + $0x78] sm:$0xff]  ;;  %v6971_v29 = vpop.f32.mrb[33].mxu1  ;;  %v1983_v8 = vld [vmem:[%s10445_s1 + $0xa0] sm:$0xff] }
 0x128   :  { %2119 = vrot.lane.b32.xlu0 %v1977_v19, %s6391_s7  ;;  %2121 = vrot.lane.b32.xlu1 %v1978_v42, %s6391_s7  ;;  %v6979_v35 = vpop.f32.mrb[34].mxu1  ;;  %v1985_v42 = vld [vmem:[%s10445_s1 + $0xb0] sm:$0xff] }
 0x129   :  { %v1224_v20 = vadd.f32 %v6797_v45, %v935_v12  ;;  %1146 = vmatmul.mubr.bf16.gmra.mrb[116].mxu0 %v5848_v1  ;;  %v1463_v21 = vmax.f32 %v1221_v13, 0.0  ;;  %v5851_v45 = vld [vmem:[%s10444_s0 + $0x2d0] ss:$12 sps:$4 sm:$0xff]   ;;  %v6985_v47 = vpop.f32.mrb[35].mxu1  ;;  %v5854_v1 = vld [vmem:[%s10444_s0 + $0x2e8] ss:$12 sps:$4 sm:$0xff]  }
 0x12a   :  { %1153 = vmatprep.mubr.bf16.mxu0 %v5849_v9  ;;  %s6393_s0 = smov 16  }
 0x12b   :  { %v1464_v22 = vmax.f32 %v1224_v20, 0.0  ;;  %v1984_v20 = vld [vmem:[%s10445_s1 + $0xa8] sm:$0xff] }
 0x12c   :  { %v939_v23 = vpop.f32.mrb[12].mxu0  ;;  %2123 = vrot.lane.b32.xlu0 %v1979_v30, %s6391_s7  ;;  %2125 = vrot.lane.b32.xlu1 %v1980_v49, %s6391_s7 }
 0x12d   :  { %v1525_v25 = vpack.c.bf16 %v1464_v22, %v1463_v21  ;;  %v940_v27 = vadd.f32 %v6860_v4, %v939_v23  ;;  %v941_v28 = vpop.f32.mrb[13].mxu0 }
 0x12e   :  { %v942_v32 = vpop.f32.mrb[14].mxu0  ;;  %v6999_v38 = vpop.f32.mrb[36].mxu1 }
 0x12f   :  { %v1229_v37 = vadd.f32 %v6785_v40, %v940_v27  ;;  %v943_v39 = vadd.f32 %v6860_v4, %v942_v32  ;;  %v944_v41 = vpop.f32.mrb[15].mxu0  ;;  %5638 = vmatprep.mubr.msk.bf16.mxu1 %vm784_vm0, %v1525_v25  ;;  %v1981_v40 = vld [vmem:[%s10445_s1 + $0x90] sm:$0xff]  ;;  %v7006_v7 = vpop.f32.mrb[37].mxu1 }
 0x130   :  { %2127 = vrot.lane.b32.xlu0 %v1981_v40, %s6391_s7  ;;  %2129 = vrot.lane.b32.xlu1 %v1982_v58, %s6391_s7  ;;  %v7011_v12 = vpop.f32.mrb[38].mxu1  ;;  %v1988_v40 = vld [vmem:[%s10445_s1 + $0xc8] sm:$0xff] }
 0x131   :  { %v1232_v34 = vadd.f32 %v6795_v44, %v943_v39  ;;  %1154 = vmatmul.mubr.bf16.gmra.mrb[120].mxu0 %v5851_v45  ;;  %v1465_v53 = vmax.f32 %v1229_v37, 0.0  ;;  %v7017_v19 = vpop.f32.mrb[39].mxu1 }
 0x132   :  { %1161 = vmatprep.mubr.bf16.mxu0 %v5852_v33 }
 0x133   :  { %v1466_v55 = vmax.f32 %v1232_v34, 0.0 }
 0x134   :  { %v947_v59 = vpop.f32.mrb[16].mxu0  ;;  %2131 = vrot.lane.b32.xlu0 %v1983_v8, %s6391_s7  ;;  %2133 = vrot.lane.b32.xlu1 %v1984_v20, %s6391_s7  ;;  %v1993_v20 = vld [vmem:[%s10445_s1 + $0xf0] sm:$0xff] }
 0x135   :  { %v1526_v44 = vpack.c.bf16 %v1466_v55, %v1465_v53  ;;  %v948_v62 = vadd.f32 %v6860_v4, %v947_v59  ;;  %v949_v63 = vpop.f32.mrb[17].mxu0  ;;  %v1989_v55 = vld [vmem:[%s10445_s1 + $0xd0] sm:$0xff]  ;;  %v1990_v59 = vld [vmem:[%s10445_s1 + $0xd8] sm:$0xff] }
 0x136   :  { %v950_v9 = vpop.f32.mrb[18].mxu0  ;;  %v7032_v27 = vpop.f32.mrb[40].mxu1 }
 0x137   :  { %v951_v13 = vadd.f32 %v6860_v4, %v950_v9  ;;  %v1237_v15 = vadd.f32 %v6804_v48, %v948_v62  ;;  %v952_v17 = vpop.f32.mrb[19].mxu0  ;;  %5639 = vmatmul.mubr.msk.bf16.gmra.mrb[68].mxu1 %vm784_vm0, %v1526_v44  ;;  %v1986_v48 = vld [vmem:[%s10445_s1 + $0xb8] sm:$0xff]  ;;  %v7035_v32 = vpop.f32.mrb[41].mxu1 }
 0x138   :  { %2135 = vrot.lane.b32.xlu0 %v1985_v42, %s6391_s7  ;;  %2137 = vrot.lane.b32.xlu1 %v1986_v48, %s6391_s7  ;;  %v7041_v37 = vpop.f32.mrb[42].mxu1  ;;  %v1992_v17 = vld [vmem:[%s10445_s1 + $0xe8] sm:$0xff] }
 0x139   :  { %v1240_v21 = vadd.f32 %v6811_v51, %v951_v13  ;;  %1162 = vmatmul.mubr.bf16.gmra.mrb[124].mxu0 %v5854_v1  ;;  %v1467_v22 = vmax.f32 %v1237_v15, 0.0  ;;  %v1987_v51 = vld [vmem:[%s10445_s1 + $0xc0] sm:$0xff]  ;;  %v7046_v34 = vpop.f32.mrb[43].mxu1 }
 0x13b   :  { %v1468_v23 = vmax.f32 %v1240_v21, 0.0  ;;  %v1994_v21 = vld [vmem:[%s10445_s1 + $0xf8] sm:$0xff] }
 0x13c   :  { %v955_v25 = vpop.f32.mrb[20].mxu0  ;;  %2139 = vrot.lane.b32.xlu0 %v1987_v51, %s6391_s7  ;;  %2141 = vrot.lane.b32.xlu1 %v1988_v40, %s6391_s7 }
 0x13d   :  { %v1527_v28 = vpack.c.bf16 %v1468_v23, %v1467_v22  ;;  %v956_v45 = vadd.f32 %v6860_v4, %v955_v25  ;;  %v957_v30 = vpop.f32.mrb[21].mxu0 }
 0x13e   :  { %v958_v33 = vpop.f32.mrb[22].mxu0  ;;  %v7082_v23 = vpop.f32.mrb[44].mxu1 }
 0x13f   :  { %v1245_v39 = vadd.f32 %v6799_v46, %v956_v45  ;;  %v959_v41 = vadd.f32 %v6860_v4, %v958_v33  ;;  %v960_v49 = vpop.f32.mrb[23].mxu0  ;;  %5642 = vmatprep.mubr.msk.bf16.mxu1 %vm784_vm0, %v1527_v28  ;;  %v7085_v30 = vpop.f32.mrb[45].mxu1 }
 0x140   :  { %2143 = vrot.lane.b32.xlu0 %v1989_v55, %s6391_s7  ;;  %2145 = vrot.lane.b32.xlu1 %v1990_v59, %s6391_s7  ;;  %v7091_v33 = vpop.f32.mrb[46].mxu1  ;;  %v1998_v59 = vld [vmem:[%s10445_s1 + $0x118] sm:$0xff] }
 0x141   :  { %v1248_v53 = vadd.f32 %v6809_v50, %v959_v41  ;;  %v1469_v46 = vmax.f32 %v1245_v39, 0.0  ;;  %v1991_v50 = vld [vmem:[%s10445_s1 + $0xe0] sm:$0xff]  ;;  %v7096_v40 = vpop.f32.mrb[47].mxu1 }
 0x143   :  { %v1470_v58 = vmax.f32 %v1248_v53, 0.0  ;;  %v1996_v53 = vld [vmem:[%s10445_s1 + $0x108] sm:$0xff] }
 0x144   :  { %v963_v44 = vpop.f32.mrb[24].mxu0  ;;  %2147 = vrot.lane.b32.xlu0 %v1991_v50, %s6391_s7  ;;  %2149 = vrot.lane.b32.xlu1 %v1992_v17, %s6391_s7  ;;  %v2000_v17 = vld [vmem:[%s10445_s1 + $0x128] sm:$0xff] }
 0x145   :  { %v1528_v62 = vpack.c.bf16 %v1470_v58, %v1469_v46  ;;  %v964_v63 = vadd.f32 %v6860_v4, %v963_v44  ;;  %v965_v1 = vpop.f32.mrb[25].mxu0  ;;  %v1997_v46 = vld [vmem:[%s10445_s1 + $0x110] sm:$0xff] }
 0x146   :  { %v966_v8 = vpop.f32.mrb[26].mxu0 }
 0x147   :  { %v967_v9 = vadd.f32 %v6860_v4, %v966_v8  ;;  %v1253_v13 = vadd.f32 %v6818_v54, %v964_v63  ;;  %v968_v15 = vpop.f32.mrb[27].mxu0  ;;  %5643 = vmatmul.mubr.msk.bf16.gmra.mrb[72].mxu1 %vm784_vm0, %v1528_v62 }
 0x148   :  { %2151 = vrot.lane.b32.xlu0 %v1993_v20, %s6391_s7  ;;  %2153 = vrot.lane.b32.xlu1 %v1994_v21, %s6391_s7  ;;  %v7119_v15 = vpop.f32.mrb[48].mxu1 }
 0x149   :  { %v1256_v42 = vadd.f32 %v6825_v57, %v967_v9  ;;  %v1471_v54 = vmax.f32 %v1253_v13, 0.0  ;;  %v1995_v57 = vld [vmem:[%s10445_s1 + $0x100] sm:$0xff]  ;;  %v7125_v20 = vpop.f32.mrb[49].mxu1 }
 0x14a   :  { %v7128_v21 = vpop.f32.mrb[50].mxu1 }
 0x14b   :  { %v1472_v48 = vmax.f32 %v1256_v42, 0.0 }
 0x14c   :  { %v971_v22 = vpop.f32.mrb[28].mxu0  ;;  %2155 = vrot.lane.b32.xlu0 %v1995_v57, %s6391_s7  ;;  %2157 = vrot.lane.b32.xlu1 %v1996_v53, %s6391_s7 }
 0x14d   :  { %v1529_v25 = vpack.c.bf16 %v1472_v48, %v1471_v54  ;;  %v972_v28 = vadd.f32 %v6860_v4, %v971_v22  ;;  %v973_v45 = vpop.f32.mrb[29].mxu0  ;;  %v7134_v54 = vpop.f32.mrb[51].mxu1 }
 0x14e   :  { %v974_v51 = vpop.f32.mrb[30].mxu0 }
 0x14f   :  { %v1261_v39 = vadd.f32 %v6813_v52, %v972_v28  ;;  %v975_v41 = vadd.f32 %v6860_v4, %v974_v51  ;;  %v976_v49 = vpop.f32.mrb[31].mxu0  ;;  %5646 = vmatprep.mubr.msk.bf16.mxu1 %vm784_vm0, %v1529_v25  ;;  %v2002_v25 = vld [vmem:[%s10445_s1 + $0x138] sm:$0xff]  ;;  %v2003_v51 = vld [vmem:[%s10445_s1 + $0x140] sm:$0xff] }
 0x150   :  { %2159 = vrot.lane.b32.xlu0 %v1997_v46, %s6391_s7  ;;  %2161 = vrot.lane.b32.xlu1 %v1998_v59, %s6391_s7  ;;  %v2004_v46 = vld [vmem:[%s10445_s1 + $0x148] sm:$0xff] }
 0x151   :  { %v1264_v55 = vadd.f32 %v6823_v56, %v975_v41  ;;  %v1473_v52 = vmax.f32 %v1261_v39, 0.0  ;;  %v1999_v56 = vld [vmem:[%s10445_s1 + $0x120] sm:$0xff] }
 0x153   :  { %v1474_v58 = vmax.f32 %v1264_v55, 0.0  ;;  %v7148_v55 = vpop.f32.mrb[52].mxu1 }
 0x154   :  { %v979_v44 = vpop.f32.mrb[32].mxu0  ;;  %2163 = vrot.lane.b32.xlu0 %v1999_v56, %s6391_s7  ;;  %2165 = vrot.lane.b32.xlu1 %v2000_v17, %s6391_s7 }
 0x155   :  { %v1530_v62 = vpack.c.bf16 %v1474_v58, %v1473_v52  ;;  %v980_v63 = vadd.f32 %v6860_v4, %v979_v44  ;;  %v981_v1 = vpop.f32.mrb[33].mxu0  ;;  %v7154_v52 = vpop.f32.mrb[53].mxu1 }
 0x156   :  { %v982_v50 = vpop.f32.mrb[34].mxu0  ;;  %v7157_v59 = vpop.f32.mrb[54].mxu1  ;;  %v2006_v1 = vld [vmem:[%s10445_s1 + $0x158] sm:$0xff] }
 0x157   :  { %v983_v8 = vadd.f32 %v6860_v4, %v982_v50  ;;  %v1269_v9 = vadd.f32 %v6847_v0, %v980_v63  ;;  %v984_v13 = vpop.f32.mrb[35].mxu0  ;;  %5647 = vmatmul.mubr.msk.bf16.gmra.mrb[76].mxu1 %vm784_vm0, %v1530_v62  ;;  %v2001_v0 = vld [vmem:[%s10445_s1 + $0x130] sm:$0xff]  ;;  %v7163_v44 = vpop.f32.mrb[55].mxu1 }
 0x158   :  { %2167 = vrot.lane.b32.xlu0 %v2001_v0, %s6391_s7  ;;  %2169 = vrot.lane.b32.xlu1 %v2002_v25, %s6391_s7 }
 0x159   :  { %v1272_v42 = vadd.f32 %v6855_v3, %v983_v8  ;;  %v1475_v48 = vmax.f32 %v1269_v9, 0.0  ;;  %v2007_v9 = vld [vmem:[%s10445_s1 + $0x160] sm:$0xff] }
 0x15b   :  { %v1476_v22 = vmax.f32 %v1272_v42, 0.0 }
 0x15c   :  { %v987_v28 = vpop.f32.mrb[36].mxu0  ;;  %2171 = vrot.lane.b32.xlu0 %v2003_v51, %s6391_s7  ;;  %2173 = vrot.lane.b32.xlu1 %v2004_v46, %s6391_s7  ;;  %v2011_v46 = vld [vmem:[%s10445_s1 + $0x180] sm:$0xff] }
 0x15d   :  { %v1531_v3 = vpack.c.bf16 %v1476_v22, %v1475_v48  ;;  %v988_v45 = vadd.f32 %v6860_v4, %v987_v28  ;;  %v989_v57 = vpop.f32.mrb[37].mxu0  ;;  %v7177_v48 = vpop.f32.mrb[56].mxu1  ;;  %v2008_v22 = vld [vmem:[%s10445_s1 + $0x168] sm:$0xff] }
 0x15e   :  { %v990_v39 = vpop.f32.mrb[38].mxu0  ;;  %v7183_v25 = vpop.f32.mrb[57].mxu1 }
 0x15f   :  { %v1277_v41 = vadd.f32 %v6838_v61, %v988_v45  ;;  %v991_v49 = vadd.f32 %v6860_v4, %v990_v39  ;;  %v992_v53 = vpop.f32.mrb[39].mxu0  ;;  %5650 = vmatprep.mubr.msk.bf16.mxu1 %vm784_vm0, %v1531_v3  ;;  %v2005_v61 = vld [vmem:[%s10445_s1 + $0x150] sm:$0xff]  ;;  %v7186_v3 = vpop.f32.mrb[58].mxu1  ;;  %v2010_v39 = vld [vmem:[%s10445_s1 + $0x178] sm:$0xff] }
 0x160   :  { %2175 = vrot.lane.b32.xlu0 %v2005_v61, %s6391_s7  ;;  %2177 = vrot.lane.b32.xlu1 %v2006_v1, %s6391_s7  ;;  %v7192_v45 = vpop.f32.mrb[59].mxu1 }
 0x161   :  { %v1280_v58 = vadd.f32 %v6853_v2, %v991_v49  ;;  %v1477_v62 = vmax.f32 %v1277_v41, 0.0  ;;  %v7206_v1 = vpop.f32.mrb[60].mxu1 }
 0x163   :  { %v1478_v63 = vmax.f32 %v1280_v58, 0.0 }
 0x164   :  { %v995_v56 = vpop.f32.mrb[40].mxu0  ;;  %2179 = vrot.lane.b32.xlu0 %v2007_v9, %s6391_s7  ;;  %2181 = vrot.lane.b32.xlu1 %v2008_v22, %s6391_s7 }
 0x165   :  { %v1532_v2 = vpack.c.bf16 %v1478_v63, %v1477_v62  ;;  %v996_v50 = vadd.f32 %v6860_v4, %v995_v56  ;;  %v997_v8 = vpop.f32.mrb[41].mxu0  ;;  %v2012_v56 = vld [vmem:[%s10445_s1 + $0x188] sm:$0xff] }
 0x166   :  { %v998_v13 = vpop.f32.mrb[42].mxu0 }
 0x167   :  { %v999_v17 = vadd.f32 %v6860_v4, %v998_v13  ;;  %v1285_v42 = vadd.f32 %v6868_v10, %v996_v50  ;;  %v1000_v0 = vpop.f32.mrb[43].mxu0  ;;  %5651 = vmatmul.mubr.msk.bf16.gmra.mrb[80].mxu1 %vm784_vm0, %v1532_v2  ;;  %v2009_v10 = vld [vmem:[%s10445_s1 + $0x170] sm:$0xff]  ;;  %v7212_v2 = vpop.f32.mrb[61].mxu1 }
 0x168   :  { %2183 = vrot.lane.b32.xlu0 %v2009_v10, %s6391_s7  ;;  %2185 = vrot.lane.b32.xlu1 %v2010_v39, %s6391_s7  ;;  %v7215_v8 = vpop.f32.mrb[62].mxu1  ;;  %v2015_v10 = vld [vmem:[%s10445_s1 + $0x1a0] sm:$0xff] }
 0x169   :  { %v1288_v28 = vadd.f32 %v6880_v18, %v999_v17  ;;  %v1479_v57 = vmax.f32 %v1285_v42, 0.0  ;;  %v7221_v9 = vpop.f32.mrb[63].mxu1  ;;  %v2014_v42 = vld [vmem:[%s10445_s1 + $0x198] sm:$0xff] }
 0x16b   :  { %v1480_v51 = vmax.f32 %v1288_v28, 0.0 }
 0x16c   :  { %v1003_v41 = vpop.f32.mrb[44].mxu0  ;;  %2187 = vrot.lane.b32.xlu0 %v2011_v46, %s6391_s7  ;;  %2189 = vrot.lane.b32.xlu1 %v2012_v56, %s6391_s7  ;;  %v2018_v56 = vld [vmem:[%s10445_s1 + $0x1b8] sm:$0xff] }
 0x16d   :  { %v1533_v18 = vpack.c.bf16 %v1480_v51, %v1479_v57  ;;  %v1004_v49 = vadd.f32 %v6860_v4, %v1003_v41  ;;  %v1005_v53 = vpop.f32.mrb[45].mxu0 }
 0x16e   :  { %v1006_v58 = vpop.f32.mrb[46].mxu0  ;;  %v2017_v53 = vld [vmem:[%s10445_s1 + $0x1b0] sm:$0xff] }
 0x16f   :  { %v1293_v61 = vadd.f32 %v6862_v6, %v1004_v49  ;;  %v1007_v62 = vadd.f32 %v6860_v4, %v1006_v58  ;;  %v1008_v63 = vpop.f32.mrb[47].mxu0  ;;  %5654 = vmatprep.mubr.msk.bf16.mxu1 %vm784_vm0, %v1533_v18  ;;  %v2013_v6 = vld [vmem:[%s10445_s1 + $0x190] sm:$0xff]  ;;  %v2016_v18 = vld [vmem:[%s10445_s1 + $0x1a8] sm:$0xff] }
 0x170   :  { %2191 = vrot.lane.b32.xlu0 %v2013_v6, %s6391_s7  ;;  %2193 = vrot.lane.b32.xlu1 %v2014_v42, %s6391_s7  ;;  %v2019_v42 = vld [vmem:[%s10445_s1 + $0x1c0] sm:$0xff] }
 0x171   :  { %v1296_v50 = vadd.f32 %v6876_v14, %v1007_v62  ;;  %v1481_v13 = vmax.f32 %v1293_v61, 0.0 }
 0x173   :  { %v1482_v17 = vmax.f32 %v1296_v50, 0.0 }
 0x174   :  { %v1011_v0 = vpop.f32.mrb[48].mxu0  ;;  %2195 = vrot.lane.b32.xlu0 %v2015_v10, %s6391_s7  ;;  %2197 = vrot.lane.b32.xlu1 %v2016_v18, %s6391_s7 }
 0x175   :  { %v1534_v14 = vpack.c.bf16 %v1482_v17, %v1481_v13  ;;  %v1012_v22 = vadd.f32 %v6860_v4, %v1011_v0  ;;  %v1013_v28 = vpop.f32.mrb[49].mxu0 }
 0x176   :  { %v1014_v57 = vpop.f32.mrb[50].mxu0 }
 0x177   :  { %v1015_v51 = vadd.f32 %v6860_v4, %v1014_v57  ;;  %v1301_v39 = vadd.f32 %v6901_v31, %v1012_v22  ;;  %v1016_v41 = vpop.f32.mrb[51].mxu0  ;;  %5655 = vmatmul.mubr.msk.bf16.gmra.mrb[84].mxu1 %vm784_vm0, %v1534_v14  ;;  %v2020_v22 = vld [vmem:[%s10445_s1 + $0x1c8] sm:$0xff] }
 0x178   :  { %2199 = vrot.lane.b32.xlu0 %v2017_v53, %s6391_s7  ;;  %2201 = vrot.lane.b32.xlu1 %v2018_v56, %s6391_s7 }
 0x179   :  { %v1304_v49 = vadd.f32 %v6915_v43, %v1015_v51  ;;  %v1483_v46 = vmax.f32 %v1301_v39, 0.0 }
 0x17b   :  { %v1484_v58 = vmax.f32 %v1304_v49, 0.0  ;;  %v2022_v49 = vld [vmem:[%s10445_s1 + $0x1d8] sm:$0xff] }
 0x17c   :  { %v1019_v31 = vpop.f32.mrb[52].mxu0  ;;  %2203 = vrot.lane.b32.xlu0 %v2019_v42, %s6391_s7  ;;  %2205 = vrot.lane.b32.xlu1 %v2020_v22, %s6391_s7 }
 0x17d   :  { %v1535_v61 = vpack.c.bf16 %v1484_v58, %v1483_v46  ;;  %v1020_v62 = vadd.f32 %v6860_v4, %v1019_v31  ;;  %v1021_v63 = vpop.f32.mrb[53].mxu0  ;;  %v2023_v46 = vld [vmem:[%s10445_s1 + $0x1e0] sm:$0xff] }
 0x17e   :  { %v1022_v50 = vpop.f32.mrb[54].mxu0 }
 0x17f   :  { %v1309_v43 = vadd.f32 %v6894_v26, %v1020_v62  ;;  %v1023_v6 = vadd.f32 %v6860_v4, %v1022_v50  ;;  %v1024_v13 = vpop.f32.mrb[55].mxu0  ;;  %5658 = vmatprep.mubr.msk.bf16.mxu1 %vm784_vm0, %v1535_v61 }
 0x180   :  { %2209 = vrot.lane.b32.xlu1 %v2022_v49, %s6391_s7 }
 0x181   :  { %v1312_v17 = vadd.f32 %v6909_v36, %v1023_v6  ;;  %v1485_v0 = vmax.f32 %v1309_v43, 0.0  ;;  %v2021_v36 = vld [vmem:[%s10445_s1 + $0x1d0] sm:$0xff] }
 0x182   :  { %2207 = vrot.lane.b32.xlu0 %v2021_v36, %s6391_s7 }
 0x183   :  { %v1486_v14 = vmax.f32 %v1312_v17, 0.0  ;;  %v2026_v17 = vld [vmem:[%s10445_s1 + $0x1f8] sm:$0xff] }
 0x184   :  { %v1027_v26 = vpop.f32.mrb[56].mxu0 }
 0x185   :  { %v1536_v28 = vpack.c.bf16 %v1486_v14, %v1485_v0  ;;  %v1028_v10 = vadd.f32 %v6860_v4, %v1027_v26  ;;  %v1029_v57 = vpop.f32.mrb[57].mxu0 }
 0x186   :  { %v1030_v51 = vpop.f32.mrb[58].mxu0  ;;  %2211 = vrot.lane.b32.xlu0 %v2023_v46, %s6391_s7 }
 0x187   :  { %v1031_v39 = vadd.f32 %v6860_v4, %v1030_v51  ;;  %v1317_v41 = vadd.f32 %v6936_v5, %v1028_v10  ;;  %v1032_v18 = vpop.f32.mrb[59].mxu0  ;;  %5659 = vmatmul.mubr.msk.bf16.gmra.mrb[88].mxu1 %vm784_vm0, %v1536_v28  ;;  %v2024_v5 = vld [vmem:[%s10445_s1 + $0x1e8] sm:$0xff] }
 0x188   :  { %2213 = vrot.lane.b32.xlu1 %v2024_v5, %s6391_s7 }
 0x189   :  { %v1320_v53 = vadd.f32 %v6950_v16, %v1031_v39  ;;  %v1487_v58 = vmax.f32 %v1317_v41, 0.0  ;;  %v2025_v16 = vld [vmem:[%s10445_s1 + $0x1f0] sm:$0xff] }
 0x18a   :  { %2215 = vrot.lane.b32.xlu0 %v2025_v16, %s6391_s7 }
 0x18b   :  { %v1488_v31 = vmax.f32 %v1320_v53, 0.0 }
 0x18c   :  { %v1035_v61 = vpop.f32.mrb[60].mxu0  ;;  %2217 = vrot.lane.b32.xlu1 %v2026_v17, %s6391_s7 }
 0x18d   :  { %v1537_v62 = vpack.c.bf16 %v1488_v31, %v1487_v58  ;;  %v1036_v63 = vadd.f32 %v6860_v4, %v1035_v61  ;;  %v1037_v56 = vpop.f32.mrb[61].mxu0 }
 0x18e   :  { %v1038_v50 = vpop.f32.mrb[62].mxu0 }
 0x18f   :  { %v1325_v43 = vadd.f32 %v6929_v60, %v1036_v63  ;;  %v1039_v6 = vadd.f32 %v6860_v4, %v1038_v50  ;;  %v1040_v13 = vpop.f32.mrb[63].mxu0  ;;  %5662 = vmatprep.mubr.msk.bf16.mxu1 %vm784_vm0, %v1537_v62 }
 0x191   :  { %v1328_v42 = vadd.f32 %v6944_v11, %v1039_v6  ;;  %v1489_v0 = vmax.f32 %v1325_v43, 0.0 }
 0x193   :  { %v1490_v14 = vmax.f32 %v1328_v42, 0.0 }
 0x194   :  { %v1043_v22 = vpop.f32.mrb[64].mxu0 }
 0x195   :  { %v1538_v26 = vpack.c.bf16 %v1490_v14, %v1489_v0  ;;  %v1044_v28 = vadd.f32 %v6860_v4, %v1043_v22  ;;  %v1045_v60 = vpop.f32.mrb[65].mxu0 }
 0x196   :  { %v1046_v10 = vpop.f32.mrb[66].mxu0 }
 0x197   :  { %5663 = vmatmul.mubr.msk.bf16.gmra.mrb[92].mxu1 %vm784_vm0, %v1538_v26  ;;  %v1047_v57 = vadd.f32 %v6860_v4, %v1046_v10  ;;  %v1048_v36 = vpop.f32.mrb[67].mxu0  ;;  %v1333_v51 = vadd.f32 %v6971_v29, %v1044_v28 }
 0x199   :  { %v1491_v39 = vmax.f32 %v1333_v51, 0.0  ;;  %v1336_v11 = vadd.f32 %v6985_v47, %v1047_v57 }
 0x19b   :  { %v1492_v41 = vmax.f32 %v1336_v11, 0.0 }
 0x19c   :  { %v1051_v18 = vpop.f32.mrb[68].mxu0 }
 0x19d   :  { %v1052_v49 = vadd.f32 %v6860_v4, %v1051_v18  ;;  %v1053_v53 = vpop.f32.mrb[69].mxu0  ;;  %v1539_v46 = vpack.c.bf16 %v1492_v41, %v1491_v39 }
 0x19e   :  { %v1054_v58 = vpop.f32.mrb[70].mxu0 }
 0x19f   :  { %v1341_v31 = vadd.f32 %v6964_v24, %v1052_v49  ;;  %v1055_v5 = vadd.f32 %v6860_v4, %v1054_v58  ;;  %5666 = vmatprep.mubr.msk.bf16.mxu1 %vm784_vm0, %v1539_v46  ;;  %v1056_v61 = vpop.f32.mrb[71].mxu0 }
 0x1a1   :  { %v1493_v62 = vmax.f32 %v1341_v31, 0.0  ;;  %v1344_v29 = vadd.f32 %v6979_v35, %v1055_v5 }
 0x1a3   :  { %v1494_v63 = vmax.f32 %v1344_v29, 0.0 }
 0x1a4   :  { %v1059_v56 = vpop.f32.mrb[72].mxu0 }
 0x1a5   :  { %v1540_v47 = vpack.c.bf16 %v1494_v63, %v1493_v62  ;;  %v1060_v16 = vadd.f32 %v6860_v4, %v1059_v56  ;;  %v1061_v50 = vpop.f32.mrb[73].mxu0 }
 0x1a6   :  { %v1062_v43 = vpop.f32.mrb[74].mxu0 }
 0x1a7   :  { %5667 = vmatmul.mubr.msk.bf16.gmra.mrb[96].mxu1 %vm784_vm0, %v1540_v47  ;;  %v1063_v6 = vadd.f32 %v6860_v4, %v1062_v43  ;;  %v1064_v24 = vpop.f32.mrb[75].mxu0  ;;  %v1349_v13 = vadd.f32 %v7006_v7, %v1060_v16 }
 0x1a9   :  { %v1495_v17 = vmax.f32 %v1349_v13, 0.0  ;;  %v1352_v42 = vadd.f32 %v7017_v19, %v1063_v6 }
 0x1ab   :  { %v1496_v0 = vmax.f32 %v1352_v42, 0.0 }
 0x1ac   :  { %v1067_v14 = vpop.f32.mrb[76].mxu0 }
 0x1ad   :  { %v1068_v35 = vadd.f32 %v6860_v4, %v1067_v14  ;;  %v1069_v22 = vpop.f32.mrb[77].mxu0  ;;  %v1541_v26 = vpack.c.bf16 %v1496_v0, %v1495_v17 }
 0x1ae   :  { %v1070_v28 = vpop.f32.mrb[78].mxu0 }
 0x1af   :  { %v1357_v60 = vadd.f32 %v6999_v38, %v1068_v35  ;;  %v1071_v10 = vadd.f32 %v6860_v4, %v1070_v28  ;;  %5670 = vmatprep.mubr.msk.bf16.mxu1 %vm784_vm0, %v1541_v26  ;;  %v1072_v57 = vpop.f32.mrb[79].mxu0  ;;  %v7334_v26 = vpop.permute.xlu1 %2095 }
 0x1b1   :  { %v1497_v36 = vmax.f32 %v1357_v60, 0.0  ;;  %v1360_v7 = vadd.f32 %v7011_v12, %v1071_v10 }
 0x1b3   :  { %v1498_v51 = vmax.f32 %v1360_v7, 0.0 }
 0x1b4   :  { %v1075_v39 = vpop.f32.mrb[80].mxu0 }
 0x1b5   :  { %v1542_v19 = vpack.c.bf16 %v1498_v51, %v1497_v36  ;;  %v1076_v11 = vadd.f32 %v6860_v4, %v1075_v39  ;;  %v1077_v41 = vpop.f32.mrb[81].mxu0 }
 0x1b6   :  { %v1078_v18 = vpop.f32.mrb[82].mxu0 }
 0x1b7   :  { %5671 = vmatmul.mubr.msk.bf16.gmra.mrb[100].mxu1 %vm784_vm0, %v1542_v19  ;;  %v1079_v49 = vadd.f32 %v6860_v4, %v1078_v18  ;;  %v1080_v38 = vpop.f32.mrb[83].mxu0  ;;  %v1365_v53 = vadd.f32 %v7035_v32, %v1076_v11  ;;  %v7343_v11 = vpop.permute.xlu1 %2097 }
 0x1b9   :  { %v1499_v46 = vmax.f32 %v1365_v53, 0.0  ;;  %v1368_v58 = vadd.f32 %v7046_v34, %v1079_v49  ;;  %v7325_v34 = vpop.permute.xlu0 %2091 }
 0x1bb   :  { %v1500_v31 = vmax.f32 %v1368_v58, 0.0  ;;  %v7348_v58 = vpop.permute.xlu1 %2101 }
 0x1bc   :  { %v1083_v5 = vpop.f32.mrb[84].mxu0 }
 0x1bd   :  { %v1084_v12 = vadd.f32 %v6860_v4, %v1083_v5  ;;  %v1085_v61 = vpop.f32.mrb[85].mxu0  ;;  %v1543_v62 = vpack.c.bf16 %v1500_v31, %v1499_v46 }
 0x1be   :  { %v1086_v29 = vpop.f32.mrb[86].mxu0 }
 0x1bf   :  { %v1373_v63 = vadd.f32 %v7032_v27, %v1084_v12  ;;  %v1087_v56 = vadd.f32 %v6860_v4, %v1086_v29  ;;  %5674 = vmatprep.mubr.msk.bf16.mxu1 %vm784_vm0, %v1543_v62  ;;  %v1088_v47 = vpop.f32.mrb[87].mxu0 }
 0x1c1   :  { %v1501_v16 = vmax.f32 %v1373_v63, 0.0  ;;  %v1376_v32 = vadd.f32 %v7041_v37, %v1087_v56  ;;  %v7332_v37 = vpop.permute.xlu0 %2093  ;;  %v7356_v63 = vpop.permute.xlu1 %2105 }
 0x1c3   :  { %v1502_v50 = vmax.f32 %v1376_v32, 0.0 }
 0x1c4   :  { %v1091_v43 = vpop.f32.mrb[88].mxu0 }
 0x1c5   :  { %v1544_v6 = vpack.c.bf16 %v1502_v50, %v1501_v16  ;;  %v1092_v24 = vadd.f32 %v6860_v4, %v1091_v43  ;;  %v1093_v13 = vpop.f32.mrb[89].mxu0  ;;  %v7337_v7 = vpop.permute.xlu0 %2099 }
 0x1c6   :  { %v1094_v17 = vpop.f32.mrb[90].mxu0  ;;  %v7365_v13 = vpop.permute.xlu1 %2109 }
 0x1c7   :  { %5675 = vmatmul.mubr.msk.bf16.gmra.mrb[104].mxu1 %vm784_vm0, %v1544_v6  ;;  %v1095_v27 = vadd.f32 %v6860_v4, %v1094_v17  ;;  %v1096_v42 = vpop.f32.mrb[91].mxu0  ;;  %v1381_v0 = vadd.f32 %v7085_v30, %v1092_v24 }
 0x1c9   :  { %v1503_v14 = vmax.f32 %v1381_v0, 0.0  ;;  %v1384_v35 = vadd.f32 %v7096_v40, %v1095_v27  ;;  %v7345_v49 = vpop.permute.xlu0 %2103 }
 0x1cb   :  { %v1504_v22 = vmax.f32 %v1384_v35, 0.0 }
 0x1cc   :  { %v1099_v28 = vpop.f32.mrb[92].mxu0 }
 0x1cd   :  { %v1100_v60 = vadd.f32 %v6860_v4, %v1099_v28  ;;  %v1101_v10 = vpop.f32.mrb[93].mxu0  ;;  %v1545_v57 = vpack.c.bf16 %v1504_v22, %v1503_v14  ;;  %v7354_v62 = vpop.permute.xlu0 %2107 }
 0x1ce   :  { %v1102_v36 = vpop.f32.mrb[94].mxu0 }
 0x1cf   :  { %v1389_v51 = vadd.f32 %v7082_v23, %v1100_v60  ;;  %v1103_v30 = vadd.f32 %v6860_v4, %v1102_v36  ;;  %v1104_v39 = vpop.f32.mrb[95].mxu0  ;;  %5678 = vmatprep.mubr.msk.bf16.mxu1 %vm784_vm0, %v1545_v57  ;;  %v7374_v60 = vld [vmem:[%s10447_s3] ss:$0 sm:$0xff]  ;;  %v7378_v57 = vpop.permute.xlu1 %2113 }
 0x1d1   :  { %v1505_v40 = vmax.f32 %v1389_v51, 0.0  ;;  %v1392_v19 = vadd.f32 %v7091_v33, %v1103_v30  ;;  %v7362_v24 = vpop.permute.xlu0 %2111 }
 0x1d3   :  { %v1506_v41 = vmax.f32 %v1392_v19, 0.0 }
 0x1d4   :  { %v1107_v18 = vpop.f32.mrb[96].mxu0 }
 0x1d5   :  { %v1546_v38 = vpack.c.bf16 %v1506_v41, %v1505_v40  ;;  %v1108_v53 = vadd.f32 %v6860_v4, %v1107_v18  ;;  %v1109_v46 = vpop.f32.mrb[97].mxu0  ;;  %v7384_v41 = vpop.permute.xlu1 %2117 }
 0x1d6   :  { %v1110_v23 = vpop.f32.mrb[98].mxu0 }
 0x1d7   :  { %5679 = vmatmul.mubr.msk.bf16.gmra.mrb[108].mxu1 %vm784_vm0, %v1546_v38  ;;  %v1111_v31 = vadd.f32 %v6860_v4, %v1110_v23  ;;  %v1397_v5 = vadd.f32 %v7125_v20, %v1108_v53  ;;  %v1112_v33 = vpop.f32.mrb[99].mxu0 }
 0x1d9   :  { %v1507_v12 = vmax.f32 %v1397_v5, 0.0  ;;  %v1400_v61 = vadd.f32 %v7134_v54, %v1111_v31  ;;  %v7392_v33 = vpop.permute.xlu1 %2121 }
 0x1db   :  { %v1508_v29 = vmax.f32 %v1400_v61, 0.0 }
 0x1dc   :  { %v1115_v56 = vpop.f32.mrb[100].mxu0 }
 0x1dd   :  { %v1547_v47 = vpack.c.bf16 %v1508_v29, %v1507_v12  ;;  %v1116_v16 = vadd.f32 %v6860_v4, %v1115_v56  ;;  %v1117_v32 = vpop.f32.mrb[101].mxu0 }
 0x1de   :  { %v1118_v50 = vpop.f32.mrb[102].mxu0 }
 0x1df   :  { %v1405_v43 = vadd.f32 %v7119_v15, %v1116_v16  ;;  %v1119_v6 = vadd.f32 %v6860_v4, %v1118_v50  ;;  %5682 = vmatprep.mubr.msk.bf16.mxu1 %vm784_vm0, %v1547_v47  ;;  %v1120_v20 = vpop.f32.mrb[103].mxu0  ;;  %v7368_v15 = vpop.permute.xlu0 %2115 }
 0x1e1   :  { %v1408_v54 = vadd.f32 %v7128_v21, %v1119_v6  ;;  %v1509_v17 = vmax.f32 %v1405_v43, 0.0  ;;  %v7406_v6 = vpop.permute.xlu1 %2125 }
 0x1e2   :  { %10621 = vst [vmem:[#allocation6_spill] sm:$0xff] %v7406_v6 }
 0x1e3   :  { %v1510_v27 = vmax.f32 %v1408_v54, 0.0  ;;  %v7381_v39 = vpop.permute.xlu0 %2119 }
 0x1e4   :  { %v1123_v42 = vpop.f32.mrb[104].mxu0 }
 0x1e5   :  { %v1548_v0 = vpack.c.bf16 %v1510_v27, %v1509_v17  ;;  %v1124_v14 = vadd.f32 %v6860_v4, %v1123_v42  ;;  %v1125_v35 = vpop.f32.mrb[105].mxu0 }
 0x1e6   :  { %v1126_v22 = vpop.f32.mrb[106].mxu0 }
 0x1e7   :  { %v1413_v28 = vadd.f32 %v7154_v52, %v1124_v14  ;;  %v1127_v21 = vadd.f32 %v7374_v60, %v1126_v22  ;;  %5683 = vmatmul.mubr.msk.bf16.gmra.mrb[112].mxu1 %vm784_vm0, %v1548_v0  ;;  %v1128_v10 = vpop.f32.mrb[107].mxu0  ;;  %v7390_v23 = vpop.permute.xlu0 %2123 }
 0x1e8   :  { %10620 = vst [vmem:[#allocation5_spill] sm:$0xff] %v7390_v23 }
 0x1e9   :  { %v1416_v4 = vadd.f32 %v7163_v44, %v1127_v21  ;;  %v1511_v36 = vmax.f32 %v1413_v28, 0.0 }
 0x1eb   :  { %v1512_v51 = vmax.f32 %v1416_v4, 0.0  ;;  %v7403_v50 = vpop.permute.xlu0 %2127 }
 0x1ec   :  { %v1131_v30 = vpop.f32.mrb[108].mxu0 }
 0x1ed   :  { %v1549_v52 = vpack.c.bf16 %v1512_v51, %v1511_v36  ;;  %v1132_v40 = vadd.f32 %v7374_v60, %v1131_v30  ;;  %v1133_v19 = vpop.f32.mrb[109].mxu0 }
 0x1ee   :  { %v1134_v18 = vpop.f32.mrb[110].mxu0 }
 0x1ef   :  { %v1421_v38 = vadd.f32 %v7148_v55, %v1132_v40  ;;  %v1135_v53 = vadd.f32 %v7374_v60, %v1134_v18  ;;  %5686 = vmatprep.mubr.msk.bf16.mxu1 %vm784_vm0, %v1549_v52  ;;  %v1136_v46 = vpop.f32.mrb[111].mxu0  ;;  %v7419_v30 = vpop.permute.xlu0 %2131 }
 0x1f0   :  { %10622 = vst [vmem:[#allocation7_spill] sm:$0xff] %v7419_v30 }
 0x1f1   :  { %v1424_v44 = vadd.f32 %v7157_v59, %v1135_v53  ;;  %v1513_v31 = vmax.f32 %v1421_v38, 0.0  ;;  %v7401_v59 = vld [vmem:[%s10449_s5] ss:$0 sm:$0xff]  ;;  %v7429_v38 = vpop.permute.xlu1 %2129 }
 0x1f3   :  { %v1514_v5 = vmax.f32 %v1424_v44, 0.0 }
 0x1f4   :  { %v1139_v12 = vpop.f32.mrb[112].mxu0 }
 0x1f5   :  { %v1550_v61 = vpack.c.bf16 %v1514_v5, %v1513_v31  ;;  %v1140_v29 = vadd.f32 %v7374_v60, %v1139_v12  ;;  %v1141_v56 = vpop.f32.mrb[113].mxu0 }
 0x1f6   :  { %v1142_v47 = vpop.f32.mrb[114].mxu0 }
 0x1f7   :  { %v1429_v55 = vadd.f32 %v7183_v25, %v1140_v29  ;;  %v1143_v16 = vadd.f32 %v7374_v60, %v1142_v47  ;;  %5687 = vmatmul.mubr.msk.bf16.gmra.mrb[116].mxu1 %vm784_vm0, %v1550_v61  ;;  %v1144_v32 = vpop.f32.mrb[115].mxu0  ;;  %v7436_v61 = vpop.permute.xlu0 %2135 }
 0x1f8   :  { %10623 = vst [vmem:[#allocation8_spill] sm:$0xff] %v7436_v61 }
 0x1f9   :  { %v1432_v43 = vadd.f32 %v7192_v45, %v1143_v16  ;;  %v1515_v54 = vmax.f32 %v1429_v55, 0.0  ;;  %v7440_v16 = vpop.permute.xlu1 %2133 }
 0x1fa   :  { %v5636_v20 = vpop.f32.mrb[64].mxu1  ;;  %10624 = vst [vmem:[#allocation9_spill] sm:$0xff] %v7440_v16 }
 0x1fb   :  { %v1516_v17 = vmax.f32 %v1432_v43, 0.0  ;;  %v7409_v25 = vadd.f32 %v5636_v20, %v7401_v59  ;;  %v1708_v27 = vpop.f32.mrb[65].mxu1 }
 0x1fc   :  { %v7412_v42 = vadd.f32 %v7401_v59, %v1708_v27  ;;  %v1147_v0 = vpop.f32.mrb[116].mxu0  ;;  %v5637_v14 = vpop.f32.mrb[66].mxu1 }
 0x1fd   :  { %v1551_v35 = vpack.c.bf16 %v1516_v17, %v1515_v54  ;;  %v2415_v22 = vmul.f32 1.442695, %v7409_v25  ;;  %v5432_v28 = vmul.f32 -1.442695, %v7409_v25  ;;  %v1149_v45 = vpop.f32.mrb[117].mxu0  ;;  %v1711_v21 = vpop.f32.mrb[67].mxu1  ;;  %v1148_v36 = vadd.f32 %v7374_v60, %v1147_v0 }
 0x1fe   :  { %v2411_v10 = vmul.f32 1.442695, %v7412_v42  ;;  %v5430_v4 = vmul.f32 -1.442695, %v7412_v42  ;;  %v1150_v51 = vpop.f32.mrb[118].mxu0  ;;  %v7422_v52 = vadd.f32 %v5637_v14, %v7401_v59  ;;  %v7425_v40 = vadd.f32 %v7401_v59, %v1711_v21 }
 0x1ff   :  { %5855 = vpow2.f32 %v2415_v22  ;;  %v1151_v19 = vadd.f32 %v7374_v60, %v1150_v51  ;;  %5690 = vmatprep.mubr.msk.bf16.mxu1 %vm784_vm0, %v1551_v35  ;;  %v1152_v18 = vpop.f32.mrb[119].mxu0  ;;  %v1437_v53 = vadd.f32 %v7177_v48, %v1148_v36  ;;  %v7446_v22 = vpop.permute.xlu0 %2139 }
 0x200   :  { %5857 = vpow2.f32 %v5432_v28  ;;  %v5433_v46 = vmul.f32 -1.442695, %v7422_v52  ;;  %v5431_v44 = vmul.f32 -1.442695, %v7425_v40  ;;  %v2417_v31 = vmul.f32 1.442695, %v7422_v52  ;;  %v7451_v36 = vpop.permute.xlu1 %2137 }
 0x201   :  { %5859 = vpow2.f32 %v2411_v10  ;;  %v1440_v5 = vadd.f32 %v7186_v3, %v1151_v19  ;;  %v1517_v29 = vmax.f32 %v1437_v53, 0.0  ;;  %v2413_v56 = vmul.f32 1.442695, %v7425_v40  ;;  %10625 = vst [vmem:[#allocation10_spill] sm:$0xff] %v7446_v22  ;;  %10626 = vst [vmem:[#allocation11_spill] sm:$0xff] %v7451_v36  ;;  %v7459_v53 = vld [vmem:[%s10445_s1 + $0x10] sm:$0xff] }
 0x202   :  { %5861 = vpow2.f32 %v5430_v4 }
 0x203   :  { %5863 = vpow2.f32 %v5433_v46  ;;  %v1518_v47 = vmax.f32 %v1440_v5, 0.0 }
 0x204   :  { %v1155_v12 = vpop.f32.mrb[120].mxu0  ;;  %5865 = vpow2.f32 %v5431_v44 }
 0x205   :  { %v1156_v48 = vadd.f32 %v7374_v60, %v1155_v12  ;;  %v1157_v55 = vpop.f32.mrb[121].mxu0  ;;  %5867 = vpow2.f32 %v2417_v31  ;;  %v1552_v43 = vpack.c.bf16 %v1518_v47, %v1517_v29 }
 0x206   :  { %v1158_v32 = vpop.f32.mrb[122].mxu0  ;;  %5869 = vpow2.f32 %v2413_v56 }
 0x207   :  { %v1445_v20 = vadd.f32 %v7212_v2, %v1156_v48  ;;  %v1159_v3 = vadd.f32 %v7374_v60, %v1158_v32  ;;  %v1160_v54 = vpop.f32.mrb[123].mxu0  ;;  %5691 = vmatmul.mubr.msk.bf16.gmra.mrb[120].mxu1 %vm784_vm0, %v1552_v43 }
 0x209   :  { %v5856_v17 = vpop.eup %5855  ;;  %v1448_v27 = vadd.f32 %v7221_v9, %v1159_v3  ;;  %v1519_v21 = vmax.f32 %v1445_v20, 0.0 }
 0x20a   :  { %v5858_v0 = vpop.eup %5857  ;;  %v5640_v14 = vpop.f32.mrb[68].mxu1  ;;  %v2541_v35 = vmul.f32 0.5, %v5856_v17 }
 0x20b   :  { %v5860_v28 = vpop.eup %5859  ;;  %v3952_v45 = vadd.f32 1.0, %v5858_v0  ;;  %v1520_v10 = vmax.f32 %v1448_v27, 0.0  ;;  %v7449_v2 = vadd.f32 %v5640_v14, %v7401_v59  ;;  %v1724_v4 = vpop.f32.mrb[69].mxu1 }
 0x20c   :  { %v5862_v51 = vpop.eup %5861  ;;  %v7454_v9 = vadd.f32 %v7401_v59, %v1724_v4  ;;  %v1163_v19 = vpop.f32.mrb[124].mxu0  ;;  %v2605_v46 = vmul.f32 %v7459_v53, %v2541_v35  ;;  %v2539_v48 = vmul.f32 0.5, %v5860_v28 }
 0x20d   :  { %v5641_v18 = vpop.f32.mrb[70].mxu1  ;;  %v3950_v44 = vadd.f32 1.0, %v5862_v51  ;;  %v1553_v31 = vpack.c.bf16 %v1520_v10, %v1519_v21  ;;  %v2423_v5 = vmul.f32 1.442695, %v7449_v2  ;;  %v1165_v12 = vpop.f32.mrb[125].mxu0  ;;  %5871 = vrcp.f32 %v3952_v45 }
 0x20e   :  { %v1727_v29 = vpop.f32.mrb[71].mxu1  ;;  %v5864_v56 = vpop.eup %5863  ;;  %v5436_v47 = vmul.f32 -1.442695, %v7449_v2  ;;  %2735 = vrot.lane.b32.xlu0 %v2605_v46, %s6391_s7  ;;  %v2419_v32 = vmul.f32 1.442695, %v7454_v9  ;;  %v1164_v43 = vadd.f32 %v7374_v60, %v1163_v19  ;;  %v7469_v54 = vadd.f32 %v5641_v18, %v7401_v59 }
 0x20f   :  { %5873 = vrcp.f32 %v3950_v44  ;;  %v3953_v55 = vadd.f32 1.0, %v5864_v56  ;;  %v1166_v20 = vpop.f32.mrb[126].mxu0  ;;  %5694 = vmatprep.mubr.msk.bf16.mxu1 %vm784_vm0, %v1553_v31  ;;  %v5866_v3 = vpop.eup %5865  ;;  %v7472_v17 = vadd.f32 %v7401_v59, %v1727_v29  ;;  %v5434_v45 = vmul.f32 -1.442695, %v7454_v9  ;;  %v7495_v29 = vld [vmem:[%s10445_s1 + $0x18] sm:$0xff] }
 0x210   :  { %5875 = vpow2.f32 %v2423_v5  ;;  %v1167_v27 = vadd.f32 %v7374_v60, %v1166_v20  ;;  %v7475_v0 = vpop.permute.xlu0 %2143  ;;  %v1168_v14 = vpop.f32.mrb[127].mxu0  ;;  %v3951_v28 = vadd.f32 1.0, %v5866_v3  ;;  %v1453_v21 = vadd.f32 %v7206_v1, %v1164_v43  ;;  %v7489_v1 = vld [vmem:[%s10445_s1] sm:$0xff]  ;;  %v7507_v3 = vld [vmem:[%s10445_s1 + $0x8] sm:$0xff] }
 0x211   :  { %10627 = vst [vmem:[#allocation12_spill] sm:$0xff] %v7475_v0  ;;  %v5868_v35 = vpop.eup %5867  ;;  %5877 = vrcp.f32 %v3953_v55  ;;  %v2425_v10 = vmul.f32 1.442695, %v7469_v54  ;;  %v7480_v4 = vpop.permute.xlu1 %2141  ;;  %v5437_v19 = vmul.f32 -1.442695, %v7469_v54  ;;  %v2603_v5 = vmul.f32 %v7489_v1, %v2539_v48 }
 0x212   :  { %5879 = vpow2.f32 %v5436_v47  ;;  %10628 = vst [vmem:[#allocation13_spill] sm:$0xff] %v7480_v4  ;;  %v5870_v51 = vpop.eup %5869  ;;  %v2421_v60 = vmul.f32 1.442695, %v7472_v17  ;;  %v1456_v18 = vadd.f32 %v7215_v8, %v1167_v27  ;;  %v2542_v46 = vmul.f32 0.5, %v5868_v35 }
 0x213   :  { %5881 = vrcp.f32 %v3951_v28  ;;  %v1521_v44 = vmax.f32 %v1453_v21, 0.0  ;;  %v5435_v31 = vmul.f32 -1.442695, %v7472_v17  ;;  %v2540_v56 = vmul.f32 0.5, %v5870_v51  ;;  %2731 = vrot.lane.b32.xlu0 %v2603_v5, %s6391_s7 }
 0x214   :  { %5883 = vpow2.f32 %v2419_v32  ;;  %v1522_v12 = vmax.f32 %v1456_v18, 0.0  ;;  %v2606_v8 = vmul.f32 %v7495_v29, %v2542_v46  ;;  %v7498_v47 = vpop.permute.xlu0 %2147 }
 0x215   :  { %5885 = vpow2.f32 %v5434_v45  ;;  %10629 = vst [vmem:[#allocation14_spill] sm:$0xff] %v7498_v47  ;;  %v7502_v48 = vpop.permute.xlu1 %2145  ;;  %v2604_v27 = vmul.f32 %v7507_v3, %v2540_v56 }
 0x216   :  { %5887 = vpow2.f32 %v2425_v10  ;;  %v1554_v32 = vpack.c.bf16 %v1522_v12, %v1521_v44  ;;  %2737 = vrot.lane.b32.xlu1 %v2606_v8, %s6391_s7  ;;  %10630 = vst [vmem:[#allocation15_spill] sm:$0xff] %v7502_v48 }
 0x217   :  { %5889 = vpow2.f32 %v5437_v19  ;;  %v5872_v55 = vpop.eup %5871 }
 0x218   :  { %5891 = vpow2.f32 %v2421_v60  ;;  %5695 = vmatmul.mubr.msk.bf16.gmra.mrb[124].mxu1 %vm784_vm0, %v1554_v32  ;;  %4210 = vrot.lane.b32.xlu0 %v5872_v55, %s6392_s14  ;;  %v7519_v60 = vpop.permute.xlu0 %2151 }
 0x219   :  { %v5874_v43 = vpop.eup %5873  ;;  %5893 = vpow2.f32 %v5435_v31  ;;  %10631 = vst [vmem:[#allocation16_spill] sm:$0xff] %v7519_v60  ;;  %v7523_v8 = vpop.permute.xlu1 %2149 }
 0x21a   :  { %v5876_v20 = vpop.eup %5875  ;;  %v5644_v14 = vpop.f32.mrb[72].mxu1  ;;  %2733 = vrot.lane.b32.xlu1 %v2604_v27, %s6391_s7  ;;  %10632 = vst [vmem:[#allocation17_spill] sm:$0xff] %v7523_v8 }
 0x21b   :  { %v5878_v35 = vpop.eup %5877  ;;  %v7513_v28 = vadd.f32 %v5644_v14, %v7401_v59  ;;  %v1740_v45 = vpop.f32.mrb[73].mxu1  ;;  %v2545_v21 = vmul.f32 0.5, %v5876_v20  ;;  %v6244_v20 = vld [vmem:[%s10445_s1 + $0x30] sm:$0xff] }
 0x21c   :  { %v5880_v10 = vpop.eup %5879  ;;  %v7517_v51 = vadd.f32 %v7401_v59, %v1740_v45  ;;  %v5645_v19 = vpop.f32.mrb[74].mxu1  ;;  %4206 = vrot.lane.b32.xlu0 %v5874_v43, %s6392_s14 }
 0x21d   :  { %v5882_v18 = vpop.eup %5881  ;;  %v3956_v46 = vadd.f32 1.0, %v5880_v10  ;;  %v2431_v44 = vmul.f32 1.442695, %v7513_v28  ;;  %v5440_v31 = vmul.f32 -1.442695, %v7513_v28  ;;  %v1743_v5 = vpop.f32.mrb[75].mxu1  ;;  %v7528_v32 = vadd.f32 %v5645_v19, %v7401_v59 }
 0x21e   :  { %v5884_v12 = vpop.eup %5883  ;;  %v2427_v55 = vmul.f32 1.442695, %v7517_v51  ;;  %v2609_v27 = vmul.f32 %v6244_v20, %v2545_v21  ;;  %4212 = vrot.lane.b32.xlu1 %v5878_v35, %s6392_s14  ;;  %v7536_v8 = vadd.f32 %v7401_v59, %v1743_v5  ;;  %v7538_v4 = vpop.permute.xlu0 %2155  ;;  %v6246_v20 = vld [vmem:[%s10445_s1 + $0x20] sm:$0xff] }
 0x21f   :  { %v5886_v56 = vpop.eup %5885  ;;  %5895 = vrcp.f32 %v3956_v46  ;;  %v5438_v46 = vmul.f32 -1.442695, %v7517_v51  ;;  %v2543_v43 = vmul.f32 0.5, %v5884_v12  ;;  %10633 = vst [vmem:[#allocation18_spill] sm:$0xff] %v7538_v4  ;;  %v7547_v12 = vpop.permute.xlu1 %2153 }
 0x220   :  { %v5888_v14 = vpop.eup %5887  ;;  %v3954_v45 = vadd.f32 1.0, %v5886_v56  ;;  %5897 = vpow2.f32 %v2431_v44  ;;  %v2433_v56 = vmul.f32 1.442695, %v7528_v32  ;;  %2743 = vrot.lane.b32.xlu0 %v2609_v27, %s6391_s7  ;;  %v5441_v44 = vmul.f32 -1.442695, %v7528_v32  ;;  %10634 = vst [vmem:[#allocation19_spill] sm:$0xff] %v7547_v12 }
 0x221   :  { %v5890_v10 = vpop.eup %5889  ;;  %5899 = vpow2.f32 %v5440_v31  ;;  %v2546_v60 = vmul.f32 0.5, %v5888_v14  ;;  %v6245_v31 = vld [vmem:[%s10445_s1 + $0x38] sm:$0xff]  ;;  %v5439_v27 = vmul.f32 -1.442695, %v7536_v8 }
 0x222   :  { %v5892_v19 = vpop.eup %5891  ;;  %5901 = vrcp.f32 %v3954_v45  ;;  %v3957_v47 = vadd.f32 1.0, %v5890_v10  ;;  %4208 = vrot.lane.b32.xlu1 %v5882_v18, %s6392_s14  ;;  %v6247_v10 = vld [vmem:[%s10445_s1 + $0x28] sm:$0xff] }
 0x223   :  { %v5894_v21 = vpop.eup %5893  ;;  %5903 = vpow2.f32 %v2427_v55  ;;  %v2610_v5 = vmul.f32 %v6245_v31, %v2546_v60  ;;  %v2429_v55 = vmul.f32 1.442695, %v7536_v8  ;;  %v2544_v14 = vmul.f32 0.5, %v5892_v19  ;;  %v7556_v60 = vpop.permute.xlu0 %2159 }
 0x224   :  { %5905 = vrcp.f32 %v3957_v47  ;;  %v3955_v35 = vadd.f32 1.0, %v5894_v21  ;;  %v2607_v47 = vmul.f32 %v6246_v20, %v2543_v43  ;;  %10635 = vst [vmem:[#allocation20_spill] sm:$0xff] %v7556_v60  ;;  %v7561_v21 = vpop.permute.xlu1 %2157 }
 0x225   :  { %5907 = vpow2.f32 %v5438_v46  ;;  %v2608_v46 = vmul.f32 %v6247_v10, %v2544_v14  ;;  %10636 = vst [vmem:[#allocation21_spill] sm:$0xff] %v7561_v21 }
 0x226   :  { %5909 = vrcp.f32 %v3955_v35  ;;  %2739 = vrot.lane.b32.xlu0 %v2607_v47, %s6391_s7  ;;  %2745 = vrot.lane.b32.xlu1 %v2610_v5, %s6391_s7 }
 0x227   :  { %5911 = vpow2.f32 %v2433_v56  ;;  %v7577_v21 = vpop.permute.xlu0 %2163 }
 0x228   :  { %5913 = vpow2.f32 %v5441_v44  ;;  %10637 = vst [vmem:[#allocation22_spill] sm:$0xff] %v7577_v21 }
 0x229   :  { %v5896_v18 = vpop.eup %5895  ;;  %5915 = vpow2.f32 %v2429_v55 }
 0x22a   :  { %v5898_v45 = vpop.eup %5897  ;;  %5917 = vpow2.f32 %v5439_v27  ;;  %v5648_v43 = vpop.f32.mrb[76].mxu1  ;;  %4218 = vrot.lane.b32.xlu0 %v5896_v18, %s6392_s14  ;;  %2741 = vrot.lane.b32.xlu1 %v2608_v46, %s6391_s7 }
 0x22b   :  { %v5900_v19 = vpop.eup %5899  ;;  %v7565_v56 = vadd.f32 %v5648_v43, %v7401_v59  ;;  %v1756_v35 = vpop.f32.mrb[77].mxu1  ;;  %v2549_v20 = vmul.f32 0.5, %v5898_v45 }
 0x22c   :  { %v5902_v44 = vpop.eup %5901  ;;  %v3960_v31 = vadd.f32 1.0, %v5900_v19  ;;  %v7569_v5 = vadd.f32 %v7401_v59, %v1756_v35  ;;  %v5649_v55 = vpop.f32.mrb[78].mxu1 }
 0x22d   :  { %v5904_v47 = vpop.eup %5903  ;;  %v2439_v27 = vmul.f32 1.442695, %v7565_v56  ;;  %v5444_v14 = vmul.f32 -1.442695, %v7565_v56  ;;  %v7574_v18 = vadd.f32 %v5649_v55, %v7401_v59  ;;  %v1759_v10 = vpop.f32.mrb[79].mxu1 }
 0x22e   :  { %v5906_v43 = vpop.eup %5905  ;;  %5919 = vrcp.f32 %v3960_v31  ;;  %v2435_v19 = vmul.f32 1.442695, %v7569_v5  ;;  %v5442_v35 = vmul.f32 -1.442695, %v7569_v5  ;;  %4214 = vrot.lane.b32.xlu0 %v5902_v44, %s6392_s14  ;;  %v7584_v55 = vadd.f32 %v7401_v59, %v1759_v10  ;;  %v6248_v31 = vld [vmem:[%s10445_s1 + $0x50] sm:$0xff] }
 0x22f   :  { %v5908_v46 = vpop.eup %5907  ;;  %5921 = vpow2.f32 %v2439_v27  ;;  %v2441_v45 = vmul.f32 1.442695, %v7574_v18  ;;  %4220 = vrot.lane.b32.xlu1 %v5906_v43, %s6392_s14  ;;  %v2613_v21 = vmul.f32 %v6248_v31, %v2549_v20  ;;  %v7589_v27 = vpop.permute.xlu1 %2161  ;;  %v2547_v44 = vmul.f32 0.5, %v5904_v47 }
 0x230   :  { %v5910_v4 = vpop.eup %5909  ;;  %v3958_v60 = vadd.f32 1.0, %v5908_v46  ;;  %5923 = vpow2.f32 %v5444_v14  ;;  %10638 = vst [vmem:[#allocation23_spill] sm:$0xff] %v7589_v27  ;;  %v5445_v46 = vmul.f32 -1.442695, %v7574_v18  ;;  %v2437_v0 = vmul.f32 1.442695, %v7584_v55 }
 0x231   :  { %v5912_v12 = vpop.eup %5911  ;;  %5925 = vpow2.f32 %v2435_v19  ;;  %v5443_v20 = vmul.f32 -1.442695, %v7584_v55  ;;  %v7596_v19 = vpop.permute.xlu0 %2167 }
 0x232   :  { %v5914_v22 = vpop.eup %5913  ;;  %5927 = vrcp.f32 %v3958_v60  ;;  %2751 = vrot.lane.b32.xlu0 %v2613_v21, %s6391_s7  ;;  %v2550_v14 = vmul.f32 0.5, %v5912_v12  ;;  %10639 = vst [vmem:[#allocation24_spill] sm:$0xff] %v7596_v19  ;;  %v6250_v12 = vld [vmem:[%s10445_s1 + $0x40] sm:$0xff] }
 0x233   :  { %v5916_v48 = vpop.eup %5915  ;;  %v3961_v43 = vadd.f32 1.0, %v5914_v22  ;;  %5929 = vpow2.f32 %v5442_v35  ;;  %4216 = vrot.lane.b32.xlu1 %v5910_v4, %s6392_s14  ;;  %v6249_v22 = vld [vmem:[%s10445_s1 + $0x58] sm:$0xff]  ;;  %v2611_v21 = vmul.f32 %v6250_v12, %v2547_v44 }
 0x234   :  { %v5918_v10 = vpop.eup %5917  ;;  %5931 = vpow2.f32 %v2441_v45  ;;  %v2614_v47 = vmul.f32 %v6249_v22, %v2550_v14  ;;  %v2548_v35 = vmul.f32 0.5, %v5916_v48  ;;  %v7604_v45 = vpop.permute.xlu1 %2165  ;;  %v6251_v14 = vld [vmem:[%s10445_s1 + $0x48] sm:$0xff] }
 0x235   :  { %5933 = vrcp.f32 %v3961_v43  ;;  %v3959_v60 = vadd.f32 1.0, %v5918_v10  ;;  %10640 = vst [vmem:[#allocation25_spill] sm:$0xff] %v7604_v45 }
 0x236   :  { %5935 = vpow2.f32 %v5445_v46  ;;  %2747 = vrot.lane.b32.xlu0 %v2611_v21, %s6391_s7  ;;  %v2612_v10 = vmul.f32 %v6251_v14, %v2548_v35  ;;  %v7611_v46 = vpop.permute.xlu0 %2171 }
 0x237   :  { %5937 = vrcp.f32 %v3959_v60  ;;  %2753 = vrot.lane.b32.xlu1 %v2614_v47, %s6391_s7  ;;  %10641 = vst [vmem:[#allocation26_spill] sm:$0xff] %v7611_v46 }
 0x238   :  { %v5920_v4 = vpop.eup %5919  ;;  %5939 = vpow2.f32 %v2437_v0  ;;  %v7621_v35 = vpop.permute.xlu1 %2169 }
 0x239   :  { %v5922_v31 = vpop.eup %5921  ;;  %5941 = vpow2.f32 %v5443_v20  ;;  %10642 = vst [vmem:[#allocation27_spill] sm:$0xff] %v7621_v35 }
 0x23a   :  { %v5924_v43 = vpop.eup %5923  ;;  %v5652_v44 = vpop.f32.mrb[80].mxu1  ;;  %4226 = vrot.lane.b32.xlu0 %v5920_v4, %s6392_s14  ;;  %v2553_v47 = vmul.f32 0.5, %v5922_v31 }
 0x23b   :  { %v5926_v48 = vpop.eup %5925  ;;  %v3964_v22 = vadd.f32 1.0, %v5924_v43  ;;  %v7615_v60 = vadd.f32 %v5652_v44, %v7401_v59  ;;  %v1772_v0 = vpop.f32.mrb[81].mxu1  ;;  %2749 = vrot.lane.b32.xlu1 %v2612_v10, %s6391_s7 }
 0x23c   :  { %v5928_v12 = vpop.eup %5927  ;;  %v7619_v20 = vadd.f32 %v7401_v59, %v1772_v0  ;;  %v5653_v21 = vpop.f32.mrb[82].mxu1  ;;  %v6252_v0 = vld [vmem:[%s10445_s1 + $0x70] sm:$0xff]  ;;  %v2551_v36 = vmul.f32 0.5, %v5926_v48 }
 0x23d   :  { %v5930_v14 = vpop.eup %5929  ;;  %v2447_v46 = vmul.f32 1.442695, %v7615_v60  ;;  %v5448_v43 = vmul.f32 -1.442695, %v7615_v60  ;;  %v1775_v4 = vpop.f32.mrb[83].mxu1  ;;  %5943 = vrcp.f32 %v3964_v22  ;;  %v7628_v10 = vadd.f32 %v5653_v21, %v7401_v59 }
 0x23e   :  { %v5932_v45 = vpop.eup %5931  ;;  %v3962_v44 = vadd.f32 1.0, %v5930_v14  ;;  %v2443_v31 = vmul.f32 1.442695, %v7619_v20  ;;  %4222 = vrot.lane.b32.xlu0 %v5928_v12, %s6392_s14  ;;  %v2617_v35 = vmul.f32 %v6252_v0, %v2553_v47  ;;  %v5446_v22 = vmul.f32 -1.442695, %v7619_v20  ;;  %v7638_v16 = vpop.permute.xlu0 %2175 }
 0x23f   :  { %v5934_v19 = vpop.eup %5933  ;;  %5945 = vpow2.f32 %v2447_v46  ;;  %v7636_v14 = vadd.f32 %v7401_v59, %v1775_v4  ;;  %v2554_v46 = vmul.f32 0.5, %v5932_v45  ;;  %10644 = vst [vmem:[#allocation29_spill] sm:$0xff] %v7638_v16  ;;  %v2449_v30 = vmul.f32 1.442695, %v7628_v10  ;;  %v7641_v47 = vpop.permute.xlu1 %2173 }
 0x240   :  { %v5936_v27 = vpop.eup %5935  ;;  %5947 = vrcp.f32 %v3962_v44  ;;  %4228 = vrot.lane.b32.xlu1 %v5934_v19, %s6392_s14  ;;  %10645 = vst [vmem:[#allocation30_spill] sm:$0xff] %v7641_v47  ;;  %v5449_v19 = vmul.f32 -1.442695, %v7628_v10 }
 0x241   :  { %10643 = vst [vmem:[#allocation28_spill] sm:$0xff] %v7636_v14  ;;  %v5938_v12 = vpop.eup %5937  ;;  %v3965_v21 = vadd.f32 1.0, %v5936_v27  ;;  %5949 = vpow2.f32 %v5448_v43  ;;  %v2445_v45 = vmul.f32 1.442695, %v7636_v14  ;;  %v6253_v27 = vld [vmem:[%s10445_s1 + $0x78] sm:$0xff] }
 0x242   :  { %v5940_v61 = vpop.eup %5939  ;;  %5951 = vpow2.f32 %v2443_v31  ;;  %2759 = vrot.lane.b32.xlu0 %v2617_v35, %s6391_s7  ;;  %v2618_v48 = vmul.f32 %v6253_v27, %v2554_v46  ;;  %v5447_v43 = vmul.f32 -1.442695, %v7636_v14  ;;  %v6254_v31 = vld [vmem:[%s10445_s1 + $0x60] sm:$0xff] }
 0x243   :  { %v5942_v44 = vpop.eup %5941  ;;  %5953 = vrcp.f32 %v3965_v21  ;;  %v2615_v0 = vmul.f32 %v6254_v31, %v2551_v36  ;;  %v2552_v35 = vmul.f32 0.5, %v5940_v61  ;;  %v7658_v46 = vpop.permute.xlu1 %2177  ;;  %v6255_v36 = vld [vmem:[%s10445_s1 + $0x68] sm:$0xff] }
 0x244   :  { %v3963_v4 = vadd.f32 1.0, %v5942_v44  ;;  %5955 = vpow2.f32 %v5446_v22  ;;  %4224 = vrot.lane.b32.xlu1 %v5938_v12, %s6392_s14  ;;  %v7654_v22 = vpop.permute.xlu0 %2179  ;;  %10647 = vst [vmem:[#allocation32_spill] sm:$0xff] %v7658_v46 }
 0x245   :  { %5957 = vpow2.f32 %v2449_v30  ;;  %10646 = vst [vmem:[#allocation31_spill] sm:$0xff] %v7654_v22  ;;  %v2616_v44 = vmul.f32 %v6255_v36, %v2552_v35 }
 0x246   :  { %5959 = vrcp.f32 %v3963_v4  ;;  %2755 = vrot.lane.b32.xlu0 %v2615_v0, %s6391_s7 }
 0x247   :  { %5961 = vpow2.f32 %v5449_v19  ;;  %v5944_v12 = vpop.eup %5943 }
 0x248   :  { %5963 = vpow2.f32 %v2445_v45  ;;  %2761 = vrot.lane.b32.xlu1 %v2618_v48, %s6391_s7  ;;  %v7671_v22 = vpop.permute.xlu0 %2183 }
 0x249   :  { %v5946_v30 = vpop.eup %5945  ;;  %5965 = vpow2.f32 %v5447_v43  ;;  %10650 = vst [vmem:[#allocation35_spill] sm:$0xff] %v7671_v22 }
 0x24a   :  { %v5948_v21 = vpop.eup %5947  ;;  %v5656_v61 = vpop.f32.mrb[84].mxu1  ;;  %v2557_v4 = vmul.f32 0.5, %v5946_v30  ;;  %4234 = vrot.lane.b32.xlu0 %v5944_v12, %s6392_s14 }
 0x24b   :  { %v5950_v27 = vpop.eup %5949  ;;  %v7665_v19 = vadd.f32 %v5656_v61, %v7401_v59  ;;  %v1788_v45 = vpop.f32.mrb[85].mxu1 }
 0x24c   :  { %v5952_v48 = vpop.eup %5951  ;;  %v3968_v31 = vadd.f32 1.0, %v5950_v27  ;;  %2757 = vrot.lane.b32.xlu1 %v2616_v44, %s6391_s7  ;;  %v7669_v43 = vadd.f32 %v7401_v59, %v1788_v45  ;;  %v5657_v0 = vpop.f32.mrb[86].mxu1  ;;  %v6256_v44 = vld [vmem:[%s10445_s1 + $0x90] sm:$0xff] }
 0x24d   :  { %10648 = vst [vmem:[#allocation33_spill] sm:$0xff] %v7665_v19  ;;  %v5954_v35 = vpop.eup %5953  ;;  %v2455_v30 = vmul.f32 1.442695, %v7665_v19  ;;  %v5452_v36 = vmul.f32 -1.442695, %v7665_v19  ;;  %v1791_v12 = vpop.f32.mrb[87].mxu1  ;;  %v2621_v27 = vmul.f32 %v6256_v44, %v2557_v4  ;;  %v7684_v19 = vadd.f32 %v5657_v0, %v7401_v59 }
 0x24e   :  { %10649 = vst [vmem:[#allocation34_spill] sm:$0xff] %v7669_v43  ;;  %v5956_v47 = vpop.eup %5955  ;;  %5967 = vrcp.f32 %v3968_v31  ;;  %v2451_v61 = vmul.f32 1.442695, %v7669_v43  ;;  %v7679_v45 = vpop.permute.xlu1 %2181  ;;  %v5450_v22 = vmul.f32 -1.442695, %v7669_v43  ;;  %4230 = vrot.lane.b32.xlu0 %v5948_v21, %s6392_s14  ;;  %v7688_v6 = vadd.f32 %v7401_v59, %v1791_v12  ;;  %v6258_v12 = vld [vmem:[%s10445_s1 + $0x80] sm:$0xff] }
 0x24f   :  { %10651 = vst [vmem:[#allocation36_spill] sm:$0xff] %v7679_v45  ;;  %v5958_v46 = vpop.eup %5957  ;;  %v3966_v16 = vadd.f32 1.0, %v5956_v47  ;;  %5969 = vpow2.f32 %v2455_v30  ;;  %10652 = vst [vmem:[#allocation37_spill] sm:$0xff] %v7684_v19  ;;  %v2555_v45 = vmul.f32 0.5, %v5952_v48  ;;  %v2457_v47 = vmul.f32 1.442695, %v7684_v19  ;;  %v7691_v21 = vpop.permute.xlu0 %2187 }
 0x250   :  { %v5960_v31 = vpop.eup %5959  ;;  %4236 = vrot.lane.b32.xlu1 %v5954_v35, %s6392_s14  ;;  %5971 = vpow2.f32 %v5452_v36  ;;  %10653 = vst [vmem:[#allocation38_spill] sm:$0xff] %v7688_v6  ;;  %v2558_v4 = vmul.f32 0.5, %v5958_v46  ;;  %10654 = vst [vmem:[#allocation39_spill] sm:$0xff] %v7691_v21  ;;  %v5453_v14 = vmul.f32 -1.442695, %v7684_v19 }
 0x251   :  { %v5962_v44 = vpop.eup %5961  ;;  %5973 = vrcp.f32 %v3966_v16  ;;  %v2453_v46 = vmul.f32 1.442695, %v7688_v6  ;;  %v6257_v16 = vld [vmem:[%s10445_s1 + $0x98] sm:$0xff] }
 0x252   :  { %v5964_v30 = vpop.eup %5963  ;;  %v3969_v43 = vadd.f32 1.0, %v5962_v44  ;;  %5975 = vpow2.f32 %v2451_v61  ;;  %2767 = vrot.lane.b32.xlu0 %v2621_v27, %s6391_s7  ;;  %v2622_v48 = vmul.f32 %v6257_v16, %v2558_v4  ;;  %v7700_v36 = vpop.permute.xlu1 %2185 }
 0x253   :  { %v5966_v0 = vpop.eup %5965  ;;  %5977 = vpow2.f32 %v5450_v22  ;;  %10655 = vst [vmem:[#allocation40_spill] sm:$0xff] %v7700_v36  ;;  %v5451_v22 = vmul.f32 -1.442695, %v7688_v6  ;;  %v2556_v61 = vmul.f32 0.5, %v5964_v30 }
 0x254   :  { %5979 = vrcp.f32 %v3969_v43  ;;  %v3967_v35 = vadd.f32 1.0, %v5966_v0  ;;  %4232 = vrot.lane.b32.xlu1 %v5960_v31, %s6392_s14  ;;  %v2619_v43 = vmul.f32 %v6258_v12, %v2555_v45  ;;  %v7708_v31 = vpop.permute.xlu0 %2191 }
 0x255   :  { %5981 = vpow2.f32 %v2457_v47  ;;  %10656 = vst [vmem:[#allocation41_spill] sm:$0xff] %v7708_v31  ;;  %v6259_v47 = vld [vmem:[%s10445_s1 + $0x88] sm:$0xff] }
 0x256   :  { %5983 = vrcp.f32 %v3967_v35  ;;  %2763 = vrot.lane.b32.xlu0 %v2619_v43, %s6391_s7  ;;  %v2620_v0 = vmul.f32 %v6259_v47, %v2556_v61  ;;  %v7713_v30 = vpop.permute.xlu1 %2189 }
 0x257   :  { %5985 = vpow2.f32 %v5453_v14  ;;  %10657 = vst [vmem:[#allocation42_spill] sm:$0xff] %v7713_v30 }
 0x258   :  { %v5968_v27 = vpop.eup %5967  ;;  %5987 = vpow2.f32 %v2453_v46  ;;  %2769 = vrot.lane.b32.xlu1 %v2622_v48, %s6391_s7 }
 0x259   :  { %v5970_v4 = vpop.eup %5969  ;;  %5989 = vpow2.f32 %v5451_v22 }
 0x25a   :  { %v5972_v44 = vpop.eup %5971  ;;  %v5660_v45 = vpop.f32.mrb[88].mxu1  ;;  %v2561_v35 = vmul.f32 0.5, %v5970_v4  ;;  %4242 = vrot.lane.b32.xlu0 %v5968_v27, %s6392_s14 }
 0x25b   :  { %v5974_v14 = vpop.eup %5973  ;;  %v3972_v16 = vadd.f32 1.0, %v5972_v44  ;;  %v7717_v46 = vadd.f32 %v5660_v45, %v7401_v59  ;;  %v1804_v48 = vpop.f32.mrb[89].mxu1 }
 0x25c   :  { %v5976_v12 = vpop.eup %5975  ;;  %2765 = vrot.lane.b32.xlu1 %v2620_v0, %s6391_s7  ;;  %v7721_v22 = vadd.f32 %v7401_v59, %v1804_v48  ;;  %v5661_v43 = vpop.f32.mrb[90].mxu1 }
 0x25d   :  { %10658 = vst [vmem:[#allocation43_spill] sm:$0xff] %v7717_v46  ;;  %v5978_v61 = vpop.eup %5977  ;;  %v2463_v47 = vmul.f32 1.442695, %v7717_v46  ;;  %v1807_v30 = vpop.f32.mrb[91].mxu1  ;;  %5991 = vrcp.f32 %v3972_v16  ;;  %v5456_v27 = vmul.f32 -1.442695, %v7717_v46  ;;  %v7731_v48 = vadd.f32 %v5661_v43, %v7401_v59 }
 0x25e   :  { %10659 = vst [vmem:[#allocation44_spill] sm:$0xff] %v7721_v22  ;;  %v5980_v21 = vpop.eup %5979  ;;  %v3970_v4 = vadd.f32 1.0, %v5978_v61  ;;  %v2459_v44 = vmul.f32 1.442695, %v7721_v22  ;;  %v7726_v45 = vpop.permute.xlu0 %2195  ;;  %v5454_v0 = vmul.f32 -1.442695, %v7721_v22  ;;  %4238 = vrot.lane.b32.xlu0 %v5974_v14, %s6392_s14 }
 0x25f   :  { %10660 = vst [vmem:[#allocation45_spill] sm:$0xff] %v7726_v45  ;;  %v5982_v31 = vpop.eup %5981  ;;  %5993 = vpow2.f32 %v2463_v47  ;;  %10661 = vst [vmem:[#allocation46_spill] sm:$0xff] %v7731_v48  ;;  %v6260_v16 = vld [vmem:[%s10445_s1 + $0xb0] sm:$0xff]  ;;  %v7738_v45 = vadd.f32 %v7401_v59, %v1807_v30  ;;  %v7740_v47 = vpop.permute.xlu1 %2193  ;;  %v2559_v14 = vmul.f32 0.5, %v5976_v12  ;;  %v2465_v43 = vmul.f32 1.442695, %v7731_v48 }
 0x260   :  { %v2625_v61 = vmul.f32 %v6260_v16, %v2561_v35  ;;  %v5984_v36 = vpop.eup %5983  ;;  %5995 = vrcp.f32 %v3970_v4  ;;  %v2562_v46 = vmul.f32 0.5, %v5982_v31  ;;  %4244 = vrot.lane.b32.xlu1 %v5980_v21, %s6392_s14  ;;  %10663 = vst [vmem:[#allocation48_spill] sm:$0xff] %v7740_v47  ;;  %v5457_v35 = vmul.f32 -1.442695, %v7731_v48  ;;  %v6261_v30 = vld [vmem:[%s10445_s1 + $0xb8] sm:$0xff]  ;;  %v6263_v16 = vld [vmem:[%s10445_s1 + $0xa8] sm:$0xff] }
 0x261   :  { %10662 = vst [vmem:[#allocation47_spill] sm:$0xff] %v7738_v45  ;;  %v5986_v22 = vpop.eup %5985  ;;  %5997 = vpow2.f32 %v5456_v27  ;;  %v2461_v31 = vmul.f32 1.442695, %v7738_v45  ;;  %v6262_v27 = vld [vmem:[%s10445_s1 + $0xa0] sm:$0xff] }
 0x262   :  { %v5988_v6 = vpop.eup %5987  ;;  %v3973_v19 = vadd.f32 1.0, %v5986_v22  ;;  %5999 = vpow2.f32 %v2459_v44  ;;  %2775 = vrot.lane.b32.xlu0 %v2625_v61, %s6391_s7  ;;  %v2626_v12 = vmul.f32 %v6261_v30, %v2562_v46  ;;  %v7750_v4 = vpop.permute.xlu0 %2199  ;;  %v5455_v22 = vmul.f32 -1.442695, %v7738_v45 }
 0x263   :  { %v5990_v23 = vpop.eup %5989  ;;  %6001 = vpow2.f32 %v5454_v0  ;;  %10664 = vst [vmem:[#allocation49_spill] sm:$0xff] %v7750_v4  ;;  %v7756_v44 = vpop.permute.xlu1 %2197 }
 0x264   :  { %6003 = vrcp.f32 %v3973_v19  ;;  %v3971_v21 = vadd.f32 1.0, %v5990_v23  ;;  %4240 = vrot.lane.b32.xlu1 %v5984_v36, %s6392_s14  ;;  %v2623_v19 = vmul.f32 %v6262_v27, %v2559_v14  ;;  %v2560_v23 = vmul.f32 0.5, %v5988_v6  ;;  %10665 = vst [vmem:[#allocation50_spill] sm:$0xff] %v7756_v44 }
 0x265   :  { %6005 = vpow2.f32 %v2465_v43 }
 0x266   :  { %6007 = vrcp.f32 %v3971_v21  ;;  %2771 = vrot.lane.b32.xlu0 %v2623_v19, %s6391_s7  ;;  %v2624_v61 = vmul.f32 %v6263_v16, %v2560_v23  ;;  %v7763_v6 = vpop.permute.xlu0 %2203 }
 0x267   :  { %6009 = vpow2.f32 %v5457_v35  ;;  %v5992_v36 = vpop.eup %5991  ;;  %10666 = vst [vmem:[#allocation51_spill] sm:$0xff] %v7763_v6  ;;  %v7773_v19 = vpop.permute.xlu1 %2201 }
 0x268   :  { %6011 = vpow2.f32 %v2461_v31  ;;  %2777 = vrot.lane.b32.xlu1 %v2626_v12, %s6391_s7  ;;  %10668 = vst [vmem:[#allocation53_spill] sm:$0xff] %v7773_v19 }
 0x269   :  { %v5994_v46 = vpop.eup %5993  ;;  %6013 = vpow2.f32 %v5455_v22 }
 0x26a   :  { %v5996_v0 = vpop.eup %5995  ;;  %v5664_v14 = vpop.f32.mrb[92].mxu1  ;;  %v2565_v21 = vmul.f32 0.5, %v5994_v46  ;;  %4250 = vrot.lane.b32.xlu0 %v5992_v36, %s6392_s14 }
 0x26b   :  { %v5998_v43 = vpop.eup %5997  ;;  %v7767_v35 = vadd.f32 %v5664_v14, %v7401_v59  ;;  %v1820_v31 = vpop.f32.mrb[93].mxu1 }
 0x26c   :  { %v6000_v30 = vpop.eup %5999  ;;  %v3976_v12 = vadd.f32 1.0, %v5998_v43  ;;  %2773 = vrot.lane.b32.xlu1 %v2624_v61, %s6391_s7  ;;  %v7771_v22 = vadd.f32 %v7401_v59, %v1820_v31  ;;  %v5665_v27 = vpop.f32.mrb[94].mxu1  ;;  %v6264_v31 = vld [vmem:[%s10445_s1 + $0xd0] sm:$0xff] }
 0x26d   :  { %10667 = vst [vmem:[#allocation52_spill] sm:$0xff] %v7767_v35  ;;  %v6002_v23 = vpop.eup %6001  ;;  %v2471_v16 = vmul.f32 1.442695, %v7767_v35  ;;  %v5460_v46 = vmul.f32 -1.442695, %v7767_v35  ;;  %v1823_v36 = vpop.f32.mrb[95].mxu1  ;;  %v7780_v61 = vadd.f32 %v5665_v27, %v7401_v59  ;;  %v2629_v19 = vmul.f32 %v6264_v31, %v2565_v21 }
 0x26e   :  { %v6004_v6 = vpop.eup %6003  ;;  %6015 = vrcp.f32 %v3976_v12  ;;  %v3974_v14 = vadd.f32 1.0, %v6002_v23  ;;  %v2467_v43 = vmul.f32 1.442695, %v7771_v22  ;;  %4246 = vrot.lane.b32.xlu0 %v5996_v0, %s6392_s14  ;;  %v7786_v12 = vpop.permute.xlu0 %2207  ;;  %v7790_v0 = vadd.f32 %v7401_v59, %v1823_v36  ;;  %v6265_v59 = vld [vmem:[%s10445_s1 + $0xd8] sm:$0xff] }
 0x26f   :  { %v6006_v44 = vpop.eup %6005  ;;  %6017 = vpow2.f32 %v2471_v16  ;;  %10669 = vst [vmem:[#allocation54_spill] sm:$0xff] %v7786_v12  ;;  %v2563_v16 = vmul.f32 0.5, %v6000_v30  ;;  %v2473_v35 = vmul.f32 1.442695, %v7780_v61  ;;  %v5458_v48 = vmul.f32 -1.442695, %v7771_v22  ;;  %v7793_v21 = vpop.permute.xlu1 %2205 }
 0x270   :  { %v6008_v4 = vpop.eup %6007  ;;  %v2566_v47 = vmul.f32 0.5, %v6006_v44  ;;  %4252 = vrot.lane.b32.xlu1 %v6004_v6, %s6392_s14  ;;  %6019 = vpow2.f32 %v5460_v46  ;;  %10670 = vst [vmem:[#allocation55_spill] sm:$0xff] %v7793_v21  ;;  %v5461_v6 = vmul.f32 -1.442695, %v7780_v61  ;;  %v2469_v36 = vmul.f32 1.442695, %v7790_v0 }
 0x271   :  { %v6010_v23 = vpop.eup %6009  ;;  %6021 = vrcp.f32 %v3974_v14  ;;  %v6266_v14 = vld [vmem:[%s10445_s1 + $0xc0] sm:$0xff] }
 0x272   :  { %v6012_v27 = vpop.eup %6011  ;;  %v3977_v45 = vadd.f32 1.0, %v6010_v23  ;;  %6023 = vpow2.f32 %v2467_v43  ;;  %2783 = vrot.lane.b32.xlu0 %v2629_v19, %s6391_s7  ;;  %v2630_v46 = vmul.f32 %v6265_v59, %v2566_v47  ;;  %v2627_v43 = vmul.f32 %v6266_v14, %v2563_v16  ;;  %v7805_v19 = vpop.permute.xlu0 %2211  ;;  %v6267_v23 = vld [vmem:[%s10445_s1 + $0xc8] sm:$0xff] }
 0x273   :  { %v6014_v44 = vpop.eup %6013  ;;  %v2564_v31 = vmul.f32 0.5, %v6012_v27  ;;  %10671 = vst [vmem:[#allocation56_spill] sm:$0xff] %v7805_v19  ;;  %v7810_v47 = vpop.permute.xlu1 %2209 }
 0x274   :  { %6025 = vrcp.f32 %v3977_v45  ;;  %v3975_v30 = vadd.f32 1.0, %v6014_v44  ;;  %4248 = vrot.lane.b32.xlu1 %v6008_v4, %s6392_s14  ;;  %v5459_v4 = vmul.f32 -1.442695, %v7790_v0  ;;  %10672 = vst [vmem:[#allocation57_spill] sm:$0xff] %v7810_v47 }
 0x275   :  { %6027 = vpow2.f32 %v2473_v35 }
 0x276   :  { %6029 = vpow2.f32 %v5458_v48  ;;  %2779 = vrot.lane.b32.xlu0 %v2627_v43, %s6391_s7  ;;  %v2628_v48 = vmul.f32 %v6267_v23, %v2564_v31 }
 0x277   :  { %6031 = vpow2.f32 %v5461_v6  ;;  %v7823_v31 = vpop.permute.xlu1 %2213 }
 0x278   :  { %v6016_v45 = vpop.eup %6015  ;;  %6033 = vrcp.f32 %v3975_v30  ;;  %2785 = vrot.lane.b32.xlu1 %v2630_v46, %s6391_s7  ;;  %v7817_v46 = vpop.permute.xlu0 %2215  ;;  %10674 = vst [vmem:[#allocation59_spill] sm:$0xff] %v7823_v31 }
 0x279   :  { %v6018_v35 = vpop.eup %6017  ;;  %6035 = vpow2.f32 %v2469_v36  ;;  %10673 = vst [vmem:[#allocation58_spill] sm:$0xff] %v7817_v46 }
 0x27a   :  { %v5668_v16 = vpop.f32.mrb[96].mxu1  ;;  %v6020_v27 = vpop.eup %6019  ;;  %v2569_v44 = vmul.f32 0.5, %v6018_v35  ;;  %4258 = vrot.lane.b32.xlu0 %v6016_v45, %s6392_s14  ;;  %6037 = vpow2.f32 %v5459_v4  ;;  %v2285_v45 = vmul.f32 %v7334_v26, %v7409_v25  ;;  %v6268_v4 = vld [vmem:[%s10445_s1 + $0xf0] sm:$0xff] }
 0x27b   :  { %v1836_v6 = vpop.f32.mrb[97].mxu1  ;;  %v6022_v30 = vpop.eup %6021  ;;  %v3980_v59 = vadd.f32 1.0, %v6020_v27 }
 0x27c   :  { %2781 = vrot.lane.b32.xlu1 %v2628_v48, %s6391_s7  ;;  %v7819_v14 = vpop.f32.mrb[98].mxu1  ;;  %v6024_v36 = vpop.eup %6023  ;;  %v2633_v23 = vmul.f32 %v6268_v4, %v2569_v44  ;;  %v2349_v26 = vadd.f32 %v7459_v53, %v2285_v45  ;;  %v2283_v4 = vmul.f32 %v7325_v34, %v7412_v42  ;;  %v6272_v42 = vld [vmem:[%s10445_s1 + $0xe8] sm:$0xff] }
 0x27d   :  { %v7821_v43 = vpop.f32.mrb[99].mxu1  ;;  %6039 = vrcp.f32 %v3980_v59  ;;  %v2567_v21 = vmul.f32 0.5, %v6024_v36 }
 0x27e   :  { %v6026_v19 = vpop.eup %6025  ;;  %4254 = vrot.lane.b32.xlu0 %v6022_v30, %s6392_s14  ;;  %v7835_v30 = vpop.permute.xlu1 %2217 }
 0x27f   :  { %v6028_v35 = vpop.eup %6027  ;;  %10675 = vst [vmem:[#allocation60_spill] sm:$0xff] %v7835_v30 }
 0x280   :  { %v6030_v48 = vpop.eup %6029  ;;  %v2570_v27 = vmul.f32 0.5, %v6028_v35  ;;  %4260 = vrot.lane.b32.xlu1 %v6026_v19, %s6392_s14  ;;  %v2736_v31 = vpop.permute.xlu0 %2735  ;;  %v6269_v19 = vld [vmem:[%s10445_s1 + $0xf8] sm:$0xff]  ;;  %v6270_v35 = vld [vmem:[%s10445_s1 + $0xe0] sm:$0xff] }
 0x281   :  { %v6032_v46 = vpop.eup %6031  ;;  %v3978_v25 = vadd.f32 1.0, %v6030_v48  ;;  %v3120_v36 = vadd.f32 %v2736_v31, %v2349_v26  ;;  %v2631_v53 = vmul.f32 %v6270_v35, %v2567_v21 }
 0x282   :  { %v6034_v59 = vpop.eup %6033  ;;  %v3981_v47 = vadd.f32 1.0, %v6032_v46  ;;  %2791 = vrot.lane.b32.xlu0 %v2633_v23, %s6391_s7  ;;  %v2634_v44 = vmul.f32 %v6269_v19, %v2570_v27  ;;  %v2286_v46 = vmul.f32 %v7343_v11, %v7422_v52  ;;  %v7853_v52 = vld [vmem:[%s10449_s5] ss:$0 sm:$0xff] }
 0x283   :  { %v6036_v12 = vpop.eup %6035  ;;  %v7856_v21 = vadd.f32 %v7853_v52, %v5668_v16  ;;  %v2284_v16 = vmul.f32 %v7332_v37, %v7425_v40  ;;  %v7872_v35 = vadd.f32 %v7853_v52, %v1836_v6  ;;  %v7883_v37 = vadd.f32 %v7853_v52, %v7819_v14 }
 0x284   :  { %6041 = vrcp.f32 %v3981_v47  ;;  %4256 = vrot.lane.b32.xlu1 %v6034_v59, %s6392_s14  ;;  %v6038_v45 = vpop.eup %6037  ;;  %v2568_v47 = vmul.f32 0.5, %v6036_v12  ;;  %v2350_v48 = vadd.f32 %v7495_v29, %v2286_v46  ;;  %v3184_v12 = vmax.f32 %v3120_v36, 0.0 }
 0x285   :  { %6043 = vrcp.f32 %v3978_v25  ;;  %v3979_v11 = vadd.f32 1.0, %v6038_v45  ;;  %10676 = vst [vmem:[#allocation61_spill] sm:$0xff] %v7856_v21  ;;  %v2732_v27 = vpop.permute.xlu0 %2731  ;;  %v5464_v29 = vmul.f32 -1.442695, %v7856_v21  ;;  %v2479_v36 = vmul.f32 1.442695, %v7856_v21 }
 0x286   :  { %2787 = vrot.lane.b32.xlu0 %v2631_v53, %s6391_s7  ;;  %v2632_v59 = vmul.f32 %v6272_v42, %v2568_v47  ;;  %10677 = vst [vmem:[#allocation62_spill] sm:$0xff] %v7872_v35  ;;  %v2925_v45 = vsub.f32 %v2349_v26, %v2736_v31  ;;  %v3248_v47 = vmin.f32 %v3184_v12, 256.0  ;;  %10679 = vst [vmem:[#allocation64_spill] sm:$0xff] %v7883_v37  ;;  %v5465_v26 = vmul.f32 -1.442695, %v7883_v37 }
 0x287   :  { %v6040_v23 = vpop.eup %6039  ;;  %6045 = vrcp.f32 %v3979_v11  ;;  %v2348_v31 = vadd.f32 %v7507_v3, %v2284_v16  ;;  %v2481_v11 = vmul.f32 1.442695, %v7883_v37 }
 0x288   :  { %2793 = vrot.lane.b32.xlu1 %v2634_v44, %s6391_s7  ;;  %v2738_v34 = vpop.permute.xlu1 %2737  ;;  %v2347_v44 = vadd.f32 %v7489_v1, %v2283_v4  ;;  %6047 = vpow2.f32 %v5464_v29  ;;  %v7891_v12 = vmax.f32 %v2925_v45, 0.0 }
 0x289   :  { %v3121_v19 = vadd.f32 %v2738_v34, %v2350_v48  ;;  %6049 = vpow2.f32 %v2479_v36  ;;  %v2926_v21 = vsub.f32 %v2350_v48, %v2738_v34 }
 0x28a   :  { %v7861_v25 = vpop.f32.mrb[100].mxu1  ;;  %4266 = vrot.lane.b32.xlu0 %v6040_v23, %s6392_s14  ;;  %v3118_v1 = vadd.f32 %v2732_v27, %v2347_v44  ;;  %v7877_v4 = vpop.permute.xlu0 %4210  ;;  %10680 = vst [vmem:[#allocation65_spill] sm:$0xff] %v7891_v12  ;;  %v2923_v14 = vsub.f32 %v2347_v44, %v2732_v27  ;;  %v10463_v44 = vmin.f32 %v7891_v12, 256.0 }
 0x28b   :  { %v7866_v46 = vpop.f32.mrb[101].mxu1  ;;  %10678 = vst [vmem:[#allocation63_spill] sm:$0xff] %v7877_v4  ;;  %v3185_v40 = vmax.f32 %v3121_v19, 0.0  ;;  %v7897_v4 = vadd.f32 %v7853_v52, %v7821_v43  ;;  %v7910_v45 = vmax.f32 %v2926_v21, 0.0 }
 0x28c   :  { %2789 = vrot.lane.b32.xlu1 %v2632_v59, %s6391_s7  ;;  %v7875_v53 = vpop.f32.mrb[102].mxu1  ;;  %v2734_v6 = vpop.permute.xlu1 %2733  ;;  %v2475_v59 = vmul.f32 1.442695, %v7872_v35  ;;  %v3182_v19 = vmax.f32 %v3118_v1, 0.0  ;;  %v7906_v43 = vmax.f32 %v2923_v14, 0.0  ;;  %v7919_v14 = vsub.f32 %v3248_v47, %v10463_v44 }
 0x28d   :  { %v7879_v23 = vpop.f32.mrb[103].mxu1  ;;  %10682 = vst [vmem:[#allocation67_spill] sm:$0xff] %v7897_v4  ;;  %v3249_v3 = vmin.f32 %v3185_v40, 256.0  ;;  %v3119_v16 = vadd.f32 %v2734_v6, %v2348_v31  ;;  %v2477_v27 = vmul.f32 1.442695, %v7897_v4  ;;  %10685 = vst [vmem:[#allocation70_spill] sm:$0xff] %v7910_v45  ;;  %v2924_v1 = vsub.f32 %v2348_v31, %v2734_v6 }
 0x28e   :  { %v6042_v42 = vpop.eup %6041  ;;  %4530 = vrot.lane.b32.xlu0 %v3248_v47, %s6393_s0  ;;  %v7893_v30 = vpop.permute.xlu0 %4206  ;;  %6051 = vpow2.f32 %v2475_v59  ;;  %10684 = vst [vmem:[#allocation69_spill] sm:$0xff] %v7906_v43  ;;  %v3246_v48 = vmin.f32 %v3182_v19, 256.0  ;;  %v10467_v21 = vmin.f32 %v7906_v43, 256.0 }
 0x28f   :  { %10681 = vst [vmem:[#allocation66_spill] sm:$0xff] %v7893_v30  ;;  %v6044_v29 = vpop.eup %6043  ;;  %6053 = vpow2.f32 %v5465_v26  ;;  %v3183_v40 = vmax.f32 %v3119_v16, 0.0  ;;  %v5463_v26 = vmul.f32 -1.442695, %v7897_v4  ;;  %v7925_v16 = vmax.f32 %v2924_v1, 0.0 }
 0x290   :  { %4268 = vrot.lane.b32.xlu1 %v6042_v42, %s6392_s14  ;;  %v7899_v36 = vpop.permute.xlu1 %4212  ;;  %v5462_v42 = vmul.f32 -1.442695, %v7872_v35  ;;  %6055 = vpow2.f32 %v2481_v11  ;;  %v10690_v30 = vmin.f32 %v7910_v45, 256.0 }
 0x291   :  { %10683 = vst [vmem:[#allocation68_spill] sm:$0xff] %v7899_v36  ;;  %10687 = vst [vmem:[#allocation72_spill] sm:$0xff] %v7925_v16 }
 0x292   :  { %4262 = vrot.lane.b32.xlu0 %v6044_v29, %s6392_s14  ;;  %v7908_v34 = vpop.permute.xlu0 %2743  ;;  %v6046_v29 = vpop.eup %6045  ;;  %6057 = vpow2.f32 %v5462_v42  ;;  %v3247_v42 = vmin.f32 %v3183_v40, 256.0  ;;  %v7940_v40 = vsub.f32 %v3246_v48, %v10467_v21  ;;  %v7948_v36 = vsub.f32 %v3249_v3, %v10690_v30 }
 0x293   :  { %v6048_v11 = vpop.eup %6047  ;;  %6059 = vpow2.f32 %v2477_v27 }
 0x294   :  { %4532 = vrot.lane.b32.xlu1 %v3249_v3, %s6393_s0  ;;  %v7912_v59 = vpop.permute.xlu1 %4208  ;;  %v6050_v31 = vpop.eup %6049  ;;  %v3984_v27 = vadd.f32 1.0, %v6048_v11  ;;  %6061 = vpow2.f32 %v5463_v26  ;;  %10688 = vst [vmem:[#allocation73_spill] sm:$0xff] %v7940_v40  ;;  %10691 = vst [vmem:[#allocation75_spill] sm:$0xff] %v7948_v36  ;;  %v6273_v3 = vld [vmem:[%s10445_s1 + $0x110] sm:$0xff] }
 0x295   :  { %10686 = vst [vmem:[#allocation71_spill] sm:$0xff] %v7912_v59  ;;  %v2573_v1 = vmul.f32 0.5, %v6050_v31  ;;  %v2289_v31 = vmul.f32 %v7345_v49, %v7449_v2  ;;  %v10693_v49 = vmin.f32 %v7925_v16, 256.0 }
 0x296   :  { %4526 = vrot.lane.b32.xlu0 %v3246_v48, %s6393_s0  ;;  %6063 = vrcp.f32 %v3984_v27 }
 0x297   :  { %v2637_v26 = vmul.f32 %v6273_v3, %v2573_v1  ;;  %v7966_v2 = vsub.f32 %v3247_v42, %v10693_v49  ;;  %v6275_v1 = vld [vmem:[%s10445_s1 + $0x100] sm:$0xff] }
 0x298   :  { %4264 = vrot.lane.b32.xlu1 %v6046_v29, %s6392_s14  ;;  %v7922_v6 = vpop.permute.xlu0 %2739  ;;  %v7927_v59 = vpop.permute.xlu1 %2745 }
 0x299   :  { %v6052_v44 = vpop.eup %6051  ;;  %10694 = vst [vmem:[#allocation77_spill] sm:$0xff] %v7966_v2 }
 0x29a   :  { %v7929_v4 = vpop.f32.mrb[104].mxu1  ;;  %3442 = vrot.lane.b32.xlu0 %v7919_v14, %s6394_s20  ;;  %v6054_v35 = vpop.eup %6053  ;;  %v2571_v21 = vmul.f32 0.5, %v6052_v44  ;;  %v6274_v44 = vld [vmem:[%s10445_s1 + $0x30] sm:$0xff] }
 0x29b   :  { %v7933_v47 = vpop.f32.mrb[105].mxu1  ;;  %v6056_v37 = vpop.eup %6055  ;;  %v3985_v43 = vadd.f32 1.0, %v6054_v35  ;;  %v2353_v35 = vadd.f32 %v6274_v44, %v2289_v31 }
 0x29c   :  { %4528 = vrot.lane.b32.xlu1 %v3247_v42, %s6393_s0  ;;  %v7936_v29 = vpop.f32.mrb[106].mxu1  ;;  %v7942_v19 = vpop.permute.xlu0 %4218  ;;  %v2574_v45 = vmul.f32 0.5, %v6056_v37  ;;  %v2635_v3 = vmul.f32 %v6275_v1, %v2571_v21 }
 0x29d   :  { %10689 = vst [vmem:[#allocation74_spill] sm:$0xff] %v7942_v19  ;;  %v7944_v12 = vpop.f32.mrb[107].mxu1  ;;  %v7951_v11 = vpop.permute.xlu1 %2741  ;;  %6065 = vrcp.f32 %v3985_v43  ;;  %v3124_v37 = vadd.f32 %v7908_v34, %v2353_v35  ;;  %v2287_v43 = vmul.f32 %v7337_v7, %v7454_v9 }
 0x29e   :  { %3438 = vrot.lane.b32.xlu0 %v7940_v40, %s6394_s20  ;;  %v6058_v48 = vpop.eup %6057 }
 0x29f   :  { %v6060_v27 = vpop.eup %6059  ;;  %v3982_v40 = vadd.f32 1.0, %v6058_v48  ;;  %v6277_v48 = vld [vmem:[%s10445_s1 + $0x38] sm:$0xff] }
 0x2a0   :  { %3444 = vrot.lane.b32.xlu1 %v7948_v36, %s6394_s20  ;;  %v7959_v30 = vpop.permute.xlu0 %4214  ;;  %v6062_v31 = vpop.eup %6061  ;;  %v2572_v49 = vmul.f32 0.5, %v6060_v27  ;;  %v8000_v27 = vadd.f32 %v7853_v52, %v7861_v25  ;;  %v6279_v25 = vld [vmem:[%s10445_s1 + $0x20] sm:$0xff] }
 0x2a1   :  { %10692 = vst [vmem:[#allocation76_spill] sm:$0xff] %v7959_v30  ;;  %v7968_v19 = vpop.permute.xlu1 %4220  ;;  %v2290_v30 = vmul.f32 %v7356_v63, %v7469_v54  ;;  %v6276_v63 = vld [vmem:[%s10445_s1 + $0x118] sm:$0xff]  ;;  %6067 = vrcp.f32 %v3982_v40  ;;  %v3983_v21 = vadd.f32 1.0, %v6062_v31  ;;  %v6064_v7 = vpop.eup %6063  ;;  %v6278_v40 = vld [vmem:[%s10445_s1 + $0x108] sm:$0xff] }
 0x2a2   :  { %10695 = vst [vmem:[#allocation78_spill] sm:$0xff] %v7968_v19  ;;  %2799 = vrot.lane.b32.xlu0 %v2637_v26, %s6391_s7  ;;  %v2638_v54 = vmul.f32 %v6276_v63, %v2574_v45  ;;  %10697 = vst [vmem:[#allocation80_spill] sm:$0xff] %v8000_v27  ;;  %v3188_v45 = vmax.f32 %v3124_v37, 0.0  ;;  %v5468_v31 = vmul.f32 -1.442695, %v8000_v27  ;;  %v2351_v37 = vadd.f32 %v6279_v25, %v2287_v43 }
 0x2a3   :  { %v7995_v44 = vadd.f32 %v6277_v48, %v2290_v30  ;;  %v2636_v30 = vmul.f32 %v6278_v40, %v2572_v49  ;;  %v2288_v48 = vmul.f32 %v7348_v58, %v7472_v17  ;;  %v2487_v16 = vmul.f32 1.442695, %v8000_v27 }
 0x2a4   :  { %3440 = vrot.lane.b32.xlu1 %v7966_v2, %s6394_s20  ;;  %v7979_v42 = vpop.permute.xlu0 %2751  ;;  %v8025_v49 = vadd.f32 %v7853_v52, %v7866_v46  ;;  %6069 = vrcp.f32 %v3983_v21  ;;  %v2929_v43 = vsub.f32 %v2353_v35, %v7908_v34  ;;  %v3252_v25 = vmin.f32 %v3188_v45, 256.0  ;;  %v6280_v35 = vld [vmem:[%s10445_s1 + $0x28] sm:$0xff] }
 0x2a5   :  { %v7984_v26 = vpop.permute.xlu1 %4216  ;;  %v3125_v9 = vadd.f32 %v7927_v59, %v7995_v44  ;;  %v8038_v58 = vadd.f32 %v7853_v52, %v7875_v53  ;;  %6071 = vpow2.f32 %v5468_v31  ;;  %v2352_v45 = vadd.f32 %v6280_v35, %v2288_v48 }
 0x2a6   :  { %10696 = vst [vmem:[#allocation79_spill] sm:$0xff] %v7984_v26  ;;  %2795 = vrot.lane.b32.xlu0 %v2635_v3, %s6391_s7  ;;  %10698 = vst [vmem:[#allocation81_spill] sm:$0xff] %v8025_v49  ;;  %v2483_v21 = vmul.f32 1.442695, %v8025_v49  ;;  %6073 = vpow2.f32 %v2487_v16  ;;  %v2927_v31 = vsub.f32 %v2351_v37, %v7922_v6  ;;  %v8057_v16 = vadd.f32 %v7853_v52, %v7879_v23 }
 0x2a7   :  { %10700 = vst [vmem:[#allocation83_spill] sm:$0xff] %v8038_v58  ;;  %v3189_v17 = vmax.f32 %v3125_v9, 0.0  ;;  %v5469_v34 = vmul.f32 -1.442695, %v8038_v58  ;;  %v2489_v53 = vmul.f32 1.442695, %v8038_v58  ;;  %v2930_v36 = vsub.f32 %v7995_v44, %v7927_v59 }
 0x2a8   :  { %2801 = vrot.lane.b32.xlu1 %v2638_v54, %s6391_s7  ;;  %v8002_v1 = vpop.permute.xlu0 %2747  ;;  %v8050_v9 = vmax.f32 %v2929_v43, 0.0  ;;  %10703 = vst [vmem:[#allocation86_spill] sm:$0xff] %v8057_v16  ;;  %6075 = vpow2.f32 %v2483_v21  ;;  %v5466_v43 = vmul.f32 -1.442695, %v8025_v49 }
 0x2a9   :  { %v8006_v3 = vpop.permute.xlu1 %2753  ;;  %v3253_v48 = vmin.f32 %v3189_v17, 256.0  ;;  %6077 = vpow2.f32 %v5469_v34  ;;  %v2928_v17 = vsub.f32 %v2352_v45, %v7951_v11  ;;  %v5467_v34 = vmul.f32 -1.442695, %v8057_v16 }
 0x2aa   :  { %v8011_v63 = vpop.f32.mrb[108].mxu1  ;;  %4274 = vrot.lane.b32.xlu0 %v6064_v7, %s6392_s14  ;;  %v3122_v7 = vadd.f32 %v7922_v6, %v2351_v37  ;;  %10701 = vst [vmem:[#allocation84_spill] sm:$0xff] %v8050_v9  ;;  %v2485_v6 = vmul.f32 1.442695, %v8057_v16  ;;  %6079 = vpow2.f32 %v2489_v53  ;;  %v10475_v23 = vmin.f32 %v8050_v9, 256.0 }
 0x2ab   :  { %v8018_v54 = vpop.f32.mrb[109].mxu1  ;;  %v8069_v37 = vmax.f32 %v2927_v31, 0.0  ;;  %6081 = vpow2.f32 %v5466_v43 }
 0x2ac   :  { %2797 = vrot.lane.b32.xlu1 %v2636_v30, %s6391_s7  ;;  %v8028_v40 = vpop.f32.mrb[110].mxu1  ;;  %v8032_v26 = vpop.permute.xlu0 %4226  ;;  %6083 = vpow2.f32 %v2485_v6 }
 0x2ad   :  { %10699 = vst [vmem:[#allocation82_spill] sm:$0xff] %v8032_v26  ;;  %v8034_v19 = vpop.f32.mrb[111].mxu1  ;;  %v8040_v46 = vpop.permute.xlu1 %2749  ;;  %v3186_v26 = vmax.f32 %v3122_v7, 0.0  ;;  %10705 = vst [vmem:[#allocation88_spill] sm:$0xff] %v8069_v37  ;;  %v8073_v7 = vmax.f32 %v2930_v36, 0.0  ;;  %v10481_v36 = vmin.f32 %v8069_v37, 256.0  ;;  %6085 = vpow2.f32 %v5467_v34 }
 0x2ae   :  { %v6066_v30 = vpop.eup %6065  ;;  %4538 = vrot.lane.b32.xlu0 %v3252_v25, %s6393_s0 }
 0x2af   :  { %v6068_v2 = vpop.eup %6067  ;;  %v3250_v59 = vmin.f32 %v3186_v26, 256.0  ;;  %10706 = vst [vmem:[#allocation89_spill] sm:$0xff] %v8073_v7  ;;  %v8083_v26 = vsub.f32 %v3252_v25, %v10475_v23  ;;  %v10712_v49 = vmin.f32 %v8073_v7, 256.0 }
 0x2b0   :  { %4276 = vrot.lane.b32.xlu1 %v6066_v30, %s6392_s14  ;;  %v8053_v27 = vpop.permute.xlu0 %4222  ;;  %v3123_v30 = vadd.f32 %v7951_v11, %v2352_v45 }
 0x2b1   :  { %10702 = vst [vmem:[#allocation85_spill] sm:$0xff] %v8053_v27  ;;  %10708 = vst [vmem:[#allocation91_spill] sm:$0xff] %v8083_v26  ;;  %v8112_v58 = vsub.f32 %v3253_v48, %v10712_v49 }
 0x2b2   :  { %v8062_v35 = vpop.permute.xlu1 %4228  ;;  %4270 = vrot.lane.b32.xlu0 %v6068_v2, %s6392_s14  ;;  %v3187_v21 = vmax.f32 %v3123_v30, 0.0  ;;  %v6070_v2 = vpop.eup %6069  ;;  %v8089_v30 = vmax.f32 %v2928_v17, 0.0  ;;  %v8104_v17 = vsub.f32 %v3250_v59, %v10481_v36 }
 0x2b3   :  { %10704 = vst [vmem:[#allocation87_spill] sm:$0xff] %v8062_v35  ;;  %v6072_v53 = vpop.eup %6071  ;;  %10713 = vst [vmem:[#allocation95_spill] sm:$0xff] %v8112_v58 }
 0x2b4   :  { %4540 = vrot.lane.b32.xlu1 %v3253_v48, %s6393_s0  ;;  %v8071_v44 = vpop.permute.xlu0 %2759  ;;  %v6074_v45 = vpop.eup %6073  ;;  %10709 = vst [vmem:[#allocation92_spill] sm:$0xff] %v8089_v30  ;;  %v3251_v43 = vmin.f32 %v3187_v21, 256.0  ;;  %v3988_v25 = vadd.f32 1.0, %v6072_v53  ;;  %10710 = vst [vmem:[#allocation93_spill] sm:$0xff] %v8104_v17  ;;  %v6281_v48 = vld [vmem:[%s10445_s1 + $0x130] sm:$0xff] }
 0x2b5   :  { %v6076_v23 = vpop.eup %6075  ;;  %v2577_v31 = vmul.f32 0.5, %v6074_v45  ;;  %v2293_v45 = vmul.f32 %v7362_v24, %v7513_v28  ;;  %v10715_v24 = vmin.f32 %v8089_v30, 256.0 }
 0x2b6   :  { %v8076_v27 = vpop.permute.xlu1 %4224  ;;  %4534 = vrot.lane.b32.xlu0 %v3250_v59, %s6393_s0  ;;  %v6078_v16 = vpop.eup %6077  ;;  %6087 = vrcp.f32 %v3988_v25  ;;  %v2575_v36 = vmul.f32 0.5, %v6076_v23  ;;  %v6282_v23 = vld [vmem:[%s10445_s1 + $0x50] sm:$0xff] }
 0x2b7   :  { %10707 = vst [vmem:[#allocation90_spill] sm:$0xff] %v8076_v27  ;;  %v3989_v37 = vadd.f32 1.0, %v6078_v16  ;;  %v2641_v34 = vmul.f32 %v6281_v48, %v2577_v31  ;;  %v8130_v28 = vsub.f32 %v3251_v43, %v10715_v24  ;;  %v2357_v16 = vadd.f32 %v6282_v23, %v2293_v45 }
 0x2b8   :  { %4272 = vrot.lane.b32.xlu1 %v6070_v2, %s6392_s14  ;;  %v8086_v11 = vpop.permute.xlu0 %2755 }
 0x2b9   :  { %10716 = vst [vmem:[#allocation97_spill] sm:$0xff] %v8130_v28  ;;  %6089 = vrcp.f32 %v3989_v37  ;;  %v2291_v37 = vmul.f32 %v7354_v62, %v7517_v51 }
 0x2ba   :  { %v8091_v27 = vpop.permute.xlu1 %2761  ;;  %v8093_v35 = vpop.f32.mrb[112].mxu1  ;;  %3450 = vrot.lane.b32.xlu0 %v8083_v26, %s6394_s20 }
 0x2bb   :  { %v8097_v6 = vpop.f32.mrb[113].mxu1  ;;  %v6080_v26 = vpop.eup %6079 }
 0x2bc   :  { %4536 = vrot.lane.b32.xlu1 %v3251_v43, %s6393_s0  ;;  %v8100_v2 = vpop.f32.mrb[114].mxu1  ;;  %v8106_v21 = vpop.permute.xlu0 %4234  ;;  %v2578_v7 = vmul.f32 0.5, %v6080_v26  ;;  %v3128_v26 = vadd.f32 %v7979_v42, %v2357_v16  ;;  %v6283_v43 = vld [vmem:[%s10445_s1 + $0x120] sm:$0xff] }
 0x2bd   :  { %10711 = vst [vmem:[#allocation94_spill] sm:$0xff] %v8106_v21  ;;  %v8108_v9 = vpop.f32.mrb[115].mxu1  ;;  %v6082_v59 = vpop.eup %6081  ;;  %v2639_v48 = vmul.f32 %v6283_v43, %v2575_v36 }
 0x2be   :  { %v8115_v53 = vpop.permute.xlu1 %2757  ;;  %3446 = vrot.lane.b32.xlu0 %v8104_v17, %s6394_s20  ;;  %v6084_v25 = vpop.eup %6083  ;;  %v3986_v17 = vadd.f32 1.0, %v6082_v59  ;;  %v6285_v59 = vld [vmem:[%s10445_s1 + $0x58] sm:$0xff]  ;;  %v3192_v23 = vmax.f32 %v3128_v26, 0.0  ;;  %v6287_v26 = vld [vmem:[%s10445_s1 + $0x40] sm:$0xff] }
 0x2bf   :  { %v6086_v45 = vpop.eup %6085  ;;  %v2576_v24 = vmul.f32 0.5, %v6084_v25 }
 0x2c0   :  { %3452 = vrot.lane.b32.xlu1 %v8112_v58, %s6394_s20  ;;  %v8123_v49 = vpop.permute.xlu0 %4230  ;;  %6091 = vrcp.f32 %v3986_v17  ;;  %v3987_v25 = vadd.f32 1.0, %v6086_v45  ;;  %v6088_v30 = vpop.eup %6087  ;;  %v6286_v17 = vld [vmem:[%s10445_s1 + $0x128] sm:$0xff]  ;;  %v2355_v45 = vadd.f32 %v6287_v26, %v2291_v37 }
 0x2c1   :  { %10714 = vst [vmem:[#allocation96_spill] sm:$0xff] %v8123_v49  ;;  %v2294_v49 = vmul.f32 %v7378_v57, %v7528_v32  ;;  %v6284_v57 = vld [vmem:[%s10445_s1 + $0x138] sm:$0xff] }
 0x2c2   :  { %v8132_v21 = vpop.permute.xlu1 %4236  ;;  %2807 = vrot.lane.b32.xlu0 %v2641_v34, %s6391_s7  ;;  %v2642_v32 = vmul.f32 %v6284_v57, %v2578_v7  ;;  %v8164_v7 = vadd.f32 %v7853_v52, %v7929_v4  ;;  %v2292_v57 = vmul.f32 %v7365_v13, %v7536_v8  ;;  %6093 = vrcp.f32 %v3987_v25 }
 0x2c3   :  { %10717 = vst [vmem:[#allocation98_spill] sm:$0xff] %v8132_v21  ;;  %v2358_v36 = vadd.f32 %v6285_v59, %v2294_v49  ;;  %v2640_v49 = vmul.f32 %v6286_v17, %v2576_v24  ;;  %v2933_v24 = vsub.f32 %v2357_v16, %v7979_v42  ;;  %v3256_v17 = vmin.f32 %v3192_v23, 256.0  ;;  %v6090_v13 = vpop.eup %6089  ;;  %v6288_v42 = vld [vmem:[%s10445_s1 + $0x48] sm:$0xff] }
 0x2c4   :  { %3448 = vrot.lane.b32.xlu1 %v8130_v28, %s6394_s20  ;;  %v8143_v31 = vpop.permute.xlu0 %2767  ;;  %10719 = vst [vmem:[#allocation100_spill] sm:$0xff] %v8164_v7  ;;  %v5472_v8 = vmul.f32 -1.442695, %v8164_v7  ;;  %v2356_v16 = vadd.f32 %v6288_v42, %v2292_v57  ;;  %v8202_v25 = vadd.f32 %v7853_v52, %v7936_v29 }
 0x2c5   :  { %v3129_v62 = vadd.f32 %v8006_v3, %v2358_v36  ;;  %v8204_v23 = vmax.f32 %v2933_v24, 0.0 }
 0x2c6   :  { %v8148_v34 = vpop.permute.xlu1 %4232  ;;  %2803 = vrot.lane.b32.xlu0 %v2639_v48, %s6391_s7  ;;  %10721 = vst [vmem:[#allocation102_spill] sm:$0xff] %v8202_v25  ;;  %v3127_v58 = vadd.f32 %v8040_v46, %v2356_v16  ;;  %v5473_v29 = vmul.f32 -1.442695, %v8202_v25 }
 0x2c7   :  { %10718 = vst [vmem:[#allocation99_spill] sm:$0xff] %v8148_v34  ;;  %v3126_v34 = vadd.f32 %v8002_v1, %v2355_v45  ;;  %v3193_v26 = vmax.f32 %v3129_v62, 0.0  ;;  %10722 = vst [vmem:[#allocation103_spill] sm:$0xff] %v8204_v23  ;;  %v2931_v62 = vsub.f32 %v2355_v45, %v8002_v1  ;;  %v2497_v1 = vmul.f32 1.442695, %v8202_v25 }
 0x2c8   :  { %2809 = vrot.lane.b32.xlu1 %v2642_v32, %s6391_s7  ;;  %v8160_v43 = vpop.permute.xlu0 %2763  ;;  %v2495_v32 = vmul.f32 1.442695, %v8164_v7  ;;  %v2934_v7 = vsub.f32 %v2358_v36, %v8006_v3  ;;  %v3191_v42 = vmax.f32 %v3127_v58, 0.0 }
 0x2c9   :  { %v3257_v28 = vmin.f32 %v3193_v26, 256.0  ;;  %v8223_v36 = vmax.f32 %v2931_v62, 0.0 }
 0x2ca   :  { %v8167_v51 = vpop.permute.xlu1 %2769  ;;  %v8172_v48 = vpop.f32.mrb[116].mxu1  ;;  %4282 = vrot.lane.b32.xlu0 %v6088_v30, %s6392_s14  ;;  %6095 = vpow2.f32 %v2495_v32  ;;  %v8231_v26 = vmax.f32 %v2934_v7, 0.0 }
 0x2cb   :  { %v8178_v4 = vpop.f32.mrb[117].mxu1  ;;  %v6092_v32 = vpop.eup %6091  ;;  %6097 = vpow2.f32 %v5472_v8  ;;  %10726 = vst [vmem:[#allocation107_spill] sm:$0xff] %v8223_v36  ;;  %v2932_v8 = vsub.f32 %v2356_v16, %v8040_v46  ;;  %v10492_v58 = vmin.f32 %v8223_v36, 256.0 }
 0x2cc   :  { %2805 = vrot.lane.b32.xlu1 %v2640_v49, %s6391_s7  ;;  %v8184_v59 = vpop.f32.mrb[118].mxu1  ;;  %v8188_v37 = vpop.permute.xlu0 %4242  ;;  %v3190_v49 = vmax.f32 %v3126_v34, 0.0  ;;  %v10489_v34 = vmin.f32 %v8204_v23, 256.0  ;;  %10728 = vst [vmem:[#allocation109_spill] sm:$0xff] %v8231_v26  ;;  %6099 = vpow2.f32 %v5473_v29  ;;  %v10494_v16 = vmin.f32 %v8231_v26, 256.0 }
 0x2cd   :  { %10720 = vst [vmem:[#allocation101_spill] sm:$0xff] %v8188_v37  ;;  %v8190_v30 = vpop.f32.mrb[119].mxu1  ;;  %6101 = vpow2.f32 %v2497_v1  ;;  %v3255_v29 = vmin.f32 %v3191_v42, 256.0 }
 0x2ce   :  { %v8192_v21 = vpop.permute.xlu1 %2765  ;;  %4546 = vrot.lane.b32.xlu0 %v3256_v17, %s6393_s0  ;;  %v3254_v45 = vmin.f32 %v3190_v49, 256.0  ;;  %v8248_v49 = vmax.f32 %v2932_v8, 0.0  ;;  %v8268_v23 = vsub.f32 %v3257_v28, %v10494_v16 }
 0x2d0   :  { %4284 = vrot.lane.b32.xlu1 %v6090_v13, %s6392_s14  ;;  %v8207_v37 = vpop.permute.xlu0 %4238  ;;  %v8215_v13 = vadd.f32 %v7853_v52, %v7933_v47  ;;  %v8229_v47 = vadd.f32 %v7853_v52, %v7944_v12  ;;  %v8242_v12 = vsub.f32 %v3256_v17, %v10489_v34  ;;  %10731 = vst [vmem:[#allocation112_spill] sm:$0xff] %v8248_v49  ;;  %10734 = vst [vmem:[#allocation115_spill] sm:$0xff] %v8268_v23 }
 0x2d1   :  { %10723 = vst [vmem:[#allocation104_spill] sm:$0xff] %v8207_v37  ;;  %v6094_v37 = vpop.eup %6093  ;;  %v8260_v34 = vsub.f32 %v3254_v45, %v10492_v58 }
 0x2d2   :  { %v8211_v57 = vpop.permute.xlu1 %4244  ;;  %10725 = vst [vmem:[#allocation106_spill] sm:$0xff] %v8215_v13  ;;  %4278 = vrot.lane.b32.xlu0 %v6092_v32, %s6392_s14  ;;  %v2491_v3 = vmul.f32 1.442695, %v8215_v13  ;;  %10727 = vst [vmem:[#allocation108_spill] sm:$0xff] %v8229_v47  ;;  %v2493_v62 = vmul.f32 1.442695, %v8229_v47 }
 0x2d3   :  { %10724 = vst [vmem:[#allocation105_spill] sm:$0xff] %v8211_v57  ;;  %v5470_v57 = vmul.f32 -1.442695, %v8215_v13  ;;  %10730 = vst [vmem:[#allocation111_spill] sm:$0xff] %v8242_v12 }
 0x2d4   :  { %4548 = vrot.lane.b32.xlu1 %v3257_v28, %s6393_s0  ;;  %v8225_v24 = vpop.permute.xlu0 %2775  ;;  %6103 = vpow2.f32 %v2491_v3  ;;  %v6096_v7 = vpop.eup %6095  ;;  %10732 = vst [vmem:[#allocation113_spill] sm:$0xff] %v8260_v34  ;;  %v6289_v28 = vld [vmem:[%s10445_s1 + $0x150] sm:$0xff] }
 0x2d5   :  { %6105 = vpow2.f32 %v5470_v57  ;;  %v2581_v3 = vmul.f32 0.5, %v6096_v7  ;;  %v6098_v57 = vpop.eup %6097 }
 0x2d6   :  { %v8234_v32 = vpop.permute.xlu1 %4240  ;;  %4542 = vrot.lane.b32.xlu0 %v3254_v45, %s6393_s0  ;;  %6107 = vpow2.f32 %v2493_v62  ;;  %v6100_v7 = vpop.eup %6099  ;;  %v3992_v58 = vadd.f32 1.0, %v6098_v57  ;;  %v2297_v57 = vmul.f32 %v7381_v39, %v7565_v56  ;;  %v6290_v39 = vld [vmem:[%s10445_s1 + $0x70] sm:$0xff] }
 0x2d7   :  { %10729 = vst [vmem:[#allocation110_spill] sm:$0xff] %v8234_v32  ;;  %v2645_v16 = vmul.f32 %v6289_v28, %v2581_v3  ;;  %v6102_v62 = vpop.eup %6101  ;;  %v3993_v13 = vadd.f32 1.0, %v6100_v7 }
 0x2d8   :  { %4280 = vrot.lane.b32.xlu1 %v6094_v37, %s6392_s14  ;;  %v8245_v46 = vpop.permute.xlu0 %2771  ;;  %v5471_v37 = vmul.f32 -1.442695, %v8229_v47  ;;  %v2582_v3 = vmul.f32 0.5, %v6102_v62  ;;  %v2361_v56 = vadd.f32 %v6290_v39, %v2297_v57  ;;  %v6294_v39 = vld [vmem:[%s10445_s1 + $0x148] sm:$0xff] }
 0x2da   :  { %v8250_v1 = vpop.permute.xlu1 %2777  ;;  %3458 = vrot.lane.b32.xlu0 %v8242_v12, %s6394_s20  ;;  %v8256_v17 = vpop.f32.mrb[120].mxu1  ;;  %6109 = vpow2.f32 %v5471_v37  ;;  %v10736_v37 = vmin.f32 %v8248_v49, 256.0 }
 0x2db   :  { %v8264_v42 = vpop.f32.mrb[121].mxu1  ;;  %6111 = vrcp.f32 %v3992_v58  ;;  %v6291_v58 = vld [vmem:[%s10445_s1 + $0x158] sm:$0xff] }
 0x2dc   :  { %4544 = vrot.lane.b32.xlu1 %v3255_v29, %s6393_s0  ;;  %v8262_v8 = vpop.permute.xlu0 %4250  ;;  %v8273_v47 = vpop.f32.mrb[122].mxu1  ;;  %v8288_v26 = vsub.f32 %v3255_v29, %v10736_v37  ;;  %6113 = vrcp.f32 %v3993_v13  ;;  %v2646_v62 = vmul.f32 %v6291_v58, %v2582_v3  ;;  %v6293_v13 = vld [vmem:[%s10445_s1 + $0x78] sm:$0xff]  ;;  %v8326_v3 = vadd.f32 %v7853_v52, %v8011_v63 }
 0x2dd   :  { %10733 = vst [vmem:[#allocation114_spill] sm:$0xff] %v8262_v8  ;;  %v8277_v45 = vpop.f32.mrb[123].mxu1  ;;  %v2296_v63 = vmul.f32 %v7384_v41, %v7584_v55  ;;  %v8359_v55 = vadd.f32 %v7853_v52, %v8018_v54 }
 0x2de   :  { %v8271_v32 = vpop.permute.xlu1 %2773  ;;  %3454 = vrot.lane.b32.xlu0 %v8260_v34, %s6394_s20  ;;  %10737 = vst [vmem:[#allocation117_spill] sm:$0xff] %v8288_v26  ;;  %v6104_v34 = vpop.eup %6103  ;;  %10740 = vst [vmem:[#allocation120_spill] sm:$0xff] %v8326_v3 }
 0x2df   :  { %v2579_v29 = vmul.f32 0.5, %v6104_v34  ;;  %10742 = vst [vmem:[#allocation122_spill] sm:$0xff] %v8359_v55 }
 0x2e0   :  { %3460 = vrot.lane.b32.xlu1 %v8268_v23, %s6394_s20  ;;  %v8281_v36 = vpop.permute.xlu0 %4246 }
 0x2e1   :  { %10735 = vst [vmem:[#allocation116_spill] sm:$0xff] %v8281_v36  ;;  %v6106_v36 = vpop.eup %6105 }
 0x2e2   :  { %v8290_v8 = vpop.permute.xlu1 %4252  ;;  %2815 = vrot.lane.b32.xlu0 %v2645_v16, %s6391_s7  ;;  %v6108_v49 = vpop.eup %6107  ;;  %v3990_v7 = vadd.f32 1.0, %v6106_v36 }
 0x2e3   :  { %10738 = vst [vmem:[#allocation118_spill] sm:$0xff] %v8290_v8  ;;  %v2298_v8 = vmul.f32 %v7392_v33, %v7574_v18  ;;  %v6292_v33 = vld [vmem:[%s10445_s1 + $0x140] sm:$0xff] }
 0x2e4   :  { %3456 = vrot.lane.b32.xlu1 %v8288_v26, %s6394_s20  ;;  %v8297_v28 = vpop.permute.xlu0 %2783  ;;  %v6110_v16 = vpop.eup %6109  ;;  %v2580_v26 = vmul.f32 0.5, %v6108_v49  ;;  %v2643_v18 = vmul.f32 %v6292_v33, %v2579_v29  ;;  %v2295_v49 = vmul.f32 %v7368_v15, %v7569_v5  ;;  %6115 = vrcp.f32 %v3990_v7 }
 0x2e5   :  { %v2362_v36 = vadd.f32 %v6293_v13, %v2298_v8  ;;  %v3991_v57 = vadd.f32 1.0, %v6110_v16  ;;  %v6112_v7 = vpop.eup %6111  ;;  %v2503_v33 = vmul.f32 1.442695, %v8326_v3  ;;  %v6295_v13 = vld [vmem:[%s10445_s1 + $0x60] sm:$0xff] }
 0x2e6   :  { %v8299_v37 = vpop.permute.xlu1 %4248  ;;  %2811 = vrot.lane.b32.xlu0 %v2643_v18, %s6391_s7  ;;  %v2644_v8 = vmul.f32 %v6294_v39, %v2580_v26  ;;  %v8345_v18 = vadd.f32 %v7853_v52, %v8028_v40  ;;  %v2359_v39 = vadd.f32 %v6295_v13, %v2295_v49 }
 0x2e7   :  { %10739 = vst [vmem:[#allocation119_spill] sm:$0xff] %v8299_v37  ;;  %v3132_v37 = vadd.f32 %v8071_v44, %v2361_v56  ;;  %v3133_v29 = vadd.f32 %v8091_v27, %v2362_v36  ;;  %6117 = vrcp.f32 %v3991_v57  ;;  %v2937_v57 = vsub.f32 %v2361_v56, %v8071_v44 }
 0x2e8   :  { %v8309_v34 = vpop.permute.xlu0 %2779  ;;  %2817 = vrot.lane.b32.xlu1 %v2646_v62, %s6391_s7  ;;  %v3130_v25 = vadd.f32 %v8086_v11, %v2359_v39  ;;  %6119 = vpow2.f32 %v2503_v33  ;;  %v5477_v49 = vmul.f32 -1.442695, %v8345_v18  ;;  %v8375_v44 = vadd.f32 %v7853_v52, %v8034_v19 }
 0x2e9   :  { %v3196_v15 = vmax.f32 %v3132_v37, 0.0  ;;  %v5476_v37 = vmul.f32 -1.442695, %v8326_v3  ;;  %v3197_v40 = vmax.f32 %v3133_v29, 0.0  ;;  %v2505_v29 = vmul.f32 1.442695, %v8345_v18 }
 0x2ea   :  { %v8312_v23 = vpop.permute.xlu1 %2785  ;;  %4290 = vrot.lane.b32.xlu0 %v6112_v7, %s6392_s14  ;;  %v6296_v7 = vld [vmem:[%s10445_s1 + $0x68] sm:$0xff]  ;;  %10745 = vst [vmem:[#allocation125_spill] sm:$0xff] %v8375_v44  ;;  %v2499_v56 = vmul.f32 1.442695, %v8359_v55 }
 0x2eb   :  { %v8334_v62 = vpop.f32.mrb[124].mxu1  ;;  %v3260_v3 = vmin.f32 %v3196_v15, 256.0  ;;  %v2360_v54 = vadd.f32 %v6296_v7, %v2296_v63  ;;  %6121 = vpow2.f32 %v5476_v37  ;;  %v2938_v15 = vsub.f32 %v2362_v36, %v8091_v27 }
 0x2ec   :  { %v8332_v58 = vpop.permute.xlu0 %4258  ;;  %v8338_v16 = vpop.f32.mrb[125].mxu1  ;;  %2813 = vrot.lane.b32.xlu1 %v2644_v8, %s6391_s7  ;;  %v3261_v33 = vmin.f32 %v3197_v40, 256.0  ;;  %v8383_v63 = vmax.f32 %v2937_v57, 0.0  ;;  %v3194_v37 = vmax.f32 %v3130_v25, 0.0  ;;  %6123 = vpow2.f32 %v5477_v49 }
 0x2ed   :  { %10741 = vst [vmem:[#allocation121_spill] sm:$0xff] %v8332_v58  ;;  %v8348_v26 = vpop.f32.mrb[126].mxu1  ;;  %v6114_v58 = vpop.eup %6113  ;;  %v3131_v13 = vadd.f32 %v8115_v53, %v2360_v54  ;;  %6125 = vpow2.f32 %v2505_v29  ;;  %v2501_v27 = vmul.f32 1.442695, %v8375_v44  ;;  %v8392_v36 = vmax.f32 %v2938_v15, 0.0 }
 0x2ee   :  { %v8336_v5 = vpop.permute.xlu1 %2781  ;;  %v8355_v41 = vpop.f32.mrb[127].mxu1  ;;  %4554 = vrot.lane.b32.xlu0 %v3260_v3, %s6393_s0  ;;  %10746 = vst [vmem:[#allocation126_spill] sm:$0xff] %v8383_v63  ;;  %6127 = vpow2.f32 %v2499_v56  ;;  %v2936_v40 = vsub.f32 %v2360_v54, %v8115_v53  ;;  %v10505_v57 = vmin.f32 %v8383_v63, 256.0  ;;  %v3258_v49 = vmin.f32 %v3194_v37, 256.0 }
 0x2ef   :  { %v6116_v19 = vpop.eup %6115  ;;  %10748 = vst [vmem:[#allocation128_spill] sm:$0xff] %v8392_v36  ;;  %v5475_v29 = vmul.f32 -1.442695, %v8375_v44  ;;  %v10508_v54 = vmin.f32 %v8392_v36, 256.0 }
 0x2f0   :  { %v8361_v8 = vpop.permute.xlu0 %4254  ;;  %4292 = vrot.lane.b32.xlu1 %v6114_v58, %s6392_s14  ;;  %v2935_v58 = vsub.f32 %v2359_v39, %v8086_v11  ;;  %v3195_v11 = vmax.f32 %v3131_v13, 0.0  ;;  %v8406_v56 = vmax.f32 %v2936_v40, 0.0  ;;  %v8412_v37 = vsub.f32 %v3260_v3, %v10505_v57 }
 0x2f1   :  { %10743 = vst [vmem:[#allocation123_spill] sm:$0xff] %v8361_v8  ;;  %v6118_v39 = vpop.eup %6117 }
 0x2f2   :  { %v8365_v12 = vpop.permute.xlu1 %4260  ;;  %4286 = vrot.lane.b32.xlu0 %v6116_v19, %s6392_s14  ;;  %v6120_v53 = vpop.eup %6119  ;;  %10750 = vst [vmem:[#allocation130_spill] sm:$0xff] %v8406_v56  ;;  %v3259_v15 = vmin.f32 %v3195_v11, 256.0  ;;  %v8422_v11 = vsub.f32 %v3261_v33, %v10508_v54 }
 0x2f3   :  { %10744 = vst [vmem:[#allocation124_spill] sm:$0xff] %v8365_v12  ;;  %v5474_v12 = vmul.f32 -1.442695, %v8359_v55 }
 0x2f4   :  { %v8381_v8 = vpop.permute.xlu0 %2791  ;;  %4556 = vrot.lane.b32.xlu1 %v3261_v33, %s6393_s0  ;;  %v2301_v33 = vmul.f32 %v7403_v50, %v7615_v60  ;;  %v6297_v50 = vld [vmem:[%s10445_s1 + $0x170] sm:$0xff] }
 0x2f5   :  { %6129 = vpow2.f32 %v5474_v12  ;;  %v2585_v12 = vmul.f32 0.5, %v6120_v53 }
 0x2f6   :  { %v8386_v7 = vpop.permute.xlu1 %4256  ;;  %6131 = vpow2.f32 %v2501_v27  ;;  %4550 = vrot.lane.b32.xlu0 %v3258_v49, %s6393_s0 }
 0x2f7   :  { %10747 = vst [vmem:[#allocation127_spill] sm:$0xff] %v8386_v7  ;;  %v8398_v7 = vmax.f32 %v2935_v58, 0.0  ;;  %v6122_v58 = vpop.eup %6121  ;;  %6133 = vpow2.f32 %v5475_v29  ;;  %v2649_v60 = vmul.f32 %v6297_v50, %v2585_v12  ;;  %v6299_v12 = vld [vmem:[%s10445_s1 + $0x178] sm:$0xff] }
 0x2f8   :  { %v8395_v25 = vpop.permute.xlu0 %2787  ;;  %4288 = vrot.lane.b32.xlu1 %v6118_v39, %s6392_s14  ;;  %v6124_v27 = vpop.eup %6123  ;;  %v3996_v40 = vadd.f32 1.0, %v6122_v58  ;;  %v10511_v39 = vmin.f32 %v8406_v56, 256.0 }
 0x2f9   :  { %10749 = vst [vmem:[#allocation129_spill] sm:$0xff] %v8398_v7  ;;  %v6126_v57 = vpop.eup %6125  ;;  %v10753_v63 = vmin.f32 %v8398_v7, 256.0  ;;  %v3997_v58 = vadd.f32 1.0, %v6124_v27  ;;  %v2302_v27 = vmul.f32 %v7429_v38, %v7628_v10 }
 0x2fa   :  { %v8400_v55 = vpop.permute.xlu1 %2793  ;;  %3466 = vrot.lane.b32.xlu0 %v8412_v37, %s6394_s20  ;;  %v6128_v44 = vpop.eup %6127  ;;  %6135 = vrcp.f32 %v3996_v40  ;;  %v2586_v53 = vmul.f32 0.5, %v6126_v57  ;;  %v6298_v57 = vld [vmem:[%s10445_s1 + $0x90] sm:$0xff] }
 0x2fb   :  { %v8429_v29 = vsub.f32 %v3258_v49, %v10753_v63  ;;  %v8441_v63 = vsub.f32 %v3259_v15, %v10511_v39  ;;  %v2583_v36 = vmul.f32 0.5, %v6128_v44  ;;  %6137 = vrcp.f32 %v3997_v58 }
 0x2fc   :  { %v8408_v13 = vpop.permute.xlu0 %4266  ;;  %4552 = vrot.lane.b32.xlu1 %v3259_v15, %s6393_s0  ;;  %v2365_v15 = vadd.f32 %v6298_v57, %v2301_v33  ;;  %v2650_v50 = vmul.f32 %v6299_v12, %v2586_v53  ;;  %v6300_v33 = vld [vmem:[%s10445_s1 + $0x160] sm:$0xff] }
 0x2fd   :  { %10751 = vst [vmem:[#allocation131_spill] sm:$0xff] %v8408_v13  ;;  %v2647_v57 = vmul.f32 %v6300_v33, %v2583_v36 }
 0x2fe   :  { %v8415_v19 = vpop.permute.xlu1 %2789  ;;  %3462 = vrot.lane.b32.xlu0 %v8429_v29, %s6394_s20  ;;  %v3136_v10 = vadd.f32 %v8143_v31, %v2365_v15 }
 0x2ff   :  { %v6130_v54 = vpop.eup %6129 }
 0x300   :  { %v8425_v3 = vpop.permute.xlu0 %4530  ;;  %3468 = vrot.lane.b32.xlu1 %v8422_v11, %s6394_s20  ;;  %v6132_v7 = vpop.eup %6131  ;;  %v3994_v40 = vadd.f32 1.0, %v6130_v54  ;;  %v8471_v54 = vadd.f32 %v7853_v52, %v8093_v35  ;;  %v6302_v35 = vld [vmem:[%s10445_s1 + $0x168] sm:$0xff] }
 0x301   :  { %10752 = vst [vmem:[#allocation132_spill] sm:$0xff] %v8425_v3  ;;  %v6134_v44 = vpop.eup %6133  ;;  %v2584_v39 = vmul.f32 0.5, %v6132_v7  ;;  %v6301_v7 = vld [vmem:[%s10445_s1 + $0x98] sm:$0xff] }
 0x302   :  { %v8431_v13 = vpop.permute.xlu1 %4268  ;;  %2823 = vrot.lane.b32.xlu0 %v2649_v60, %s6391_s7  ;;  %v2366_v53 = vadd.f32 %v6301_v7, %v2302_v27  ;;  %v10759_v60 = vld [vmem:[#allocation5_spill] sm:$0xff]  ;;  %v3995_v56 = vadd.f32 1.0, %v6134_v44  ;;  %6139 = vrcp.f32 %v3994_v40  ;;  %v10761_v7 = vld [vmem:[#allocation28_spill] sm:$0xff]  ;;  %v2511_v44 = vmul.f32 1.442695, %v8471_v54 }
 0x303   :  { %10754 = vst [vmem:[#allocation133_spill] sm:$0xff] %v8431_v13  ;;  %v2299_v12 = vmul.f32 %v10759_v60, %v7619_v20  ;;  %v2648_v33 = vmul.f32 %v6302_v35, %v2584_v39  ;;  %v8493_v40 = vadd.f32 %v7853_v52, %v8100_v2  ;;  %v5480_v39 = vmul.f32 -1.442695, %v8471_v54 }
 0x304   :  { %v8443_v49 = vpop.permute.xlu0 %4262  ;;  %3464 = vrot.lane.b32.xlu1 %v8441_v63, %s6394_s20  ;;  %v3137_v36 = vadd.f32 %v8167_v51, %v2366_v53  ;;  %6141 = vrcp.f32 %v3995_v56 }
 0x305   :  { %10755 = vst [vmem:[#allocation134_spill] sm:$0xff] %v8443_v49  ;;  %v3200_v49 = vmax.f32 %v3136_v10, 0.0  ;;  %10763 = vst [vmem:[#allocation28_spill] sm:$0xff] %v8493_v40  ;;  %v6303_v10 = vld [vmem:[%s10445_s1 + $0x80] sm:$0xff]  ;;  %6143 = vpow2.f32 %v2511_v44 }
 0x306   :  { %v8445_v13 = vpop.permute.xlu1 %4532  ;;  %2819 = vrot.lane.b32.xlu0 %v2647_v57, %s6391_s7  ;;  %v2363_v57 = vadd.f32 %v6303_v10, %v2299_v12  ;;  %v3201_v60 = vmax.f32 %v3137_v36, 0.0  ;;  %v5481_v12 = vmul.f32 -1.442695, %v8493_v40  ;;  %6145 = vpow2.f32 %v5480_v39 }
 0x307   :  { %10756 = vst [vmem:[#allocation135_spill] sm:$0xff] %v8445_v13  ;;  %v3264_v56 = vmin.f32 %v3200_v49, 256.0  ;;  %v2942_v36 = vsub.f32 %v2366_v53, %v8167_v51 }
 0x308   :  { %v8461_v38 = vpop.permute.xlu0 %4526  ;;  %2825 = vrot.lane.b32.xlu1 %v2650_v50, %s6391_s7  ;;  %v6136_v50 = vpop.eup %6135  ;;  %6147 = vpow2.f32 %v5481_v12 }
 0x309   :  { %10757 = vst [vmem:[#allocation136_spill] sm:$0xff] %v8461_v38  ;;  %v10762_v38 = vld [vmem:[#allocation6_spill] sm:$0xff]  ;;  %v6138_v2 = vpop.eup %6137  ;;  %v8541_v53 = vmax.f32 %v2942_v36, 0.0 }
 0x30a   :  { %v8464_v58 = vpop.permute.xlu1 %4264  ;;  %v2300_v20 = vmul.f32 %v10762_v38, %v10761_v7  ;;  %4298 = vrot.lane.b32.xlu0 %v6136_v50, %s6392_s14  ;;  %v8503_v38 = vadd.f32 %v7853_v52, %v8097_v6  ;;  %v3134_v7 = vadd.f32 %v8160_v43, %v2363_v57  ;;  %v6304_v50 = vld [vmem:[%s10445_s1 + $0x88] sm:$0xff]  ;;  %v2513_v6 = vmul.f32 1.442695, %v8493_v40 }
 0x30b   :  { %10758 = vst [vmem:[#allocation137_spill] sm:$0xff] %v8464_v58  ;;  %10767 = vst [vmem:[#allocation140_spill] sm:$0xff] %v8541_v53 }
 0x30c   :  { %v8484_v58 = vpop.permute.xlu0 %3442  ;;  %2821 = vrot.lane.b32.xlu1 %v2648_v33, %s6391_s7  ;;  %10764 = vst [vmem:[#allocation6_spill] sm:$0xff] %v8503_v38  ;;  %v2941_v33 = vsub.f32 %v2365_v15, %v8143_v31  ;;  %v2364_v52 = vadd.f32 %v6304_v50, %v2300_v20  ;;  %v8520_v31 = vld [vmem:[%s10449_s5] ss:$0 sm:$0xff]  ;;  %v2507_v15 = vmul.f32 1.442695, %v8503_v38  ;;  %v3265_v20 = vmin.f32 %v3201_v60, 256.0 }
 0x30d   :  { %v8524_v49 = vadd.f32 %v8520_v31, %v8108_v9  ;;  %v3198_v50 = vmax.f32 %v3134_v7, 0.0  ;;  %v6140_v9 = vpop.eup %6139  ;;  %v5478_v3 = vmul.f32 -1.442695, %v8503_v38  ;;  %6149 = vpow2.f32 %v2513_v6 }
 0x30e   :  { %v8486_v27 = vpop.permute.xlu1 %4528  ;;  %4562 = vrot.lane.b32.xlu0 %v3264_v56, %s6393_s0  ;;  %v3135_v44 = vadd.f32 %v8192_v21, %v2364_v52  ;;  %v8532_v10 = vmax.f32 %v2941_v33, 0.0  ;;  %6151 = vpow2.f32 %v2507_v15  ;;  %v2940_v60 = vsub.f32 %v2364_v52, %v8192_v21  ;;  %v6142_v33 = vpop.eup %6141 }
 0x30f   :  { %10760 = vst [vmem:[#allocation5_spill] sm:$0xff] %v8486_v27  ;;  %10765 = vst [vmem:[#allocation138_spill] sm:$0xff] %v8524_v49  ;;  %v2509_v51 = vmul.f32 1.442695, %v8524_v49  ;;  %v3262_v12 = vmin.f32 %v3198_v50, 256.0  ;;  %6153 = vpow2.f32 %v5478_v3  ;;  %v6144_v21 = vpop.eup %6143  ;;  %v10519_v52 = vmin.f32 %v8541_v53, 256.0 }
 0x310   :  { %v8505_v35 = vpop.permute.xlu0 %3438  ;;  %4300 = vrot.lane.b32.xlu1 %v6138_v2, %s6392_s14  ;;  %10766 = vst [vmem:[#allocation139_spill] sm:$0xff] %v8532_v10  ;;  %v2939_v2 = vsub.f32 %v2363_v57, %v8160_v43  ;;  %v3199_v43 = vmax.f32 %v3135_v44, 0.0  ;;  %v10515_v7 = vmin.f32 %v8532_v10, 256.0  ;;  %v5479_v6 = vmul.f32 -1.442695, %v8524_v49  ;;  %v10778_v53 = vld [vmem:[#allocation8_spill] sm:$0xff] }
 0x311   :  { %6155 = vpow2.f32 %v2509_v51  ;;  %v8555_v15 = vmax.f32 %v2940_v60, 0.0  ;;  %v2589_v3 = vmul.f32 0.5, %v6144_v21 }
 0x312   :  { %v8509_v27 = vpop.permute.xlu1 %3444  ;;  %4294 = vrot.lane.b32.xlu0 %v6140_v9, %s6392_s14  ;;  %v8547_v38 = vmax.f32 %v2939_v2, 0.0  ;;  %v3263_v36 = vmin.f32 %v3199_v43, 256.0  ;;  %v6146_v2 = vpop.eup %6145  ;;  %v8561_v50 = vsub.f32 %v3264_v56, %v10515_v7  ;;  %6157 = vpow2.f32 %v5479_v6 }
 0x313   :  { %10769 = vst [vmem:[#allocation142_spill] sm:$0xff] %v8555_v15  ;;  %v6148_v51 = vpop.eup %6147  ;;  %v4000_v60 = vadd.f32 1.0, %v6146_v2  ;;  %v8571_v43 = vsub.f32 %v3265_v20, %v10519_v52  ;;  %v10777_v2 = vld [vmem:[#allocation33_spill] sm:$0xff] }
 0x314   :  { %v8530_v39 = vpop.permute.xlu0 %2799  ;;  %4564 = vrot.lane.b32.xlu1 %v3265_v20, %s6393_s0  ;;  %10768 = vst [vmem:[#allocation141_spill] sm:$0xff] %v8547_v38  ;;  %10771 = vst [vmem:[#allocation144_spill] sm:$0xff] %v8561_v50  ;;  %v10774_v10 = vmin.f32 %v8547_v38, 256.0  ;;  %v2305_v20 = vmul.f32 %v10778_v53, %v10777_v2  ;;  %v4001_v52 = vadd.f32 1.0, %v6148_v51  ;;  %v10779_v38 = vmin.f32 %v8555_v15, 256.0  ;;  %v6306_v53 = vld [vmem:[%s10445_s1 + $0x190] sm:$0xff] }
 0x315   :  { %10772 = vst [vmem:[#allocation145_spill] sm:$0xff] %v8571_v43  ;;  %6159 = vrcp.f32 %v4000_v60  ;;  %v2653_v51 = vmul.f32 %v6306_v53, %v2589_v3  ;;  %v10783_v2 = vld [vmem:[#allocation37_spill] sm:$0xff]  ;;  %v6308_v3 = vld [vmem:[%s10445_s1 + $0x198] sm:$0xff] }
 0x316   :  { %v8535_v13 = vpop.permute.xlu1 %3440  ;;  %4558 = vrot.lane.b32.xlu0 %v3262_v12, %s6393_s0  ;;  %v8578_v6 = vsub.f32 %v3262_v12, %v10774_v10  ;;  %v8590_v10 = vsub.f32 %v3263_v36, %v10779_v38  ;;  %6161 = vrcp.f32 %v4001_v52  ;;  %v6307_v38 = vld [vmem:[%s10445_s1 + $0xb0] sm:$0xff] }
 0x317   :  { %v6150_v7 = vpop.eup %6149 }
 0x318   :  { %v8544_v57 = vpop.permute.xlu0 %2795  ;;  %4296 = vrot.lane.b32.xlu1 %v6142_v33, %s6392_s14  ;;  %10775 = vst [vmem:[#allocation147_spill] sm:$0xff] %v8578_v6  ;;  %v6152_v49 = vpop.eup %6151  ;;  %v2590_v21 = vmul.f32 0.5, %v6150_v7  ;;  %10780 = vst [vmem:[#allocation33_spill] sm:$0xff] %v8590_v10  ;;  %v2369_v7 = vadd.f32 %v6307_v38, %v2305_v20  ;;  %v6309_v20 = vld [vmem:[%s10445_s1 + $0x180] sm:$0xff] }
 0x319   :  { %v6154_v33 = vpop.eup %6153 }
 0x31a   :  { %v8549_v40 = vpop.permute.xlu1 %2801  ;;  %3474 = vrot.lane.b32.xlu0 %v8561_v50, %s6394_s20  ;;  %v2654_v53 = vmul.f32 %v6308_v3, %v2590_v21  ;;  %v10788_v21 = vld [vmem:[#allocation7_spill] sm:$0xff] }
 0x31c   :  { %v8557_v44 = vpop.permute.xlu0 %4274  ;;  %4560 = vrot.lane.b32.xlu1 %v3263_v36, %s6393_s0  ;;  %v3998_v36 = vadd.f32 1.0, %v6154_v33 }
 0x31d   :  { %10770 = vst [vmem:[#allocation143_spill] sm:$0xff] %v8557_v44 }
 0x31e   :  { %v8564_v9 = vpop.permute.xlu1 %2797  ;;  %3470 = vrot.lane.b32.xlu0 %v8578_v6, %s6394_s20  ;;  %v10784_v6 = vld [vmem:[#allocation11_spill] sm:$0xff]  ;;  %6163 = vrcp.f32 %v3998_v36 }
 0x320   :  { %v8574_v56 = vpop.permute.xlu0 %4538  ;;  %3476 = vrot.lane.b32.xlu1 %v8571_v43, %s6394_s20  ;;  %v2306_v43 = vmul.f32 %v10784_v6, %v10783_v2  ;;  %v3140_v2 = vadd.f32 %v8225_v24, %v2369_v7 }
 0x321   :  { %10773 = vst [vmem:[#allocation146_spill] sm:$0xff] %v8574_v56  ;;  %v2587_v56 = vmul.f32 0.5, %v6152_v49 }
 0x322   :  { %v8580_v44 = vpop.permute.xlu1 %4276  ;;  %2831 = vrot.lane.b32.xlu0 %v2653_v51, %s6391_s7  ;;  %v10787_v51 = vld [vmem:[#allocation34_spill] sm:$0xff] }
 0x323   :  { %10776 = vst [vmem:[#allocation148_spill] sm:$0xff] %v8580_v44  ;;  %v6156_v44 = vpop.eup %6155  ;;  %v2651_v38 = vmul.f32 %v6309_v20, %v2587_v56  ;;  %v2303_v3 = vmul.f32 %v10788_v21, %v10787_v51  ;;  %v6311_v20 = vld [vmem:[%s10445_s1 + $0x188] sm:$0xff]  ;;  %v10792_v21 = vld [vmem:[#allocation9_spill] sm:$0xff] }
 0x324   :  { %v8592_v12 = vpop.permute.xlu0 %4270  ;;  %3472 = vrot.lane.b32.xlu1 %v8590_v10, %s6394_s20  ;;  %v6158_v49 = vpop.eup %6157  ;;  %v2588_v60 = vmul.f32 0.5, %v6156_v44  ;;  %v6310_v44 = vld [vmem:[%s10445_s1 + $0xb8] sm:$0xff]  ;;  %v10791_v51 = vld [vmem:[#allocation38_spill] sm:$0xff] }
 0x325   :  { %10781 = vst [vmem:[#allocation8_spill] sm:$0xff] %v8592_v12  ;;  %v2370_v33 = vadd.f32 %v6310_v44, %v2306_v43  ;;  %v3999_v15 = vadd.f32 1.0, %v6158_v49  ;;  %v8626_v12 = vadd.f32 %v8520_v31, %v8172_v48  ;;  %v6160_v49 = vpop.eup %6159  ;;  %v2304_v48 = vmul.f32 %v10792_v21, %v10791_v51 }
 0x326   :  { %v8594_v50 = vpop.permute.xlu1 %4540  ;;  %2827 = vrot.lane.b32.xlu0 %v2651_v38, %s6391_s7  ;;  %v2652_v43 = vmul.f32 %v6311_v20, %v2588_v60  ;;  %v8641_v38 = vadd.f32 %v8520_v31, %v8184_v59  ;;  %v8647_v60 = vadd.f32 %v8520_v31, %v8178_v4 }
 0x327   :  { %10782 = vst [vmem:[#allocation149_spill] sm:$0xff] %v8594_v50  ;;  %10789 = vst [vmem:[#allocation34_spill] sm:$0xff] %v8626_v12  ;;  %v3141_v56 = vadd.f32 %v8250_v1, %v2370_v33  ;;  %6165 = vrcp.f32 %v3999_v15  ;;  %v5484_v36 = vmul.f32 -1.442695, %v8626_v12  ;;  %v2519_v51 = vmul.f32 1.442695, %v8626_v12 }
 0x328   :  { %v8610_v6 = vpop.permute.xlu0 %4534  ;;  %2833 = vrot.lane.b32.xlu1 %v2654_v53, %s6391_s7  ;;  %v3204_v53 = vmax.f32 %v3140_v2, 0.0  ;;  %10793 = vst [vmem:[#allocation38_spill] sm:$0xff] %v8641_v38  ;;  %10794 = vst [vmem:[#allocation9_spill] sm:$0xff] %v8647_v60  ;;  %v6312_v2 = vld [vmem:[%s10445_s1 + $0xa0] sm:$0xff]  ;;  %v2945_v15 = vsub.f32 %v2369_v7, %v8225_v24  ;;  %v5485_v50 = vmul.f32 -1.442695, %v8641_v38  ;;  %v8669_v24 = vadd.f32 %v8520_v31, %v8190_v30 }
 0x329   :  { %10785 = vst [vmem:[#allocation37_spill] sm:$0xff] %v8610_v6  ;;  %v2367_v20 = vadd.f32 %v6312_v2, %v2303_v3  ;;  %v3205_v59 = vmax.f32 %v3141_v56, 0.0  ;;  %v6313_v3 = vld [vmem:[%s10445_s1 + $0xa8] sm:$0xff]  ;;  %6167 = vpow2.f32 %v5484_v36  ;;  %v2515_v56 = vmul.f32 1.442695, %v8647_v60 }
 0x32a   :  { %v8613_v52 = vpop.permute.xlu1 %4272  ;;  %4306 = vrot.lane.b32.xlu0 %v6160_v49, %s6392_s14  ;;  %v2368_v49 = vadd.f32 %v6313_v3, %v2304_v48  ;;  %v2521_v2 = vmul.f32 1.442695, %v8641_v38  ;;  %10795 = vst [vmem:[#allocation150_spill] sm:$0xff] %v8669_v24  ;;  %6169 = vpow2.f32 %v2519_v51  ;;  %v2946_v7 = vsub.f32 %v2370_v33, %v8250_v1 }
 0x32b   :  { %10786 = vst [vmem:[#allocation11_spill] sm:$0xff] %v8613_v52  ;;  %v3138_v6 = vadd.f32 %v8245_v46, %v2367_v20  ;;  %v2943_v36 = vsub.f32 %v2367_v20, %v8245_v46  ;;  %v5482_v30 = vmul.f32 -1.442695, %v8647_v60  ;;  %6171 = vpow2.f32 %v5485_v50 }
 0x32c   :  { %v8633_v44 = vpop.permute.xlu0 %3450  ;;  %2829 = vrot.lane.b32.xlu1 %v2652_v43, %s6391_s7  ;;  %v6162_v43 = vpop.eup %6161  ;;  %v3139_v12 = vadd.f32 %v8271_v32, %v2368_v49  ;;  %6173 = vpow2.f32 %v2521_v2  ;;  %v2517_v1 = vmul.f32 1.442695, %v8669_v24  ;;  %v8685_v33 = vmax.f32 %v2946_v7, 0.0 }
 0x32d   :  { %v3202_v3 = vmax.f32 %v3138_v6, 0.0  ;;  %v6164_v10 = vpop.eup %6163  ;;  %6175 = vpow2.f32 %v2515_v56  ;;  %v2944_v51 = vsub.f32 %v2368_v49, %v8271_v32  ;;  %v5483_v2 = vmul.f32 -1.442695, %v8669_v24 }
 0x32e   :  { %v8635_v52 = vpop.permute.xlu1 %4536  ;;  %10797 = vst [vmem:[#allocation152_spill] sm:$0xff] %v8685_v33  ;;  %v3203_v46 = vmax.f32 %v3139_v12, 0.0  ;;  %6177 = vpow2.f32 %v5482_v30  ;;  %v10533_v32 = vmin.f32 %v8685_v33, 256.0  ;;  %v10808_v33 = vld [vmem:[#allocation12_spill] sm:$0xff] }
 0x32f   :  { %10790 = vst [vmem:[#allocation7_spill] sm:$0xff] %v8635_v52  ;;  %v3268_v52 = vmin.f32 %v3204_v53, 256.0  ;;  %v3269_v53 = vmin.f32 %v3205_v59, 256.0  ;;  %v3266_v50 = vmin.f32 %v3202_v3, 256.0  ;;  %6179 = vpow2.f32 %v2517_v1 }
 0x330   :  { %v8654_v21 = vpop.permute.xlu0 %3446  ;;  %4308 = vrot.lane.b32.xlu1 %v6162_v43, %s6392_s14  ;;  %v8676_v43 = vmax.f32 %v2945_v15, 0.0  ;;  %v8691_v15 = vmax.f32 %v2943_v36, 0.0  ;;  %v3267_v12 = vmin.f32 %v3203_v46, 256.0  ;;  %6181 = vpow2.f32 %v5483_v2 }
 0x331   :  { %4570 = vrot.lane.b32.xlu0 %v3268_v52, %s6393_s0  ;;  %v6166_v20 = vpop.eup %6165  ;;  %v8715_v46 = vsub.f32 %v3269_v53, %v10533_v32 }
 0x332   :  { %v8658_v4 = vpop.permute.xlu1 %3452  ;;  %10796 = vst [vmem:[#allocation151_spill] sm:$0xff] %v8676_v43  ;;  %v10529_v59 = vmin.f32 %v8676_v43, 256.0  ;;  %10798 = vst [vmem:[#allocation153_spill] sm:$0xff] %v8691_v15  ;;  %v10804_v43 = vmin.f32 %v8691_v15, 256.0 }
 0x333   :  { %v6168_v56 = vpop.eup %6167  ;;  %10802 = vst [vmem:[#allocation157_spill] sm:$0xff] %v8715_v46 }
 0x334   :  { %v8674_v48 = vpop.permute.xlu0 %2807  ;;  %4572 = vrot.lane.b32.xlu1 %v3269_v53, %s6393_s0  ;;  %v8705_v7 = vsub.f32 %v3268_v52, %v10529_v59  ;;  %v6170_v30 = vpop.eup %6169  ;;  %v8722_v2 = vsub.f32 %v3266_v50, %v10804_v43 }
 0x335   :  { %4302 = vrot.lane.b32.xlu0 %v6164_v10, %s6392_s14  ;;  %v8699_v10 = vmax.f32 %v2944_v51, 0.0  ;;  %v6172_v1 = vpop.eup %6171  ;;  %v4004_v51 = vadd.f32 1.0, %v6168_v56  ;;  %v2593_v36 = vmul.f32 0.5, %v6170_v30  ;;  %v10807_v56 = vld [vmem:[#allocation43_spill] sm:$0xff] }
 0x336   :  { %v8679_v38 = vpop.permute.xlu1 %3448  ;;  %10801 = vst [vmem:[#allocation156_spill] sm:$0xff] %v8705_v7  ;;  %v6174_v59 = vpop.eup %6173  ;;  %10805 = vst [vmem:[#allocation159_spill] sm:$0xff] %v8722_v2  ;;  %v2309_v53 = vmul.f32 %v10808_v33, %v10807_v56  ;;  %v4005_v32 = vadd.f32 1.0, %v6172_v1  ;;  %v6314_v33 = vld [vmem:[%s10445_s1 + $0x1b0] sm:$0xff]  ;;  %v10813_v56 = vld [vmem:[#allocation46_spill] sm:$0xff] }
 0x337   :  { %10799 = vst [vmem:[#allocation154_spill] sm:$0xff] %v8699_v10  ;;  %v6176_v24 = vpop.eup %6175  ;;  %6183 = vrcp.f32 %v4004_v51  ;;  %v2594_v30 = vmul.f32 0.5, %v6174_v59  ;;  %v10809_v15 = vmin.f32 %v8699_v10, 256.0  ;;  %v2657_v1 = vmul.f32 %v6314_v33, %v2593_v36  ;;  %v6315_v59 = vld [vmem:[%s10445_s1 + $0xd0] sm:$0xff]  ;;  %v6316_v36 = vld [vmem:[%s10445_s1 + $0x1b8] sm:$0xff] }
 0x338   :  { %v8688_v6 = vpop.permute.xlu0 %2803  ;;  %4304 = vrot.lane.b32.xlu1 %v6166_v20, %s6392_s14  ;;  %v6178_v52 = vpop.eup %6177  ;;  %6185 = vrcp.f32 %v4005_v32 }
 0x339   :  { %4566 = vrot.lane.b32.xlu0 %v3266_v50, %s6393_s0  ;;  %v8734_v43 = vsub.f32 %v3267_v12, %v10809_v15  ;;  %v2373_v15 = vadd.f32 %v6315_v59, %v2309_v53  ;;  %v2658_v33 = vmul.f32 %v6316_v36, %v2594_v30  ;;  %v6317_v53 = vld [vmem:[%s10445_s1 + $0x1a0] sm:$0xff]  ;;  %v10819_v36 = vld [vmem:[#allocation10_spill] sm:$0xff] }
 0x33a   :  { %v8693_v60 = vpop.permute.xlu1 %2809 }
 0x33b   :  { %10810 = vst [vmem:[#allocation43_spill] sm:$0xff] %v8734_v43 }
 0x33c   :  { %v8701_v49 = vpop.permute.xlu0 %4282  ;;  %4568 = vrot.lane.b32.xlu1 %v3267_v12, %s6393_s0  ;;  %v4002_v12 = vadd.f32 1.0, %v6178_v52  ;;  %v8764_v52 = vadd.f32 %v8520_v31, %v8256_v17  ;;  %v6319_v17 = vld [vmem:[%s10445_s1 + $0x1a8] sm:$0xff] }
 0x33d   :  { %10800 = vst [vmem:[#allocation155_spill] sm:$0xff] %v8701_v49  ;;  %3482 = vrot.lane.b32.xlu0 %v8705_v7, %s6394_s20 }
 0x33e   :  { %v8708_v3 = vpop.permute.xlu1 %2805  ;;  %10817 = vst [vmem:[#allocation162_spill] sm:$0xff] %v8764_v52  ;;  %6187 = vrcp.f32 %v4002_v12  ;;  %v8786_v12 = vadd.f32 %v8520_v31, %v8273_v47  ;;  %v2949_v47 = vsub.f32 %v2373_v15, %v8297_v28 }
 0x340   :  { %v8718_v20 = vpop.permute.xlu0 %4546  ;;  %3484 = vrot.lane.b32.xlu1 %v8715_v46, %s6394_s20  ;;  %10823 = vst [vmem:[#allocation10_spill] sm:$0xff] %v8786_v12 }
 0x341   :  { %10803 = vst [vmem:[#allocation158_spill] sm:$0xff] %v8718_v20  ;;  %3478 = vrot.lane.b32.xlu0 %v8722_v2, %s6394_s20  ;;  %v2591_v20 = vmul.f32 0.5, %v6176_v24  ;;  %v10814_v2 = vld [vmem:[#allocation15_spill] sm:$0xff] }
 0x342   :  { %v8724_v49 = vpop.permute.xlu1 %4284  ;;  %v2310_v46 = vmul.f32 %v10814_v2, %v10813_v56  ;;  %v3144_v56 = vadd.f32 %v8297_v28, %v2373_v15  ;;  %v2529_v28 = vmul.f32 1.442695, %v8786_v12  ;;  %v8812_v15 = vadd.f32 %v8520_v31, %v8277_v45 }
 0x343   :  { %10806 = vst [vmem:[#allocation160_spill] sm:$0xff] %v8724_v49  ;;  %v6180_v49 = vpop.eup %6179  ;;  %v2655_v59 = vmul.f32 %v6317_v53, %v2591_v20 }
 0x344   :  { %v8736_v50 = vpop.permute.xlu0 %4278  ;;  %3480 = vrot.lane.b32.xlu1 %v8734_v43, %s6394_s20  ;;  %v6182_v24 = vpop.eup %6181  ;;  %v2592_v51 = vmul.f32 0.5, %v6180_v49  ;;  %v6318_v49 = vld [vmem:[%s10445_s1 + $0xd8] sm:$0xff] }
 0x345   :  { %10811 = vst [vmem:[#allocation12_spill] sm:$0xff] %v8736_v50  ;;  %2839 = vrot.lane.b32.xlu0 %v2657_v1, %s6391_s7  ;;  %v2374_v30 = vadd.f32 %v6318_v49, %v2310_v46  ;;  %v10818_v1 = vld [vmem:[#allocation44_spill] sm:$0xff]  ;;  %v10821_v49 = vld [vmem:[#allocation47_spill] sm:$0xff] }
 0x346   :  { %v8738_v7 = vpop.permute.xlu1 %4548  ;;  %v2307_v10 = vmul.f32 %v10819_v36, %v10818_v1  ;;  %v2656_v53 = vmul.f32 %v6319_v17, %v2592_v51  ;;  %v5488_v51 = vmul.f32 -1.442695, %v8764_v52 }
 0x347   :  { %10812 = vst [vmem:[#allocation161_spill] sm:$0xff] %v8738_v7  ;;  %v3145_v20 = vadd.f32 %v8312_v23, %v2374_v30  ;;  %v10822_v7 = vld [vmem:[#allocation13_spill] sm:$0xff] }
 0x348   :  { %v8754_v2 = vpop.permute.xlu0 %4542  ;;  %2841 = vrot.lane.b32.xlu1 %v2658_v33, %s6391_s7  ;;  %v6184_v33 = vpop.eup %6183  ;;  %v2308_v1 = vmul.f32 %v10822_v7, %v10821_v49  ;;  %v8796_v7 = vadd.f32 %v8520_v31, %v8264_v42  ;;  %10825 = vst [vmem:[#allocation13_spill] sm:$0xff] %v8812_v15 }
 0x349   :  { %10815 = vst [vmem:[#allocation46_spill] sm:$0xff] %v8754_v2  ;;  %2835 = vrot.lane.b32.xlu0 %v2655_v59, %s6391_s7  ;;  %v3208_v2 = vmax.f32 %v3144_v56, 0.0  ;;  %v6320_v56 = vld [vmem:[%s10445_s1 + $0xc0] sm:$0xff]  ;;  %v3209_v36 = vmax.f32 %v3145_v20, 0.0  ;;  %v6186_v17 = vpop.eup %6185  ;;  %v2950_v20 = vsub.f32 %v2374_v30, %v8312_v23 }
 0x34a   :  { %v8757_v32 = vpop.permute.xlu1 %4280  ;;  %v2371_v59 = vadd.f32 %v6320_v56, %v2307_v10  ;;  %10824 = vst [vmem:[#allocation47_spill] sm:$0xff] %v8796_v7  ;;  %v5489_v10 = vmul.f32 -1.442695, %v8786_v12  ;;  %v2525_v12 = vmul.f32 1.442695, %v8812_v15 }
 0x34b   :  { %10816 = vst [vmem:[#allocation15_spill] sm:$0xff] %v8757_v32  ;;  %v4003_v32 = vadd.f32 1.0, %v6182_v24  ;;  %v2527_v24 = vmul.f32 1.442695, %v8764_v52  ;;  %v3272_v49 = vmin.f32 %v3208_v2, 256.0  ;;  %v8818_v52 = vmax.f32 %v2949_v47, 0.0 }
 0x34c   :  { %v8777_v50 = vpop.permute.xlu0 %3458  ;;  %2837 = vrot.lane.b32.xlu1 %v2656_v53, %s6391_s7  ;;  %v2523_v2 = vmul.f32 1.442695, %v8796_v7  ;;  %v8829_v30 = vmax.f32 %v2950_v20, 0.0 }
 0x34d   :  { %6189 = vrcp.f32 %v4003_v32  ;;  %4314 = vrot.lane.b32.xlu0 %v6184_v33, %s6392_s14  ;;  %v3142_v32 = vadd.f32 %v8309_v34, %v2371_v59  ;;  %v6321_v33 = vld [vmem:[%s10445_s1 + $0xc8] sm:$0xff]  ;;  %10826 = vst [vmem:[#allocation163_spill] sm:$0xff] %v8818_v52  ;;  %v10541_v47 = vmin.f32 %v8818_v52, 256.0 }
 0x34e   :  { %v8779_v46 = vpop.permute.xlu1 %4544  ;;  %6191 = vpow2.f32 %v2527_v24  ;;  %v2372_v42 = vadd.f32 %v6321_v33, %v2308_v1  ;;  %v3273_v24 = vmin.f32 %v3209_v36, 256.0  ;;  %v2947_v1 = vsub.f32 %v2371_v59, %v8309_v34  ;;  %10827 = vst [vmem:[#allocation164_spill] sm:$0xff] %v8829_v30 }
 0x34f   :  { %10820 = vst [vmem:[#allocation44_spill] sm:$0xff] %v8779_v46  ;;  %6193 = vpow2.f32 %v5488_v51  ;;  %v3206_v51 = vmax.f32 %v3142_v32, 0.0  ;;  %v5486_v33 = vmul.f32 -1.442695, %v8796_v7  ;;  %v10546_v20 = vmin.f32 %v8829_v30, 256.0  ;;  %v10835_v30 = vld [vmem:[#allocation16_spill] sm:$0xff] }
 0x350   :  { %v8802_v46 = vpop.permute.xlu0 %3454  ;;  %4316 = vrot.lane.b32.xlu1 %v6186_v17, %s6392_s14  ;;  %v3143_v56 = vadd.f32 %v8336_v5, %v2372_v42  ;;  %v6188_v17 = vpop.eup %6187  ;;  %6195 = vpow2.f32 %v5489_v10  ;;  %v2948_v34 = vsub.f32 %v2372_v42, %v8336_v5  ;;  %v8833_v32 = vmax.f32 %v2947_v1, 0.0 }
 0x351   :  { %4578 = vrot.lane.b32.xlu0 %v3272_v49, %s6393_s0  ;;  %6197 = vpow2.f32 %v2529_v28  ;;  %v3270_v10 = vmin.f32 %v3206_v51, 256.0  ;;  %v5487_v28 = vmul.f32 -1.442695, %v8812_v15  ;;  %v8845_v1 = vsub.f32 %v3272_v49, %v10541_v47 }
 0x352   :  { %v8800_v53 = vpop.permute.xlu1 %3460  ;;  %6199 = vpow2.f32 %v2523_v2  ;;  %v3207_v59 = vmax.f32 %v3143_v56, 0.0  ;;  %10828 = vst [vmem:[#allocation165_spill] sm:$0xff] %v8833_v32  ;;  %v10831_v52 = vmin.f32 %v8833_v32, 256.0 }
 0x353   :  { %6201 = vpow2.f32 %v5486_v33  ;;  %10830 = vst [vmem:[#allocation167_spill] sm:$0xff] %v8845_v1 }
 0x354   :  { %4580 = vrot.lane.b32.xlu1 %v3273_v24, %s6393_s0  ;;  %v8827_v23 = vpop.permute.xlu0 %2815  ;;  %6203 = vpow2.f32 %v2525_v12  ;;  %v3271_v5 = vmin.f32 %v3207_v59, 256.0  ;;  %v8855_v59 = vsub.f32 %v3273_v24, %v10546_v20 }
 0x355   :  { %4310 = vrot.lane.b32.xlu0 %v6188_v17, %s6392_s14  ;;  %v8839_v17 = vmax.f32 %v2948_v34, 0.0  ;;  %6205 = vpow2.f32 %v5487_v28  ;;  %v8862_v28 = vsub.f32 %v3270_v10, %v10831_v52 }
 0x356   :  { %v8823_v45 = vpop.permute.xlu1 %3456 }
 0x357   :  { %v6190_v36 = vpop.eup %6189  ;;  %10829 = vst [vmem:[#allocation166_spill] sm:$0xff] %v8839_v17  ;;  %10832 = vst [vmem:[#allocation168_spill] sm:$0xff] %v8862_v28  ;;  %v10836_v32 = vmin.f32 %v8839_v17, 256.0 }
 0x358   :  { %4312 = vrot.lane.b32.xlu1 %v6190_v36, %s6392_s14  ;;  %v6192_v2 = vpop.eup %6191  ;;  %v8848_v33 = vpop.permute.xlu0 %2811 }
 0x359   :  { %4574 = vrot.lane.b32.xlu0 %v3270_v10, %s6393_s0  ;;  %v6194_v56 = vpop.eup %6193  ;;  %v2597_v51 = vmul.f32 0.5, %v6192_v2  ;;  %v8874_v52 = vsub.f32 %v3271_v5, %v10836_v32 }
 0x35a   :  { %v8841_v42 = vpop.permute.xlu1 %2817  ;;  %v6196_v12 = vpop.eup %6195  ;;  %v4008_v34 = vadd.f32 1.0, %v6194_v56  ;;  %v10834_v56 = vld [vmem:[#allocation52_spill] sm:$0xff] }
 0x35b   :  { %v6198_v47 = vpop.eup %6197  ;;  %v2313_v24 = vmul.f32 %v10835_v30, %v10834_v56  ;;  %v4009_v20 = vadd.f32 1.0, %v6196_v12  ;;  %v6322_v30 = vld [vmem:[%s10445_s1 + $0x1d0] sm:$0xff] }
 0x35c   :  { %4576 = vrot.lane.b32.xlu1 %v3271_v5, %s6393_s0  ;;  %v8864_v15 = vpop.permute.xlu0 %4290  ;;  %v6200_v7 = vpop.eup %6199  ;;  %6207 = vrcp.f32 %v4008_v34  ;;  %v2598_v2 = vmul.f32 0.5, %v6198_v47  ;;  %v2661_v12 = vmul.f32 %v6322_v30, %v2597_v51  ;;  %v10839_v56 = vld [vmem:[#allocation19_spill] sm:$0xff] }
 0x35d   :  { %3490 = vrot.lane.b32.xlu0 %v8845_v1, %s6394_s20  ;;  %10833 = vst [vmem:[#allocation169_spill] sm:$0xff] %v8864_v15  ;;  %v6202_v36 = vpop.eup %6201  ;;  %v2595_v1 = vmul.f32 0.5, %v6200_v7  ;;  %6209 = vrcp.f32 %v4009_v20  ;;  %v6323_v47 = vld [vmem:[%s10445_s1 + $0xf0] sm:$0xff] }
 0x35e   :  { %v8858_v49 = vpop.permute.xlu1 %2813  ;;  %v6204_v15 = vpop.eup %6203  ;;  %v2377_v32 = vadd.f32 %v6323_v47, %v2313_v24  ;;  %v4006_v5 = vadd.f32 1.0, %v6202_v36  ;;  %v6325_v24 = vld [vmem:[%s10445_s1 + $0x1c0] sm:$0xff] }
 0x35f   :  { %v6206_v7 = vpop.eup %6205  ;;  %v2596_v34 = vmul.f32 0.5, %v6204_v15  ;;  %v6326_v15 = vld [vmem:[%s10445_s1 + $0xf8] sm:$0xff] }
 0x360   :  { %3492 = vrot.lane.b32.xlu1 %v8855_v59, %s6394_s20  ;;  %v8878_v43 = vpop.permute.xlu0 %4554  ;;  %v3148_v30 = vadd.f32 %v8381_v8, %v2377_v32  ;;  %6211 = vrcp.f32 %v4006_v5 }
 0x361   :  { %3486 = vrot.lane.b32.xlu0 %v8862_v28, %s6394_s20  ;;  %10838 = vst [vmem:[#allocation16_spill] sm:$0xff] %v8878_v43  ;;  %v2314_v28 = vmul.f32 %v10839_v56, %v7780_v61  ;;  %v6324_v61 = vld [vmem:[%s10445_s1 + $0x1d8] sm:$0xff]  ;;  %v2659_v56 = vmul.f32 %v6325_v24, %v2595_v1 }
 0x362   :  { %v8876_v10 = vpop.permute.xlu1 %4292  ;;  %v2662_v51 = vmul.f32 %v6324_v61, %v2598_v2  ;;  %v4007_v2 = vadd.f32 1.0, %v6206_v7  ;;  %v8911_v61 = vadd.f32 %v8520_v31, %v8334_v62  ;;  %v10845_v7 = vld [vmem:[#allocation17_spill] sm:$0xff]  ;;  %v8926_v62 = vadd.f32 %v8520_v31, %v8338_v16 }
 0x363   :  { %10837 = vst [vmem:[#allocation52_spill] sm:$0xff] %v8876_v10  ;;  %v2378_v36 = vadd.f32 %v6326_v15, %v2314_v28  ;;  %v6327_v28 = vld [vmem:[%s10445_s1 + $0x1c8] sm:$0xff]  ;;  %v3212_v15 = vmax.f32 %v3148_v30, 0.0  ;;  %v2312_v5 = vmul.f32 %v10845_v7, %v7790_v0  ;;  %v2953_v16 = vsub.f32 %v2377_v32, %v8381_v8 }
 0x364   :  { %3488 = vrot.lane.b32.xlu1 %v8874_v52, %s6394_s20  ;;  %v8897_v20 = vpop.permute.xlu0 %4286  ;;  %6213 = vrcp.f32 %v4007_v2  ;;  %v2535_v0 = vmul.f32 1.442695, %v8911_v61 }
 0x365   :  { %2847 = vrot.lane.b32.xlu0 %v2661_v12, %s6391_s7  ;;  %10841 = vst [vmem:[#allocation170_spill] sm:$0xff] %v8897_v20  ;;  %v10842_v12 = vld [vmem:[#allocation14_spill] sm:$0xff]  ;;  %v3149_v1 = vadd.f32 %v8400_v55, %v2378_v36  ;;  %v2954_v8 = vsub.f32 %v2378_v36, %v8400_v55 }
 0x366   :  { %v8891_v17 = vpop.permute.xlu1 %4556  ;;  %v2311_v47 = vmul.f32 %v10842_v12, %v7771_v22  ;;  %v6208_v22 = vpop.eup %6207  ;;  %6215 = vpow2.f32 %v2535_v0 }
 0x367   :  { %10840 = vst [vmem:[#allocation19_spill] sm:$0xff] %v8891_v17  ;;  %v3213_v12 = vmax.f32 %v3149_v1, 0.0  ;;  %v6210_v2 = vpop.eup %6209 }
 0x368   :  { %2849 = vrot.lane.b32.xlu1 %v2662_v51, %s6391_s7  ;;  %v2660_v51 = vmul.f32 %v6327_v28, %v2596_v34  ;;  %v8919_v20 = vpop.permute.xlu0 %4550  ;;  %v6328_v34 = vld [vmem:[%s10445_s1 + $0xe0] sm:$0xff] }
 0x369   :  { %2843 = vrot.lane.b32.xlu0 %v2659_v56, %s6391_s7  ;;  %10844 = vst [vmem:[#allocation171_spill] sm:$0xff] %v8919_v20  ;;  %v8930_v56 = vadd.f32 %v8520_v31, %v8348_v26  ;;  %v2375_v30 = vadd.f32 %v6328_v34, %v2311_v47  ;;  %v8951_v34 = vadd.f32 %v8520_v31, %v8355_v41  ;;  %v3277_v32 = vmin.f32 %v3213_v12, 256.0 }
 0x36a   :  { %v8914_v24 = vpop.permute.xlu1 %4288  ;;  %v6212_v20 = vpop.eup %6211  ;;  %v5492_v41 = vmul.f32 -1.442695, %v8911_v61  ;;  %v8967_v31 = vmax.f32 %v2954_v8, 0.0 }
 0x36b   :  { %10843 = vst [vmem:[#allocation14_spill] sm:$0xff] %v8914_v24  ;;  %10846 = vst [vmem:[#allocation17_spill] sm:$0xff] %v8930_v56  ;;  %v3146_v7 = vadd.f32 %v8395_v25, %v2375_v30  ;;  %v6329_v24 = vld [vmem:[%s10445_s1 + $0xe8] sm:$0xff]  ;;  %v2537_v1 = vmul.f32 1.442695, %v8930_v56 }
 0x36c   :  { %2845 = vrot.lane.b32.xlu1 %v2660_v51, %s6391_s7  ;;  %v3276_v51 = vmin.f32 %v3212_v15, 256.0  ;;  %v8941_v26 = vpop.permute.xlu0 %3466  ;;  %v2376_v47 = vadd.f32 %v6329_v24, %v2312_v5  ;;  %10848 = vst [vmem:[#allocation173_spill] sm:$0xff] %v8951_v34  ;;  %v8958_v24 = vmax.f32 %v2953_v16, 0.0  ;;  %v2951_v5 = vsub.f32 %v2375_v30, %v8395_v25  ;;  %10850 = vst [vmem:[#allocation175_spill] sm:$0xff] %v8967_v31 }
 0x36d   :  { %4322 = vrot.lane.b32.xlu0 %v6208_v22, %s6392_s14  ;;  %v2531_v22 = vmul.f32 1.442695, %v8926_v62  ;;  %6217 = vpow2.f32 %v2537_v1  ;;  %v2533_v55 = vmul.f32 1.442695, %v8951_v34  ;;  %v5493_v1 = vmul.f32 -1.442695, %v8930_v56 }
 0x36e   :  { %v8937_v28 = vpop.permute.xlu1 %4552  ;;  %v3147_v15 = vadd.f32 %v8415_v19, %v2376_v47  ;;  %10849 = vst [vmem:[#allocation174_spill] sm:$0xff] %v8958_v24  ;;  %v2952_v36 = vsub.f32 %v2376_v47, %v8415_v19  ;;  %v6214_v30 = vpop.eup %6213  ;;  %v10552_v12 = vmin.f32 %v8958_v24, 256.0  ;;  %v8973_v16 = vmax.f32 %v2951_v5, 0.0  ;;  %v10887_v56 = vld [vmem:[#allocation91_spill] sm:$0xff] }
 0x36f   :  { %10847 = vst [vmem:[#allocation172_spill] sm:$0xff] %v8937_v28  ;;  %6219 = vpow2.f32 %v2531_v22  ;;  %v10554_v19 = vmin.f32 %v8967_v31, 256.0  ;;  %v5491_v43 = vmul.f32 -1.442695, %v8951_v34 }
 0x370   :  { %4324 = vrot.lane.b32.xlu1 %v6210_v2, %s6392_s14  ;;  %v3210_v2 = vmax.f32 %v3146_v7, 0.0  ;;  %v8961_v28 = vpop.permute.xlu0 %3462  ;;  %v3211_v0 = vmax.f32 %v3147_v15, 0.0  ;;  %10851 = vst [vmem:[#allocation176_spill] sm:$0xff] %v8973_v16  ;;  %6221 = vpow2.f32 %v5492_v41  ;;  %v8987_v8 = vsub.f32 %v3276_v51, %v10552_v12 }
 0x371   :  { %4586 = vrot.lane.b32.xlu0 %v3276_v51, %s6393_s0  ;;  %6223 = vpow2.f32 %v2533_v55  ;;  %v10555_v15 = vmin.f32 %v8973_v16, 256.0  ;;  %v5490_v41 = vmul.f32 -1.442695, %v8926_v62  ;;  %v8998_v55 = vsub.f32 %v3277_v32, %v10554_v19 }
 0x372   :  { %v8956_v10 = vpop.permute.xlu1 %3468  ;;  %v3274_v7 = vmin.f32 %v3210_v2, 256.0  ;;  %v3275_v47 = vmin.f32 %v3211_v0, 256.0  ;;  %v6216_v2 = vpop.eup %6215  ;;  %6225 = vpow2.f32 %v5493_v1 }
 0x373   :  { %6227 = vpow2.f32 %v5490_v41 }
 0x374   :  { %4588 = vrot.lane.b32.xlu1 %v3277_v32, %s6393_s0  ;;  %v8975_v17 = vpop.permute.xlu0 %2823  ;;  %v9005_v1 = vsub.f32 %v3274_v7, %v10555_v15  ;;  %6229 = vpow2.f32 %v5491_v43  ;;  %v6332_v43 = vld [vmem:[%s10445_s1 + $0x1e0] sm:$0xff] }
 0x375   :  { %4318 = vrot.lane.b32.xlu0 %v6212_v20, %s6392_s14  ;;  %v8981_v20 = vmax.f32 %v2952_v36, 0.0 }
 0x376   :  { %v8970_v25 = vpop.permute.xlu1 %3464  ;;  %10853 = vst [vmem:[#allocation178_spill] sm:$0xff] %v9005_v1 }
 0x377   :  { %10852 = vst [vmem:[#allocation177_spill] sm:$0xff] %v8981_v20  ;;  %v10558_v51 = vmin.f32 %v8981_v20, 256.0  ;;  %v6218_v0 = vpop.eup %6217 }
 0x378   :  { %4320 = vrot.lane.b32.xlu1 %v6214_v30, %s6392_s14  ;;  %v8990_v5 = vpop.permute.xlu0 %2819  ;;  %v2601_v30 = vmul.f32 0.5, %v6216_v2  ;;  %v2602_v19 = vmul.f32 0.5, %v6218_v0  ;;  %v3632_v0 = vmul.f32 %v8484_v58, %v7919_v14  ;;  %v10860_v14 = vld [vmem:[#allocation75_spill] sm:$0xff] }
 0x379   :  { %4582 = vrot.lane.b32.xlu0 %v3274_v7, %s6393_s0  ;;  %v6220_v24 = vpop.eup %6219  ;;  %v9016_v2 = vsub.f32 %v3275_v47, %v10558_v51  ;;  %v3633_v58 = vmul.f32 %v8509_v27, %v10860_v14  ;;  %v10866_v14 = vld [vmem:[#allocation64_spill] sm:$0xff] }
 0x37a   :  { %v8983_v22 = vpop.permute.xlu1 %2825  ;;  %v6222_v32 = vpop.eup %6221  ;;  %v2599_v16 = vmul.f32 0.5, %v6220_v24  ;;  %vm3696_vm1 = vcmp.ge.f32.partialorder %v3632_v0, 25.0  ;;  %v10868_v0 = vld [vmem:[#allocation63_spill] sm:$0xff] }
 0x37b   :  { %10855 = vst [vmem:[#allocation180_spill] sm:$0xff] %v9016_v2  ;;  %v6224_v15 = vpop.eup %6223  ;;  %v4012_v51 = vadd.f32 1.0, %v6222_v32  ;;  %v10862_v32 = vld [vmem:[#allocation20_spill] sm:$0xff]  ;;  %vm3697_vm2 = vcmp.ge.f32.partialorder %v3633_v58, 25.0 }
 0x37c   :  { %4584 = vrot.lane.b32.xlu1 %v3275_v47, %s6393_s0  ;;  %v9007_v12 = vpop.permute.xlu0 %4298  ;;  %v6226_v47 = vpop.eup %6225  ;;  %v2600_v20 = vmul.f32 0.5, %v6224_v15  ;;  %v10861_v15 = vld [vmem:[#allocation61_spill] sm:$0xff]  ;;  %v10871_v58 = vld [vmem:[#allocation68_spill] sm:$0xff] }
 0x37d   :  { %3498 = vrot.lane.b32.xlu0 %v8987_v8, %s6394_s20  ;;  %10854 = vst [vmem:[#allocation179_spill] sm:$0xff] %v9007_v12  ;;  %v6330_v12 = vld [vmem:[%s10445_s1 + $0x1f0] sm:$0xff]  ;;  %6231 = vrcp.f32 %v4012_v51 }
 0x37e   :  { %v9001_v36 = vpop.permute.xlu1 %2821  ;;  %v2665_v41 = vmul.f32 %v6330_v12, %v2601_v30  ;;  %v2663_v30 = vmul.f32 %v6332_v43, %v2599_v16  ;;  %v6333_v16 = vld [vmem:[%s10445_s1 + $0x1e8] sm:$0xff]  ;;  %v6228_v43 = vpop.eup %6227 }
 0x37f   :  { %v2664_v27 = vmul.f32 %v6333_v16, %v2600_v20  ;;  %v6334_v20 = vld [vmem:[%s10445_s1 + $0x110] sm:$0xff]  ;;  %v4010_v16 = vadd.f32 1.0, %v6228_v43  ;;  %v10874_v43 = vld [vmem:[#allocation18_spill] sm:$0xff] }
 0x380   :  { %3500 = vrot.lane.b32.xlu1 %v8998_v55, %s6394_s20  ;;  %v9020_v31 = vpop.permute.xlu0 %4562 }
 0x381   :  { %3494 = vrot.lane.b32.xlu0 %v9005_v1, %s6394_s20  ;;  %10857 = vst [vmem:[#allocation182_spill] sm:$0xff] %v9020_v31 }
 0x382   :  { %v9018_v7 = vpop.permute.xlu1 %4300 }
 0x383   :  { %10856 = vst [vmem:[#allocation181_spill] sm:$0xff] %v9018_v7  ;;  %v6331_v7 = vld [vmem:[%s10445_s1 + $0x1f8] sm:$0xff] }
 0x384   :  { %3496 = vrot.lane.b32.xlu1 %v9016_v2, %s6394_s20  ;;  %v2666_v31 = vmul.f32 %v6331_v7, %v2602_v19  ;;  %v9035_v12 = vpop.permute.xlu0 %4294  ;;  %v10863_v2 = vld [vmem:[#allocation73_spill] sm:$0xff] }
 0x385   :  { %2855 = vrot.lane.b32.xlu0 %v2665_v41, %s6391_s7  ;;  %10859 = vst [vmem:[#allocation184_spill] sm:$0xff] %v9035_v12  ;;  %v2317_v41 = vmul.f32 %v10862_v32, %v10861_v15  ;;  %v3630_v19 = vmul.f32 %v8505_v35, %v10863_v2  ;;  %v10867_v15 = vld [vmem:[#allocation23_spill] sm:$0xff]  ;;  %v4400_v32 = vsel %vm3696_vm1, %v10868_v0, -1.0  ;;  %v10869_v35 = vld [vmem:[#allocation77_spill] sm:$0xff] }
 0x386   :  { %v9030_v24 = vpop.permute.xlu1 %4564  ;;  %v3631_v2 = vmul.f32 %v8535_v13, %v10869_v35 }
 0x387   :  { %10858 = vst [vmem:[#allocation183_spill] sm:$0xff] %v9030_v24  ;;  %v4013_v24 = vadd.f32 1.0, %v6226_v47  ;;  %v2318_v47 = vmul.f32 %v10867_v15, %v10866_v14  ;;  %vm3694_vm3 = vcmp.ge.f32.partialorder %v3630_v19, 25.0  ;;  %v2381_v51 = vadd.f32 %v6334_v20, %v2317_v41  ;;  %v6335_v41 = vld [vmem:[%s10445_s1 + $0x118] sm:$0xff] }
 0x388   :  { %2857 = vrot.lane.b32.xlu1 %v2666_v31, %s6391_s7  ;;  %v9053_v31 = vpop.permute.xlu0 %4558  ;;  %v4401_v15 = vsel %vm3697_vm2, %v10871_v58, -1.0  ;;  %vm3695_vm4 = vcmp.ge.f32.partialorder %v3631_v2, 25.0 }
 0x389   :  { %2851 = vrot.lane.b32.xlu0 %v2663_v30, %s6391_s7  ;;  %10865 = vst [vmem:[#allocation61_spill] sm:$0xff] %v9053_v31  ;;  %6233 = vrcp.f32 %v4013_v24  ;;  %v6230_v30 = vpop.eup %6229  ;;  %v3152_v13 = vadd.f32 %v8530_v39, %v2381_v51  ;;  %v10872_v24 = vld [vmem:[#allocation66_spill] sm:$0xff] }
 0x38a   :  { %v9048_v7 = vpop.permute.xlu1 %4296  ;;  %v4398_v19 = vsel %vm3694_vm3, %v10872_v24, -1.0  ;;  %v4011_v20 = vadd.f32 1.0, %v6230_v30  ;;  %6235 = vrcp.f32 %v4010_v16  ;;  %v10875_v24 = vld [vmem:[#allocation71_spill] sm:$0xff]  ;;  %v6232_v31 = vpop.eup %6231  ;;  %v6336_v30 = vld [vmem:[%s10445_s1 + $0x100] sm:$0xff] }
 0x38b   :  { %10864 = vst [vmem:[#allocation75_spill] sm:$0xff] %v9048_v7  ;;  %v4399_v2 = vsel %vm3695_vm4, %v10875_v24, -1.0  ;;  %v3216_v12 = vmax.f32 %v3152_v13, 0.0 }
 0x38c   :  { %2853 = vrot.lane.b32.xlu1 %v2664_v27, %s6391_s7  ;;  %v9069_v0 = vpop.permute.xlu0 %3474  ;;  %v2382_v27 = vadd.f32 %v6335_v41, %v2318_v47  ;;  %v10876_v47 = vld [vmem:[#allocation67_spill] sm:$0xff]  ;;  %v10877_v41 = vld [vmem:[#allocation21_spill] sm:$0xff]  ;;  %6237 = vrcp.f32 %v4011_v20  ;;  %v6337_v20 = vld [vmem:[%s10445_s1 + $0x108] sm:$0xff] }
 0x38d   :  { %4786 = vrot.lane.b32.xlu0 %v4400_v32, %s6395_s22  ;;  %v10873_v32 = vld [vmem:[#allocation62_spill] sm:$0xff]  ;;  %v3280_v24 = vmin.f32 %v3216_v12, 256.0 }
 0x38e   :  { %v9065_v14 = vpop.permute.xlu1 %4560  ;;  %v2315_v35 = vmul.f32 %v10874_v43, %v10873_v32  ;;  %v3153_v58 = vadd.f32 %v8549_v40, %v2382_v27  ;;  %v2957_v43 = vsub.f32 %v2381_v51, %v8530_v39 }
 0x38f   :  { %10870 = vst [vmem:[#allocation20_spill] sm:$0xff] %v9065_v14 }
 0x390   :  { %4788 = vrot.lane.b32.xlu1 %v4401_v15, %s6395_s22  ;;  %v9083_v14 = vpop.permute.xlu0 %3470  ;;  %v2316_v15 = vmul.f32 %v10877_v41, %v10876_v47  ;;  %v2379_v16 = vadd.f32 %v6336_v30, %v2315_v35  ;;  %v9107_v12 = vmax.f32 %v2957_v43, 0.0 }
 0x391   :  { %4782 = vrot.lane.b32.xlu0 %v4398_v19, %s6395_s22  ;;  %v3217_v19 = vmax.f32 %v3153_v58, 0.0 }
 0x392   :  { %v9080_v7 = vpop.permute.xlu1 %3476  ;;  %v3150_v34 = vadd.f32 %v8544_v57, %v2379_v16  ;;  %10878 = vst [vmem:[#allocation73_spill] sm:$0xff] %v9107_v12  ;;  %v2955_v51 = vsub.f32 %v2379_v16, %v8544_v57  ;;  %v10564_v43 = vmin.f32 %v9107_v12, 256.0 }
 0x393   :  { %v6234_v13 = vpop.eup %6233  ;;  %v3281_v35 = vmin.f32 %v3217_v19, 256.0 }
 0x394   :  { %4784 = vrot.lane.b32.xlu1 %v4399_v2, %s6395_s22  ;;  %v9096_v47 = vpop.permute.xlu0 %2831  ;;  %v2380_v2 = vadd.f32 %v6337_v20, %v2316_v15  ;;  %v3214_v41 = vmax.f32 %v3150_v34, 0.0  ;;  %v6236_v1 = vpop.eup %6235  ;;  %v9120_v20 = vmax.f32 %v2955_v51, 0.0 }
 0x395   :  { %4330 = vrot.lane.b32.xlu0 %v6232_v31, %s6392_s14  ;;  %v2958_v31 = vsub.f32 %v2382_v27, %v8549_v40 }
 0x396   :  { %v9092_v32 = vpop.permute.xlu1 %3472  ;;  %v3151_v58 = vadd.f32 %v8564_v9, %v2380_v2  ;;  %v2956_v40 = vsub.f32 %v2380_v2, %v8564_v9  ;;  %10880 = vst [vmem:[#allocation23_spill] sm:$0xff] %v9120_v20  ;;  %v3278_v57 = vmin.f32 %v3214_v41, 256.0  ;;  %v10885_v41 = vld [vmem:[#allocation80_spill] sm:$0xff] }
 0x397   :  { %v9114_v15 = vmax.f32 %v2958_v31, 0.0  ;;  %v9133_v31 = vsub.f32 %v3280_v24, %v10564_v43 }
 0x398   :  { %4332 = vrot.lane.b32.xlu1 %v6234_v13, %s6392_s14  ;;  %v9110_v30 = vpop.permute.xlu0 %2827  ;;  %v3215_v27 = vmax.f32 %v3151_v58, 0.0  ;;  %v6238_v13 = vpop.eup %6237  ;;  %v9127_v16 = vmax.f32 %v2956_v40, 0.0  ;;  %v10569_v58 = vmin.f32 %v9120_v20, 256.0  ;;  %v3636_v40 = vmul.f32 %v8633_v44, %v10887_v56  ;;  %v10893_v56 = vld [vmem:[#allocation95_spill] sm:$0xff] }
 0x399   :  { %4594 = vrot.lane.b32.xlu0 %v3280_v24, %s6393_s0  ;;  %10879 = vst [vmem:[#allocation64_spill] sm:$0xff] %v9114_v15 }
 0x39a   :  { %v9105_v39 = vpop.permute.xlu1 %2833  ;;  %10882 = vst [vmem:[#allocation77_spill] sm:$0xff] %v9127_v16  ;;  %v3279_v9 = vmin.f32 %v3215_v27, 256.0  ;;  %v9154_v12 = vsub.f32 %v3278_v57, %v10569_v58  ;;  %vm3700_vm5 = vcmp.ge.f32.partialorder %v3636_v40, 25.0 }
 0x39c   :  { %4596 = vrot.lane.b32.xlu1 %v3281_v35, %s6393_s0  ;;  %v9122_v34 = vpop.permute.xlu0 %4306  ;;  %10889 = vst [vmem:[#allocation18_spill] sm:$0xff] %v9154_v12 }
 0x39d   :  { %4326 = vrot.lane.b32.xlu0 %v6236_v1, %s6392_s14  ;;  %10881 = vst [vmem:[#allocation63_spill] sm:$0xff] %v9122_v34  ;;  %v10566_v1 = vmin.f32 %v9114_v15, 256.0  ;;  %v10896_v15 = vld [vmem:[#allocation93_spill] sm:$0xff] }
 0x39e   :  { %v9117_v19 = vpop.permute.xlu1 %2829  ;;  %v3634_v20 = vmul.f32 %v8654_v21, %v10896_v15  ;;  %v10903_v15 = vld [vmem:[#allocation74_spill] sm:$0xff] }
 0x39f   :  { %v9147_v27 = vsub.f32 %v3281_v35, %v10566_v1  ;;  %v10894_v35 = vld [vmem:[#allocation81_spill] sm:$0xff]  ;;  %v10895_v1 = vld [vmem:[#allocation22_spill] sm:$0xff] }
 0x3a0   :  { %4328 = vrot.lane.b32.xlu1 %v6238_v13, %s6392_s14  ;;  %v10886_v13 = vld [vmem:[#allocation24_spill] sm:$0xff]  ;;  %v2319_v24 = vmul.f32 %v10895_v1, %v10894_v35  ;;  %v10901_v1 = vld [vmem:[#allocation25_spill] sm:$0xff]  ;;  %vm3698_vm7 = vcmp.ge.f32.partialorder %v3634_v20, 25.0 }
 0x3a1   :  { %4590 = vrot.lane.b32.xlu0 %v3278_v57, %s6393_s0  ;;  %v2321_v34 = vmul.f32 %v10886_v13, %v10885_v41  ;;  %v10891_v41 = vld [vmem:[#allocation83_spill] sm:$0xff]  ;;  %v10907_v20 = vld [vmem:[#allocation76_spill] sm:$0xff] }
 0x3a2   :  { %v9129_v2 = vpop.permute.xlu1 %4308  ;;  %v10892_v13 = vld [vmem:[#allocation27_spill] sm:$0xff] }
 0x3a3   :  { %10883 = vst [vmem:[#allocation68_spill] sm:$0xff] %v9129_v2  ;;  %v9136_v51 = vpop.permute.xlu0 %4570  ;;  %v2322_v44 = vmul.f32 %v10892_v13, %v10891_v41  ;;  %v3637_v2 = vmul.f32 %v8658_v4, %v10893_v56  ;;  %v6338_v57 = vld [vmem:[%s10445_s1 + $0x130] sm:$0xff]  ;;  %v10897_v4 = vmin.f32 %v9127_v16, 256.0  ;;  %v10900_v56 = vld [vmem:[#allocation86_spill] sm:$0xff] }
 0x3a4   :  { %10884 = vst [vmem:[#allocation66_spill] sm:$0xff] %v9136_v51  ;;  %4592 = vrot.lane.b32.xlu1 %v3279_v9, %s6393_s0  ;;  %v2385_v58 = vadd.f32 %v6338_v57, %v2321_v34  ;;  %v2320_v40 = vmul.f32 %v10901_v1, %v10900_v56  ;;  %v10904_v34 = vld [vmem:[#allocation97_spill] sm:$0xff] }
 0x3a5   :  { %3506 = vrot.lane.b32.xlu0 %v9133_v31, %s6394_s20  ;;  %v9175_v41 = vsub.f32 %v3279_v9, %v10897_v4  ;;  %vm3701_vm6 = vcmp.ge.f32.partialorder %v3637_v2, 25.0  ;;  %v3635_v57 = vmul.f32 %v8679_v38, %v10904_v34  ;;  %v6339_v9 = vld [vmem:[%s10445_s1 + $0x138] sm:$0xff]  ;;  %v6340_v56 = vld [vmem:[%s10445_s1 + $0x120] sm:$0xff]  ;;  %v10906_v34 = vld [vmem:[#allocation78_spill] sm:$0xff] }
 0x3a6   :  { %v9150_v43 = vpop.permute.xlu1 %4572  ;;  %v3156_v35 = vadd.f32 %v8674_v48, %v2385_v58  ;;  %v2386_v4 = vadd.f32 %v6339_v9, %v2322_v44  ;;  %v2383_v1 = vadd.f32 %v6340_v56, %v2319_v24  ;;  %v2961_v2 = vsub.f32 %v2385_v58, %v8674_v48 }
 0x3a7   :  { %10888 = vst [vmem:[#allocation62_spill] sm:$0xff] %v9150_v43  ;;  %v9156_v51 = vpop.permute.xlu0 %4302  ;;  %10898 = vst [vmem:[#allocation67_spill] sm:$0xff] %v9175_v41  ;;  %v4404_v43 = vsel %vm3700_vm5, %v10903_v15, -1.0  ;;  %v4405_v16 = vsel %vm3701_vm6, %v10906_v34, -1.0  ;;  %vm3699_vm8 = vcmp.ge.f32.partialorder %v3635_v57, 25.0  ;;  %vm4974_vm6 = vcmask 130048  }
 0x3a8   :  { %10890 = vst [vmem:[#allocation71_spill] sm:$0xff] %v9156_v51  ;;  %3508 = vrot.lane.b32.xlu1 %v9147_v27, %s6394_s20  ;;  %v3157_v38 = vadd.f32 %v8693_v60, %v2386_v4  ;;  %v3220_v44 = vmax.f32 %v3156_v35, 0.0  ;;  %v3154_v9 = vadd.f32 %v8688_v6, %v2383_v1  ;;  %v9210_v48 = vmax.f32 %v2961_v2, 0.0 }
 0x3a9   :  { %3502 = vrot.lane.b32.xlu0 %v9154_v12, %s6394_s20  ;;  %v2962_v58 = vsub.f32 %v2386_v4, %v8693_v60  ;;  %v2959_v51 = vsub.f32 %v2383_v1, %v8688_v6 }
 0x3aa   :  { %v9177_v13 = vpop.permute.xlu1 %4304  ;;  %10908 = vst [vmem:[#allocation91_spill] sm:$0xff] %v9210_v48  ;;  %v3221_v35 = vmax.f32 %v3157_v38, 0.0  ;;  %v10572_v38 = vmin.f32 %v9210_v48, 256.0 }
 0x3ab   :  { %10899 = vst [vmem:[#allocation21_spill] sm:$0xff] %v9177_v13  ;;  %v9182_v21 = vpop.permute.xlu0 %4566  ;;  %v4402_v13 = vsel %vm3698_vm7, %v10907_v20, -1.0  ;;  %v10909_v20 = vld [vmem:[#allocation79_spill] sm:$0xff]  ;;  %vm5103_vm7 = vcmask 326656  }
 0x3ac   :  { %10902 = vst [vmem:[#allocation80_spill] sm:$0xff] %v9182_v21  ;;  %3504 = vrot.lane.b32.xlu1 %v9175_v41, %s6394_s20  ;;  %v4403_v57 = vsel %vm3699_vm8, %v10909_v20, -1.0  ;;  %v3218_v41 = vmax.f32 %v3154_v9, 0.0  ;;  %v3285_v60 = vmin.f32 %v3221_v35, 256.0  ;;  %v10914_v35 = vld [vmem:[#allocation100_spill] sm:$0xff] }
 0x3ad   :  { %4794 = vrot.lane.b32.xlu0 %v4404_v43, %s6395_s22  ;;  %v6341_v43 = vld [vmem:[%s10445_s1 + $0x128] sm:$0xff] }
 0x3ae   :  { %v9198_v15 = vpop.permute.xlu1 %4568  ;;  %v2384_v24 = vadd.f32 %v6341_v43, %v2320_v40  ;;  %v3282_v6 = vmin.f32 %v3218_v41, 256.0 }
 0x3af   :  { %10905 = vst [vmem:[#allocation24_spill] sm:$0xff] %v9198_v15  ;;  %v9202_v21 = vpop.permute.xlu0 %3482  ;;  %v3284_v15 = vmin.f32 %v3220_v44, 256.0  ;;  %v9228_v44 = vmax.f32 %v2959_v51, 0.0 }
 0x3b0   :  { %4796 = vrot.lane.b32.xlu1 %v4405_v16, %s6395_s22  ;;  %v3155_v56 = vadd.f32 %v8708_v3, %v2384_v24  ;;  %v9222_v16 = vmax.f32 %v2962_v58, 0.0 }
 0x3b1   :  { %4790 = vrot.lane.b32.xlu0 %v4402_v13, %s6395_s22  ;;  %v2960_v13 = vsub.f32 %v2384_v24, %v8708_v3  ;;  %10911 = vst [vmem:[#allocation27_spill] sm:$0xff] %v9228_v44  ;;  %v9241_v24 = vsub.f32 %v3284_v15, %v10572_v38  ;;  %v10579_v51 = vmin.f32 %v9228_v44, 256.0 }
 0x3b2   :  { %v9214_v34 = vpop.permute.xlu1 %3484  ;;  %10910 = vst [vmem:[#allocation83_spill] sm:$0xff] %v9222_v16  ;;  %v3219_v4 = vmax.f32 %v3155_v56, 0.0  ;;  %v10576_v9 = vmin.f32 %v9222_v16, 256.0  ;;  %v10915_v56 = vld [vmem:[#allocation29_spill] sm:$0xff] }
 0x3b3   :  { %v9218_v40 = vpop.permute.xlu0 %3478  ;;  %v9235_v43 = vmax.f32 %v2960_v13, 0.0  ;;  %10913 = vst [vmem:[#allocation81_spill] sm:$0xff] %v9241_v24  ;;  %v2325_v20 = vmul.f32 %v10915_v56, %v10914_v35  ;;  %v9262_v48 = vsub.f32 %v3282_v6, %v10579_v51  ;;  %v10918_v35 = vld [vmem:[#allocation102_spill] sm:$0xff]  ;;  %v10919_v56 = vld [vmem:[#allocation32_spill] sm:$0xff]  ;;  %v10923_v16 = vld [vmem:[#allocation113_spill] sm:$0xff] }
 0x3b4   :  { %4792 = vrot.lane.b32.xlu1 %v4403_v57, %s6395_s22  ;;  %v3283_v58 = vmin.f32 %v3219_v4, 256.0  ;;  %v10916_v57 = vld [vmem:[#allocation111_spill] sm:$0xff]  ;;  %v9255_v4 = vsub.f32 %v3285_v60, %v10576_v9  ;;  %v10922_v9 = vld [vmem:[#allocation26_spill] sm:$0xff]  ;;  %v3638_v44 = vmul.f32 %v8802_v46, %v10923_v16 }
 0x3b5   :  { %4602 = vrot.lane.b32.xlu0 %v3284_v15, %s6393_s0  ;;  %10912 = vst [vmem:[#allocation95_spill] sm:$0xff] %v9235_v43  ;;  %v3640_v13 = vmul.f32 %v8777_v50, %v10916_v57  ;;  %v2326_v50 = vmul.f32 %v10919_v56, %v10918_v35  ;;  %v10920_v57 = vld [vmem:[#allocation115_spill] sm:$0xff]  ;;  %v10930_v16 = vld [vmem:[#allocation82_spill] sm:$0xff] }
 0x3b6   :  { %v9225_v2 = vpop.permute.xlu1 %3480  ;;  %vm3702_vm11 = vcmp.ge.f32.partialorder %v3638_v44, 25.0  ;;  %v10935_v44 = vld [vmem:[#allocation85_spill] sm:$0xff] }
 0x3b7   :  { %v9230_v1 = vpop.permute.xlu0 %2839  ;;  %vm3704_vm9 = vcmp.ge.f32.partialorder %v3640_v13, 25.0 }
 0x3b8   :  { %4604 = vrot.lane.b32.xlu1 %v3285_v60, %s6393_s0  ;;  %v10921_v60 = vld [vmem:[#allocation106_spill] sm:$0xff] }
 0x3b9   :  { %4598 = vrot.lane.b32.xlu0 %v3282_v6, %s6393_s0  ;;  %v2323_v15 = vmul.f32 %v10922_v9, %v10921_v60  ;;  %v6342_v6 = vld [vmem:[%s10445_s1 + $0x150] sm:$0xff]  ;;  %v10928_v9 = vld [vmem:[#allocation30_spill] sm:$0xff] }
 0x3ba   :  { %v9237_v3 = vpop.permute.xlu1 %2841  ;;  %v2389_v51 = vadd.f32 %v6342_v6, %v2325_v20  ;;  %v10931_v20 = vld [vmem:[#allocation117_spill] sm:$0xff] }
 0x3bb   :  { %v9244_v41 = vpop.permute.xlu0 %2835  ;;  %v3639_v6 = vmul.f32 %v8823_v45, %v10931_v20  ;;  %v10933_v20 = vld [vmem:[#allocation87_spill] sm:$0xff] }
 0x3bc   :  { %4600 = vrot.lane.b32.xlu1 %v3283_v58, %s6393_s0  ;;  %v3160_v60 = vadd.f32 %v8827_v23, %v2389_v51 }
 0x3bd   :  { %3514 = vrot.lane.b32.xlu0 %v9241_v24, %s6394_s20  ;;  %v3641_v24 = vmul.f32 %v8800_v53, %v10920_v57  ;;  %v10924_v53 = vmin.f32 %v9235_v43, 256.0  ;;  %v10927_v57 = vld [vmem:[#allocation108_spill] sm:$0xff]  ;;  %vm3703_vm12 = vcmp.ge.f32.partialorder %v3639_v6, 25.0 }
 0x3be   :  { %v9258_v38 = vpop.permute.xlu1 %2837  ;;  %v2324_v13 = vmul.f32 %v10928_v9, %v10927_v57  ;;  %v6344_v57 = vld [vmem:[%s10445_s1 + $0x140] sm:$0xff] }
 0x3bf   :  { %v9264_v12 = vpop.permute.xlu0 %4314  ;;  %v9283_v35 = vsub.f32 %v3283_v58, %v10924_v53  ;;  %vm3705_vm10 = vcmp.ge.f32.partialorder %v3641_v24, 25.0  ;;  %v6343_v58 = vld [vmem:[%s10445_s1 + $0x158] sm:$0xff]  ;;  %v2387_v9 = vadd.f32 %v6344_v57, %v2323_v15  ;;  %v2965_v24 = vsub.f32 %v2389_v51, %v8827_v23 }
 0x3c0   :  { %10917 = vst [vmem:[#allocation22_spill] sm:$0xff] %v9264_v12  ;;  %3516 = vrot.lane.b32.xlu1 %v9255_v4, %s6394_s20  ;;  %v4408_v12 = vsel %vm3704_vm9, %v10930_v16, -1.0  ;;  %v2390_v53 = vadd.f32 %v6343_v58, %v2326_v50  ;;  %v4409_v43 = vsel %vm3705_vm10, %v10933_v20, -1.0  ;;  %v3224_v50 = vmax.f32 %v3160_v60, 0.0 }
 0x3c1   :  { %3510 = vrot.lane.b32.xlu0 %v9262_v48, %s6394_s20  ;;  %10925 = vst [vmem:[#allocation93_spill] sm:$0xff] %v9283_v35  ;;  %v3158_v58 = vadd.f32 %v8848_v33, %v2387_v9  ;;  %v9318_v23 = vmax.f32 %v2965_v24, 0.0 }
 0x3c2   :  { %v9285_v56 = vpop.permute.xlu1 %4316  ;;  %v3161_v45 = vadd.f32 %v8841_v42, %v2390_v53  ;;  %v2966_v51 = vsub.f32 %v2390_v53, %v8841_v42 }
 0x3c3   :  { %10926 = vst [vmem:[#allocation86_spill] sm:$0xff] %v9285_v56  ;;  %v9290_v46 = vpop.permute.xlu0 %4578  ;;  %v4406_v56 = vsel %vm3702_vm11, %v10935_v44, -1.0  ;;  %10936 = vst [vmem:[#allocation78_spill] sm:$0xff] %v9318_v23  ;;  %v10938_v44 = vld [vmem:[#allocation90_spill] sm:$0xff] }
 0x3c4   :  { %10929 = vst [vmem:[#allocation25_spill] sm:$0xff] %v9290_v46  ;;  %3512 = vrot.lane.b32.xlu1 %v9283_v35, %s6394_s20  ;;  %v3225_v60 = vmax.f32 %v3161_v45, 0.0  ;;  %v4407_v6 = vsel %vm3703_vm12, %v10938_v44, -1.0  ;;  %v3222_v35 = vmax.f32 %v3158_v58, 0.0  ;;  %v10582_v45 = vmin.f32 %v9318_v23, 256.0 }
 0x3c5   :  { %4802 = vrot.lane.b32.xlu0 %v4408_v12, %s6395_s22  ;;  %v6345_v12 = vld [vmem:[%s10445_s1 + $0x148] sm:$0xff] }
 0x3c6   :  { %v9306_v16 = vpop.permute.xlu1 %4580  ;;  %v2388_v15 = vadd.f32 %v6345_v12, %v2324_v13  ;;  %v3289_v42 = vmin.f32 %v3225_v60, 256.0  ;;  %v10944_v60 = vld [vmem:[#allocation120_spill] sm:$0xff] }
 0x3c7   :  { %10932 = vst [vmem:[#allocation74_spill] sm:$0xff] %v9306_v16  ;;  %v9310_v46 = vpop.permute.xlu0 %4310  ;;  %v3288_v16 = vmin.f32 %v3224_v50, 256.0 }
 0x3c8   :  { %10934 = vst [vmem:[#allocation97_spill] sm:$0xff] %v9310_v46  ;;  %4804 = vrot.lane.b32.xlu1 %v4409_v43, %s6395_s22  ;;  %v3159_v57 = vadd.f32 %v8858_v49, %v2388_v15  ;;  %v2963_v46 = vsub.f32 %v2387_v9, %v8848_v33  ;;  %v9330_v43 = vmax.f32 %v2966_v51, 0.0  ;;  %v3286_v33 = vmin.f32 %v3222_v35, 256.0 }
 0x3c9   :  { %4798 = vrot.lane.b32.xlu0 %v4406_v56, %s6395_s22  ;;  %v2964_v56 = vsub.f32 %v2388_v15, %v8858_v49  ;;  %v9349_v15 = vsub.f32 %v3288_v16, %v10582_v45 }
 0x3ca   :  { %v9322_v20 = vpop.permute.xlu1 %4312  ;;  %10940 = vst [vmem:[#allocation100_spill] sm:$0xff] %v9330_v43  ;;  %v3223_v53 = vmax.f32 %v3159_v57, 0.0  ;;  %v9336_v50 = vmax.f32 %v2963_v46, 0.0  ;;  %v10583_v58 = vmin.f32 %v9330_v43, 256.0  ;;  %v10945_v57 = vld [vmem:[#allocation35_spill] sm:$0xff]  ;;  %v10955_v43 = vld [vmem:[#allocation96_spill] sm:$0xff] }
 0x3cb   :  { %10937 = vst [vmem:[#allocation76_spill] sm:$0xff] %v9322_v20  ;;  %v9326_v13 = vpop.permute.xlu0 %4574  ;;  %v9343_v12 = vmax.f32 %v2964_v56, 0.0  ;;  %v2329_v44 = vmul.f32 %v10945_v57, %v10944_v60  ;;  %v3645_v60 = vmul.f32 %v8956_v10, %v8422_v11  ;;  %v10997_v20 = vld [vmem:[#allocation69_spill] sm:$0xff] }
 0x3cc   :  { %10939 = vst [vmem:[#allocation79_spill] sm:$0xff] %v9326_v13  ;;  %4800 = vrot.lane.b32.xlu1 %v4407_v6, %s6395_s22  ;;  %10942 = vst [vmem:[#allocation111_spill] sm:$0xff] %v9336_v50  ;;  %v3287_v51 = vmin.f32 %v3223_v53, 256.0  ;;  %v10585_v46 = vmin.f32 %v9336_v50, 256.0  ;;  %v3644_v6 = vmul.f32 %v8941_v26, %v8412_v37  ;;  %v9363_v56 = vsub.f32 %v3289_v42, %v10583_v58  ;;  %v10946_v37 = vld [vmem:[#allocation40_spill] sm:$0xff]  ;;  %v10948_v58 = vld [vmem:[#allocation31_spill] sm:$0xff] }
 0x3cd   :  { %4610 = vrot.lane.b32.xlu0 %v3288_v16, %s6393_s0  ;;  %10943 = vst [vmem:[#allocation102_spill] sm:$0xff] %v9343_v12  ;;  %v2330_v26 = vmul.f32 %v10946_v37, %v8345_v18  ;;  %v3642_v50 = vmul.f32 %v8961_v28, %v8429_v29  ;;  %v10949_v18 = vmin.f32 %v9343_v12, 256.0  ;;  %vm3709_vm14 = vcmp.ge.f32.partialorder %v3645_v60, 25.0  ;;  %v10953_v60 = vld [vmem:[#allocation98_spill] sm:$0xff] }
 0x3ce   :  { %v9333_v24 = vpop.permute.xlu1 %4576  ;;  %v9370_v45 = vsub.f32 %v3286_v33, %v10585_v46  ;;  %vm3708_vm13 = vcmp.ge.f32.partialorder %v3644_v6, 25.0  ;;  %v10950_v6 = vld [vmem:[#allocation125_spill] sm:$0xff] }
 0x3cf   :  { %10941 = vst [vmem:[#allocation29_spill] sm:$0xff] %v9333_v24  ;;  %v9338_v9 = vpop.permute.xlu0 %3490  ;;  %v9391_v10 = vsub.f32 %v3287_v51, %v10949_v18  ;;  %vm3706_vm15 = vcmp.ge.f32.partialorder %v3642_v50, 25.0 }
 0x3d0   :  { %4612 = vrot.lane.b32.xlu1 %v3289_v42, %s6393_s0  ;;  %v10947_v42 = vld [vmem:[#allocation122_spill] sm:$0xff]  ;;  %v4410_v23 = vsel %vm3706_vm15, %v10955_v43, -1.0 }
 0x3d1   :  { %4606 = vrot.lane.b32.xlu0 %v3286_v33, %s6393_s0  ;;  %v2327_v16 = vmul.f32 %v10948_v58, %v10947_v42  ;;  %v6346_v33 = vld [vmem:[%s10445_s1 + $0x170] sm:$0xff]  ;;  %v3643_v58 = vmul.f32 %v8970_v25, %v8441_v63  ;;  %v10951_v42 = vld [vmem:[#allocation36_spill] sm:$0xff]  ;;  %v6348_v63 = vld [vmem:[%s10445_s1 + $0x160] sm:$0xff] }
 0x3d2   :  { %v9345_v49 = vpop.permute.xlu1 %3492  ;;  %v2393_v11 = vadd.f32 %v6346_v33, %v2329_v44  ;;  %v2328_v44 = vmul.f32 %v10951_v42, %v10950_v6  ;;  %v10952_v33 = vld [vmem:[#allocation94_spill] sm:$0xff]  ;;  %v4413_v6 = vsel %vm3709_vm14, %v10953_v60, -1.0 }
 0x3d3   :  { %v9352_v35 = vpop.permute.xlu0 %3486  ;;  %v4412_v46 = vsel %vm3708_vm13, %v10952_v33, -1.0  ;;  %v2391_v25 = vadd.f32 %v6348_v63, %v2327_v16  ;;  %vm3707_vm1 = vcmp.ge.f32.partialorder %v3643_v58, 25.0  ;;  %v10956_v63 = vld [vmem:[#allocation99_spill] sm:$0xff] }
 0x3d4   :  { %4608 = vrot.lane.b32.xlu1 %v3287_v51, %s6393_s0  ;;  %v3164_v29 = vadd.f32 %v8975_v17, %v2393_v11  ;;  %v6347_v51 = vld [vmem:[%s10445_s1 + $0x178] sm:$0xff]  ;;  %v4411_v58 = vsel %vm3707_vm1, %v10956_v63, -1.0 }
 0x3d5   :  { %3522 = vrot.lane.b32.xlu0 %v9349_v15, %s6394_s20  ;;  %v2394_v18 = vadd.f32 %v6347_v51, %v2330_v26  ;;  %v2969_v26 = vsub.f32 %v2393_v11, %v8975_v17  ;;  %v3162_v12 = vadd.f32 %v8990_v5, %v2391_v25  ;;  %v2967_v24 = vsub.f32 %v2391_v25, %v8990_v5 }
 0x3d6   :  { %v9366_v53 = vpop.permute.xlu1 %3488  ;;  %v3228_v51 = vmax.f32 %v3164_v29, 0.0 }
 0x3d7   :  { %v9374_v57 = vpop.permute.xlu0 %2847  ;;  %v3165_v42 = vadd.f32 %v8983_v22, %v2394_v18  ;;  %v2970_v17 = vsub.f32 %v2394_v18, %v8983_v22  ;;  %v3226_v13 = vmax.f32 %v3162_v12, 0.0 }
 0x3d8   :  { %3524 = vrot.lane.b32.xlu1 %v9363_v56, %s6394_s20  ;;  %v3292_v43 = vmin.f32 %v3228_v51, 256.0  ;;  %v9444_v51 = vmax.f32 %v2967_v24, 0.0 }
 0x3d9   :  { %3518 = vrot.lane.b32.xlu0 %v9370_v45, %s6394_s20  ;;  %v3229_v11 = vmax.f32 %v3165_v42, 0.0  ;;  %v3290_v5 = vmin.f32 %v3226_v13, 256.0 }
 0x3da   :  { %v9393_v37 = vpop.permute.xlu1 %2849  ;;  %10962 = vst [vmem:[#allocation30_spill] sm:$0xff] %v9444_v51  ;;  %v10594_v24 = vmin.f32 %v9444_v51, 256.0 }
 0x3db   :  { %v9398_v28 = vpop.permute.xlu0 %2843  ;;  %v3293_v22 = vmin.f32 %v3229_v11, 256.0  ;;  %v10968_v11 = vld [vmem:[#allocation144_spill] sm:$0xff] }
 0x3dc   :  { %3520 = vrot.lane.b32.xlu1 %v9391_v10, %s6394_s20 }
 0x3dd   :  { %4810 = vrot.lane.b32.xlu0 %v4412_v46, %s6395_s22  ;;  %v6349_v46 = vld [vmem:[%s10445_s1 + $0x168] sm:$0xff] }
 0x3de   :  { %v9414_v33 = vpop.permute.xlu1 %2845  ;;  %v2392_v16 = vadd.f32 %v6349_v46, %v2328_v44 }
 0x3df   :  { %v9418_v50 = vpop.permute.xlu0 %4322 }
 0x3e0   :  { %10954 = vst [vmem:[#allocation32_spill] sm:$0xff] %v9418_v50  ;;  %4812 = vrot.lane.b32.xlu1 %v4413_v6, %s6395_s22  ;;  %v3163_v29 = vadd.f32 %v9001_v36, %v2392_v16  ;;  %v9431_v50 = vmax.f32 %v2969_v26, 0.0  ;;  %v2968_v18 = vsub.f32 %v2392_v16, %v9001_v36 }
 0x3e1   :  { %4806 = vrot.lane.b32.xlu0 %v4410_v23, %s6395_s22  ;;  %v9438_v23 = vmax.f32 %v2970_v17, 0.0 }
 0x3e2   :  { %v9429_v60 = vpop.permute.xlu1 %4324  ;;  %10958 = vst [vmem:[#allocation106_spill] sm:$0xff] %v9431_v50  ;;  %v3227_v6 = vmax.f32 %v3163_v29, 0.0  ;;  %v10589_v26 = vmin.f32 %v9431_v50, 256.0  ;;  %v9451_v46 = vmax.f32 %v2968_v18, 0.0  ;;  %v3648_v29 = vmul.f32 %v9069_v0, %v10968_v11  ;;  %v10971_v50 = vld [vmem:[#allocation145_spill] sm:$0xff]  ;;  %v10972_v0 = vld [vmem:[#allocation28_spill] sm:$0xff] }
 0x3e3   :  { %10957 = vst [vmem:[#allocation115_spill] sm:$0xff] %v9429_v60  ;;  %v9434_v44 = vpop.permute.xlu0 %4586  ;;  %10960 = vst [vmem:[#allocation113_spill] sm:$0xff] %v9438_v23  ;;  %v10591_v25 = vmin.f32 %v9438_v23, 256.0  ;;  %v10973_v11 = vld [vmem:[#allocation48_spill] sm:$0xff]  ;;  %v10976_v23 = vld [vmem:[#allocation147_spill] sm:$0xff] }
 0x3e4   :  { %10959 = vst [vmem:[#allocation26_spill] sm:$0xff] %v9434_v44  ;;  %4808 = vrot.lane.b32.xlu1 %v4411_v58, %s6395_s22  ;;  %10964 = vst [vmem:[#allocation117_spill] sm:$0xff] %v9451_v46  ;;  %v3291_v63 = vmin.f32 %v3227_v6, 256.0  ;;  %v9457_v16 = vsub.f32 %v3292_v43, %v10589_v26  ;;  %v10967_v58 = vld [vmem:[#allocation41_spill] sm:$0xff]  ;;  %v9478_v26 = vsub.f32 %v3290_v5, %v10594_v24  ;;  %vm3712_vm2 = vcmp.ge.f32.partialorder %v3648_v29, 25.0  ;;  %v10981_v24 = vld [vmem:[#allocation42_spill] sm:$0xff] }
 0x3e5   :  { %4618 = vrot.lane.b32.xlu0 %v3292_v43, %s6393_s0  ;;  %v2333_v17 = vmul.f32 %v10967_v58, %v8471_v54  ;;  %v9471_v18 = vsub.f32 %v3293_v22, %v10591_v25  ;;  %v3649_v54 = vmul.f32 %v9080_v7, %v10971_v50  ;;  %v10975_v25 = vld [vmem:[#allocation39_spill] sm:$0xff]  ;;  %v3646_v51 = vmul.f32 %v9083_v14, %v10976_v23 }
 0x3e6   :  { %v9441_v42 = vpop.permute.xlu1 %4588  ;;  %10970 = vst [vmem:[#allocation120_spill] sm:$0xff] %v9478_v26  ;;  %v10977_v50 = vmin.f32 %v9451_v46, 256.0 }
 0x3e7   :  { %10961 = vst [vmem:[#allocation108_spill] sm:$0xff] %v9441_v42  ;;  %v9446_v12 = vpop.permute.xlu0 %4318  ;;  %vm3713_vm3 = vcmp.ge.f32.partialorder %v3649_v54, 25.0  ;;  %vm3710_vm4 = vcmp.ge.f32.partialorder %v3646_v51, 25.0 }
 0x3e8   :  { %10963 = vst [vmem:[#allocation82_spill] sm:$0xff] %v9446_v12  ;;  %4620 = vrot.lane.b32.xlu1 %v3293_v22, %s6393_s0  ;;  %v10974_v22 = vld [vmem:[#allocation6_spill] sm:$0xff] }
 0x3e9   :  { %4614 = vrot.lane.b32.xlu0 %v3290_v5, %s6393_s0  ;;  %v2331_v43 = vmul.f32 %v10975_v25, %v10974_v22  ;;  %v6350_v5 = vld [vmem:[%s10445_s1 + $0x190] sm:$0xff]  ;;  %v10979_v25 = vld [vmem:[#allocation33_spill] sm:$0xff]  ;;  %v10980_v22 = vld [vmem:[#allocation138_spill] sm:$0xff] }
 0x3ea   :  { %v9453_v36 = vpop.permute.xlu1 %4320  ;;  %v2397_v7 = vadd.f32 %v6350_v5, %v2333_v17  ;;  %v3647_v29 = vmul.f32 %v9092_v32, %v10979_v25  ;;  %v2332_v17 = vmul.f32 %v10981_v24, %v10980_v22  ;;  %v10982_v5 = vld [vmem:[#allocation101_spill] sm:$0xff] }
 0x3eb   :  { %10965 = vst [vmem:[#allocation87_spill] sm:$0xff] %v9453_v36  ;;  %v9460_v13 = vpop.permute.xlu0 %4582  ;;  %v6352_v32 = vld [vmem:[%s10445_s1 + $0x180] sm:$0xff]  ;;  %v10984_v36 = vld [vmem:[#allocation104_spill] sm:$0xff] }
 0x3ec   :  { %10966 = vst [vmem:[#allocation85_spill] sm:$0xff] %v9460_v13  ;;  %4616 = vrot.lane.b32.xlu1 %v3291_v63, %s6393_s0  ;;  %v2334_v13 = vmul.f32 %v10973_v11, %v10972_v0  ;;  %v9499_v0 = vsub.f32 %v3291_v63, %v10977_v50  ;;  %v3168_v14 = vadd.f32 %v9096_v47, %v2397_v7  ;;  %v6351_v63 = vld [vmem:[%s10445_s1 + $0x198] sm:$0xff]  ;;  %v10983_v25 = vld [vmem:[#allocation105_spill] sm:$0xff]  ;;  %vm3711_vm5 = vcmp.ge.f32.partialorder %v3647_v29, 25.0 }
 0x3ed   :  { %3530 = vrot.lane.b32.xlu0 %v9457_v16, %s6394_s20  ;;  %v2395_v54 = vadd.f32 %v6352_v32, %v2331_v43  ;;  %v4417_v24 = vsel %vm3713_vm3, %v10983_v25, -1.0  ;;  %v4414_v42 = vsel %vm3710_vm4, %v10984_v36, -1.0  ;;  %v6353_v43 = vld [vmem:[%s10445_s1 + $0x188] sm:$0xff] }
 0x3ee   :  { %v9474_v6 = vpop.permute.xlu1 %4584  ;;  %10978 = vst [vmem:[#allocation35_spill] sm:$0xff] %v9499_v0  ;;  %v2398_v50 = vadd.f32 %v6351_v63, %v2334_v13  ;;  %v2973_v13 = vsub.f32 %v2397_v7, %v9096_v47  ;;  %v3232_v63 = vmax.f32 %v3168_v14, 0.0  ;;  %v10985_v32 = vld [vmem:[#allocation110_spill] sm:$0xff] }
 0x3ef   :  { %10969 = vst [vmem:[#allocation90_spill] sm:$0xff] %v9474_v6  ;;  %v9482_v58 = vpop.permute.xlu0 %3498  ;;  %v4416_v6 = vsel %vm3712_vm2, %v10982_v5, -1.0  ;;  %v3166_v46 = vadd.f32 %v9110_v30, %v2395_v54  ;;  %v4415_v29 = vsel %vm3711_vm5, %v10985_v32, -1.0  ;;  %v2971_v44 = vsub.f32 %v2395_v54, %v9110_v30  ;;  %v10996_v54 = vld [vmem:[#allocation136_spill] sm:$0xff] }
 0x3f0   :  { %3532 = vrot.lane.b32.xlu1 %v9471_v18, %s6394_s20  ;;  %v3169_v22 = vadd.f32 %v9105_v39, %v2398_v50  ;;  %v2974_v47 = vsub.f32 %v2398_v50, %v9105_v39  ;;  %v9539_v12 = vmax.f32 %v2973_v13, 0.0  ;;  %v3296_v36 = vmin.f32 %v3232_v63, 256.0  ;;  %v10988_v13 = vld [vmem:[#allocation132_spill] sm:$0xff]  ;;  %v10989_v63 = vld [vmem:[#allocation65_spill] sm:$0xff] }
 0x3f1   :  { %3526 = vrot.lane.b32.xlu0 %v9478_v26, %s6394_s20  ;;  %v3230_v60 = vmax.f32 %v3166_v46, 0.0  ;;  %v10990_v30 = vmin.f32 %v10989_v63, 256.0  ;;  %v11002_v26 = vld [vmem:[#allocation156_spill] sm:$0xff] }
 0x3f2   :  { %v9501_v11 = vpop.permute.xlu1 %3500  ;;  %v3233_v7 = vmax.f32 %v3169_v22, 0.0  ;;  %10986 = vst [vmem:[#allocation40_spill] sm:$0xff] %v9539_v12  ;;  %v9546_v39 = vmax.f32 %v2974_v47, 0.0 }
 0x3f3   :  { %v9506_v23 = vpop.permute.xlu0 %3494  ;;  %v4977_v46 = vsel %vm4974_vm6, %v10990_v30, %v10988_v13  ;;  %v3294_v32 = vmin.f32 %v3230_v60, 256.0  ;;  %v11001_v13 = vld [vmem:[#allocation49_spill] sm:$0xff] }
 0x3f4   :  { %3528 = vrot.lane.b32.xlu1 %v9499_v0, %s6394_s20  ;;  %10987 = vst [vmem:[#allocation122_spill] sm:$0xff] %v9546_v39  ;;  %v10998_v0 = vmin.f32 %v10997_v20, 256.0 }
 0x3f5   :  { %4818 = vrot.lane.b32.xlu0 %v4416_v6, %s6395_s22  ;;  %v2396_v6 = vadd.f32 %v6353_v43, %v2332_v17  ;;  %v9556_v43 = vmax.f32 %v2971_v44, 0.0 }
 0x3f6   :  { %v9522_v5 = vpop.permute.xlu1 %3496 }
 0x3f7   :  { %v9526_v51 = vpop.permute.xlu0 %2855  ;;  %v3167_v14 = vadd.f32 %v9117_v19, %v2396_v6  ;;  %v2972_v50 = vsub.f32 %v2396_v6, %v9117_v19  ;;  %10991 = vst [vmem:[#allocation31_spill] sm:$0xff] %v9556_v43  ;;  %v10992_v6 = vld [vmem:[#allocation135_spill] sm:$0xff] }
 0x3f8   :  { %4820 = vrot.lane.b32.xlu1 %v4417_v24, %s6395_s22 }
 0x3f9   :  { %4814 = vrot.lane.b32.xlu0 %v4414_v42, %s6395_s22  ;;  %v3297_v42 = vmin.f32 %v3233_v7, 256.0  ;;  %v3231_v24 = vmax.f32 %v3167_v14, 0.0  ;;  %v10993_v7 = vld [vmem:[#allocation70_spill] sm:$0xff]  ;;  %v9567_v30 = vmax.f32 %v2972_v50, 0.0 }
 0x3fa   :  { %v9537_v25 = vpop.permute.xlu1 %2857  ;;  %v10994_v14 = vmin.f32 %v10993_v7, 256.0  ;;  %v10598_v7 = vmin.f32 %v9556_v43, 256.0 }
 0x3fb   :  { %v9542_v17 = vpop.permute.xlu0 %2851  ;;  %10995 = vst [vmem:[#allocation125_spill] sm:$0xff] %v9567_v30  ;;  %v3295_v44 = vmin.f32 %v3231_v24, 256.0 }
 0x3fc   :  { %4816 = vrot.lane.b32.xlu1 %v4415_v29, %s6395_s22  ;;  %v4978_v63 = vsel %vm4974_vm6, %v10994_v14, %v10992_v6 }
 0x3fd   :  { %4626 = vrot.lane.b32.xlu0 %v3296_v36, %s6393_s0 }
 0x3fe   :  { %v9549_v22 = vpop.permute.xlu1 %2853 }
 0x3ff   :  { %v4787_v29 = vpop.permute.xlu0 %4786 }
 0x400   :  { %4628 = vrot.lane.b32.xlu1 %v3297_v42, %s6393_s0  ;;  %v5041_v47 = vsel %vm784_vm0, %v4977_v46, %v4787_v29  ;;  %v4975_v46 = vsel %vm4974_vm6, %v10998_v0, %v10996_v54  ;;  %v10999_v29 = vmin.f32 %v9539_v12, 256.0  ;;  %v3652_v0 = vmul.f32 %v9202_v21, %v11002_v26  ;;  %v11003_v54 = vld [vmem:[#allocation5_spill] sm:$0xff] }
 0x401   :  { %v5106_v19 = vsel %vm5103_vm7, %v5041_v47, 0.0  ;;  %4622 = vrot.lane.b32.xlu0 %v3294_v32, %s6393_s0  ;;  %v9600_v21 = vsub.f32 %v3294_v32, %v10598_v7  ;;  %v11007_v26 = vld [vmem:[#allocation157_spill] sm:$0xff]  ;;  %v11013_v32 = vld [vmem:[#allocation159_spill] sm:$0xff] }
 0x402   :  { %5170 = vst [vmem:[#allocation2 + $0x10] sm:$0xff] %v5106_v19  ;;  %v4789_v60 = vpop.permute.xlu1 %4788  ;;  %v9575_v47 = vsub.f32 %v3296_v36, %v10999_v29  ;;  %v11000_v19 = vld [vmem:[#allocation34_spill] sm:$0xff]  ;;  %vm3716_vm8 = vcmp.ge.f32.partialorder %v3652_v0, 25.0  ;;  %v3650_v7 = vmul.f32 %v9218_v40, %v11013_v32  ;;  %v11016_v0 = vld [vmem:[#allocation43_spill] sm:$0xff] }
 0x403   :  { %v5042_v6 = vsel %vm784_vm0, %v4978_v63, %v4789_v60  ;;  %v4783_v14 = vpop.permute.xlu0 %4782  ;;  %v2337_v20 = vmul.f32 %v11001_v13, %v11000_v19  ;;  %v11004_v63 = vld [vmem:[#allocation72_spill] sm:$0xff] }
 0x404   :  { %v5107_v50 = vsel %vm5103_vm7, %v5042_v6, 0.0  ;;  %4624 = vrot.lane.b32.xlu1 %v3295_v44, %s6393_s0  ;;  %v5039_v24 = vsel %vm784_vm0, %v4975_v46, %v4783_v14  ;;  %v11005_v60 = vmin.f32 %v11004_v63, 256.0  ;;  %v11006_v6 = vmin.f32 %v9546_v39, 256.0  ;;  %v11010_v63 = vld [vmem:[#allocation53_spill] sm:$0xff] }
 0x405   :  { %5171 = vst [vmem:[#allocation2 + $0x18] sm:$0xff] %v5107_v50  ;;  %v5104_v36 = vsel %vm5103_vm7, %v5039_v24, 0.0  ;;  %3538 = vrot.lane.b32.xlu0 %v9575_v47, %s6394_s20  ;;  %v3653_v50 = vmul.f32 %v9214_v34, %v11007_v26  ;;  %v6354_v34 = vld [vmem:[%s10445_s1 + $0x1b0] sm:$0xff]  ;;  %vm3714_vm10 = vcmp.ge.f32.partialorder %v3650_v7, 25.0 }
 0x406   :  { %v4976_v29 = vsel %vm4974_vm6, %v11005_v60, %v11003_v54  ;;  %v9595_v46 = vsub.f32 %v3297_v42, %v11006_v6  ;;  %5168 = vst [vmem:[#allocation2] sm:$0xff] %v5104_v36  ;;  %v4785_v14 = vpop.permute.xlu1 %4784  ;;  %v11009_v54 = vld [vmem:[#allocation38_spill] sm:$0xff]  ;;  %v11011_v36 = vld [vmem:[#allocation9_spill] sm:$0xff] }
 0x407   :  { %v5040_v24 = vsel %vm784_vm0, %v4976_v29, %v4785_v14  ;;  %v9605_v19 = vpop.permute.xlu0 %4330  ;;  %v2338_v60 = vmul.f32 %v11010_v63, %v11009_v54  ;;  %v11012_v6 = vld [vmem:[#allocation45_spill] sm:$0xff]  ;;  %v2401_v29 = vadd.f32 %v6354_v34, %v2337_v20  ;;  %v11014_v14 = vmin.f32 %v9567_v30, 256.0  ;;  %v11018_v20 = vld [vmem:[#allocation50_spill] sm:$0xff]  ;;  %v11022_v30 = vld [vmem:[#allocation116_spill] sm:$0xff] }
 0x408   :  { %11008 = vst [vmem:[#allocation36_spill] sm:$0xff] %v9605_v19  ;;  %v5105_v42 = vsel %vm5103_vm7, %v5040_v24, 0.0  ;;  %3540 = vrot.lane.b32.xlu1 %v9595_v46, %s6394_s20  ;;  %v2335_v13 = vmul.f32 %v11012_v6, %v11011_v36  ;;  %vm3717_vm9 = vcmp.ge.f32.partialorder %v3653_v50, 25.0  ;;  %v3651_v54 = vmul.f32 %v9225_v2, %v11016_v0  ;;  %v11017_v36 = vld [vmem:[#allocation150_spill] sm:$0xff]  ;;  %v6356_v2 = vld [vmem:[%s10445_s1 + $0x1a0] sm:$0xff] }
 0x409   :  { %5169 = vst [vmem:[#allocation2 + $0x8] sm:$0xff] %v5105_v42  ;;  %3534 = vrot.lane.b32.xlu0 %v9600_v21, %s6394_s20  ;;  %v9623_v26 = vsub.f32 %v3295_v44, %v11014_v14  ;;  %v3172_v40 = vadd.f32 %v9230_v1, %v2401_v29  ;;  %v2336_v42 = vmul.f32 %v11018_v20, %v11017_v36  ;;  %v11019_v6 = vld [vmem:[#allocation114_spill] sm:$0xff]  ;;  %v6355_v44 = vld [vmem:[%s10445_s1 + $0x1b8] sm:$0xff]  ;;  %v4418_v43 = vsel %vm3714_vm10, %v11022_v30, -1.0 }
 0x40a   :  { %v9625_v24 = vpop.permute.xlu1 %4332  ;;  %v4420_v32 = vsel %vm3716_vm8, %v11019_v6, -1.0  ;;  %v2402_v34 = vadd.f32 %v6355_v44, %v2338_v60  ;;  %v2399_v50 = vadd.f32 %v6356_v2, %v2335_v13  ;;  %v11020_v14 = vld [vmem:[#allocation118_spill] sm:$0xff]  ;;  %vm3715_vm11 = vcmp.ge.f32.partialorder %v3651_v54, 25.0  ;;  %v11023_v2 = vld [vmem:[#allocation119_spill] sm:$0xff] }
 0x40b   :  { %11015 = vst [vmem:[#allocation94_spill] sm:$0xff] %v9625_v24  ;;  %v9630_v63 = vpop.permute.xlu0 %4594  ;;  %v4421_v0 = vsel %vm3717_vm9, %v11020_v14, -1.0  ;;  %v2977_v60 = vsub.f32 %v2401_v29, %v9230_v1  ;;  %v3236_v6 = vmax.f32 %v3172_v40, 0.0  ;;  %v6357_v13 = vld [vmem:[%s10445_s1 + $0x1a8] sm:$0xff]  ;;  %v4419_v54 = vsel %vm3715_vm11, %v11023_v2, -1.0 }
 0x40c   :  { %3536 = vrot.lane.b32.xlu1 %v9623_v26, %s6394_s20  ;;  %v3173_v36 = vadd.f32 %v9237_v3, %v2402_v34  ;;  %v3170_v44 = vadd.f32 %v9244_v41, %v2399_v50  ;;  %v2978_v1 = vsub.f32 %v2402_v34, %v9237_v3  ;;  %v2975_v12 = vsub.f32 %v2399_v50, %v9244_v41 }
 0x40d   :  { %4826 = vrot.lane.b32.xlu0 %v4420_v32, %s6395_s22  ;;  %v2400_v32 = vadd.f32 %v6357_v13, %v2336_v42  ;;  %v9663_v39 = vmax.f32 %v2977_v60, 0.0  ;;  %v3300_v30 = vmin.f32 %v3236_v6, 256.0 }
 0x40e   :  { %v9646_v20 = vpop.permute.xlu1 %4596  ;;  %v3237_v29 = vmax.f32 %v3173_v36, 0.0  ;;  %v3234_v24 = vmax.f32 %v3170_v44, 0.0  ;;  %v9676_v6 = vmax.f32 %v2975_v12, 0.0  ;;  %v11034_v12 = vld [vmem:[#allocation146_spill] sm:$0xff] }
 0x40f   :  { %11021 = vst [vmem:[#allocation98_spill] sm:$0xff] %v9646_v20  ;;  %v9650_v7 = vpop.permute.xlu0 %4326  ;;  %v3171_v40 = vadd.f32 %v9258_v38, %v2400_v32  ;;  %11025 = vst [vmem:[#allocation99_spill] sm:$0xff] %v9663_v39  ;;  %v2976_v34 = vsub.f32 %v2400_v32, %v9258_v38  ;;  %v10603_v60 = vmin.f32 %v9663_v39, 256.0  ;;  %v11035_v39 = vld [vmem:[#allocation84_spill] sm:$0xff] }
 0x410   :  { %4828 = vrot.lane.b32.xlu1 %v4421_v0, %s6395_s22  ;;  %v3301_v3 = vmin.f32 %v3237_v29, 256.0  ;;  %11029 = vst [vmem:[#allocation28_spill] sm:$0xff] %v9676_v6  ;;  %v3298_v41 = vmin.f32 %v3234_v24, 256.0 }
 0x411   :  { %4822 = vrot.lane.b32.xlu0 %v4418_v43, %s6395_s22  ;;  %v9670_v43 = vmax.f32 %v2978_v1, 0.0  ;;  %v3235_v0 = vmax.f32 %v3171_v40, 0.0  ;;  %v9683_v13 = vmax.f32 %v2976_v34, 0.0  ;;  %v9689_v32 = vsub.f32 %v3300_v30, %v10603_v60  ;;  %v11032_v1 = vld [vmem:[#allocation54_spill] sm:$0xff]  ;;  %v11033_v40 = vld [vmem:[#allocation167_spill] sm:$0xff] }
 0x412   :  { %v9661_v14 = vpop.permute.xlu1 %4328  ;;  %v3656_v34 = vmul.f32 %v9338_v9, %v11033_v40  ;;  %v3657_v9 = vmul.f32 %v9345_v49, %v8855_v59  ;;  %v6358_v59 = vld [vmem:[%s10445_s1 + $0x1d0] sm:$0xff] }
 0x413   :  { %11024 = vst [vmem:[#allocation96_spill] sm:$0xff] %v9661_v14  ;;  %v9666_v42 = vpop.permute.xlu0 %4590  ;;  %11027 = vst [vmem:[#allocation144_spill] sm:$0xff] %v9670_v43  ;;  %v10606_v44 = vmin.f32 %v9670_v43, 256.0  ;;  %v3299_v2 = vmin.f32 %v3235_v0, 256.0  ;;  %v11038_v43 = vld [vmem:[#allocation47_spill] sm:$0xff] }
 0x414   :  { %11026 = vst [vmem:[#allocation41_spill] sm:$0xff] %v9666_v42  ;;  %4824 = vrot.lane.b32.xlu1 %v4419_v54, %s6395_s22  ;;  %11030 = vst [vmem:[#allocation48_spill] sm:$0xff] %v9683_v13  ;;  %v11031_v54 = vld [vmem:[#allocation162_spill] sm:$0xff]  ;;  %vm3720_vm12 = vcmp.ge.f32.partialorder %v3656_v34, 25.0  ;;  %vm3721_vm13 = vcmp.ge.f32.partialorder %v3657_v9, 25.0 }
 0x415   :  { %4634 = vrot.lane.b32.xlu0 %v3300_v30, %s6393_s0  ;;  %v2341_v29 = vmul.f32 %v11032_v1, %v11031_v54  ;;  %v9703_v0 = vsub.f32 %v3301_v3, %v10606_v44  ;;  %v11037_v54 = vmin.f32 %v9676_v6, 256.0  ;;  %v11040_v42 = vld [vmem:[#allocation10_spill] sm:$0xff]  ;;  %v11041_v30 = vld [vmem:[#allocation57_spill] sm:$0xff] }
 0x416   :  { %v9673_v36 = vpop.permute.xlu1 %4592  ;;  %v2342_v14 = vmul.f32 %v11041_v30, %v11040_v42  ;;  %v11043_v42 = vld [vmem:[#allocation13_spill] sm:$0xff]  ;;  %v6361_v9 = vld [vmem:[%s10445_s1 + $0x1c8] sm:$0xff] }
 0x417   :  { %11028 = vst [vmem:[#allocation145_spill] sm:$0xff] %v9673_v36  ;;  %v9678_v50 = vpop.permute.xlu0 %3506  ;;  %v11036_v36 = vmin.f32 %v11035_v39, 256.0  ;;  %v9714_v1 = vsub.f32 %v3298_v41, %v11037_v54  ;;  %v2405_v49 = vadd.f32 %v6358_v59, %v2341_v29  ;;  %v11045_v54 = vld [vmem:[#allocation149_spill] sm:$0xff]  ;;  %v11051_v29 = vmin.f32 %v9683_v13, 256.0  ;;  %v11079_v13 = vld [vmem:[#allocation180_spill] sm:$0xff] }
 0x418   :  { %4636 = vrot.lane.b32.xlu1 %v3301_v3, %s6393_s0  ;;  %v11039_v3 = vld [vmem:[#allocation51_spill] sm:$0xff]  ;;  %v11048_v6 = vld [vmem:[#allocation37_spill] sm:$0xff] }
 0x419   :  { %4630 = vrot.lane.b32.xlu0 %v3298_v41, %s6393_s0  ;;  %v4981_v19 = vsel %vm4974_vm6, %v11036_v36, %v11034_v12  ;;  %v2339_v44 = vmul.f32 %v11039_v3, %v11038_v43  ;;  %v11042_v36 = vld [vmem:[#allocation168_spill] sm:$0xff]  ;;  %v11044_v43 = vld [vmem:[#allocation55_spill] sm:$0xff]  ;;  %v11046_v3 = vld [vmem:[#allocation89_spill] sm:$0xff]  ;;  %v9745_v59 = vsub.f32 %v3299_v2, %v11051_v29 }
 0x41a   :  { %v9685_v38 = vpop.permute.xlu1 %3508  ;;  %v3654_v41 = vmul.f32 %v9352_v35, %v11042_v36  ;;  %v2340_v30 = vmul.f32 %v11044_v43, %v11043_v42  ;;  %v11049_v35 = vld [vmem:[#allocation88_spill] sm:$0xff]  ;;  %v3655_v42 = vmul.f32 %v9366_v53, %v8874_v52  ;;  %v3176_v43 = vadd.f32 %v9374_v57, %v2405_v49  ;;  %v6360_v53 = vld [vmem:[%s10445_s1 + $0x1c0] sm:$0xff] }
 0x41b   :  { %v9692_v24 = vpop.permute.xlu0 %3502  ;;  %v11050_v36 = vmin.f32 %v11049_v35, 256.0 }
 0x41c   :  { %4632 = vrot.lane.b32.xlu1 %v3299_v2, %s6393_s0  ;;  %vm3718_vm14 = vcmp.ge.f32.partialorder %v3654_v41, 25.0  ;;  %vm3719_vm15 = vcmp.ge.f32.partialorder %v3655_v42, 25.0  ;;  %v11058_v42 = vld [vmem:[#allocation127_spill] sm:$0xff] }
 0x41d   :  { %3546 = vrot.lane.b32.xlu0 %v9689_v32, %s6394_s20  ;;  %v4979_v20 = vsel %vm4974_vm6, %v11050_v36, %v11048_v6  ;;  %v6359_v6 = vld [vmem:[%s10445_s1 + $0x1d8] sm:$0xff]  ;;  %v11053_v36 = vld [vmem:[#allocation7_spill] sm:$0xff] }
 0x41e   :  { %v9706_v60 = vpop.permute.xlu1 %3504  ;;  %v2406_v2 = vadd.f32 %v6359_v6, %v2342_v14  ;;  %v11054_v14 = vld [vmem:[#allocation92_spill] sm:$0xff] }
 0x41f   :  { %v4795_v40 = vpop.permute.xlu0 %4794  ;;  %v11055_v29 = vmin.f32 %v11054_v14, 256.0 }
 0x420   :  { %3548 = vrot.lane.b32.xlu1 %v9703_v0, %s6394_s20  ;;  %v5045_v39 = vsel %vm784_vm0, %v4981_v19, %v4795_v40  ;;  %v11047_v19 = vmin.f32 %v11046_v3, 256.0 }
 0x421   :  { %v5110_v12 = vsel %vm5103_vm7, %v5045_v39, 0.0  ;;  %3542 = vrot.lane.b32.xlu0 %v9714_v1, %s6394_s20 }
 0x422   :  { %v4982_v40 = vsel %vm4974_vm6, %v11047_v19, %v11045_v54  ;;  %5174 = vst [vmem:[#allocation2 + $0x30] sm:$0xff] %v5110_v12  ;;  %v4797_v39 = vpop.permute.xlu1 %4796  ;;  %v11052_v19 = vld [vmem:[#allocation121_spill] sm:$0xff] }
 0x423   :  { %v5046_v3 = vsel %vm784_vm0, %v4982_v40, %v4797_v39  ;;  %v4791_v54 = vpop.permute.xlu0 %4790  ;;  %v4424_v35 = vsel %vm3720_vm12, %v11052_v19, -1.0  ;;  %v2403_v40 = vadd.f32 %v6360_v53, %v2339_v44  ;;  %v4980_v39 = vsel %vm4974_vm6, %v11055_v29, %v11053_v36  ;;  %v11057_v53 = vld [vmem:[#allocation123_spill] sm:$0xff] }
 0x424   :  { %v5111_v12 = vsel %vm5103_vm7, %v5046_v3, 0.0  ;;  %3544 = vrot.lane.b32.xlu1 %v9745_v59, %s6394_s20  ;;  %v5043_v52 = vsel %vm784_vm0, %v4979_v20, %v4791_v54  ;;  %v11056_v3 = vld [vmem:[#allocation124_spill] sm:$0xff]  ;;  %v2981_v20 = vsub.f32 %v2405_v49, %v9374_v57  ;;  %v3177_v54 = vadd.f32 %v9393_v37, %v2406_v2 }
 0x425   :  { %5175 = vst [vmem:[#allocation2 + $0x38] sm:$0xff] %v5111_v12  ;;  %v5108_v34 = vsel %vm5103_vm7, %v5043_v52, 0.0  ;;  %4834 = vrot.lane.b32.xlu0 %v4424_v35, %s6395_s22  ;;  %v4425_v19 = vsel %vm3721_vm13, %v11056_v3, -1.0  ;;  %v3240_v44 = vmax.f32 %v3176_v43, 0.0  ;;  %v3174_v12 = vadd.f32 %v9398_v28, %v2403_v40 }
 0x426   :  { %5172 = vst [vmem:[#allocation2 + $0x20] sm:$0xff] %v5108_v34  ;;  %v4793_v6 = vpop.permute.xlu1 %4792  ;;  %v4422_v36 = vsel %vm3718_vm14, %v11057_v53, -1.0  ;;  %v2404_v57 = vadd.f32 %v6361_v9, %v2340_v30  ;;  %v4423_v43 = vsel %vm3719_vm15, %v11058_v42, -1.0  ;;  %v2982_v34 = vsub.f32 %v2406_v2, %v9393_v37 }
 0x427   :  { %v5044_v35 = vsel %vm784_vm0, %v4980_v39, %v4793_v6  ;;  %v9775_v52 = vpop.permute.xlu0 %4602  ;;  %v3241_v14 = vmax.f32 %v3177_v54, 0.0  ;;  %v9790_v39 = vmax.f32 %v2981_v20, 0.0  ;;  %v3304_v3 = vmin.f32 %v3240_v44, 256.0 }
 0x428   :  { %v5109_v49 = vsel %vm5103_vm7, %v5044_v35, 0.0  ;;  %4836 = vrot.lane.b32.xlu1 %v4425_v19, %s6395_s22  ;;  %v3175_v41 = vadd.f32 %v9414_v33, %v2404_v57  ;;  %v2979_v30 = vsub.f32 %v2403_v40, %v9398_v28  ;;  %v3238_v6 = vmax.f32 %v3174_v12, 0.0 }
 0x429   :  { %5173 = vst [vmem:[#allocation2 + $0x28] sm:$0xff] %v5109_v49  ;;  %4830 = vrot.lane.b32.xlu0 %v4422_v36, %s6395_s22  ;;  %11059 = vst [vmem:[#allocation6_spill] sm:$0xff] %v9790_v39  ;;  %v9797_v19 = vmax.f32 %v2982_v34, 0.0  ;;  %v3305_v37 = vmin.f32 %v3241_v14, 256.0  ;;  %v2980_v2 = vsub.f32 %v2404_v57, %v9414_v33  ;;  %v10608_v20 = vmin.f32 %v9790_v39, 256.0 }
 0x42a   :  { %v9788_v29 = vpop.permute.xlu1 %4604  ;;  %v3239_v54 = vmax.f32 %v3175_v41, 0.0  ;;  %v9803_v44 = vmax.f32 %v2979_v30, 0.0  ;;  %v3302_v28 = vmin.f32 %v3238_v6, 256.0  ;;  %v3660_v14 = vmul.f32 %v9482_v58, %v8987_v8  ;;  %v11063_v6 = vld [vmem:[#allocation158_spill] sm:$0xff] }
 0x42b   :  { %v9793_v35 = vpop.permute.xlu0 %4598  ;;  %11060 = vst [vmem:[#allocation39_spill] sm:$0xff] %v9797_v19  ;;  %v10609_v12 = vmin.f32 %v9797_v19, 256.0  ;;  %v9810_v36 = vmax.f32 %v2980_v2, 0.0  ;;  %v9816_v57 = vsub.f32 %v3304_v3, %v10608_v20  ;;  %v11064_v2 = vld [vmem:[#allocation103_spill] sm:$0xff]  ;;  %v3661_v8 = vmul.f32 %v9501_v11, %v8998_v55 }
 0x42c   :  { %4832 = vrot.lane.b32.xlu1 %v4423_v43, %s6395_s22  ;;  %11061 = vst [vmem:[#allocation147_spill] sm:$0xff] %v9803_v44  ;;  %v3303_v9 = vmin.f32 %v3239_v54, 256.0  ;;  %v10611_v49 = vmin.f32 %v9803_v44, 256.0  ;;  %v11062_v43 = vld [vmem:[#allocation58_spill] sm:$0xff]  ;;  %v11065_v54 = vmin.f32 %v11064_v2, 256.0  ;;  %vm3724_vm1 = vcmp.ge.f32.partialorder %v3660_v14, 25.0 }
 0x42d   :  { %4642 = vrot.lane.b32.xlu0 %v3304_v3, %s6393_s0  ;;  %v2345_v34 = vmul.f32 %v11062_v43, %v8911_v61  ;;  %v9830_v41 = vsub.f32 %v3305_v37, %v10609_v12  ;;  %v11067_v12 = vld [vmem:[#allocation17_spill] sm:$0xff]  ;;  %v11068_v3 = vld [vmem:[#allocation60_spill] sm:$0xff]  ;;  %v6362_v55 = vld [vmem:[%s10445_s1 + $0x1f0] sm:$0xff]  ;;  %vm3725_vm2 = vcmp.ge.f32.partialorder %v3661_v8, 25.0 }
 0x42e   :  { %v9800_v53 = vpop.permute.xlu1 %4600  ;;  %v4985_v20 = vsel %vm4974_vm6, %v11065_v54, %v11063_v6  ;;  %v9841_v61 = vsub.f32 %v3302_v28, %v10611_v49  ;;  %v2346_v19 = vmul.f32 %v11068_v3, %v11067_v12  ;;  %v11069_v6 = vld [vmem:[#allocation178_spill] sm:$0xff]  ;;  %v11071_v12 = vld [vmem:[#allocation59_spill] sm:$0xff]  ;;  %v11073_v49 = vld [vmem:[#allocation109_spill] sm:$0xff] }
 0x42f   :  { %v9805_v40 = vpop.permute.xlu0 %3514  ;;  %v2409_v11 = vadd.f32 %v6362_v55, %v2345_v34  ;;  %v11075_v44 = vld [vmem:[#allocation46_spill] sm:$0xff]  ;;  %v11078_v34 = vmin.f32 %v9810_v36, 256.0 }
 0x430   :  { %4644 = vrot.lane.b32.xlu1 %v3305_v37, %s6393_s0  ;;  %v11066_v37 = vld [vmem:[#allocation56_spill] sm:$0xff]  ;;  %v6365_v8 = vld [vmem:[%s10445_s1 + $0x1e8] sm:$0xff] }
 0x431   :  { %4638 = vrot.lane.b32.xlu0 %v3302_v28, %s6393_s0  ;;  %v2343_v43 = vmul.f32 %v11066_v37, %v8926_v62  ;;  %v3658_v28 = vmul.f32 %v9506_v23, %v11069_v6  ;;  %v11070_v62 = vld [vmem:[#allocation173_spill] sm:$0xff]  ;;  %v11076_v23 = vld [vmem:[#allocation107_spill] sm:$0xff]  ;;  %v9872_v55 = vsub.f32 %v3303_v9, %v11078_v34 }
 0x432   :  { %v9812_v33 = vpop.permute.xlu1 %3516  ;;  %v2344_v3 = vmul.f32 %v11071_v12, %v11070_v62  ;;  %v11072_v37 = vld [vmem:[#allocation161_spill] sm:$0xff]  ;;  %v11077_v6 = vmin.f32 %v11076_v23, 256.0  ;;  %v3659_v62 = vmul.f32 %v9522_v5, %v11079_v13  ;;  %v3180_v12 = vadd.f32 %v9526_v51, %v2409_v11 }
 0x433   :  { %v9819_v42 = vpop.permute.xlu0 %3510  ;;  %vm3722_vm3 = vcmp.ge.f32.partialorder %v3658_v28, 25.0  ;;  %v6364_v13 = vld [vmem:[%s10445_s1 + $0x1e0] sm:$0xff] }
 0x434   :  { %4640 = vrot.lane.b32.xlu1 %v3303_v9, %s6393_s0  ;;  %v4983_v39 = vsel %vm4974_vm6, %v11077_v6, %v11075_v44  ;;  %v6363_v44 = vld [vmem:[%s10445_s1 + $0x1f8] sm:$0xff]  ;;  %vm3723_vm4 = vcmp.ge.f32.partialorder %v3659_v62, 25.0  ;;  %v11086_v62 = vld [vmem:[#allocation137_spill] sm:$0xff]  ;;  %s6396_s1 = smov [#allocation2]  }
 0x435   :  { %3554 = vrot.lane.b32.xlu0 %v9816_v57, %s6394_s20  ;;  %v2410_v9 = vadd.f32 %v6363_v44, %v2346_v19  ;;  %v11081_v6 = vld [vmem:[#allocation44_spill] sm:$0xff] }
 0x436   :  { %v9833_v30 = vpop.permute.xlu1 %3512  ;;  %v11082_v19 = vld [vmem:[#allocation112_spill] sm:$0xff] }
 0x437   :  { %v4803_v58 = vpop.permute.xlu0 %4802  ;;  %v11083_v34 = vmin.f32 %v11082_v19, 256.0 }
 0x438   :  { %3556 = vrot.lane.b32.xlu1 %v9830_v41, %s6394_s20  ;;  %v5049_v2 = vsel %vm784_vm0, %v4985_v20, %v4803_v58  ;;  %v11074_v20 = vmin.f32 %v11073_v49, 256.0 }
 0x439   :  { %v5114_v54 = vsel %vm5103_vm7, %v5049_v2, 0.0  ;;  %3550 = vrot.lane.b32.xlu0 %v9841_v61, %s6394_s20 }
 0x43a   :  { %v4986_v58 = vsel %vm4974_vm6, %v11074_v20, %v11072_v37  ;;  %5178 = vst [vmem:[#allocation2 + $0x50] sm:$0xff] %v5114_v54  ;;  %v4805_v2 = vpop.permute.xlu1 %4804  ;;  %v11080_v20 = vld [vmem:[#allocation131_spill] sm:$0xff] }
 0x43b   :  { %v5050_v49 = vsel %vm784_vm0, %v4986_v58, %v4805_v2  ;;  %v4799_v37 = vpop.permute.xlu0 %4798  ;;  %v4428_v23 = vsel %vm3724_vm1, %v11080_v20, -1.0  ;;  %v2407_v58 = vadd.f32 %v6364_v13, %v2343_v43  ;;  %v4984_v2 = vsel %vm4974_vm6, %v11083_v34, %v11081_v6  ;;  %v11085_v13 = vld [vmem:[#allocation134_spill] sm:$0xff] }
 0x43c   :  { %v5115_v54 = vsel %vm5103_vm7, %v5050_v49, 0.0  ;;  %3552 = vrot.lane.b32.xlu1 %v9872_v55, %s6394_s20  ;;  %v5047_v5 = vsel %vm784_vm0, %v4983_v39, %v4799_v37  ;;  %v11084_v49 = vld [vmem:[#allocation133_spill] sm:$0xff]  ;;  %v2985_v39 = vsub.f32 %v2409_v11, %v9526_v51  ;;  %v3181_v37 = vadd.f32 %v9537_v25, %v2410_v9 }
 0x43d   :  { %5179 = vst [vmem:[#allocation2 + $0x58] sm:$0xff] %v5115_v54  ;;  %v5112_v14 = vsel %vm5103_vm7, %v5047_v5, 0.0  ;;  %4842 = vrot.lane.b32.xlu0 %v4428_v23, %s6395_s22  ;;  %v4429_v20 = vsel %vm3725_vm2, %v11084_v49, -1.0  ;;  %v3244_v43 = vmax.f32 %v3180_v12, 0.0  ;;  %v3178_v54 = vadd.f32 %v9542_v17, %v2407_v58 }
 0x43e   :  { %5176 = vst [vmem:[#allocation2 + $0x40] sm:$0xff] %v5112_v14  ;;  %v4801_v44 = vpop.permute.xlu1 %4800  ;;  %v4426_v6 = vsel %vm3722_vm3, %v11085_v13, -1.0  ;;  %v2408_v51 = vadd.f32 %v6365_v8, %v2344_v3  ;;  %v4427_v12 = vsel %vm3723_vm4, %v11086_v62, -1.0  ;;  %v2986_v14 = vsub.f32 %v2410_v9, %v9537_v25 }
 0x43f   :  { %v5048_v23 = vsel %vm784_vm0, %v4984_v2, %v4801_v44  ;;  %v9902_v5 = vpop.permute.xlu0 %4610  ;;  %v3245_v19 = vmax.f32 %v3181_v37, 0.0  ;;  %v9917_v2 = vmax.f32 %v2985_v39, 0.0  ;;  %v3308_v49 = vmin.f32 %v3244_v43, 256.0 }
 0x440   :  { %v5113_v11 = vsel %vm5103_vm7, %v5048_v23, 0.0  ;;  %4844 = vrot.lane.b32.xlu1 %v4429_v20, %s6395_s22  ;;  %v3179_v28 = vadd.f32 %v9549_v22, %v2408_v51  ;;  %v2983_v3 = vsub.f32 %v2407_v58, %v9542_v17  ;;  %v3242_v44 = vmax.f32 %v3178_v54, 0.0 }
 0x441   :  { %5177 = vst [vmem:[#allocation2 + $0x48] sm:$0xff] %v5113_v11  ;;  %4838 = vrot.lane.b32.xlu0 %v4426_v6, %s6395_s22  ;;  %11087 = vst [vmem:[#allocation33_spill] sm:$0xff] %v9917_v2  ;;  %v9924_v20 = vmax.f32 %v2986_v14, 0.0  ;;  %v3309_v25 = vmin.f32 %v3245_v19, 256.0  ;;  %v2984_v9 = vsub.f32 %v2408_v51, %v9549_v22  ;;  %v10616_v39 = vmin.f32 %v9917_v2, 256.0 }
 0x442   :  { %v9915_v34 = vpop.permute.xlu1 %4612  ;;  %v3243_v37 = vmax.f32 %v3179_v28, 0.0  ;;  %v9930_v43 = vmax.f32 %v2983_v3, 0.0  ;;  %v3306_v17 = vmin.f32 %v3242_v44, 256.0  ;;  %v11090_v3 = vld [vmem:[#allocation126_spill] sm:$0xff] }
 0x443   :  { %v9920_v23 = vpop.permute.xlu0 %4606  ;;  %11088 = vst [vmem:[#allocation138_spill] sm:$0xff] %v9924_v20  ;;  %v10615_v54 = vmin.f32 %v9924_v20, 256.0  ;;  %v9937_v6 = vmax.f32 %v2984_v9, 0.0  ;;  %v9943_v51 = vsub.f32 %v3308_v49, %v10616_v39  ;;  %v11091_v44 = vmin.f32 %v11090_v3, 256.0  ;;  %v11100_v20 = vld [vmem:[#allocation67_spill] sm:$0xff] }
 0x444   :  { %4840 = vrot.lane.b32.xlu1 %v4427_v12, %s6395_s22  ;;  %v3307_v8 = vmin.f32 %v3243_v37, 256.0  ;;  %v10617_v11 = vmin.f32 %v9930_v43, 256.0  ;;  %v3664_v12 = vmul.f32 %v9678_v50, %v9133_v31  ;;  %v3665_v50 = vmul.f32 %v9685_v38, %v9147_v27  ;;  %v11096_v38 = vld [vmem:[#allocation171_spill] sm:$0xff] }
 0x445   :  { %4650 = vrot.lane.b32.xlu0 %v3308_v49, %s6393_s0  ;;  %v9955_v14 = vsub.f32 %v3309_v25, %v10615_v54  ;;  %v3115_v19 = vmin.f32 %v9937_v6, 256.0  ;;  %v11089_v49 = vld [vmem:[#allocation16_spill] sm:$0xff]  ;;  %v3663_v2 = vmul.f32 %v9706_v60, %v11100_v20  ;;  %v11103_v20 = vld [vmem:[#allocation130_spill] sm:$0xff] }
 0x446   :  { %v9927_v13 = vpop.permute.xlu1 %4608  ;;  %v4989_v9 = vsel %vm4974_vm6, %v11091_v44, %v11089_v49  ;;  %v9966_v31 = vsub.f32 %v3306_v17, %v10617_v11  ;;  %vm3728_vm5 = vcmp.ge.f32.partialorder %v3664_v12, 25.0  ;;  %v11094_v49 = vld [vmem:[#allocation128_spill] sm:$0xff]  ;;  %v11097_v12 = vld [vmem:[#allocation129_spill] sm:$0xff]  ;;  %vm3729_vm8 = vcmp.ge.f32.partialorder %v3665_v50, 25.0 }
 0x447   :  { %v9932_v58 = vpop.permute.xlu0 %3522  ;;  %v11095_v44 = vmin.f32 %v11094_v49, 256.0  ;;  %v11098_v11 = vmin.f32 %v11097_v12, 256.0  ;;  %v11102_v60 = vld [vmem:[#allocation172_spill] sm:$0xff]  ;;  %vm3727_vm10 = vcmp.ge.f32.partialorder %v3663_v2, 25.0  ;;  %v11107_v2 = vld [vmem:[#allocation11_spill] sm:$0xff] }
 0x448   :  { %4652 = vrot.lane.b32.xlu1 %v3309_v25, %s6393_s0  ;;  %v11092_v25 = vld [vmem:[#allocation18_spill] sm:$0xff] }
 0x449   :  { %4646 = vrot.lane.b32.xlu0 %v3306_v17, %s6393_s0  ;;  %v3662_v54 = vmul.f32 %v9692_v24, %v11092_v25  ;;  %v11093_v17 = vld [vmem:[#allocation19_spill] sm:$0xff]  ;;  %v4987_v24 = vsel %vm4974_vm6, %v11098_v11, %v11096_v38  ;;  %v9988_v25 = vsub.f32 %v3307_v8, %v3115_v19 }
 0x44a   :  { %v9939_v22 = vpop.permute.xlu1 %3524  ;;  %v4990_v27 = vsel %vm4974_vm6, %v11095_v44, %v11093_v17  ;;  %v11101_v44 = vld [vmem:[#allocation81_spill] sm:$0xff] }
 0x44b   :  { %v9946_v62 = vpop.permute.xlu0 %3518  ;;  %vm3726_vm9 = vcmp.ge.f32.partialorder %v3662_v54, 25.0  ;;  %v3668_v12 = vmul.f32 %v9805_v40, %v11101_v44  ;;  %v11105_v40 = vld [vmem:[#allocation148_spill] sm:$0xff] }
 0x44c   :  { %4648 = vrot.lane.b32.xlu1 %v3307_v8, %s6393_s0  ;;  %v4433_v38 = vsel %vm3729_vm8, %v11105_v40, -1.0  ;;  %s5237_s0 = sshll.u32 %s6396_s1, 4  ;;  %s5238_s0 = int_to_ptr.vmem [resolvable:$true] %s5237_s0 }
 0x44d   :  { %3562 = vrot.lane.b32.xlu0 %v9943_v51, %s6394_s20  ;;  %vm3732_vm11 = vcmp.ge.f32.partialorder %v3668_v12, 25.0  ;;  %p6371_p1 = scmp.lt.s32.totalorder %s5238_s0, %s5238_s0 }
 0x44e   :  { %v9958_v28 = vpop.permute.xlu1 %3520 }
 0x44f   :  { %v4811_v37 = vpop.permute.xlu0 %4810 }
 0x450   :  { %3564 = vrot.lane.b32.xlu1 %v9955_v14, %s6394_s20  ;;  %v5053_v39 = vsel %vm784_vm0, %v4989_v9, %v4811_v37 }
 0x451   :  { %v5118_v3 = vsel %vm5103_vm7, %v5053_v39, 0.0  ;;  %3558 = vrot.lane.b32.xlu0 %v9966_v31, %s6394_s20  ;;  %v11099_v39 = vld [vmem:[#allocation143_spill] sm:$0xff] }
 0x452   :  { %5182 = vst [vmem:[#allocation2 + $0x70] sm:$0xff] %v5118_v3  ;;  %v4813_v9 = vpop.permute.xlu1 %4812  ;;  %v4432_v37 = vsel %vm3728_vm5, %v11099_v39, -1.0  ;;  %v11104_v3 = vmin.f32 %v11103_v20, 256.0  ;;  %v11110_v20 = vld [vmem:[#allocation160_spill] sm:$0xff] }
 0x453   :  { %v5054_v49 = vsel %vm784_vm0, %v4990_v27, %v4813_v9  ;;  %v4807_v17 = vpop.permute.xlu0 %4806  ;;  %v11106_v9 = vld [vmem:[#allocation8_spill] sm:$0xff] }
 0x454   :  { %v5119_v11 = vsel %vm5103_vm7, %v5054_v49, 0.0  ;;  %3560 = vrot.lane.b32.xlu1 %v9988_v25, %s6394_s20  ;;  %v5051_v8 = vsel %vm784_vm0, %v4987_v24, %v4807_v17  ;;  %v4988_v54 = vsel %vm4974_vm6, %v11104_v3, %v11102_v60  ;;  %v4430_v39 = vsel %vm3726_vm9, %v11106_v9, -1.0  ;;  %s6366_s20 = scalar_lea.vmem %s5238_s0, 8192 }
 0x455   :  { %5183 = vst [vmem:[#allocation2 + $0x78] sm:$0xff] %v5119_v11  ;;  %v5116_v50 = vsel %vm5103_vm7, %v5051_v8, 0.0  ;;  %4850 = vrot.lane.b32.xlu0 %v4432_v37, %s6395_s22  ;;  %v3669_v37 = vmul.f32 %v9812_v33, %v9255_v4  ;;  %v3666_v17 = vmul.f32 %v9819_v42, %v9262_v48  ;;  %v4431_v8 = vsel %vm3727_vm10, %v11107_v2, -1.0  ;;  %v11109_v4 = vld [vmem:[#allocation93_spill] sm:$0xff]  ;;  %p6367_p0 = scmp.ne.s32.totalorder %s5238_s0, %s6366_s20  ;;  %p6372_p2 = scmp.lt.s32.totalorder %s6366_s20, %s6366_s20 }
 0x456   :  { %5180 = vst [vmem:[#allocation2 + $0x60] sm:$0xff] %v5116_v50  ;;  %v4809_v27 = vpop.permute.xlu1 %4808  ;;  %v11108_v50 = vld [vmem:[#allocation155_spill] sm:$0xff]  ;;  %v3667_v48 = vmul.f32 %v9833_v30, %v11109_v4  ;;  %v3672_v33 = vmul.f32 %v9932_v58, %v9349_v15  ;;  %v3670_v30 = vmul.f32 %v9946_v62, %v9370_v45 }
 0x457   :  { %v5052_v49 = vsel %vm784_vm0, %v4988_v54, %v4809_v27  ;;  %v10009_v24 = vpop.permute.xlu0 %4618  ;;  %v4436_v60 = vsel %vm3732_vm11, %v11108_v50, -1.0  ;;  %vm3733_vm12 = vcmp.ge.f32.partialorder %v3669_v37, 25.0  ;;  %vm3730_vm13 = vcmp.ge.f32.partialorder %v3666_v17, 25.0  ;;  %v11111_v54 = vld [vmem:[#allocation12_spill] sm:$0xff]  ;;  %v11112_v58 = vld [vmem:[#allocation15_spill] sm:$0xff]  ;;  %p6373_p3 = por %p6372_p2, %p6371_p1 }
 0x458   :  { %v5117_v44 = vsel %vm5103_vm7, %v5052_v49, 0.0  ;;  %4852 = vrot.lane.b32.xlu1 %v4433_v38, %s6395_s22  ;;  %v4437_v3 = vsel %vm3733_vm12, %v11110_v20, -1.0  ;;  %v4434_v27 = vsel %vm3730_vm13, %v11111_v54, -1.0  ;;  %vm3731_vm14 = vcmp.ge.f32.partialorder %v3667_v48, 25.0  ;;  %v11115_v62 = vld [vmem:[#allocation139_spill] sm:$0xff]  ;;  %v11121_v54 = vld [vmem:[#allocation140_spill] sm:$0xff] }
 0x459   :  { %5181 = vst [vmem:[#allocation2 + $0x68] sm:$0xff] %v5117_v44  ;;  %4846 = vrot.lane.b32.xlu0 %v4430_v39, %s6395_s22  ;;  %vm3736_vm15 = vcmp.ge.f32.partialorder %v3672_v33, 25.0  ;;  %v3673_v38 = vmul.f32 %v9939_v22, %v9363_v56  ;;  %v4435_v9 = vsel %vm3731_vm14, %v11112_v58, -1.0  ;;  %v11113_v39 = vld [vmem:[#allocation169_spill] sm:$0xff]  ;;  %vm3734_vm2 = vcmp.ge.f32.partialorder %v3670_v30, 25.0  ;;  %v11114_v22 = vld [vmem:[#allocation182_spill] sm:$0xff]  ;;  %p6374_p4 = pnand %p6373_p3, %p6367_p0 }
 0x45a   :  { %v10018_v11 = vpop.permute.xlu1 %4620  ;;  %v4440_v49 = vsel %vm3736_vm15, %v11113_v39, -1.0  ;;  %v3671_v17 = vmul.f32 %v9958_v28, %v9391_v10  ;;  %v11116_v44 = vmin.f32 %v11115_v62, 256.0  ;;  %v11119_v28 = vld [vmem:[#allocation120_spill] sm:$0xff]  ;;  %v11123_v30 = vld [vmem:[#allocation61_spill] sm:$0xff] }
 0x45b   :  { %v10022_v12 = vpop.permute.xlu0 %4614  ;;  %vm3737_vm1 = vcmp.ge.f32.partialorder %v3673_v38, 25.0  ;;  %v11124_v58 = vld [vmem:[#allocation141_spill] sm:$0xff] }
 0x45c   :  { %4848 = vrot.lane.b32.xlu1 %v4431_v8, %s6395_s22  ;;  %v4993_v2 = vsel %vm4974_vm6, %v11116_v44, %v11114_v22  ;;  %v11117_v8 = vld [vmem:[#allocation52_spill] sm:$0xff]  ;;  %vm3735_vm3 = vcmp.ge.f32.partialorder %v3671_v17, 25.0  ;;  %v11128_v22 = vld [vmem:[#allocation35_spill] sm:$0xff] }
 0x45d   :  { %4858 = vrot.lane.b32.xlu0 %v4436_v60, %s6395_s22  ;;  %v4441_v50 = vsel %vm3737_vm1, %v11117_v8, -1.0  ;;  %v11118_v60 = vld [vmem:[#allocation170_spill] sm:$0xff] }
 0x45e   :  { %v10030_v42 = vpop.permute.xlu1 %4616  ;;  %v4438_v4 = vsel %vm3734_vm2, %v11118_v60, -1.0  ;;  %v11130_v60 = vld [vmem:[#allocation142_spill] sm:$0xff] }
 0x45f   :  { %v3531_v40 = vpop.permute.xlu0 %3530 }
 0x460   :  { %4860 = vrot.lane.b32.xlu1 %v4437_v3, %s6395_s22  ;;  %v3676_v56 = vmul.f32 %v3531_v40, %v9457_v16  ;;  %v11120_v3 = vld [vmem:[#allocation183_spill] sm:$0xff] }
 0x461   :  { %4854 = vrot.lane.b32.xlu0 %v4434_v27, %s6395_s22  ;;  %v11122_v27 = vmin.f32 %v11121_v54, 256.0 }
 0x462   :  { %v3533_v15 = vpop.permute.xlu1 %3532  ;;  %vm3740_vm4 = vcmp.ge.f32.partialorder %v3676_v56, 25.0 }
 0x463   :  { %v3527_v37 = vpop.permute.xlu0 %3526  ;;  %v3677_v10 = vmul.f32 %v3533_v15, %v9471_v18  ;;  %v4994_v40 = vsel %vm4974_vm6, %v11122_v27, %v11120_v3  ;;  %v11125_v18 = vmin.f32 %v11124_v58, 256.0  ;;  %v11133_v3 = vld [vmem:[#allocation184_spill] sm:$0xff] }
 0x464   :  { %4856 = vrot.lane.b32.xlu1 %v4435_v9, %s6395_s22  ;;  %v3674_v33 = vmul.f32 %v3527_v37, %v11119_v28  ;;  %v11126_v9 = vld [vmem:[#allocation14_spill] sm:$0xff] }
 0x465   :  { %4866 = vrot.lane.b32.xlu0 %v4440_v49, %s6395_s22  ;;  %v4991_v15 = vsel %vm4974_vm6, %v11125_v18, %v11123_v30  ;;  %v4439_v39 = vsel %vm3735_vm3, %v11126_v9, -1.0  ;;  %v11127_v49 = vld [vmem:[#allocation179_spill] sm:$0xff]  ;;  %vm3741_vm5 = vcmp.ge.f32.partialorder %v3677_v10, 25.0 }
 0x466   :  { %v3529_v45 = vpop.permute.xlu1 %3528  ;;  %v4444_v37 = vsel %vm3740_vm4, %v11127_v49, -1.0  ;;  %vm3738_vm8 = vcmp.ge.f32.partialorder %v3674_v33, 25.0 }
 0x467   :  { %v4819_v48 = vpop.permute.xlu0 %4818  ;;  %v3675_v62 = vmul.f32 %v3529_v45, %v11128_v22  ;;  %v11132_v45 = vld [vmem:[#allocation181_spill] sm:$0xff]  ;;  %v4442_v33 = vsel %vm3738_vm8, %v11133_v3, -1.0  ;;  %v11136_v22 = vld [vmem:[#allocation68_spill] sm:$0xff] }
 0x468   :  { %4868 = vrot.lane.b32.xlu1 %v4441_v50, %s6395_s22  ;;  %v5057_v16 = vsel %vm784_vm0, %v4993_v2, %v4819_v48  ;;  %v11129_v50 = vld [vmem:[#allocation20_spill] sm:$0xff] }
 0x469   :  { %v5122_v20 = vsel %vm5103_vm7, %v5057_v16, 0.0  ;;  %4862 = vrot.lane.b32.xlu0 %v4438_v4, %s6395_s22  ;;  %v11131_v4 = vmin.f32 %v11130_v60, 256.0  ;;  %v4445_v16 = vsel %vm3741_vm5, %v11132_v45, -1.0  ;;  %vm3739_vm9 = vcmp.ge.f32.partialorder %v3675_v62, 25.0  ;;  %v11140_v60 = vld [vmem:[#allocation71_spill] sm:$0xff]  ;;  %v11141_v45 = vld [vmem:[#allocation62_spill] sm:$0xff] }
 0x46a   :  { %5186 = vst [vmem:[#allocation2 + $0x90] sm:$0xff] %v5122_v20  ;;  %v4821_v38 = vpop.permute.xlu1 %4820 }
 0x46b   :  { %v5058_v17 = vsel %vm784_vm0, %v4994_v40, %v4821_v38  ;;  %v4815_v56 = vpop.permute.xlu0 %4814  ;;  %v4992_v48 = vsel %vm4974_vm6, %v11131_v4, %v11129_v50  ;;  %v11134_v40 = vld [vmem:[#allocation75_spill] sm:$0xff] }
 0x46c   :  { %v5123_v44 = vsel %vm5103_vm7, %v5058_v17, 0.0  ;;  %4864 = vrot.lane.b32.xlu1 %v4439_v39, %s6395_s22  ;;  %v5055_v2 = vsel %vm784_vm0, %v4991_v15, %v4815_v56  ;;  %v4443_v38 = vsel %vm3739_vm9, %v11134_v40, -1.0  ;;  %v11135_v39 = vld [vmem:[#allocation63_spill] sm:$0xff] }
 0x46d   :  { %5187 = vst [vmem:[#allocation2 + $0x98] sm:$0xff] %v5123_v44  ;;  %v5120_v8 = vsel %vm5103_vm7, %v5055_v2, 0.0  ;;  %4874 = vrot.lane.b32.xlu0 %v4444_v37, %s6395_s22  ;;  %v11137_v2 = vld [vmem:[#allocation66_spill] sm:$0xff] }
 0x46e   :  { %5184 = vst [vmem:[#allocation2 + $0x80] sm:$0xff] %v5120_v8  ;;  %v4817_v10 = vpop.permute.xlu1 %4816  ;;  %v11138_v8 = vld [vmem:[#allocation151_spill] sm:$0xff] }
 0x46f   :  { %v5056_v28 = vsel %vm784_vm0, %v4992_v48, %v4817_v10  ;;  %v10082_v20 = vpop.permute.xlu0 %4626  ;;  %v11139_v50 = vmin.f32 %v11138_v8, 256.0 }
 0x470   :  { %v5121_v54 = vsel %vm5103_vm7, %v5056_v28, 0.0  ;;  %4876 = vrot.lane.b32.xlu1 %v4445_v16, %s6395_s22  ;;  %v11142_v16 = vld [vmem:[#allocation152_spill] sm:$0xff] }
 0x471   :  { %5185 = vst [vmem:[#allocation2 + $0x88] sm:$0xff] %v5121_v54  ;;  %4870 = vrot.lane.b32.xlu0 %v4442_v33, %s6395_s22  ;;  %v11143_v28 = vmin.f32 %v11142_v16, 256.0  ;;  %v11144_v33 = vld [vmem:[#allocation21_spill] sm:$0xff] }
 0x472   :  { %v10088_v27 = vpop.permute.xlu1 %4628 }
 0x473   :  { %v10091_v30 = vpop.permute.xlu0 %4622  ;;  %v4998_v3 = vsel %vm4974_vm6, %v11143_v28, %v11141_v45  ;;  %v11151_v45 = vld [vmem:[#allocation22_spill] sm:$0xff] }
 0x474   :  { %4872 = vrot.lane.b32.xlu1 %v4443_v38, %s6395_s22  ;;  %v11146_v38 = vld [vmem:[#allocation153_spill] sm:$0xff] }
 0x476   :  { %v10094_v58 = vpop.permute.xlu1 %4624 }
 0x477   :  { %v3539_v18 = vpop.permute.xlu0 %3538 }
 0x478   :  { %v3680_v15 = vmul.f32 %v3539_v18, %v9575_v47  ;;  %v4997_v47 = vsel %vm4974_vm6, %v11139_v50, %v11137_v2  ;;  %v11147_v18 = vmin.f32 %v11146_v38, 256.0  ;;  %v11153_v38 = vld [vmem:[#allocation25_spill] sm:$0xff] }
 0x47a   :  { %vm3744_vm10 = vcmp.ge.f32.partialorder %v3680_v15, 25.0  ;;  %v3541_v9 = vpop.permute.xlu1 %3540 }
 0x47b   :  { %v4448_v49 = vsel %vm3744_vm10, %v11135_v39, -1.0  ;;  %v3681_v37 = vmul.f32 %v3541_v9, %v9595_v46  ;;  %v3535_v17 = vpop.permute.xlu0 %3534 }
 0x47c   :  { %v3678_v56 = vmul.f32 %v3535_v17, %v9600_v21  ;;  %4882 = vrot.lane.b32.xlu0 %v4448_v49, %s6395_s22 }
 0x47d   :  { %vm3745_vm11 = vcmp.ge.f32.partialorder %v3681_v37, 25.0 }
 0x47e   :  { %v4449_v62 = vsel %vm3745_vm11, %v11136_v22, -1.0  ;;  %vm3742_vm12 = vcmp.ge.f32.partialorder %v3678_v56, 25.0  ;;  %v3537_v44 = vpop.permute.xlu1 %3536  ;;  %v11148_v56 = vld [vmem:[#allocation24_spill] sm:$0xff]  ;;  %v11149_v22 = vld [vmem:[#allocation154_spill] sm:$0xff] }
 0x47f   :  { %v4446_v4 = vsel %vm3742_vm12, %v11140_v60, -1.0  ;;  %v3679_v48 = vmul.f32 %v3537_v44, %v9623_v26  ;;  %4884 = vrot.lane.b32.xlu1 %v4449_v62, %s6395_s22  ;;  %v4827_v46 = vpop.permute.xlu0 %4826  ;;  %v11145_v26 = vld [vmem:[#allocation80_spill] sm:$0xff]  ;;  %v11150_v62 = vmin.f32 %v11149_v22, 256.0 }
 0x480   :  { %v5061_v21 = vsel %vm784_vm0, %v4997_v47, %v4827_v46  ;;  %4878 = vrot.lane.b32.xlu0 %v4446_v4, %s6395_s22  ;;  %v4995_v15 = vsel %vm4974_vm6, %v11147_v18, %v11145_v26  ;;  %v11154_v18 = vld [vmem:[#allocation163_spill] sm:$0xff] }
 0x481   :  { %vm3743_vm13 = vcmp.ge.f32.partialorder %v3679_v48, 25.0  ;;  %v5126_v10 = vsel %vm5103_vm7, %v5061_v21, 0.0  ;;  %v4996_v44 = vsel %vm4974_vm6, %v11150_v62, %v11148_v56  ;;  %v11158_v56 = vld [vmem:[#allocation164_spill] sm:$0xff] }
 0x482   :  { %v4447_v54 = vsel %vm3743_vm13, %v11144_v33, -1.0  ;;  %5190 = vst [vmem:[#allocation2 + $0xb0] sm:$0xff] %v5126_v10  ;;  %v4829_v40 = vpop.permute.xlu1 %4828  ;;  %v11159_v22 = vmin.f32 %v11158_v56, 256.0 }
 0x483   :  { %v5062_v9 = vsel %vm784_vm0, %v4998_v3, %v4829_v40  ;;  %4880 = vrot.lane.b32.xlu1 %v4447_v54, %s6395_s22  ;;  %v4823_v39 = vpop.permute.xlu0 %4822  ;;  %v11152_v54 = vld [vmem:[#allocation86_spill] sm:$0xff] }
 0x484   :  { %v5127_v49 = vsel %vm5103_vm7, %v5062_v9, 0.0  ;;  %v5059_v37 = vsel %vm784_vm0, %v4995_v15, %v4823_v39  ;;  %v11155_v15 = vmin.f32 %v11154_v18, 256.0  ;;  %v11156_v9 = vld [vmem:[#allocation97_spill] sm:$0xff] }
 0x485   :  { %5191 = vst [vmem:[#allocation2 + $0xb8] sm:$0xff] %v5127_v49  ;;  %v5124_v17 = vsel %vm5103_vm7, %v5059_v37, 0.0 }
 0x486   :  { %5188 = vst [vmem:[#allocation2 + $0xa0] sm:$0xff] %v5124_v17  ;;  %v4825_v2 = vpop.permute.xlu1 %4824  ;;  %v11157_v17 = vld [vmem:[#allocation74_spill] sm:$0xff] }
 0x487   :  { %v5060_v8 = vsel %vm784_vm0, %v4996_v44, %v4825_v2  ;;  %v10131_v50 = vpop.permute.xlu0 %4634  ;;  %v5002_v62 = vsel %vm4974_vm6, %v11159_v22, %v11157_v17  ;;  %v11160_v44 = vld [vmem:[#allocation76_spill] sm:$0xff] }
 0x488   :  { %v5125_v47 = vsel %vm5103_vm7, %v5060_v8, 0.0  ;;  %v11167_v17 = vld [vmem:[#allocation32_spill] sm:$0xff] }
 0x489   :  { %5189 = vst [vmem:[#allocation2 + $0xa8] sm:$0xff] %v5125_v47  ;;  %v11162_v47 = vld [vmem:[#allocation165_spill] sm:$0xff] }
 0x48a   :  { %v10134_v60 = vpop.permute.xlu1 %4636 }
 0x48b   :  { %v10136_v4 = vpop.permute.xlu0 %4630 }
 0x48e   :  { %v10138_v48 = vpop.permute.xlu1 %4632 }
 0x48f   :  { %v3547_v46 = vpop.permute.xlu0 %3546 }
 0x490   :  { %v3684_v21 = vmul.f32 %v3547_v46, %v9689_v32  ;;  %v5001_v32 = vsel %vm4974_vm6, %v11155_v15, %v11153_v38  ;;  %v11163_v46 = vmin.f32 %v11162_v47, 256.0  ;;  %v11169_v47 = vld [vmem:[#allocation26_spill] sm:$0xff] }
 0x492   :  { %vm3748_vm14 = vcmp.ge.f32.partialorder %v3684_v21, 25.0  ;;  %v3549_v10 = vpop.permute.xlu1 %3548 }
 0x493   :  { %v4452_v16 = vsel %vm3748_vm14, %v11151_v45, -1.0  ;;  %v3685_v28 = vmul.f32 %v3549_v10, %v9703_v0  ;;  %v3543_v3 = vpop.permute.xlu0 %3542 }
 0x494   :  { %v3682_v33 = vmul.f32 %v3543_v3, %v9714_v1  ;;  %4890 = vrot.lane.b32.xlu0 %v4452_v16, %s6395_s22 }
 0x495   :  { %vm3749_vm15 = vcmp.ge.f32.partialorder %v3685_v28, 25.0 }
 0x496   :  { %v4453_v40 = vsel %vm3749_vm15, %v11152_v54, -1.0  ;;  %vm3746_vm1 = vcmp.ge.f32.partialorder %v3682_v33, 25.0  ;;  %v3545_v26 = vpop.permute.xlu1 %3544  ;;  %v11164_v33 = vld [vmem:[#allocation29_spill] sm:$0xff]  ;;  %v11165_v54 = vld [vmem:[#allocation166_spill] sm:$0xff] }
 0x497   :  { %v4450_v39 = vsel %vm3746_vm1, %v11156_v9, -1.0  ;;  %v3683_v49 = vmul.f32 %v3545_v26, %v9745_v59  ;;  %4892 = vrot.lane.b32.xlu1 %v4453_v40, %s6395_s22  ;;  %v4835_v0 = vpop.permute.xlu0 %4834  ;;  %v11161_v59 = vld [vmem:[#allocation79_spill] sm:$0xff]  ;;  %v11166_v40 = vmin.f32 %v11165_v54, 256.0 }
 0x498   :  { %v5065_v1 = vsel %vm784_vm0, %v5001_v32, %v4835_v0  ;;  %4886 = vrot.lane.b32.xlu0 %v4450_v39, %s6395_s22  ;;  %v4999_v21 = vsel %vm4974_vm6, %v11163_v46, %v11161_v59  ;;  %v11170_v46 = vld [vmem:[#allocation174_spill] sm:$0xff] }
 0x499   :  { %vm3747_vm2 = vcmp.ge.f32.partialorder %v3683_v49, 25.0  ;;  %v5130_v37 = vsel %vm5103_vm7, %v5065_v1, 0.0  ;;  %v5000_v26 = vsel %vm4974_vm6, %v11166_v40, %v11164_v33  ;;  %v11174_v33 = vld [vmem:[#allocation175_spill] sm:$0xff] }
 0x49a   :  { %v4451_v2 = vsel %vm3747_vm2, %v11160_v44, -1.0  ;;  %5194 = vst [vmem:[#allocation2 + $0xd0] sm:$0xff] %v5130_v37  ;;  %v4837_v8 = vpop.permute.xlu1 %4836  ;;  %v11175_v54 = vmin.f32 %v11174_v33, 256.0 }
 0x49b   :  { %v5066_v10 = vsel %vm784_vm0, %v5002_v62, %v4837_v8  ;;  %4888 = vrot.lane.b32.xlu1 %v4451_v2, %s6395_s22  ;;  %v4831_v45 = vpop.permute.xlu0 %4830  ;;  %v11168_v2 = vld [vmem:[#allocation115_spill] sm:$0xff] }
 0x49c   :  { %v5131_v16 = vsel %vm5103_vm7, %v5066_v10, 0.0  ;;  %v5063_v28 = vsel %vm784_vm0, %v4999_v21, %v4831_v45  ;;  %v11171_v21 = vmin.f32 %v11170_v46, 256.0  ;;  %v11172_v10 = vld [vmem:[#allocation82_spill] sm:$0xff] }
 0x49d   :  { %5195 = vst [vmem:[#allocation2 + $0xd8] sm:$0xff] %v5131_v16  ;;  %v5128_v3 = vsel %vm5103_vm7, %v5063_v28, 0.0 }
 0x49e   :  { %5192 = vst [vmem:[#allocation2 + $0xc0] sm:$0xff] %v5128_v3  ;;  %v4833_v38 = vpop.permute.xlu1 %4832  ;;  %v11173_v3 = vld [vmem:[#allocation108_spill] sm:$0xff] }
 0x49f   :  { %v5064_v18 = vsel %vm784_vm0, %v5000_v26, %v4833_v38  ;;  %v10175_v15 = vpop.permute.xlu0 %4642  ;;  %v5006_v40 = vsel %vm4974_vm6, %v11175_v54, %v11173_v3  ;;  %v11176_v26 = vld [vmem:[#allocation87_spill] sm:$0xff] }
 0x4a0   :  { %v5129_v32 = vsel %vm5103_vm7, %v5064_v18, 0.0 }
 0x4a1   :  { %5193 = vst [vmem:[#allocation2 + $0xc8] sm:$0xff] %v5129_v32  ;;  %v11178_v32 = vld [vmem:[#allocation176_spill] sm:$0xff] }
 0x4a2   :  { %v10178_v9 = vpop.permute.xlu1 %4644 }
 0x4a3   :  { %v10180_v39 = vpop.permute.xlu0 %4638 }
 0x4a6   :  { %v10182_v49 = vpop.permute.xlu1 %4640 }
 0x4a7   :  { %v3555_v0 = vpop.permute.xlu0 %3554 }
 0x4a8   :  { %v3688_v1 = vmul.f32 %v3555_v0, %v9816_v57  ;;  %v5005_v57 = vsel %vm4974_vm6, %v11171_v21, %v11169_v47  ;;  %v11179_v0 = vmin.f32 %v11178_v32, 256.0 }
 0x4aa   :  { %vm3752_vm3 = vcmp.ge.f32.partialorder %v3688_v1, 25.0  ;;  %v3557_v37 = vpop.permute.xlu1 %3556 }
 0x4ab   :  { %v4456_v56 = vsel %vm3752_vm3, %v11167_v17, -1.0  ;;  %v3689_v22 = vmul.f32 %v3557_v37, %v9830_v41  ;;  %v3551_v62 = vpop.permute.xlu0 %3550 }
 0x4ac   :  { %v3686_v44 = vmul.f32 %v3551_v62, %v9841_v61  ;;  %4898 = vrot.lane.b32.xlu0 %v4456_v56, %s6395_s22 }
 0x4ad   :  { %vm3753_vm4 = vcmp.ge.f32.partialorder %v3689_v22, 25.0 }
 0x4ae   :  { %v4457_v8 = vsel %vm3753_vm4, %v11168_v2, -1.0  ;;  %vm3750_vm5 = vcmp.ge.f32.partialorder %v3686_v44, 25.0  ;;  %v3553_v59 = vpop.permute.xlu1 %3552  ;;  %v11180_v44 = vld [vmem:[#allocation90_spill] sm:$0xff]  ;;  %v11181_v2 = vld [vmem:[#allocation177_spill] sm:$0xff] }
 0x4af   :  { %v4454_v45 = vsel %vm3750_vm5, %v11172_v10, -1.0  ;;  %v3687_v16 = vmul.f32 %v3553_v59, %v9872_v55  ;;  %4900 = vrot.lane.b32.xlu1 %v4457_v8, %s6395_s22  ;;  %v4843_v41 = vpop.permute.xlu0 %4842  ;;  %v11177_v55 = vld [vmem:[#allocation85_spill] sm:$0xff]  ;;  %v11182_v8 = vmin.f32 %v11181_v2, 256.0  ;;  %v11192_v2 = vld [vmem:[#allocation36_spill] sm:$0xff] }
 0x4b0   :  { %v5069_v61 = vsel %vm784_vm0, %v5005_v57, %v4843_v41  ;;  %4894 = vrot.lane.b32.xlu0 %v4454_v45, %s6395_s22  ;;  %v5003_v1 = vsel %vm4974_vm6, %v11179_v0, %v11177_v55 }
 0x4b1   :  { %vm3751_vm8 = vcmp.ge.f32.partialorder %v3687_v16, 25.0  ;;  %v5134_v28 = vsel %vm5103_vm7, %v5069_v61, 0.0  ;;  %v5004_v59 = vsel %vm4974_vm6, %v11182_v8, %v11180_v44 }
 0x4b2   :  { %v4455_v38 = vsel %vm3751_vm8, %v11176_v26, -1.0  ;;  %5198 = vst [vmem:[#allocation2 + $0xf0] sm:$0xff] %v5134_v28  ;;  %v4845_v18 = vpop.permute.xlu1 %4844 }
 0x4b3   :  { %v5070_v37 = vsel %vm784_vm0, %v5006_v40, %v4845_v18  ;;  %4896 = vrot.lane.b32.xlu1 %v4455_v38, %s6395_s22  ;;  %v4839_v17 = vpop.permute.xlu0 %4838  ;;  %v11183_v40 = vld [vmem:[#allocation73_spill] sm:$0xff] }
 0x4b4   :  { %v5135_v56 = vsel %vm5103_vm7, %v5070_v37, 0.0  ;;  %v5067_v22 = vsel %vm784_vm0, %v5003_v1, %v4839_v17  ;;  %v11184_v26 = vmin.f32 %v11183_v40, 256.0  ;;  %v11186_v37 = vld [vmem:[#allocation64_spill] sm:$0xff] }
 0x4b5   :  { %5199 = vst [vmem:[#allocation2 + $0xf8] sm:$0xff] %v5135_v56  ;;  %v5132_v62 = vsel %vm5103_vm7, %v5067_v22, 0.0  ;;  %v11187_v17 = vmin.f32 %v11186_v37, 256.0  ;;  %v11188_v56 = vld [vmem:[#allocation96_spill] sm:$0xff]  ;;  %v11189_v22 = vld [vmem:[#allocation41_spill] sm:$0xff]  ;;  %v11199_v37 = vld [vmem:[#allocation83_spill] sm:$0xff] }
 0x4b6   :  { %5196 = vst [vmem:[#allocation2 + $0xe0] sm:$0xff] %v5132_v62  ;;  %v4841_v47 = vpop.permute.xlu1 %4840  ;;  %v5009_v38 = vsel %vm4974_vm6, %v11184_v26, %v9630_v63 }
 0x4b7   :  { %v5068_v46 = vsel %vm784_vm0, %v5004_v59, %v4841_v47  ;;  %v10219_v21 = vpop.permute.xlu0 %4650 }
 0x4b8   :  { %v5133_v57 = vsel %vm5103_vm7, %v5068_v46, 0.0 }
 0x4b9   :  { %5197 = vst [vmem:[#allocation2 + $0xe8] sm:$0xff] %v5133_v57 }
 0x4ba   :  { %v10222_v10 = vpop.permute.xlu1 %4652 }
 0x4bb   :  { %v10224_v45 = vpop.permute.xlu0 %4646 }
 0x4be   :  { %v10226_v16 = vpop.permute.xlu1 %4648 }
 0x4bf   :  { %v3563_v41 = vpop.permute.xlu0 %3562 }
 0x4c0   :  { %v3692_v3 = vmul.f32 %v3563_v41, %v9943_v51 }
 0x4c2   :  { %v3565_v61 = vpop.permute.xlu1 %3564  ;;  %vm3756_vm10 = vcmp.ge.f32.partialorder %v3692_v3, 25.0 }
 0x4c3   :  { %v3559_v28 = vpop.permute.xlu0 %3558  ;;  %v3693_v18 = vmul.f32 %v3565_v61, %v9955_v14  ;;  %v4460_v8 = vsel %vm3756_vm10, %v11192_v2, -1.0  ;;  %v11193_v61 = vld [vmem:[#allocation145_spill] sm:$0xff] }
 0x4c4   :  { %v3690_v33 = vmul.f32 %v3559_v28, %v9966_v31  ;;  %v11185_v31 = vld [vmem:[#allocation98_spill] sm:$0xff]  ;;  %v11194_v28 = vld [vmem:[#allocation77_spill] sm:$0xff] }
 0x4c5   :  { %v5010_v63 = vsel %vm4974_vm6, %v11187_v17, %v11185_v31  ;;  %vm3757_vm12 = vcmp.ge.f32.partialorder %v3693_v18, 25.0  ;;  %v11195_v3 = vmin.f32 %v11194_v28, 256.0  ;;  %v11200_v17 = vmin.f32 %v11199_v37, 256.0 }
 0x4c6   :  { %vm3754_vm9 = vcmp.ge.f32.partialorder %v3690_v33, 25.0  ;;  %v3561_v54 = vpop.permute.xlu1 %3560 }
 0x4c7   :  { %v4458_v55 = vsel %vm3754_vm9, %v9650_v7, -1.0  ;;  %v3691_v32 = vmul.f32 %v3561_v54, %v9988_v25  ;;  %v4851_v0 = vpop.permute.xlu0 %4850  ;;  %v11190_v25 = vld [vmem:[#allocation23_spill] sm:$0xff]  ;;  %v5008_v33 = vsel %vm4974_vm6, %v11195_v3, %v11193_v61  ;;  %v11196_v54 = vld [vmem:[#allocation94_spill] sm:$0xff] }
 0x4c8   :  { %v5073_v1 = vsel %vm784_vm0, %v5009_v38, %v4851_v0  ;;  %4902 = vrot.lane.b32.xlu0 %v4458_v55, %s6395_s22  ;;  %v11191_v62 = vmin.f32 %v11190_v25, 256.0  ;;  %v4461_v40 = vsel %vm3757_vm12, %v11196_v54, -1.0  ;;  %v11197_v38 = vld [vmem:[#allocation91_spill] sm:$0xff]  ;;  %v11207_v54 = vld [vmem:[#allocation100_spill] sm:$0xff] }
 0x4c9   :  { %vm3755_vm11 = vcmp.ge.f32.partialorder %v3691_v32, 25.0  ;;  %v5138_v51 = vsel %vm5103_vm7, %v5073_v1, 0.0  ;;  %v11198_v18 = vmin.f32 %v11197_v38, 256.0  ;;  %v11209_v38 = vld [vmem:[#allocation111_spill] sm:$0xff] }
 0x4ca   :  { %v4459_v14 = vsel %vm3755_vm11, %v11188_v56, -1.0  ;;  %5202 = vst [vmem:[#allocation2 + $0x110] sm:$0xff] %v5138_v51  ;;  %v4853_v7 = vpop.permute.xlu1 %4852  ;;  %v5007_v44 = vsel %vm4974_vm6, %v11191_v62, %v11189_v22 }
 0x4cb   :  { %v5074_v59 = vsel %vm784_vm0, %v5010_v63, %v4853_v7  ;;  %4904 = vrot.lane.b32.xlu1 %v4459_v14, %s6395_s22  ;;  %v4847_v47 = vpop.permute.xlu0 %4846  ;;  %v5013_v55 = vsel %vm4974_vm6, %v11198_v18, %v9775_v52  ;;  %v5014_v63 = vsel %vm4974_vm6, %v11200_v17, %v9788_v29  ;;  %v11201_v52 = vld [vmem:[#allocation27_spill] sm:$0xff] }
 0x4cc   :  { %v5139_v46 = vsel %vm5103_vm7, %v5074_v59, 0.0  ;;  %v5071_v57 = vsel %vm784_vm0, %v5007_v44, %v4847_v47  ;;  %4906 = vrot.lane.b32.xlu0 %v4460_v8, %s6395_s22  ;;  %v11202_v14 = vmin.f32 %v11201_v52, 256.0  ;;  %v11203_v8 = vld [vmem:[#allocation95_spill] sm:$0xff] }
 0x4cd   :  { %5203 = vst [vmem:[#allocation2 + $0x118] sm:$0xff] %v5139_v46  ;;  %v5136_v41 = vsel %vm5103_vm7, %v5071_v57, 0.0  ;;  %v11204_v29 = vmin.f32 %v11203_v8, 256.0  ;;  %v11205_v46 = vld [vmem:[#allocation78_spill] sm:$0xff] }
 0x4ce   :  { %5200 = vst [vmem:[#allocation2 + $0x100] sm:$0xff] %v5136_v41  ;;  %v4849_v26 = vpop.permute.xlu1 %4848  ;;  %v5011_v7 = vsel %vm4974_vm6, %v11202_v14, %v9793_v35  ;;  %v11206_v35 = vmin.f32 %v11205_v46, 256.0  ;;  %v11217_v8 = vld [vmem:[#allocation30_spill] sm:$0xff] }
 0x4cf   :  { %v5072_v32 = vsel %vm784_vm0, %v5008_v33, %v4849_v26  ;;  %4908 = vrot.lane.b32.xlu1 %v4461_v40, %s6395_s22  ;;  %v4859_v0 = vpop.permute.xlu0 %4858  ;;  %v5012_v59 = vsel %vm4974_vm6, %v11204_v29, %v9800_v53  ;;  %v11208_v53 = vmin.f32 %v11207_v54, 256.0 }
 0x4d0   :  { %v5137_v1 = vsel %vm5103_vm7, %v5072_v32, 0.0  ;;  %v5077_v51 = vsel %vm784_vm0, %v5013_v55, %v4859_v0  ;;  %v5017_v57 = vsel %vm4974_vm6, %v11206_v35, %v9902_v5  ;;  %v11210_v5 = vmin.f32 %v11209_v38, 256.0 }
 0x4d1   :  { %5201 = vst [vmem:[#allocation2 + $0x108] sm:$0xff] %v5137_v1  ;;  %v5142_v31 = vsel %vm5103_vm7, %v5077_v51, 0.0  ;;  %v5018_v40 = vsel %vm4974_vm6, %v11208_v53, %v9915_v34 }
 0x4d2   :  { %5206 = vst [vmem:[#allocation2 + $0x130] sm:$0xff] %v5142_v31  ;;  %v4861_v56 = vpop.permute.xlu1 %4860  ;;  %v5015_v18 = vsel %vm4974_vm6, %v11210_v5, %v9920_v23  ;;  %v11211_v31 = vld [vmem:[#allocation102_spill] sm:$0xff] }
 0x4d3   :  { %v5078_v22 = vsel %vm784_vm0, %v5014_v63, %v4861_v56  ;;  %v4855_v25 = vpop.permute.xlu0 %4854  ;;  %v11212_v34 = vmin.f32 %v11211_v31, 256.0  ;;  %v11213_v63 = vld [vmem:[#allocation106_spill] sm:$0xff] }
 0x4d4   :  { %v5143_v62 = vsel %vm5103_vm7, %v5078_v22, 0.0  ;;  %v5075_v44 = vsel %vm784_vm0, %v5011_v7, %v4855_v25  ;;  %v11214_v23 = vmin.f32 %v11213_v63, 256.0  ;;  %v11223_v5 = vld [vmem:[#allocation122_spill] sm:$0xff] }
 0x4d5   :  { %5207 = vst [vmem:[#allocation2 + $0x138] sm:$0xff] %v5143_v62  ;;  %v5140_v2 = vsel %vm5103_vm7, %v5075_v44, 0.0  ;;  %v5016_v37 = vsel %vm4974_vm6, %v11212_v34, %v9927_v13  ;;  %v11215_v62 = vld [vmem:[#allocation113_spill] sm:$0xff] }
 0x4d6   :  { %5204 = vst [vmem:[#allocation2 + $0x120] sm:$0xff] %v5140_v2  ;;  %v4857_v47 = vpop.permute.xlu1 %4856  ;;  %v5021_v56 = vsel %vm4974_vm6, %v11214_v23, %v10009_v24  ;;  %v11216_v13 = vmin.f32 %v11215_v62, 256.0  ;;  %v11218_v24 = vmin.f32 %v11217_v8, 256.0  ;;  %v11233_v8 = vld [vmem:[#allocation28_spill] sm:$0xff] }
 0x4d7   :  { %v5076_v41 = vsel %vm784_vm0, %v5012_v59, %v4857_v47  ;;  %v4867_v61 = vpop.permute.xlu0 %4866 }
 0x4d8   :  { %v5141_v28 = vsel %vm5103_vm7, %v5076_v41, 0.0  ;;  %v5081_v3 = vsel %vm784_vm0, %v5017_v57, %v4867_v61  ;;  %v5022_v44 = vsel %vm4974_vm6, %v11216_v13, %v10018_v11  ;;  %v5019_v29 = vsel %vm4974_vm6, %v11218_v24, %v10022_v12  ;;  %v11219_v41 = vld [vmem:[#allocation117_spill] sm:$0xff]  ;;  %v11231_v13 = vld [vmem:[#allocation144_spill] sm:$0xff] }
 0x4d9   :  { %5205 = vst [vmem:[#allocation2 + $0x128] sm:$0xff] %v5141_v28  ;;  %v5146_v33 = vsel %vm5103_vm7, %v5081_v3, 0.0  ;;  %v11220_v11 = vmin.f32 %v11219_v41, 256.0  ;;  %v11234_v24 = vmin.f32 %v11233_v8, 256.0 }
 0x4da   :  { %5210 = vst [vmem:[#allocation2 + $0x150] sm:$0xff] %v5146_v33  ;;  %v4869_v26 = vpop.permute.xlu1 %4868  ;;  %v11221_v33 = vld [vmem:[#allocation40_spill] sm:$0xff] }
 0x4db   :  { %v5082_v55 = vsel %vm784_vm0, %v5018_v40, %v4869_v26  ;;  %v4863_v32 = vpop.permute.xlu0 %4862  ;;  %v5020_v61 = vsel %vm4974_vm6, %v11220_v11, %v10030_v42  ;;  %v11222_v54 = vmin.f32 %v11221_v33, 256.0  ;;  %v11224_v42 = vmin.f32 %v11223_v5, 256.0  ;;  %v11241_v5 = vld [vmem:[#allocation147_spill] sm:$0xff] }
 0x4dc   :  { %v5147_v0 = vsel %vm5103_vm7, %v5082_v55, 0.0  ;;  %v5079_v1 = vsel %vm784_vm0, %v5015_v18, %v4863_v32  ;;  %v11225_v32 = vld [vmem:[#allocation31_spill] sm:$0xff] }
 0x4dd   :  { %5211 = vst [vmem:[#allocation2 + $0x158] sm:$0xff] %v5147_v0  ;;  %v5144_v51 = vsel %vm5103_vm7, %v5079_v1, 0.0  ;;  %v5025_v53 = vsel %vm4974_vm6, %v11222_v54, %v10082_v20  ;;  %v5026_v18 = vsel %vm4974_vm6, %v11224_v42, %v10088_v27  ;;  %v11226_v0 = vmin.f32 %v11225_v32, 256.0 }
 0x4de   :  { %5208 = vst [vmem:[#allocation2 + $0x140] sm:$0xff] %v5144_v51  ;;  %v4865_v17 = vpop.permute.xlu1 %4864  ;;  %v11242_v42 = vmin.f32 %v11241_v5, 256.0 }
 0x4df   :  { %v5080_v52 = vsel %vm784_vm0, %v5016_v37, %v4865_v17  ;;  %v4875_v14 = vpop.permute.xlu0 %4874  ;;  %v5023_v1 = vsel %vm4974_vm6, %v11226_v0, %v10091_v30  ;;  %v11227_v17 = vld [vmem:[#allocation125_spill] sm:$0xff] }
 0x4e0   :  { %v5145_v7 = vsel %vm5103_vm7, %v5080_v52, 0.0  ;;  %v5085_v22 = vsel %vm784_vm0, %v5021_v56, %v4875_v14  ;;  %v11228_v27 = vmin.f32 %v11227_v17, 256.0  ;;  %v11229_v52 = vld [vmem:[#allocation99_spill] sm:$0xff] }
 0x4e1   :  { %5209 = vst [vmem:[#allocation2 + $0x148] sm:$0xff] %v5145_v7  ;;  %v5150_v25 = vsel %vm5103_vm7, %v5085_v22, 0.0  ;;  %v11230_v14 = vmin.f32 %v11229_v52, 256.0 }
 0x4e2   :  { %5214 = vst [vmem:[#allocation2 + $0x170] sm:$0xff] %v5150_v25  ;;  %v4877_v2 = vpop.permute.xlu1 %4876  ;;  %v5024_v63 = vsel %vm4974_vm6, %v11228_v27, %v10094_v58  ;;  %v11232_v58 = vmin.f32 %v11231_v13, 256.0 }
 0x4e3   :  { %v5086_v59 = vsel %vm784_vm0, %v5022_v44, %v4877_v2  ;;  %v4871_v47 = vpop.permute.xlu0 %4870  ;;  %v5029_v7 = vsel %vm4974_vm6, %v11230_v14, %v10131_v50 }
 0x4e4   :  { %v5151_v46 = vsel %vm5103_vm7, %v5086_v59, 0.0  ;;  %v5083_v35 = vsel %vm784_vm0, %v5019_v29, %v4871_v47  ;;  %v5030_v44 = vsel %vm4974_vm6, %v11232_v58, %v10134_v60  ;;  %v5027_v29 = vsel %vm4974_vm6, %v11234_v24, %v10136_v4 }
 0x4e5   :  { %5215 = vst [vmem:[#allocation2 + $0x178] sm:$0xff] %v5151_v46  ;;  %v5148_v57 = vsel %vm5103_vm7, %v5083_v35, 0.0 }
 0x4e6   :  { %5212 = vst [vmem:[#allocation2 + $0x160] sm:$0xff] %v5148_v57  ;;  %v4873_v28 = vpop.permute.xlu1 %4872  ;;  %v11235_v57 = vld [vmem:[#allocation48_spill] sm:$0xff] }
 0x4e7   :  { %v5084_v3 = vsel %vm784_vm0, %v5020_v61, %v4873_v28  ;;  %v11236_v60 = vmin.f32 %v11235_v57, 256.0  ;;  %v11237_v28 = vld [vmem:[#allocation6_spill] sm:$0xff] }
 0x4e8   :  { %v5149_v12 = vsel %vm5103_vm7, %v5084_v3, 0.0  ;;  %v11238_v3 = vmin.f32 %v11237_v28, 256.0 }
 0x4e9   :  { %5213 = vst [vmem:[#allocation2 + $0x168] sm:$0xff] %v5149_v12  ;;  %v5028_v41 = vsel %vm4974_vm6, %v11236_v60, %v10138_v48 }
 0x4ea   :  { %v5033_v12 = vsel %vm4974_vm6, %v11238_v3, %v10175_v15 }
 0x4ee   :  { %v4883_v40 = vpop.permute.xlu0 %4882 }
 0x4ef   :  { %v5089_v26 = vsel %vm784_vm0, %v5025_v53, %v4883_v40  ;;  %v11239_v40 = vld [vmem:[#allocation39_spill] sm:$0xff] }
 0x4f0   :  { %v5154_v38 = vsel %vm5103_vm7, %v5089_v26, 0.0  ;;  %v11240_v48 = vmin.f32 %v11239_v40, 256.0 }
 0x4f1   :  { %5218 = vst [vmem:[#allocation2 + $0x190] sm:$0xff] %v5154_v38  ;;  %v4885_v55 = vpop.permute.xlu1 %4884 }
 0x4f2   :  { %v5090_v51 = vsel %vm784_vm0, %v5026_v18, %v4885_v55  ;;  %v4879_v20 = vpop.permute.xlu0 %4878  ;;  %v5034_v26 = vsel %vm4974_vm6, %v11240_v48, %v10178_v9  ;;  %v5031_v18 = vsel %vm4974_vm6, %v11242_v42, %v10180_v39  ;;  %v11243_v9 = vmin.f32 %v9810_v36, 256.0 }
 0x4f3   :  { %v5155_v31 = vsel %vm5103_vm7, %v5090_v51, 0.0  ;;  %v5087_v34 = vsel %vm784_vm0, %v5023_v1, %v4879_v20  ;;  %v5036_v36 = vsel %vm4974_vm6, %v3115_v19, %v10226_v16  ;;  %v11247_v19 = vld [vmem:[#allocation138_spill] sm:$0xff] }
 0x4f4   :  { %5219 = vst [vmem:[#allocation2 + $0x198] sm:$0xff] %v5155_v31  ;;  %v5152_v37 = vsel %vm5103_vm7, %v5087_v34, 0.0  ;;  %v5032_v51 = vsel %vm4974_vm6, %v11243_v9, %v10182_v49  ;;  %v11244_v34 = vmin.f32 %v9930_v43, 256.0  ;;  %v11248_v16 = vmin.f32 %v11247_v19, 256.0 }
 0x4f5   :  { %5216 = vst [vmem:[#allocation2 + $0x180] sm:$0xff] %v5152_v37  ;;  %v4881_v23 = vpop.permute.xlu1 %4880 }
 0x4f6   :  { %v5088_v56 = vsel %vm784_vm0, %v5024_v63, %v4881_v23  ;;  %v5035_v37 = vsel %vm4974_vm6, %v11244_v34, %v10224_v45  ;;  %v11245_v23 = vld [vmem:[#allocation33_spill] sm:$0xff] }
 0x4f7   :  { %v5153_v30 = vsel %vm5103_vm7, %v5088_v56, 0.0  ;;  %v11246_v56 = vmin.f32 %v11245_v23, 256.0 }
 0x4f8   :  { %5217 = vst [vmem:[#allocation2 + $0x188] sm:$0xff] %v5153_v30 }
 0x4f9   :  { %v5037_v30 = vsel %vm4974_vm6, %v11246_v56, %v10219_v21 }
 0x506   :  { %v4891_v22 = vpop.permute.xlu0 %4890 }
 0x507   :  { %v5093_v25 = vsel %vm784_vm0, %v5029_v7, %v4891_v22  ;;  %v5038_v7 = vsel %vm4974_vm6, %v11248_v16, %v10222_v10 }
 0x508   :  { %v5158_v62 = vsel %vm5103_vm7, %v5093_v25, 0.0 }
 0x509   :  { %5222 = vst [vmem:[#allocation2 + $0x1b0] sm:$0xff] %v5158_v62  ;;  %v4893_v2 = vpop.permute.xlu1 %4892 }
 0x50a   :  { %v5094_v59 = vsel %vm784_vm0, %v5030_v44, %v4893_v2  ;;  %v4887_v50 = vpop.permute.xlu0 %4886 }
 0x50b   :  { %v5159_v47 = vsel %vm5103_vm7, %v5094_v59, 0.0  ;;  %v5091_v46 = vsel %vm784_vm0, %v5027_v29, %v4887_v50 }
 0x50c   :  { %5223 = vst [vmem:[#allocation2 + $0x1b8] sm:$0xff] %v5159_v47  ;;  %v5156_v35 = vsel %vm5103_vm7, %v5091_v46, 0.0 }
 0x50d   :  { %5220 = vst [vmem:[#allocation2 + $0x1a0] sm:$0xff] %v5156_v35  ;;  %v4889_v11 = vpop.permute.xlu1 %4888 }
 0x50e   :  { %v5092_v61 = vsel %vm784_vm0, %v5028_v41, %v4889_v11 }
 0x50f   :  { %v5157_v4 = vsel %vm5103_vm7, %v5092_v61, 0.0 }
 0x510   :  { %5221 = vst [vmem:[#allocation2 + $0x1a8] sm:$0xff] %v5157_v4 }
 0x51e   :  { %v4899_v33 = vpop.permute.xlu0 %4898 }
 0x51f   :  { %v5097_v54 = vsel %vm784_vm0, %v5033_v12, %v4899_v33 }
 0x520   :  { %v5162_v53 = vsel %vm5103_vm7, %v5097_v54, 0.0 }
 0x521   :  { %5226 = vst [vmem:[#allocation2 + $0x1d0] sm:$0xff] %v5162_v53  ;;  %v4901_v38 = vpop.permute.xlu1 %4900 }
 0x522   :  { %v5098_v55 = vsel %vm784_vm0, %v5034_v26, %v4901_v38  ;;  %v4895_v15 = vpop.permute.xlu0 %4894 }
 0x523   :  { %v5163_v32 = vsel %vm5103_vm7, %v5098_v55, 0.0  ;;  %v5095_v0 = vsel %vm784_vm0, %v5031_v18, %v4895_v15 }
 0x524   :  { %5227 = vst [vmem:[#allocation2 + $0x1d8] sm:$0xff] %v5163_v32  ;;  %v5160_v1 = vsel %vm5103_vm7, %v5095_v0, 0.0 }
 0x525   :  { %5224 = vst [vmem:[#allocation2 + $0x1c0] sm:$0xff] %v5160_v1  ;;  %v4897_v20 = vpop.permute.xlu1 %4896 }
 0x526   :  { %v5096_v31 = vsel %vm784_vm0, %v5032_v51, %v4897_v20 }
 0x527   :  { %v5161_v39 = vsel %vm5103_vm7, %v5096_v31, 0.0 }
 0x528   :  { %5225 = vst [vmem:[#allocation2 + $0x1c8] sm:$0xff] %v5161_v39 }
 0x53a   :  { %v4903_v17 = vpop.permute.xlu0 %4902 }
 0x53b   :  { %v5099_v27 = vsel %vm784_vm0, %v5035_v37, %v4903_v17 }
 0x53c   :  { %v5164_v63 = vsel %vm5103_vm7, %v5099_v27, 0.0 }
 0x53d   :  { %5228 = vst [vmem:[#allocation2 + $0x1e0] sm:$0xff] %v5164_v63  ;;  %v4905_v49 = vpop.permute.xlu1 %4904 }
 0x53e   :  { %v5100_v43 = vsel %vm784_vm0, %v5036_v36, %v4905_v49  ;;  %v4907_v45 = vpop.permute.xlu0 %4906 }
 0x53f   :  { %v5165_v52 = vsel %vm5103_vm7, %v5100_v43, 0.0  ;;  %v5101_v14 = vsel %vm784_vm0, %v5037_v30, %v4907_v45 }
 0x540   :  { %5229 = vst [vmem:[#allocation2 + $0x1e8] sm:$0xff] %v5165_v52  ;;  %v5166_v6 = vsel %vm5103_vm7, %v5101_v14, 0.0 }
 0x541   :  { %5230 = vst [vmem:[#allocation2 + $0x1f0] sm:$0xff] %v5166_v6  ;;  %v4909_v22 = vpop.permute.xlu1 %4908 }
 0x542   :  { %v5102_v21 = vsel %vm784_vm0, %v5038_v7, %v4909_v22 }
 0x543   :  { %v5167_v25 = vsel %vm5103_vm7, %v5102_v21, 0.0 }
 0x544   :  { %5231 = vst [vmem:[#allocation2 + $0x1f8] sm:$0xff] %v5167_v25 }
 0x545   :  { %6377 = shalt.err (!%p6374_p4)
}
 0x546   :  { %s6378_s8 = scalar_lea.hbm %s10450_s6, 8192 }
 0x547   :  { %p6379_p5 = scmp.ne.s32.totalorder %s10450_s6, %s6378_s8  ;;  %p6382_p6 = scmp.lt.u32.totalorder %s6378_s8, %s10450_s6 }
 0x549   :  { %p6384_p7 = pnand %p6382_p6, %p6379_p5 }
 0x54b   :  { %6387 = shalt.err (!%p6384_p7)
}
 0x54c   :  { %s6397_s12 = smov 128   ;;  %s6398_s13 = smov 8  }
 0x54d   :  { %5243 = dma.vmem_to_hbm [thread:$0]  %s5238_s0, 8192, %s10450_s6, [#allocation3], %s6397_s12, %s6397_s12, %s6398_s13  }
 0x54e   :  { %6388 = dma.done.wait [#allocation3], 8192  }
 0x54f   :  { %6389 = vsyncadd [#allocation3], 4294959104 }
 0x550   :  { %5247 = vsyncpa [#allocation3], 1 }

</bundles_post_ra>
